<compile_context>
chip_gen: v7x
topology: tpu7x:2x2x1
jax: 0.10.0
libtpu: 0.0.40
codegen_flags: <defaults>
</compile_context>

<pallas_src>
import jax
import jax.numpy as jnp
from jax import lax
from jax.experimental import pallas as pl
from jax.experimental.pallas import tpu as pltpu


def _round_up(x, m):
    return ((x + m - 1) // m) * m


def _make_kernel(H, W, C, R0, ROWS):
    HW = H * W
    bf16 = jnp.bfloat16

    def kernel(x_ref, w1_ref, b1_ref, w2_ref, b2_ref, out_ref, apad_ref):
        # x_ref   : (1, H*W, C)  f32   unpadded input (flattened NHWC)
        # w*_ref  : (3, 3C, C)   bf16  per-ky, kx-stacked weights
        # b*_ref  : (1, C)       f32
        # out_ref : (1, H*W, C)  f32
        # apad_ref: (ROWS, C)    bf16  activation rows with zero margins above/below

        # Zero only the top/bottom margins (few KiB), every step -> no dependence on
        # cross-iteration scratch state or which core runs which grid index.
        apad_ref[pl.ds(0, R0), :] = jnp.zeros((R0, C), bf16)
        apad_ref[pl.ds(R0 + HW, ROWS - R0 - HW), :] = (
            jnp.zeros((ROWS - R0 - HW, C), bf16))

        # Row masks implementing W-direction SAME padding: the kx=-1 tap is invalid
        # for output column x == 0, the kx=+1 tap for x == W-1.
        x_col = lax.broadcasted_iota(jnp.int32, (HW, 1), 0) % W
        keep_l = x_col != 0          # keep kx = -1 operand rows
        keep_r = x_col != (W - 1)    # keep kx = +1 operand rows

        def conv3x3(w_ref):
            acc = jnp.zeros((HW, C), jnp.float32)
            for ky in range(3):
                s = R0 + (ky - 1) * W - 1          # slice start for the kx=-1 tap
                a_l = apad_ref[pl.ds(s + 0, HW), :]
                a_c = apad_ref[pl.ds(s + 1, HW), :]
                a_r = apad_ref[pl.ds(s + 2, HW), :]
                a_l = jnp.where(keep_l, a_l, jnp.zeros_like(a_l))
                a_r = jnp.where(keep_r, a_r, jnp.zeros_like(a_r))
                a_k = jnp.concatenate([a_l, a_c, a_r], axis=1)   # (HW, 3C) bf16
                acc = acc + jnp.dot(a_k, w_ref[ky],
                                    preferred_element_type=jnp.float32)
            return acc

        # ---- conv1 + ReLU ----
        apad_ref[pl.ds(R0, HW), :] = x_ref[0].astype(bf16)
        mid = jnp.maximum(conv3x3(w1_ref) + b1_ref[...], 0.0)

        # ---- conv2 (reuse the same scratch; margins are still zero) ----
        apad_ref[pl.ds(R0, HW), :] = mid.astype(bf16)
        conv2 = conv3x3(w2_ref) + b2_ref[...]

        # ---- residual add with the exact f32 identity ----
        out_ref[...] = (x_ref[0] + conv2).astype(out_ref.dtype).reshape(1, HW, C)

    return kernel


def residual_block_nobn(x_nchw, w1, b1, w2, b2):
    """x_nchw: (N, C, H, W) f32; w*: (3, 3, Cin, Cout) HWIO; b*: (C,). Returns NCHW."""
    N, C, H, W = x_nchw.shape
    HW = H * W
    R0 = _round_up(W + 1, 8)                     # zero rows above the activation
    ROWS = _round_up(R0 + HW + W + 1, 8)         # total scratch rows (covers max slice)

    x_flat = jnp.transpose(x_nchw, (0, 2, 3, 1)).reshape(N, HW, C)
    # (ky, kx, Cin, Cout) -> (ky, kx*Cin, Cout): rows ordered kx-major to match the
    # kernel's concat([a_l, a_c, a_r], axis=1) contraction layout.
    w1s = w1.reshape(3, 3 * C, C).astype(jnp.bfloat16)
    w2s = w2.reshape(3, 3 * C, C).astype(jnp.bfloat16)
    b1r = b1.reshape(1, C).astype(jnp.float32)
    b2r = b2.reshape(1, C).astype(jnp.float32)

    kernel = _make_kernel(H, W, C, R0, ROWS)

    out_flat = pl.pallas_call(
        kernel,
        out_shape=jax.ShapeDtypeStruct((N, HW, C), x_nchw.dtype),
        grid_spec=pltpu.PrefetchScalarGridSpec(
            num_scalar_prefetch=0,
            grid=(N,),
            in_specs=[
                pl.BlockSpec((1, HW, C), lambda n: (n, 0, 0)),
                pl.BlockSpec((3, 3 * C, C), lambda n: (0, 0, 0)),
                pl.BlockSpec((1, C), lambda n: (0, 0)),
                pl.BlockSpec((3, 3 * C, C), lambda n: (0, 0, 0)),
                pl.BlockSpec((1, C), lambda n: (0, 0)),
            ],
            out_specs=pl.BlockSpec((1, HW, C), lambda n: (n, 0, 0)),
            scratch_shapes=[pltpu.VMEM((ROWS, C), jnp.bfloat16)],
        ),
        compiler_params=pltpu.CompilerParams(
            dimension_semantics=("parallel",)),
    )(x_flat, w1s, b1r, w2s, b2r)

    return jnp.transpose(out_flat.reshape(N, H, W, C), (0, 3, 1, 2))


def _init_conv_params(key, c, scale=0.1):
    # kaiming_normal_(a=0, mode='fan_in'): std = sqrt(2 / fan_in), fan_in = c*3*3
    std = (2.0 / (c * 3 * 3)) ** 0.5
    w = jax.random.normal(key, (3, 3, c, c), jnp.float32) * std * scale
    b = jnp.zeros((c,), jnp.float32)
    return w, b


def _reference(x_nchw, w1, b1, w2, b2):
    # Pure-JAX f32 reference (NHWC / HWIO convs) for validation.
    x = jnp.transpose(x_nchw, (0, 2, 3, 1))
    dn = ("NHWC", "HWIO", "NHWC")
    o = lax.conv_general_dilated(x, w1, (1, 1), "SAME", dimension_numbers=dn) + b1
    o = jnp.maximum(o, 0.0)
    o = lax.conv_general_dilated(o, w2, (1, 1), "SAME", dimension_numbers=dn) + b2
    return jnp.transpose(x + o, (0, 3, 1, 2))


if __name__ == "__main__":
    N, C, H, W = 2, 64, 16, 16  # nf = 64 (module default)
    key = jax.random.PRNGKey(0)
    kx, k1, k2 = jax.random.split(key, 3)
    x = jax.random.normal(kx, (N, C, H, W), jnp.float32)
    w1, b1 = _init_conv_params(k1, C)
    w2, b2 = _init_conv_params(k2, C)

    out = jax.block_until_ready(residual_block_nobn(x, w1, b1, w2, b2))
    ref = _reference(x, w1, b1, w2, b2)

    assert out.shape == (N, C, H, W)
    # bf16 matmul operands (f32 accumulation) -> relaxed tolerance vs f32 reference.
    assert jnp.allclose(out, ref, atol=2e-2, rtol=2e-2), "mismatch vs reference"
    print("KERNEL_OK")
</pallas_src>

<mosaic_0001>
module attributes {stable_mosaic.version = 11 : i64} {
  func.func @kernel(%arg0: i32, %arg1: memref<1x256x64xf32, #tpu.memory_space<vmem>>, %arg2: memref<3x192x64xbf16, #tpu.memory_space<vmem>>, %arg3: memref<1x64xf32, #tpu.memory_space<vmem>>, %arg4: memref<3x192x64xbf16, #tpu.memory_space<vmem>>, %arg5: memref<1x64xf32, #tpu.memory_space<vmem>>, %arg6: memref<1x256x64xf32, #tpu.memory_space<vmem>>, %arg7: memref<304x64xbf16, #tpu.memory_space<vmem>>) attributes {dimension_semantics = [#tpu.dimension_semantics<parallel>], iteration_bounds = array<i64: 2>, scalar_prefetch = 0 : i64, scratch_operands = 1 : i64, tpu.core_type = #tpu.core_type<tc>, window_params = [{transform_indices = @transform_0, window_bounds = array<i64: 1, 256, 64>}, {pipeline_mode = #tpu.pipeline_mode<synchronous>, transform_indices = @transform_1, window_bounds = array<i64: 3, 192, 64>}, {pipeline_mode = #tpu.pipeline_mode<synchronous>, transform_indices = @transform_2, window_bounds = array<i64: 1, 64>}, {pipeline_mode = #tpu.pipeline_mode<synchronous>, transform_indices = @transform_3, window_bounds = array<i64: 3, 192, 64>}, {pipeline_mode = #tpu.pipeline_mode<synchronous>, transform_indices = @transform_4, window_bounds = array<i64: 1, 64>}, {transform_indices = @transform_5, window_bounds = array<i64: 1, 256, 64>}]} {
    %cst = arith.constant 0.000000e+00 : bf16
    %0 = vector.broadcast %cst : bf16 to vector<24x64xbf16>
    %c0 = arith.constant 0 : index
    %c0_0 = arith.constant 0 : index
    %1 = vector.load %arg7[%c0, %c0_0] : memref<304x64xbf16, #tpu.memory_space<vmem>>, vector<24x64xbf16>
    tpu.vector_store %arg7[%c0, %c0_0], %0 {strides = array<i32>} : memref<304x64xbf16, #tpu.memory_space<vmem>>, vector<24x64xbf16>,
    %cst_1 = arith.constant 0.000000e+00 : bf16
    %2 = vector.broadcast %cst_1 : bf16 to vector<24x64xbf16>
    %c280 = arith.constant 280 : index
    %c0_2 = arith.constant 0 : index
    %3 = vector.load %arg7[%c280, %c0_2] : memref<304x64xbf16, #tpu.memory_space<vmem>>, vector<24x64xbf16>
    tpu.vector_store %arg7[%c280, %c0_2], %2 {strides = array<i32>} : memref<304x64xbf16, #tpu.memory_space<vmem>>, vector<24x64xbf16>,
    %4 = tpu.iota {dimensions = array<i32: 0>} : vector<256x1xi32>
    %c16_i32 = arith.constant 16 : i32
    %c0_i32 = arith.constant 0 : i32
    %5 = arith.cmpi eq, %c16_i32, %c0_i32 : i32
    %c1_i32 = arith.constant 1 : i32
    %6 = arith.select %5, %c1_i32, %c16_i32 : i32
    %7 = vector.broadcast %6 : i32 to vector<256x1xi32>
    %8 = arith.remsi %4, %7 : vector<256x1xi32>
    %c0_i32_3 = arith.constant 0 : i32
    %9 = vector.broadcast %c0_i32_3 : i32 to vector<256x1xi32>
    %10 = arith.cmpi ne, %8, %9 : vector<256x1xi32>
    %c0_i32_4 = arith.constant 0 : i32
    %11 = vector.broadcast %c0_i32_4 : i32 to vector<256x1xi32>
    %12 = arith.cmpi slt, %8, %11 : vector<256x1xi32>
    %c0_i32_5 = arith.constant 0 : i32
    %13 = arith.cmpi slt, %6, %c0_i32_5 : i32
    %14 = vector.broadcast %13 : i1 to vector<256x1xi1>
    %15 = vector.broadcast %14 : vector<256x1xi1> to vector<256x1xi1>
    %16 = arith.xori %12, %15 : vector<256x1xi1>
    %17 = arith.andi %16, %10 : vector<256x1xi1>
    %18 = vector.broadcast %6 : i32 to vector<256x1xi32>
    %19 = arith.addi %8, %18 : vector<256x1xi32>
    %20 = arith.select %17, %19, %8 : vector<256x1xi1>, vector<256x1xi32>
    %c0_i32_6 = arith.constant 0 : i32
    %21 = vector.broadcast %c0_i32_6 : i32 to vector<256x1xi32>
    %22 = arith.cmpi ne, %20, %21 : vector<256x1xi32>
    %c15_i32 = arith.constant 15 : i32
    %23 = vector.broadcast %c15_i32 : i32 to vector<256x1xi32>
    %24 = arith.cmpi ne, %20, %23 : vector<256x1xi32>
    %c0_7 = arith.constant 0 : index
    %c0_8 = arith.constant 0 : index
    %c0_9 = arith.constant 0 : index
    %25 = vector.load %arg1[%c0_7, %c0_8, %c0_9] : memref<1x256x64xf32, #tpu.memory_space<vmem>>, vector<1x256x64xf32>
    %26 = vector.shape_cast %25 : vector<1x256x64xf32> to vector<256x64xf32>
    %27 = arith.truncf %26 : vector<256x64xf32> to vector<256x64xbf16>
    %c24 = arith.constant 24 : index
    %c0_10 = arith.constant 0 : index
    %28 = vector.load %arg7[%c24, %c0_10] : memref<304x64xbf16, #tpu.memory_space<vmem>>, vector<256x64xbf16>
    tpu.vector_store %arg7[%c24, %c0_10], %27 {strides = array<i32>} : memref<304x64xbf16, #tpu.memory_space<vmem>>, vector<256x64xbf16>,
    %cst_11 = arith.constant 0.000000e+00 : f32
    %29 = vector.broadcast %cst_11 : f32 to vector<256x64xf32>
    %c7 = arith.constant 7 : index
    %c0_12 = arith.constant 0 : index
    %30 = vector.load %arg7[%c7, %c0_12] : memref<304x64xbf16, #tpu.memory_space<vmem>>, vector<256x64xbf16>
    %c8 = arith.constant 8 : index
    %c0_13 = arith.constant 0 : index
    %31 = vector.load %arg7[%c8, %c0_13] : memref<304x64xbf16, #tpu.memory_space<vmem>>, vector<256x64xbf16>
    %c9 = arith.constant 9 : index
    %c0_14 = arith.constant 0 : index
    %32 = vector.load %arg7[%c9, %c0_14] : memref<304x64xbf16, #tpu.memory_space<vmem>>, vector<256x64xbf16>
    %cst_15 = arith.constant 0.000000e+00 : bf16
    %33 = vector.broadcast %cst_15 : bf16 to vector<256x64xbf16>
    %34 = vector.shape_cast %22 : vector<256x1xi1> to vector<256x1xi1>
    %35 = vector.broadcast %34 : vector<256x1xi1> to vector<256x64xi1>
    %36 = arith.select %35, %30, %33 : vector<256x64xi1>, vector<256x64xbf16>
    %cst_16 = arith.constant 0.000000e+00 : bf16
    %37 = vector.broadcast %cst_16 : bf16 to vector<256x64xbf16>
    %38 = vector.shape_cast %24 : vector<256x1xi1> to vector<256x1xi1>
    %39 = vector.broadcast %38 : vector<256x1xi1> to vector<256x64xi1>
    %40 = arith.select %39, %32, %37 : vector<256x64xi1>, vector<256x64xbf16>
    %41 = tpu.concatenate %36, %31, %40 in 1 : vector<256x64xbf16>, vector<256x64xbf16>, vector<256x64xbf16> -> vector<256x192xbf16>
    %c0_17 = arith.constant 0 : index
    %c0_18 = arith.constant 0 : index
    %c0_19 = arith.constant 0 : index
    %42 = vector.load %arg2[%c0_17, %c0_18, %c0_19] : memref<3x192x64xbf16, #tpu.memory_space<vmem>>, vector<1x192x64xbf16>
    %43 = vector.shape_cast %42 : vector<1x192x64xbf16> to vector<192x64xbf16>
    %cst_20 = arith.constant dense<0.000000e+00> : vector<256x64xf32>
    %44 = tpu.matmul %41, %43, %cst_20 {dimension_numbers = #tpu.dot_dimension_numbers<[1], [0], [0], [1], [0, 0, 1, 1], [], []>} : vector<256x192xbf16>, vector<192x64xbf16>, vector<256x64xf32> -> vector<256x64xf32>
    %45 = arith.addf %29, %44 : vector<256x64xf32>
    %c23 = arith.constant 23 : index
    %c0_21 = arith.constant 0 : index
    %46 = vector.load %arg7[%c23, %c0_21] : memref<304x64xbf16, #tpu.memory_space<vmem>>, vector<256x64xbf16>
    %c24_22 = arith.constant 24 : index
    %c0_23 = arith.constant 0 : index
    %47 = vector.load %arg7[%c24_22, %c0_23] : memref<304x64xbf16, #tpu.memory_space<vmem>>, vector<256x64xbf16>
    %c25 = arith.constant 25 : index
    %c0_24 = arith.constant 0 : index
    %48 = vector.load %arg7[%c25, %c0_24] : memref<304x64xbf16, #tpu.memory_space<vmem>>, vector<256x64xbf16>
    %cst_25 = arith.constant 0.000000e+00 : bf16
    %49 = vector.broadcast %cst_25 : bf16 to vector<256x64xbf16>
    %50 = vector.shape_cast %22 : vector<256x1xi1> to vector<256x1xi1>
    %51 = vector.broadcast %50 : vector<256x1xi1> to vector<256x64xi1>
    %52 = arith.select %51, %46, %49 : vector<256x64xi1>, vector<256x64xbf16>
    %cst_26 = arith.constant 0.000000e+00 : bf16
    %53 = vector.broadcast %cst_26 : bf16 to vector<256x64xbf16>
    %54 = vector.shape_cast %24 : vector<256x1xi1> to vector<256x1xi1>
    %55 = vector.broadcast %54 : vector<256x1xi1> to vector<256x64xi1>
    %56 = arith.select %55, %48, %53 : vector<256x64xi1>, vector<256x64xbf16>
    %57 = tpu.concatenate %52, %47, %56 in 1 : vector<256x64xbf16>, vector<256x64xbf16>, vector<256x64xbf16> -> vector<256x192xbf16>
    %c1 = arith.constant 1 : index
    %c0_27 = arith.constant 0 : index
    %c0_28 = arith.constant 0 : index
    %58 = vector.load %arg2[%c1, %c0_27, %c0_28] : memref<3x192x64xbf16, #tpu.memory_space<vmem>>, vector<1x192x64xbf16>
    %59 = vector.shape_cast %58 : vector<1x192x64xbf16> to vector<192x64xbf16>
    %cst_29 = arith.constant dense<0.000000e+00> : vector<256x64xf32>
    %60 = tpu.matmul %57, %59, %cst_29 {dimension_numbers = #tpu.dot_dimension_numbers<[1], [0], [0], [1], [0, 0, 1, 1], [], []>} : vector<256x192xbf16>, vector<192x64xbf16>, vector<256x64xf32> -> vector<256x64xf32>
    %61 = arith.addf %45, %60 : vector<256x64xf32>
    %c39 = arith.constant 39 : index
    %c0_30 = arith.constant 0 : index
    %62 = vector.load %arg7[%c39, %c0_30] : memref<304x64xbf16, #tpu.memory_space<vmem>>, vector<256x64xbf16>
    %c40 = arith.constant 40 : index
    %c0_31 = arith.constant 0 : index
    %63 = vector.load %arg7[%c40, %c0_31] : memref<304x64xbf16, #tpu.memory_space<vmem>>, vector<256x64xbf16>
    %c41 = arith.constant 41 : index
    %c0_32 = arith.constant 0 : index
    %64 = vector.load %arg7[%c41, %c0_32] : memref<304x64xbf16, #tpu.memory_space<vmem>>, vector<256x64xbf16>
    %cst_33 = arith.constant 0.000000e+00 : bf16
    %65 = vector.broadcast %cst_33 : bf16 to vector<256x64xbf16>
    %66 = vector.shape_cast %22 : vector<256x1xi1> to vector<256x1xi1>
    %67 = vector.broadcast %66 : vector<256x1xi1> to vector<256x64xi1>
    %68 = arith.select %67, %62, %65 : vector<256x64xi1>, vector<256x64xbf16>
    %cst_34 = arith.constant 0.000000e+00 : bf16
    %69 = vector.broadcast %cst_34 : bf16 to vector<256x64xbf16>
    %70 = vector.shape_cast %24 : vector<256x1xi1> to vector<256x1xi1>
    %71 = vector.broadcast %70 : vector<256x1xi1> to vector<256x64xi1>
    %72 = arith.select %71, %64, %69 : vector<256x64xi1>, vector<256x64xbf16>
    %73 = tpu.concatenate %68, %63, %72 in 1 : vector<256x64xbf16>, vector<256x64xbf16>, vector<256x64xbf16> -> vector<256x192xbf16>
    %c2 = arith.constant 2 : index
    %c0_35 = arith.constant 0 : index
    %c0_36 = arith.constant 0 : index
    %74 = vector.load %arg2[%c2, %c0_35, %c0_36] : memref<3x192x64xbf16, #tpu.memory_space<vmem>>, vector<1x192x64xbf16>
    %75 = vector.shape_cast %74 : vector<1x192x64xbf16> to vector<192x64xbf16>
    %cst_37 = arith.constant dense<0.000000e+00> : vector<256x64xf32>
    %76 = tpu.matmul %73, %75, %cst_37 {dimension_numbers = #tpu.dot_dimension_numbers<[1], [0], [0], [1], [0, 0, 1, 1], [], []>} : vector<256x192xbf16>, vector<192x64xbf16>, vector<256x64xf32> -> vector<256x64xf32>
    %77 = arith.addf %61, %76 : vector<256x64xf32>
    %c0_38 = arith.constant 0 : index
    %c0_39 = arith.constant 0 : index
    %78 = vector.load %arg3[%c0_38, %c0_39] : memref<1x64xf32, #tpu.memory_space<vmem>>, vector<1x64xf32>
    %79 = vector.broadcast %78 : vector<1x64xf32> to vector<256x64xf32>
    %80 = arith.addf %77, %79 : vector<256x64xf32>
    %cst_40 = arith.constant 0.000000e+00 : f32
    %81 = vector.broadcast %cst_40 : f32 to vector<256x64xf32>
    %82 = arith.maximumf %80, %81 : vector<256x64xf32>
    %83 = arith.truncf %82 : vector<256x64xf32> to vector<256x64xbf16>
    %c24_41 = arith.constant 24 : index
    %c0_42 = arith.constant 0 : index
    %84 = vector.load %arg7[%c24_41, %c0_42] : memref<304x64xbf16, #tpu.memory_space<vmem>>, vector<256x64xbf16>
    tpu.vector_store %arg7[%c24_41, %c0_42], %83 {strides = array<i32>} : memref<304x64xbf16, #tpu.memory_space<vmem>>, vector<256x64xbf16>,
    %cst_43 = arith.constant 0.000000e+00 : f32
    %85 = vector.broadcast %cst_43 : f32 to vector<256x64xf32>
    %c7_44 = arith.constant 7 : index
    %c0_45 = arith.constant 0 : index
    %86 = vector.load %arg7[%c7_44, %c0_45] : memref<304x64xbf16, #tpu.memory_space<vmem>>, vector<256x64xbf16>
    %c8_46 = arith.constant 8 : index
    %c0_47 = arith.constant 0 : index
    %87 = vector.load %arg7[%c8_46, %c0_47] : memref<304x64xbf16, #tpu.memory_space<vmem>>, vector<256x64xbf16>
    %c9_48 = arith.constant 9 : index
    %c0_49 = arith.constant 0 : index
    %88 = vector.load %arg7[%c9_48, %c0_49] : memref<304x64xbf16, #tpu.memory_space<vmem>>, vector<256x64xbf16>
    %cst_50 = arith.constant 0.000000e+00 : bf16
    %89 = vector.broadcast %cst_50 : bf16 to vector<256x64xbf16>
    %90 = vector.shape_cast %22 : vector<256x1xi1> to vector<256x1xi1>
    %91 = vector.broadcast %90 : vector<256x1xi1> to vector<256x64xi1>
    %92 = arith.select %91, %86, %89 : vector<256x64xi1>, vector<256x64xbf16>
    %cst_51 = arith.constant 0.000000e+00 : bf16
    %93 = vector.broadcast %cst_51 : bf16 to vector<256x64xbf16>
    %94 = vector.shape_cast %24 : vector<256x1xi1> to vector<256x1xi1>
    %95 = vector.broadcast %94 : vector<256x1xi1> to vector<256x64xi1>
    %96 = arith.select %95, %88, %93 : vector<256x64xi1>, vector<256x64xbf16>
    %97 = tpu.concatenate %92, %87, %96 in 1 : vector<256x64xbf16>, vector<256x64xbf16>, vector<256x64xbf16> -> vector<256x192xbf16>
    %c0_52 = arith.constant 0 : index
    %c0_53 = arith.constant 0 : index
    %c0_54 = arith.constant 0 : index
    %98 = vector.load %arg4[%c0_52, %c0_53, %c0_54] : memref<3x192x64xbf16, #tpu.memory_space<vmem>>, vector<1x192x64xbf16>
    %99 = vector.shape_cast %98 : vector<1x192x64xbf16> to vector<192x64xbf16>
    %cst_55 = arith.constant dense<0.000000e+00> : vector<256x64xf32>
    %100 = tpu.matmul %97, %99, %cst_55 {dimension_numbers = #tpu.dot_dimension_numbers<[1], [0], [0], [1], [0, 0, 1, 1], [], []>} : vector<256x192xbf16>, vector<192x64xbf16>, vector<256x64xf32> -> vector<256x64xf32>
    %101 = arith.addf %85, %100 : vector<256x64xf32>
    %c23_56 = arith.constant 23 : index
    %c0_57 = arith.constant 0 : index
    %102 = vector.load %arg7[%c23_56, %c0_57] : memref<304x64xbf16, #tpu.memory_space<vmem>>, vector<256x64xbf16>
    %c24_58 = arith.constant 24 : index
    %c0_59 = arith.constant 0 : index
    %103 = vector.load %arg7[%c24_58, %c0_59] : memref<304x64xbf16, #tpu.memory_space<vmem>>, vector<256x64xbf16>
    %c25_60 = arith.constant 25 : index
    %c0_61 = arith.constant 0 : index
    %104 = vector.load %arg7[%c25_60, %c0_61] : memref<304x64xbf16, #tpu.memory_space<vmem>>, vector<256x64xbf16>
    %cst_62 = arith.constant 0.000000e+00 : bf16
    %105 = vector.broadcast %cst_62 : bf16 to vector<256x64xbf16>
    %106 = vector.shape_cast %22 : vector<256x1xi1> to vector<256x1xi1>
    %107 = vector.broadcast %106 : vector<256x1xi1> to vector<256x64xi1>
    %108 = arith.select %107, %102, %105 : vector<256x64xi1>, vector<256x64xbf16>
    %cst_63 = arith.constant 0.000000e+00 : bf16
    %109 = vector.broadcast %cst_63 : bf16 to vector<256x64xbf16>
    %110 = vector.shape_cast %24 : vector<256x1xi1> to vector<256x1xi1>
    %111 = vector.broadcast %110 : vector<256x1xi1> to vector<256x64xi1>
    %112 = arith.select %111, %104, %109 : vector<256x64xi1>, vector<256x64xbf16>
    %113 = tpu.concatenate %108, %103, %112 in 1 : vector<256x64xbf16>, vector<256x64xbf16>, vector<256x64xbf16> -> vector<256x192xbf16>
    %c1_64 = arith.constant 1 : index
    %c0_65 = arith.constant 0 : index
    %c0_66 = arith.constant 0 : index
    %114 = vector.load %arg4[%c1_64, %c0_65, %c0_66] : memref<3x192x64xbf16, #tpu.memory_space<vmem>>, vector<1x192x64xbf16>
    %115 = vector.shape_cast %114 : vector<1x192x64xbf16> to vector<192x64xbf16>
    %cst_67 = arith.constant dense<0.000000e+00> : vector<256x64xf32>
    %116 = tpu.matmul %113, %115, %cst_67 {dimension_numbers = #tpu.dot_dimension_numbers<[1], [0], [0], [1], [0, 0, 1, 1], [], []>} : vector<256x192xbf16>, vector<192x64xbf16>, vector<256x64xf32> -> vector<256x64xf32>
    %117 = arith.addf %101, %116 : vector<256x64xf32>
    %c39_68 = arith.constant 39 : index
    %c0_69 = arith.constant 0 : index
    %118 = vector.load %arg7[%c39_68, %c0_69] : memref<304x64xbf16, #tpu.memory_space<vmem>>, vector<256x64xbf16>
    %c40_70 = arith.constant 40 : index
    %c0_71 = arith.constant 0 : index
    %119 = vector.load %arg7[%c40_70, %c0_71] : memref<304x64xbf16, #tpu.memory_space<vmem>>, vector<256x64xbf16>
    %c41_72 = arith.constant 41 : index
    %c0_73 = arith.constant 0 : index
    %120 = vector.load %arg7[%c41_72, %c0_73] : memref<304x64xbf16, #tpu.memory_space<vmem>>, vector<256x64xbf16>
    %cst_74 = arith.constant 0.000000e+00 : bf16
    %121 = vector.broadcast %cst_74 : bf16 to vector<256x64xbf16>
    %122 = vector.shape_cast %22 : vector<256x1xi1> to vector<256x1xi1>
    %123 = vector.broadcast %122 : vector<256x1xi1> to vector<256x64xi1>
    %124 = arith.select %123, %118, %121 : vector<256x64xi1>, vector<256x64xbf16>
    %cst_75 = arith.constant 0.000000e+00 : bf16
    %125 = vector.broadcast %cst_75 : bf16 to vector<256x64xbf16>
    %126 = vector.shape_cast %24 : vector<256x1xi1> to vector<256x1xi1>
    %127 = vector.broadcast %126 : vector<256x1xi1> to vector<256x64xi1>
    %128 = arith.select %127, %120, %125 : vector<256x64xi1>, vector<256x64xbf16>
    %129 = tpu.concatenate %124, %119, %128 in 1 : vector<256x64xbf16>, vector<256x64xbf16>, vector<256x64xbf16> -> vector<256x192xbf16>
    %c2_76 = arith.constant 2 : index
    %c0_77 = arith.constant 0 : index
    %c0_78 = arith.constant 0 : index
    %130 = vector.load %arg4[%c2_76, %c0_77, %c0_78] : memref<3x192x64xbf16, #tpu.memory_space<vmem>>, vector<1x192x64xbf16>
    %131 = vector.shape_cast %130 : vector<1x192x64xbf16> to vector<192x64xbf16>
    %cst_79 = arith.constant dense<0.000000e+00> : vector<256x64xf32>
    %132 = tpu.matmul %129, %131, %cst_79 {dimension_numbers = #tpu.dot_dimension_numbers<[1], [0], [0], [1], [0, 0, 1, 1], [], []>} : vector<256x192xbf16>, vector<192x64xbf16>, vector<256x64xf32> -> vector<256x64xf32>
    %133 = arith.addf %117, %132 : vector<256x64xf32>
    %c0_80 = arith.constant 0 : index
    %c0_81 = arith.constant 0 : index
    %134 = vector.load %arg5[%c0_80, %c0_81] : memref<1x64xf32, #tpu.memory_space<vmem>>, vector<1x64xf32>
    %135 = vector.broadcast %134 : vector<1x64xf32> to vector<256x64xf32>
    %136 = arith.addf %133, %135 : vector<256x64xf32>
    %c0_82 = arith.constant 0 : index
    %c0_83 = arith.constant 0 : index
    %c0_84 = arith.constant 0 : index
    %137 = vector.load %arg1[%c0_82, %c0_83, %c0_84] : memref<1x256x64xf32, #tpu.memory_space<vmem>>, vector<1x256x64xf32>
    %138 = vector.shape_cast %137 : vector<1x256x64xf32> to vector<256x64xf32>
    %139 = arith.addf %138, %136 : vector<256x64xf32>
    %140 = vector.shape_cast %139 : vector<256x64xf32> to vector<1x256x64xf32>
    %c0_85 = arith.constant 0 : index
    %c0_86 = arith.constant 0 : index
    %c0_87 = arith.constant 0 : index
    %141 = vector.load %arg6[%c0_85, %c0_86, %c0_87] : memref<1x256x64xf32, #tpu.memory_space<vmem>>, vector<1x256x64xf32>
    tpu.vector_store %arg6[%c0_85, %c0_86, %c0_87], %140 {strides = array<i32>} : memref<1x256x64xf32, #tpu.memory_space<vmem>>, vector<1x256x64xf32>,
    return
  }
  func.func @transform_0(%arg0: i32) -> (i32, i32, i32) {
    %c0_i32 = arith.constant 0 : i32
    %c0_i32_0 = arith.constant 0 : i32
    %c0_i32_1 = arith.constant 0 : i32
    return %arg0, %c0_i32, %c0_i32_0 : i32, i32, i32
  }
  func.func @transform_1(%arg0: i32) -> (i32, i32, i32) {
    %c0_i32 = arith.constant 0 : i32
    %c0_i32_0 = arith.constant 0 : i32
    %c0_i32_1 = arith.constant 0 : i32
    %c0_i32_2 = arith.constant 0 : i32
    return %c0_i32, %c0_i32_0, %c0_i32_1 : i32, i32, i32
  }
  func.func @transform_2(%arg0: i32) -> (i32, i32) {
    %c0_i32 = arith.constant 0 : i32
    %c0_i32_0 = arith.constant 0 : i32
    %c0_i32_1 = arith.constant 0 : i32
    return %c0_i32, %c0_i32_0 : i32, i32
  }
  func.func @transform_3(%arg0: i32) -> (i32, i32, i32) {
    %c0_i32 = arith.constant 0 : i32
    %c0_i32_0 = arith.constant 0 : i32
    %c0_i32_1 = arith.constant 0 : i32
    %c0_i32_2 = arith.constant 0 : i32
    return %c0_i32, %c0_i32_0, %c0_i32_1 : i32, i32, i32
  }
  func.func @transform_4(%arg0: i32) -> (i32, i32) {
    %c0_i32 = arith.constant 0 : i32
    %c0_i32_0 = arith.constant 0 : i32
    %c0_i32_1 = arith.constant 0 : i32
    return %c0_i32, %c0_i32_0 : i32, i32
  }
  func.func @transform_5(%arg0: i32) -> (i32, i32, i32) {
    %c0_i32 = arith.constant 0 : i32
    %c0_i32_0 = arith.constant 0 : i32
    %c0_i32_1 = arith.constant 0 : i32
    return %arg0, %c0_i32, %c0_i32_0 : i32, i32, i32
  }
}

</mosaic_0001>

<bundles_post_ra>
// kernel: tpu_custom_call.1
= control target key start
LH: loop header
LB: loop body
LE: loop exit
PB: predicated region body
PF: predicated region fallthrough
CT: control target
= control target key end

     0   :  { %s7694_s18 = smov 0   ;;  %s11448_s0 = inlined_call_operand.vmem [shape: f32[2,256,64], index: 0, kind: input, shape index: {}]   ;;  %s11449_s1 = inlined_call_operand.vmem [shape: bf16[3,192,64], index: 1, kind: input, shape index: {}]   ;;  %s11450_s2 = inlined_call_operand.vmem [shape: f32[1,64], index: 2, kind: input, shape index: {}]   ;;  %s11451_s3 = inlined_call_operand.vmem [shape: bf16[3,192,64], index: 3, kind: input, shape index: {}]   ;;  %s11452_s4 = inlined_call_operand.vmem [shape: f32[1,64], index: 4, kind: input, shape index: {}]   ;;  %s11453_s5 = inlined_call_operand.vmem [shape: f32[2,256,64], index: 5, kind: output, shape index: {}]  }
   0x1 LB: > { %s7206_s19 = sadd.s32 4294967295, %s7659_s18   ;;  %p7210_p0 = scmp.ge.s32.totalorder %s7659_s18, 1  ;;  %s7659_s18 = sphi %s7694_s18, %s15_s18  }
   0x2   : > { %p187_p1 = scmp.lt.s32.totalorder %s7659_s18, 3 }
   0x4   : > { %p188_p2 = pnand %p7210_p0, %p187_p1 }
   0x6   : > { %191 = sbr.rel (%p188_p2) target bundleno = 1174 (0x496), region = 40 }
   0xd   : > { %p215_p3 = scmp.lt.s32.totalorder %s7206_s19, 1  ;;  %vm228_vm0 = vcmask 523264   ;;  %vm11456_vm1 = vcmask 523268   ;;  %vm11454_vm2 = vcmask 519168   ;;  %v11466_v0 = vmov 0   ;;  %v7528_v1 = vld [vmem:[%s11449_s1 + $0x60] sm:$0xff]  }
   0xe   : > { %229 = vst.msk [vmem:[#allocation2] sm:$0xff] %vm228_vm0, %v11466_v0  ;;  %234 = vst.msk [vmem:[#allocation2 + $0x90] sm:$0xff] %vm228_vm0, %v11466_v0  ;;  %2476 = vmatprep.subr.bf16.mxu0 %v11466_v0  ;;  %3060 = vmatprep.subr.bf16.mxu1 %v11466_v0  ;;  %v7529_v2 = vld [vmem:[%s11449_s1 + $0x68] sm:$0xff]   ;;  %v7530_v6 = vld [vmem:[%s11449_s1 + $0x70] sm:$0xff]   ;;  %v235_v11 = vlaneseq  ;;  %vm11455_vm3 = vcmask 1043456   ;;  %s7662_s13 = smov 64  }
   0xf   : > { %s11986_s19 = smov (!%p215_p3, %s7206_s19), 1  ;;  %231 = vst.msk [vmem:[#allocation2 + $0x8] sm:$0xf] %vm11454_vm2, %v11466_v0  ;;  %2477 = vmatpush1.bf16.msra.mxu0 %v7528_v1  ;;  %vm11553_vm4 = vsmask.f32 7424  ;;  %vm7663_vm6 = vmmov 1  }
  0x10   : > { %233 = vst.msk [vmem:[#allocation2 + $0x88] sm:$0xf0] %vm11456_vm1, %v11466_v0  ;;  %s7515_s22 = sshll.u32 %s11986_s19, 8  ;;  %2478 = vmatprep.subr.bf16.mxu0 %v11466_v0  ;;  %v7751_v34 = vshrl.u32 %v235_v11, 7  ;;  %v7532_v11 = vld [vmem:[%s11449_s1 + $0x80] sm:$0xff]   ;;  %vm7942_vm7 = vmpackc.low %vm7663_vm6, %vm7663_vm6 }
  0x11   : > { %s7726_s27 = scalar_lea.vmem %s11448_s0, %s7515_s22  ;;  %s11291_s8 = scalar_lea.vmem %s11453_s5, %s7515_s22 }
  0x12   : > { %v718_v3 = vld [vmem:[%s7726_s27 + $0x10] sm:$0xff]  ;;  %v719_v4 = vld [vmem:[%s7726_s27 + $0x18] sm:$0xff]  ;;  %v720_v5 = vld [vmem:[%s7726_s27 + $0x20] sm:$0xff] }
  0x13   : > { %v721_v7 = vld [vmem:[%s7726_s27 + $0x28] sm:$0xff]  ;;  %v722_v8 = vld [vmem:[%s7726_s27 + $0x30] sm:$0xff]  ;;  %v723_v9 = vld [vmem:[%s7726_s27 + $0x38] sm:$0xff]  ;;  %v749_v10 = vpack.c.bf16 %v719_v4, %v718_v3  ;;  %2479 = vmatpush1.bf16.msra.mxu0 %v7529_v2 }
  0x14   : > { %v750_v12 = vpack.c.bf16 %v721_v7, %v720_v5  ;;  %v751_v13 = vpack.c.bf16 %v723_v9, %v722_v8  ;;  %v716_v14 = vld [vmem:[%s7726_s27] sm:$0xff]  ;;  %v717_v15 = vld [vmem:[%s7726_s27 + $0x8] sm:$0xff]  ;;  %v726_v20 = vld [vmem:[%s7726_s27 + $0x50] sm:$0xff]  ;;  %2480 = vmatprep.subr.bf16.mxu0 %v11466_v0 }
  0x15   : > { %v724_v16 = vld [vmem:[%s7726_s27 + $0x40] sm:$0xff]  ;;  %v782_v17 = vrot.slane %v749_v10, 4  ;;  %v748_v18 = vpack.c.bf16 %v717_v15, %v716_v14  ;;  %v725_v19 = vld [vmem:[%s7726_s27 + $0x48] sm:$0xff]  ;;  %v727_v21 = vld [vmem:[%s7726_s27 + $0x58] sm:$0xff] }
  0x16   : > { %v784_v22 = vrot.slane %v750_v12, 4  ;;  %v786_v23 = vrot.slane %v751_v13, 4  ;;  %v752_v24 = vpack.c.bf16 %v725_v19, %v724_v16  ;;  %v753_v25 = vpack.c.bf16 %v727_v21, %v726_v20  ;;  %v728_v26 = vld [vmem:[%s7726_s27 + $0x60] sm:$0xff]  ;;  %v729_v27 = vld [vmem:[%s7726_s27 + $0x68] sm:$0xff]  ;;  %v730_v28 = vld [vmem:[%s7726_s27 + $0x70] sm:$0xff] }
  0x17   : > { %v781_v29 = vrot.slane %v748_v18, 4  ;;  %v754_v30 = vpack.c.bf16 %v729_v27, %v728_v26  ;;  %v731_v31 = vld [vmem:[%s7726_s27 + $0x78] sm:$0xff]  ;;  %v732_v32 = vld [vmem:[%s7726_s27 + $0x80] sm:$0xff]  ;;  %v733_v33 = vld [vmem:[%s7726_s27 + $0x88] sm:$0xff]  ;;  %2481 = vmatpush1.bf16.msra.mxu0 %v7530_v6 }
  0x18   : > { %v785_v35 = vsel %vm11455_vm3, %v782_v17, %v784_v22  ;;  %v787_v36 = vsel %vm11455_vm3, %v784_v22, %v786_v23  ;;  %v788_v37 = vrot.slane %v752_v24, 4  ;;  %v790_v38 = vrot.slane %v753_v25, 4  ;;  %v734_v39 = vld [vmem:[%s7726_s27 + $0x90] sm:$0xff]  ;;  %v735_v40 = vld [vmem:[%s7726_s27 + $0x98] sm:$0xff]  ;;  %v736_v41 = vld [vmem:[%s7726_s27 + $0xa0] sm:$0xff]  ;;  %2482 = vmatprep.subr.bf16.mxu0 %v11466_v0 }
  0x19   : > { %831 = vst.msk [vmem:[#allocation2 + $0x18] sm:$0xff] %vm228_vm0, %v785_v35  ;;  %832 = vst.msk [vmem:[#allocation2 + $0x20] sm:$0xff] %vm228_vm0, %v787_v36  ;;  %v783_v42 = vsel %vm11455_vm3, %v781_v29, %v782_v17  ;;  %v792_v43 = vrot.slane %v754_v30, 4  ;;  %v755_v44 = vpack.c.bf16 %v731_v31, %v730_v28  ;;  %v756_v45 = vpack.c.bf16 %v733_v33, %v732_v32  ;;  %v737_v46 = vld [vmem:[%s7726_s27 + $0xa8] sm:$0xff]  ;;  %v738_v47 = vld [vmem:[%s7726_s27 + $0xb0] sm:$0xff] }
  0x1a   : > { %829 = vst.msk [vmem:[#allocation2 + $0x8] sm:$0xf0] %vm11456_vm1, %v781_v29  ;;  %v739_v48 = vld [vmem:[%s7726_s27 + $0xb8] sm:$0xff]  ;;  %v789_v49 = vsel %vm11455_vm3, %v786_v23, %v788_v37  ;;  %v791_v50 = vsel %vm11455_vm3, %v788_v37, %v790_v38  ;;  %v757_v51 = vpack.c.bf16 %v735_v40, %v734_v39  ;;  %v758_v52 = vpack.c.bf16 %v737_v46, %v736_v41  ;;  %v740_v53 = vld [vmem:[%s7726_s27 + $0xc0] sm:$0xff]  ;;  %v741_v54 = vld [vmem:[%s7726_s27 + $0xc8] sm:$0xff] }
  0x1b   : > { %830 = vst.msk [vmem:[#allocation2 + $0x10] sm:$0xff] %vm228_vm0, %v783_v42  ;;  %v742_v55 = vld [vmem:[%s7726_s27 + $0xd0] sm:$0xff]  ;;  %833 = vst.msk [vmem:[#allocation2 + $0x28] sm:$0xff] %vm228_vm0, %v789_v49  ;;  %v793_v56 = vsel %vm11455_vm3, %v790_v38, %v792_v43  ;;  %v794_v57 = vrot.slane %v755_v44, 4  ;;  %v796_v58 = vrot.slane %v756_v45, 4  ;;  %v759_v59 = vpack.c.bf16 %v739_v48, %v738_v47  ;;  %v743_v60 = vld [vmem:[%s7726_s27 + $0xd8] sm:$0xff] }
  0x1c   : > { %834 = vst.msk [vmem:[#allocation2 + $0x30] sm:$0xff] %vm228_vm0, %v791_v50  ;;  %835 = vst.msk [vmem:[#allocation2 + $0x38] sm:$0xff] %vm228_vm0, %v793_v56  ;;  %v798_v61 = vrot.slane %v757_v51, 4  ;;  %v800_v62 = vrot.slane %v758_v52, 4  ;;  %v760_v63 = vpack.c.bf16 %v741_v54, %v740_v53  ;;  %v761_v1 = vpack.c.bf16 %v743_v60, %v742_v55  ;;  %v7531_v5 = vld [vmem:[%s11449_s1 + $0x78] sm:$0xff]   ;;  %v744_v29 = vld [vmem:[%s7726_s27 + $0xe0] sm:$0xff] }
  0x1d   : > { %v795_v2 = vsel %vm11455_vm3, %v792_v43, %v794_v57  ;;  %v797_v3 = vsel %vm11455_vm3, %v794_v57, %v796_v58  ;;  %v802_v4 = vrot.slane %v759_v59, 4  ;;  %2483 = vmatpush1.bf16.msra.mxu0 %v7531_v5  ;;  %v7805_v17 = vadd.s32 8, %v7751_v34  ;;  %v745_v30 = vld [vmem:[%s7726_s27 + $0xe8] sm:$0xff]  ;;  %v7534_v54 = vld [vmem:[%s11449_s1 + $0x90] sm:$0xff]  }
  0x1e   : > { %836 = vst.msk [vmem:[#allocation2 + $0x40] sm:$0xff] %vm228_vm0, %v795_v2  ;;  %837 = vst.msk [vmem:[#allocation2 + $0x48] sm:$0xff] %vm228_vm0, %v797_v3  ;;  %v799_v6 = vsel %vm11455_vm3, %v796_v58, %v798_v61  ;;  %v801_v7 = vsel %vm11455_vm3, %v798_v61, %v800_v62  ;;  %v804_v8 = vrot.slane %v760_v63, 4  ;;  %v7786_v9 = vrot.slane %v761_v1, 4  ;;  %2484 = vmatprep.subr.bf16.mxu0 %v11466_v0  ;;  %v7533_v37 = vld [vmem:[%s11449_s1 + $0x88] sm:$0xff]   ;;  %v746_v60 = vld [vmem:[%s7726_s27 + $0xf0] sm:$0xff] }
  0x1f   : > { %838 = vst.msk [vmem:[#allocation2 + $0x50] sm:$0xff] %vm228_vm0, %v799_v6  ;;  %839 = vst.msk [vmem:[#allocation2 + $0x58] sm:$0xff] %vm228_vm0, %v801_v7  ;;  %v803_v10 = vsel %vm11455_vm3, %v800_v62, %v802_v4  ;;  %v762_v52 = vpack.c.bf16 %v745_v30, %v744_v29  ;;  %v279_v53 = vand.u32 15, %v7805_v17  ;;  %v747_v2 = vld [vmem:[%s7726_s27 + $0xf8] sm:$0xff]  ;;  %v7537_v3 = vld [vmem:[%s11449_s1] sm:$0xff]   ;;  %v7870_v7 = vadd.s32 16, %v7751_v34 }
  0x20   : > { %v7794_v12 = vld [vmem:[#allocation2 + $0x18] sm:$0xff]  ;;  %v7796_v13 = vld [vmem:[#allocation2 + $0x20] sm:$0xff]  ;;  %840 = vst.msk [vmem:[#allocation2 + $0x60] sm:$0xff] %vm228_vm0, %v803_v10  ;;  %v805_v15 = vsel %vm11455_vm3, %v802_v4, %v804_v8  ;;  %v807_v16 = vsel %vm11455_vm3, %v804_v8, %v7786_v9  ;;  %3061 = vmatpush1.bf16.msra.mxu1 %v7537_v3 }
  0x21   : > { %v7798_v14 = vld [vmem:[#allocation2 + $0x8] sm:$0xf0]  ;;  %v1598_v18 = vshll.u32 %v7794_v12, 16  ;;  %v1602_v19 = vshrl.u32 %v7794_v12, 16  ;;  %v1606_v20 = vshll.u32 %v7796_v13, 16  ;;  %841 = vst.msk [vmem:[#allocation2 + $0x68] sm:$0xff] %vm228_vm0, %v805_v15  ;;  %2485 = vmatpush1.bf16.msra.mxu0 %v7532_v11  ;;  %3062 = vmatprep.subr.bf16.mxu1 %v11466_v0 }
  0x22   : > { %v7811_v21 = vld [vmem:[#allocation2 + $0x10] sm:$0xff]  ;;  %v1909_v22 = vshrl.u32 %v7798_v14, 16  ;;  %842 = vst.msk [vmem:[#allocation2 + $0x70] sm:$0xff] %vm228_vm0, %v807_v16  ;;  %v1911_v25 = vshll.u32 %v7798_v14, 16  ;;  %v7819_v26 = vld [vmem:[#allocation2 + $0x28] sm:$0xff]  ;;  %v1610_v27 = vshrl.u32 %v7796_v13, 16  ;;  %2486 = vmatprep.subr.bf16.mxu0 %v11466_v0 }
  0x23   : > { %v1590_v23 = vshll.u32 %v7811_v21, 16  ;;  %v1594_v24 = vshrl.u32 %v7811_v21, 16  ;;  %v852_v28 = vld [vmem:[#allocation2 + $0x30] sm:$0xff]  ;;  %v7824_v31 = vrot.slane %v1598_v18, 1  ;;  %v1608_v32 = vrot.slane %v1606_v20, 1  ;;  %v853_v36 = vld [vmem:[#allocation2 + $0x38] sm:$0xff] }
  0x24   : > { %v1614_v33 = vshll.u32 %v7819_v26, 16  ;;  %v1618_v35 = vshrl.u32 %v7819_v26, 16  ;;  %v1913_v39 = vrot.slane %v1911_v25, 1  ;;  %v1622_v40 = vshll.u32 %v852_v28, 16  ;;  %v7535_v15 = vld [vmem:[%s11449_s1 + $0x98] sm:$0xff]  }
  0x25   : > { %v7831_v38 = vrot.slane %v1590_v23, 1  ;;  %v1626_v41 = vshrl.u32 %v852_v28, 16  ;;  %v1604_v42 = vor.u32 %v1602_v19, %v7824_v31  ;;  %v1612_v43 = vor.u32 %v1610_v27, %v1608_v32  ;;  %v854_v46 = vld [vmem:[#allocation2 + $0x40] sm:$0xff]  ;;  %v7841_v51 = vld [vmem:[#allocation2 + $0x48] sm:$0xff]  ;;  %2487 = vmatpush1.bf16.msra.mxu0 %v7533_v37 }
  0x26   : > { %v1616_v44 = vrot.slane %v1614_v33, 1  ;;  %v1630_v45 = vshll.u32 %v853_v36, 16  ;;  %v1914_v48 = vor.u32 %v1913_v39, %v1909_v22  ;;  %v7839_v50 = vrot.slane %v1622_v40, 1  ;;  %v856_v59 = vld [vmem:[#allocation2 + $0x50] sm:$0xff]  ;;  %2488 = vmatprep.subr.bf16.mxu0 %v11466_v0  ;;  %v7867_v6 = vld [vmem:[#allocation2 + $0x58] sm:$0xff]  ;;  %v7539_v27 = vld [vmem:[%s11449_s1 + $0x8] sm:$0xff]  }
  0x27   : > { %v1596_v47 = vor.u32 %v1594_v24, %v7831_v38  ;;  %v7837_v49 = vsel %vm11553_vm4, %v1604_v42, %v1608_v32  ;;  %v1634_v57 = vshrl.u32 %v853_v36, 16  ;;  %v1638_v58 = vshll.u32 %v854_v46, 16  ;;  %v858_v11 = vld [vmem:[#allocation2 + $0x60] sm:$0xff]  ;;  %3063 = vmatpush1.bf16.msra.mxu1 %v7539_v27 }
  0x28   : > { %1715 = vrot.lane.b32.xlu1 %v7837_v49, %s7662_s13  ;;  %v1620_v56 = vor.u32 %v1618_v35, %v1616_v44  ;;  %v7855_v61 = vsel %vm11553_vm4, %v1612_v43, %v1616_v44  ;;  %v1628_v62 = vor.u32 %v1626_v41, %v7839_v50  ;;  %v7858_v63 = vrot.slane %v1630_v45, 1  ;;  %v859_v25 = vld [vmem:[#allocation2 + $0x68] sm:$0xff]  ;;  %v7536_v36 = vld [vmem:[%s11449_s1 + $0xa0] sm:$0xff]   ;;  %3064 = vmatprep.subr.bf16.mxu1 %v11466_v0 }
  0x29   : > { %v1601_v55 = vsel %vm11553_vm4, %v1596_v47, %v7824_v31  ;;  %v1642_v1 = vshrl.u32 %v854_v46, 16  ;;  %v1915_v4 = vsel %vm11553_vm4, %v1914_v48, %v7831_v38  ;;  %v1646_v5 = vshll.u32 %v7841_v51, 16  ;;  %2489 = vmatpush1.bf16.msra.mxu0 %v7534_v54  ;;  %v860_v33 = vld [vmem:[#allocation2 + $0x70] sm:$0xff]  ;;  %v7543_v54 = vld [vmem:[%s11449_s1 + $0x18] sm:$0xff]   ;;  %v7962_v3 = vld [vmem:[#allocation2] sm:$0xf0] }
  0x2a   : > { %1713 = vrot.lane.b32.xlu0 %v1601_v55, %s7662_s13  ;;  %v7872_v8 = vrot.slane %v1638_v58, 1  ;;  %v1654_v10 = vshll.u32 %v856_v59, 16  ;;  %v7881_v16 = vsel %vm11553_vm4, %v1620_v56, %v7839_v50  ;;  %v808_v17 = vrot.slane %v762_v52, 4  ;;  %2490 = vmatprep.subr.bf16.mxu0 %v11466_v0 }
  0x2b   : > { %v763_v18 = vpack.c.bf16 %v747_v2, %v746_v60  ;;  %vm7883_vm5 = vcmp.ne.s32.totalorder %v279_v53, 15  ;;  %v1633_v20 = vsel %vm11553_vm4, %v1628_v62, %v7858_v63  ;;  %v1636_v22 = vor.u32 %v1634_v57, %v7858_v63 }
  0x2c   : > { %1717 = vrot.lane.b32.xlu1 %v7855_v61, %s7662_s13  ;;  %v1644_v23 = vor.u32 %v1642_v1, %v7872_v8  ;;  %v1658_v24 = vshrl.u32 %v856_v59, 16  ;;  %v7897_v28 = vrot.slane %v1646_v5, 1  ;;  %v1650_v29 = vshrl.u32 %v7841_v51, 16  ;;  %v7538_v51 = vld [vmem:[%s11449_s1 + $0xa8] sm:$0xff]   ;;  %vm1284_vm8 = vmpackc.low %vm7883_vm5, %vm7883_vm5 }
  0x2d   : > { %v1662_v30 = vshll.u32 %v7867_v6, 16  ;;  %v1670_v32 = vshll.u32 %v858_v11, 16  ;;  %v7901_v35 = vrot.slane %v1654_v10, 1  ;;  %2491 = vmatpush1.bf16.msra.mxu0 %v7535_v15  ;;  %v1666_v37 = vshrl.u32 %v7867_v6, 16  ;;  %v7540_v6 = vld [vmem:[%s11449_s1 + $0xb0] sm:$0xff]   ;;  %v7545_v10 = vld [vmem:[%s11449_s1 + $0x20] sm:$0xff]  }
  0x2e   : > { %1932 = vrot.lane.b32.xlu0 %v1915_v4, %s7662_s13  ;;  %v1678_v39 = vshll.u32 %v859_v25, 16  ;;  %v809_v40 = vsel %vm11455_vm3, %v7786_v9, %v808_v17  ;;  %2492 = vmatprep.subr.bf16.mxu0 %v11466_v0  ;;  %v1649_v41 = vsel %vm11553_vm4, %v1644_v23, %v7897_v28  ;;  %v1674_v43 = vshrl.u32 %v858_v11, 16  ;;  %v7541_v9 = vld [vmem:[%s11449_s1 + $0x10] sm:$0xff]  }
  0x2f   : > { %11598 = vst [vmem:[#allocation3_spill] sm:$0xff] %v7901_v35  ;;  %v1660_v42 = vor.u32 %v1658_v24, %v7901_v35  ;;  %843 = vst.msk [vmem:[#allocation2 + $0x78] sm:$0xff] %vm228_vm0, %v809_v40  ;;  %v810_v44 = vrot.slane %v763_v18, 4  ;;  %v7923_v45 = vsel %vm11553_vm4, %v1636_v22, %v7872_v8  ;;  %v1652_v46 = vor.u32 %v1650_v29, %v7897_v28  ;;  %v7993_v29 = vld [vmem:[#allocation2 + $0x8] sm:$0xff] }
  0x30   : > { %1721 = vrot.lane.b32.xlu1 %v1633_v20, %s7662_s13  ;;  %v7926_v47 = vrot.slane %v1662_v30, 1  ;;  %v7928_v48 = vrot.slane %v1670_v32, 1  ;;  %v1686_v52 = vshll.u32 %v860_v33, 16  ;;  %3065 = vmatpush1.bf16.msra.mxu1 %v7541_v9  ;;  %v7939_v55 = vrot.slane %v1678_v39, 1  ;;  %v7542_v39 = vld [vmem:[%s11449_s1 + $0xb8] sm:$0xff]   ;;  %v7546_v40 = vld [vmem:[%s11449_s1 + $0x28] sm:$0xff]  }
  0x31   : > { %v811_v53 = vsel %vm11455_vm3, %v808_v17, %v810_v44  ;;  %845 = vst.msk [vmem:[#allocation2 + $0x88] sm:$0xf] %vm11454_vm2, %v810_v44  ;;  %2493 = vmatpush1.bf16.msra.mxu0 %v7536_v36  ;;  %v1682_v56 = vshrl.u32 %v859_v25, 16  ;;  %v240_v58 = vadd.s32 32, %v7751_v34  ;;  %v1690_v62 = vshrl.u32 %v860_v33, 16  ;;  %3066 = vmatprep.subr.bf16.mxu1 %v11466_v0 }
  0x32   : > { %1719 = vrot.lane.b32.xlu0 %v7881_v16, %s7662_s13  ;;  %11599 = vst [vmem:[#allocation4_spill] sm:$0xff] %v7926_v47  ;;  %11600 = vst [vmem:[#allocation5_spill] sm:$0xff] %v7928_v48  ;;  %2494 = vmatprep.subr.bf16.mxu0 %v11466_v0  ;;  %v1665_v59 = vsel %vm11553_vm4, %v1660_v42, %v7926_v47  ;;  %v1676_v60 = vor.u32 %v1674_v43, %v7928_v48  ;;  %v7964_v4 = vrot.slane %v1686_v52, 1 }
  0x33   : > { %11601 = vst [vmem:[#allocation6_spill] sm:$0xff] %v7939_v55  ;;  %844 = vst.msk [vmem:[#allocation2 + $0x80] sm:$0xff] %vm228_vm0, %v811_v53  ;;  %v7959_v1 = vsel %vm11553_vm4, %v1652_v46, %v7901_v35  ;;  %v1668_v2 = vor.u32 %v1666_v37, %v7926_v47  ;;  %v286_v5 = vand.u32 15, %v7870_v7  ;;  %v1684_v11 = vor.u32 %v1682_v56, %v7939_v55 }
  0x34   : > { %1725 = vrot.lane.b32.xlu1 %v1649_v41, %s7662_s13  ;;  %11604 = vst [vmem:[#allocation7_spill] sm:$0xff] %v7964_v4  ;;  %3067 = vmatpush1.bf16.msra.mxu1 %v7543_v54  ;;  %v7978_v17 = vsel %vm7942_vm7, 65537, %v11466_v0  ;;  %v1316_v7 = vsel %vm1284_vm8, 65537, %v11466_v0  ;;  %v300_v18 = vand.u32 15, %v240_v58  ;;  %v1681_v19 = vsel %vm11553_vm4, %v1676_v60, %v7939_v55 }
  0x35   : > { %2495 = vmatpush1.bf16.msra.mxu0 %v7538_v51  ;;  %v1692_v20 = vor.u32 %v1690_v62, %v7964_v4  ;;  %v1577_v23 = vshll.u32 %v7962_v3, 16  ;;  %3068 = vmatprep.subr.bf16.mxu1 %v11466_v0  ;;  %v7991_v24 = vsel %vm11553_vm4, %v1668_v2, %v7928_v48  ;;  %v242_v30 = vadd.s32 48, %v7751_v34 }
  0x36   : > { %1723 = vrot.lane.b32.xlu0 %v7923_v45, %s7662_s13  ;;  %v861_v15 = vld [vmem:[#allocation2 + $0x78] sm:$0xff]  ;;  %2496 = vmatprep.subr.bf16.mxu0 %v11466_v0  ;;  %vm7998_vm9 = vcmp.ne.s32.totalorder %v286_v5, 0  ;;  %v7231_v43 = vcombine.low %v7978_v17, %v1316_v7  ;;  %vm8010_vm10 = vcmp.ne.s32.totalorder %v300_v18, 0  ;;  %v8019_v9 = vsel %vm11553_vm4, %v1684_v11, %v7964_v4 }
  0x37   : > { %v1694_v22 = vshll.u32 %v861_v15, 16  ;;  %v1698_v25 = vshrl.u32 %v861_v15, 16  ;;  %v1575_v51 = vshrl.u32 %v7962_v3, 16  ;;  %v1579_v52 = vrot.slane %v1577_v23, 1  ;;  %vm931_vm11 = vmpackc.low %vm7998_vm9, %vm7998_vm9 }
  0x38   : > { %1729 = vrot.lane.b32.xlu1 %v1665_v59, %s7662_s13  ;;  %v1871_v27 = vld [vmem:[#allocation2 + $0x88] sm:$0xf]  ;;  %3069 = vmatpush1.bf16.msra.mxu1 %v7545_v10  ;;  %v1582_v57 = vshll.u32 %v7993_v29, 16  ;;  %v314_v58 = vand.u32 15, %v242_v30  ;;  %v7547_v59 = vld [vmem:[%s11449_s1 + $0x30] sm:$0xff]   ;;  %v1397_v2 = vshrl.u32 %v7231_v43, 16  ;;  %vm933_vm12 = vmpackc.low %vm8010_vm10, %vm8010_vm10 }
  0x39   : > { %v7996_v32 = vrot.slane %v1694_v22, 1  ;;  %v1925_v36 = vshll.u32 %v1871_v27, 16  ;;  %2497 = vmatpush1.bf16.msra.mxu0 %v7540_v6  ;;  %3070 = vmatprep.subr.bf16.mxu1 %v11466_v0  ;;  %v1929_v62 = vshrl.u32 %v1871_v27, 16  ;;  %v1400_v5 = vshll.u32 %v7231_v43, 16 }
  0x3a   : > { %1727 = vrot.lane.b32.xlu0 %v7959_v1, %s7662_s13  ;;  %v1870_v33 = vld [vmem:[#allocation2 + $0x80] sm:$0xff]  ;;  %2498 = vmatprep.subr.bf16.mxu0 %v11466_v0  ;;  %v1580_v6 = vor.u32 %v1579_v52, %v1575_v51  ;;  %v1584_v15 = vrot.slane %v1582_v57, 1  ;;  %v1586_v7 = vshrl.u32 %v7993_v29, 16  ;;  %vm8053_vm13 = vcmp.ne.s32.totalorder %v314_v58, 0 }
  0x3b   : > { %11605 = vst [vmem:[#allocation8_spill] sm:$0xff] %v7996_v32  ;;  %v1917_v41 = vshll.u32 %v1870_v33, 16  ;;  %v1921_v42 = vshrl.u32 %v1870_v33, 16  ;;  %v1697_v46 = vsel %vm11553_vm4, %v1692_v20, %v7996_v32  ;;  %v8026_v53 = vor.u32 %v1698_v25, %v7996_v32  ;;  %v7549_v20 = vld [vmem:[%s11449_s1 + $0x38] sm:$0xff]   ;;  %vm935_vm14 = vmpackc.low %vm8053_vm13, %vm8053_vm13  ;;  %v7550_v52 = vld [vmem:[%s11449_s1 + $0x40] sm:$0xff]  }
  0x3c   : > { %1733 = vrot.lane.b32.xlu1 %v1681_v19, %s7662_s13  ;;  %v1927_v56 = vrot.slane %v1925_v36, 1  ;;  %3071 = vmatpush1.bf16.msra.mxu1 %v7546_v40  ;;  %v963_v19 = vsel %vm931_vm11, 65537, %v11466_v0  ;;  %v965_v22 = vsel %vm933_vm12, 65537, %v11466_v0  ;;  %v1399_v25 = vrot.slane %v1397_v2, 3 }
  0x3d   : > { %v8028_v54 = vrot.slane %v1917_v41, 1  ;;  %2499 = vmatpush1.bf16.msra.mxu0 %v7542_v39  ;;  %3072 = vmatprep.subr.bf16.mxu1 %v11466_v0  ;;  %v1402_v27 = vrot.slane %v1400_v5, 4  ;;  %v1585_v30 = vsel %vm11553_vm4, %v1580_v6, %v1584_v15  ;;  %v1588_v33 = vor.u32 %v1586_v7, %v1584_v15  ;;  %v7551_v5 = vld [vmem:[%s11449_s1 + $0x48] sm:$0xff]  }
  0x3e   : > { %1731 = vrot.lane.b32.xlu0 %v7991_v24, %s7662_s13  ;;  %3992 = vmatprep.subr.bf16.mxu0 %v11466_v0  ;;  %v1931_v23 = vor.u32 %v1929_v62, %v1927_v56  ;;  %v7216_v36 = vcombine.low %v963_v19, %v7978_v17  ;;  %v239_v37 = vadd.s32 24, %v7751_v34  ;;  %v7217_v39 = vcombine.low %v965_v22, %v7978_v17 }
  0x3f   : > { %11610 = vst [vmem:[#allocation9_spill] sm:$0xff] %v8028_v54  ;;  %v1923_v60 = vor.u32 %v1921_v42, %v8028_v54  ;;  %v8048_v10 = vsel %vm11553_vm4, %v8026_v53, %v8028_v54  ;;  %v272_v40 = vand.u32 15, %v7751_v34  ;;  %v244_v41 = vadd.s32 64, %v7751_v34 }
  0x40   : > { %1737 = vrot.lane.b32.xlu1 %v1697_v46, %s7662_s13  ;;  %3073 = vmatpush1.bf16.msra.mxu1 %v7547_v59  ;;  %v241_v42 = vadd.s32 40, %v7751_v34  ;;  %v8079_v43 = vor.u32 %v1402_v27, %v1399_v25  ;;  %v967_v44 = vsel %vm935_vm14, 65537, %v11466_v0  ;;  %v246_v46 = vadd.s32 80, %v7751_v34  ;;  %v7553_v27 = vld [vmem:[%s11449_s1 + $0x50] sm:$0xff]  }
  0x41   : > { %v1928_v11 = vsel %vm11553_vm4, %v1923_v60, %v1927_v56  ;;  %3074 = vmatprep.subr.bf16.mxu1 %v11466_v0  ;;  %v293_v51 = vand.u32 15, %v239_v37  ;;  %v1593_v56 = vsel %vm11553_vm4, %v1588_v33, %v7831_v38  ;;  %v1051_v57 = vshrl.u32 %v7216_v36, 16  ;;  %v8088_v60 = vld [vmem:[#allocation2 + $0x80] sm:$0xf] }
  0x42   : > { %1735 = vrot.lane.b32.xlu0 %v8019_v9, %s7662_s13  ;;  %11613 = vst [vmem:[#allocation10_spill] sm:$0xff] %v8079_v43  ;;  %v1054_v58 = vshll.u32 %v7216_v36, 16  ;;  %v307_v59 = vand.u32 15, %v241_v42  ;;  %v1060_v62 = vshrl.u32 %v7217_v39, 16  ;;  %v1063_v2 = vshll.u32 %v7217_v39, 16 }
  0x43   : > { %vm8093_vm15 = vcmp.ne.s32.totalorder %v272_v40, 0  ;;  %vm687_vm5 = vcmp.ne.s32.totalorder %v293_v51, 15  ;;  %v8104_v15 = vcombine.low %v967_v44, %v7978_v17  ;;  %v342_v7 = vand.u32 15, %v246_v46 }
  0x44   : > { %1936 = vrot.lane.b32.xlu1 %v1928_v11, %s7662_s13  ;;  %3075 = vmatpush1.bf16.msra.mxu1 %v7549_v20  ;;  %v328_v11 = vand.u32 15, %v244_v41  ;;  %vm8097_vm6 = vcmp.ne.s32.totalorder %v307_v59, 15  ;;  %vm1286_vm7 = vmpackc.low %vm687_vm5, %vm687_vm5  ;;  %vm11458_vm8 = vcmp.ne.s16.totalorder %v8079_v43, 0  ;;  %v1053_v18 = vrot.slane %v1051_v57, 4 }
  0x45   : > { %3076 = vmatprep.subr.bf16.mxu1 %v11466_v0  ;;  %v1056_v19 = vrot.slane %v1054_v58, 5  ;;  %vm1288_vm9 = vmpackc.low %vm8097_vm6, %vm8097_vm6  ;;  %v1318_v20 = vsel %vm1286_vm7, 65537, %v11466_v0  ;;  %v1702_v22 = vshll.u32 %v8088_v60, 16  ;;  %v248_v25 = vadd.s32 96, %v7751_v34  ;;  %v7554_v58 = vld [vmem:[%s11449_s1 + $0x58] sm:$0xff]  }
  0x46   : > { %1934 = vrot.lane.b32.xlu0 %v8048_v10, %s7662_s13  ;;  %vm929_vm10 = vmpackc.low %vm8093_vm15, %vm8093_vm15  ;;  %vm1041_vm11 = vsmask.f32 3328  ;;  %vm8119_vm12 = vcmp.ne.s32.totalorder %v328_v11, 0  ;;  %v1320_v36 = vsel %vm1288_vm9, 65537, %v11466_v0  ;;  %v7232_v37 = vcombine.low %v7978_v17, %v1318_v20 }
  0x47   : > { %v1069_v39 = vshrl.u32 %v8104_v15, 16  ;;  %vm8129_vm13 = vcmp.ne.s32.totalorder %v342_v7, 0  ;;  %v7233_v41 = vcombine.low %v7978_v17, %v1320_v36  ;;  %v1072_v42 = vshll.u32 %v8104_v15, 16  ;;  %vm937_vm14 = vmpackc.low %vm8119_vm12, %vm8119_vm12 }
  0x48   : > { %1709 = vrot.lane.b32.xlu1 %v1585_v30, %s7662_s13  ;;  %3077 = vmatpush1.bf16.msra.mxu1 %v7550_v52  ;;  %v1065_v30 = vrot.slane %v1063_v2, 5  ;;  %v961_v44 = vsel %vm929_vm10, 65537, %v11466_v0  ;;  %v1405_v46 = vshrl.u32 %v7232_v37, 16  ;;  %v1408_v51 = vshll.u32 %v7232_v37, 16  ;;  %v3238_v52 = vld [vmem:[#allocation2 + $0x10] sm:$0xf0]  ;;  %vm939_vm15 = vmpackc.low %vm8129_vm13, %vm8129_vm13 }
  0x49   : > { %3078 = vmatprep.subr.bf16.mxu1 %v11466_v0  ;;  %v1417_v57 = vshll.u32 %v7233_v41, 16  ;;  %v8142_v59 = vor.u32 %v1056_v19, %v1053_v18  ;;  %vm1395_vm5 = vsmask.f32 4352  ;;  %v1891_v38 = vsel %vm11458_vm8, %v7798_v14, 0 }
  0x4a   : > { %1938 = vrot.lane.b32.xlu0 %v1931_v23, %s7662_s13  ;;  %v1062_v23 = vrot.slane %v1060_v62, 4  ;;  %v1407_v62 = vrot.slane %v1405_v46, 3  ;;  %v1410_v2 = vrot.slane %v1408_v51, 4  ;;  %v1071_v15 = vrot.slane %v1069_v39, 4 }
  0x4b   : > { %v1419_v11 = vrot.slane %v1417_v57, 4  ;;  %v7215_v7 = vcombine.low %v961_v44, %v7978_v17  ;;  %v969_v18 = vsel %vm937_vm14, 65537, %v11466_v0  ;;  %v3277_v14 = vshll.u32 %v3238_v52, 16 }
  0x4c   : > { %3079 = vmatpush1.bf16.msra.mxu1 %v7551_v5  ;;  %v8150_v5 = vor.u32 %v1065_v30, %v1062_v23  ;;  %v1411_v19 = vor.u32 %v1410_v2, %v1407_v62  ;;  %v250_v30 = vadd.s32 112, %v7751_v34  ;;  %v3275_v33 = vshrl.u32 %v3238_v52, 16 }
  0x4d   : > { %3080 = vmatprep.subr.bf16.mxu1 %v11466_v0  ;;  %v3279_v37 = vrot.slane %v3277_v14, 1  ;;  %v1074_v39 = vrot.slane %v1072_v42, 5  ;;  %vm1760_vm12 = vcmask 1046528   ;;  %v1043_v46 = vshrl.u32 %v7215_v7, 16 }
  0x4e   : > { %1711 = vrot.lane.b32.xlu0 %v1593_v56, %s7662_s13  ;;  %v1414_v56 = vshrl.u32 %v7233_v41, 16  ;;  %v7219_v41 = vcombine.low %v969_v18, %v7978_v17  ;;  %v266_v32 = vadd.s32 240, %v7751_v34 }
  0x50   : > { %3081 = vmatpush1.bf16.msra.mxu1 %v7553_v27  ;;  %v1416_v6 = vrot.slane %v1414_v56, 3  ;;  %v1957_v27 = vrot.slane %v1891_v38, 1  ;;  %v1046_v38 = vshll.u32 %v7215_v7, 16  ;;  %v1078_v18 = vshrl.u32 %v7219_v41, 16 }
  0x51   : > { %3082 = vmatprep.subr.bf16.mxu1 %v11466_v0 }
  0x52   : > { %3411 = vrot.lane.b32.xlu0 %v7837_v49, %s7662_s13  ;;  %v356_v49 = vand.u32 15, %v248_v25  ;;  %v8167_v23 = vor.u32 %v1419_v11, %v1416_v6  ;;  %v8171_v25 = vsel %vm1395_vm5, %v8079_v43, %v1411_v19 }
  0x53   : > { %11624 = vst [vmem:[#allocation11_spill] sm:$0xff] %v8171_v25  ;;  %vm1540_vm7 = vcmp.ne.s16.totalorder %v8171_v25, 0 }
  0x54   : > { %vm8163_vm6 = vcmp.ne.s32.totalorder %v356_v49, 0  ;;  %3083 = vmatpush1.bf16.msra.mxu1 %v7554_v58  ;;  %v8179_v36 = vsel %vm1395_vm5, %v1411_v19, %v8167_v23  ;;  %v1892_v40 = vsel %vm1540_vm7, %v7811_v21, 0  ;;  %v3280_v49 = vor.u32 %v3279_v37, %v3275_v33 }
  0x55   : > { %5307 = vmatprep.subr.bf16.mxu1 %v11466_v0  ;;  %11625 = vst [vmem:[#allocation12_spill] sm:$0xff] %v8179_v36  ;;  %vm941_vm9 = vmpackc.low %vm8163_vm6, %vm8163_vm6  ;;  %vm1541_vm10 = vcmp.ne.s16.totalorder %v8179_v36, 0  ;;  %v1958_v44 = vrot.slane %v1892_v40, 1  ;;  %v370_v58 = vand.u32 15, %v250_v30 }
  0x56   : > { %3415 = vrot.lane.b32.xlu0 %v7881_v16, %s7662_s13  ;;  %v971_v16 = vsel %vm939_vm15, 65537, %v11466_v0  ;;  %v8198_v42 = vsel %vm1541_vm10, %v7794_v12, 0  ;;  %v973_v56 = vsel %vm941_vm9, 65537, %v11466_v0  ;;  %v3285_v11 = vsel %vm11553_vm4, %v3280_v49, %v7824_v31 }
  0x57   : > { %v7220_v51 = vcombine.low %v971_v16, %v7978_v17  ;;  %v11459_v52 = vrot.slane %v8198_v42, 1  ;;  %v1959_v57 = vsel %vm1760_vm12, %v1957_v27, %v1958_v44  ;;  %3409 = vrot.lane.b32.xlu1 %v3285_v11, %s7662_s13  ;;  %v7221_v20 = vcombine.low %v973_v56, %v7978_v17 }
  0x58   : > { %v2069_v2 = vshrl.u32 %v1959_v57, 16  ;;  %v2072_v6 = vshll.u32 %v1959_v57, 16  ;;  %vm8215_vm13 = vcmp.ne.s32.totalorder %v370_v58, 0  ;;  %v1045_v31 = vrot.slane %v1043_v46, 4 }
  0x59   : > { %v1961_v62 = vsel %vm1760_vm12, %v1958_v44, %v11459_v52  ;;  %v1087_v7 = vshrl.u32 %v7220_v51, 16  ;;  %v1090_v40 = vshll.u32 %v7220_v51, 16  ;;  %v1048_v49 = vrot.slane %v1046_v38, 5  ;;  %vm943_vm14 = vmpackc.low %vm8215_vm13, %vm8215_vm13 }
  0x5a   : > { %3419 = vrot.lane.b32.xlu0 %v7923_v45, %s7662_s13  ;;  %v8192_v45 = vsel %vm1041_vm11, %v8142_v59, %v8150_v5  ;;  %v2077_v19 = vshrl.u32 %v1961_v62, 16  ;;  %v2080_v16 = vshll.u32 %v1961_v62, 16  ;;  %v2071_v14 = vrot.slane %v2069_v2, 3 }
  0x5b   : > { %11626 = vst [vmem:[#allocation13_spill] sm:$0xff] %v8192_v45  ;;  %v2074_v27 = vrot.slane %v2072_v6, 4  ;;  %v1080_v57 = vrot.slane %v1078_v18, 4  ;;  %v252_v56 = vadd.s32 128, %v7751_v34  ;;  %v1075_v62 = vor.u32 %v1074_v39, %v1071_v15  ;;  %3413 = vrot.lane.b32.xlu1 %v7855_v61, %s7662_s13 }
  0x5c   : > { %v2079_v30 = vrot.slane %v2077_v19, 3  ;;  %v2082_v33 = vrot.slane %v2080_v16, 4  ;;  %v1096_v2 = vshrl.u32 %v7221_v20, 16  ;;  %v1099_v6 = vshll.u32 %v7221_v20, 16 }
  0x5d   : > { %v2075_v44 = vor.u32 %v2074_v27, %v2071_v14  ;;  %v254_v51 = vadd.s32 144, %v7751_v34  ;;  %v243_v15 = vadd.s32 56, %v7751_v34  ;;  %v8235_v39 = vrot.slane %v1702_v22, 1 }
  0x5e   : > { %3423 = vrot.lane.b32.xlu0 %v7959_v1, %s7662_s13  ;;  %v1081_v1 = vshll.u32 %v7219_v41, 16  ;;  %v8219_v41 = vor.u32 %v2082_v33, %v2079_v30  ;;  %v1089_v58 = vrot.slane %v1087_v7, 4  ;;  %v1092_v11 = vrot.slane %v1090_v40, 5  ;;  %v1869_v40 = vld [vmem:[#allocation2 + $0x8] sm:$0xf8] }
  0x5f   : > { %vm11457_vm15 = vcmp.ne.s16.totalorder %v8192_v45, 0  ;;  %v384_v38 = vand.u32 15, %v252_v56  ;;  %v321_v18 = vand.u32 15, %v243_v15  ;;  %v8242_v19 = vsel %vm1041_vm11, %v8150_v5, %v1075_v62 }
  0x60   : > { %v2084_v46 = vsel %vm1395_vm5, %v2075_v44, %v8219_v41  ;;  %11629 = vst [vmem:[#allocation14_spill] sm:$0xff] %v8242_v19  ;;  %v8244_v61 = vor.u32 %v1048_v49, %v1045_v31  ;;  %v1098_v16 = vrot.slane %v1096_v2, 4  ;;  %v398_v20 = vand.u32 15, %v254_v51 }
  0x61   : > { %7283 = vmatprep.mubr.msk.bf16.mxu0 %vm228_vm0, %v2084_v46  ;;  %vm691_vm6 = vcmp.ne.s32.totalorder %v321_v18, 15  ;;  %v8251_v14 = vsel %vm11458_vm8, %v7962_v3, 0  ;;  %v1705_v5 = vsel %vm11553_vm4, %v8026_v53, %v8235_v39  ;;  %v1093_v27 = vor.u32 %v1092_v11, %v1089_v58 }
  0x62   : > { %3427 = vrot.lane.b32.xlu0 %v7991_v24, %s7662_s13  ;;  %v1083_v24 = vrot.slane %v1081_v1, 5  ;;  %11630 = vst [vmem:[#allocation15_spill] sm:$0xff] %v8244_v61  ;;  %v1101_v1 = vrot.slane %v1099_v6, 5  ;;  %vm11478_vm9 = vcmp.ne.s16.totalorder %v8242_v19, 0  ;;  %vm8263_vm13 = vcmp.ne.s32.totalorder %v384_v38, 0 }
  0x63   : > { %v256_v3 = vadd.s32 160, %v7751_v34  ;;  %v8271_v53 = vsel %vm1041_vm11, %v8244_v61, %v8142_v59  ;;  %v8276_v37 = vsel %vm11457_vm15, %v7811_v21, 0  ;;  %vm11558_vm2 = vcmp.ne.s16.totalorder %v8244_v61, 0 }
  0x64   : > { %v1084_v22 = vor.u32 %v1083_v24, %v1080_v57  ;;  %11633 = vst [vmem:[#allocation16_spill] sm:$0xff] %v8271_v53  ;;  %v8278_v31 = vor.u32 %v1101_v1, %v1098_v16  ;;  %v8294_v57 = vsel %vm11478_vm9, %v7794_v12, 0  ;;  %v8299_v56 = vsel %vm11478_vm9, %v7796_v13, 0 }
  0x65   : > { %v412_v24 = vand.u32 15, %v256_v3  ;;  %vm11555_vm3 = vcmp.ne.s16.totalorder %v8271_v53, 0  ;;  %v1557_v19 = vsel %vm1540_vm7, %v7993_v29, 0  ;;  %v7614_v53 = vld [vmem:[#allocation2 + $0x80] sm:$0xff] }
  0x66   : > { %3431 = vrot.lane.b32.xlu0 %v8019_v9, %s7662_s13  ;;  %v975_v9 = vsel %vm943_vm14, 65537, %v11466_v0  ;;  %vm1290_vm14 = vmpackc.low %vm691_vm6, %vm691_vm6  ;;  %v8284_v44 = vsel %vm1041_vm11, %v1075_v62, %v1084_v22  ;;  %vm8286_vm6 = vcmp.ne.s32.totalorder %v398_v20, 0  ;;  %v8302_v2 = vsel %vm1041_vm11, %v1084_v22, %v1093_v27 }
  0x67   : > { %v7222_v30 = vcombine.low %v975_v9, %v7978_v17  ;;  %v1322_v7 = vsel %vm1290_vm14, 65537, %v11466_v0  ;;  %11634 = vst [vmem:[#allocation17_spill] sm:$0xff] %v8284_v44  ;;  %11637 = vst [vmem:[#allocation18_spill] sm:$0xff] %v8302_v2  ;;  %vm11475_vm1 = vcmp.ne.s16.totalorder %v8284_v44, 0  ;;  %v8315_v13 = vsel %vm1041_vm11, %v1093_v27, %v8278_v31 }
  0x68   : > { %v7234_v49 = vcombine.low %v7978_v17, %v1322_v7  ;;  %vm945_vm14 = vmpackc.low %vm8263_vm13, %vm8263_vm13  ;;  %11638 = vst [vmem:[#allocation19_spill] sm:$0xff] %v8315_v13  ;;  %v258_v9 = vadd.s32 176, %v7751_v34  ;;  %vm8324_vm8 = vcmp.ne.s32.totalorder %v412_v24, 0  ;;  %v8333_v20 = vsel %vm11555_vm3, %v7811_v21, 0 }
  0x69   : > { %v1105_v62 = vshrl.u32 %v7222_v30, 16  ;;  %v1108_v6 = vshll.u32 %v7222_v30, 16  ;;  %vm947_vm13 = vmpackc.low %vm8286_vm6, %vm8286_vm6  ;;  %v977_v15 = vsel %vm945_vm14, 65537, %v11466_v0  ;;  %vm11472_vm6 = vcmp.ne.s16.totalorder %v8315_v13, 0 }
  0x6a   : > { %3435 = vrot.lane.b32.xlu0 %v8048_v10, %s7662_s13  ;;  %v8261_v10 = vsel %vm11457_vm15, %v7794_v12, 0  ;;  %v1423_v46 = vshrl.u32 %v7234_v49, 16  ;;  %v1426_v51 = vshll.u32 %v7234_v49, 16  ;;  %v8310_v12 = vsel %vm11558_vm2, %v1869_v40, 0  ;;  %vm949_vm14 = vmpackc.low %vm8324_vm8, %vm8324_vm8 }
  0x6b   : > { %vm11474_vm15 = vcmp.ne.s16.totalorder %v8302_v2, 0  ;;  %v1107_v38 = vrot.slane %v1105_v62, 4  ;;  %v1110_v18 = vrot.slane %v1108_v6, 5  ;;  %v979_v16 = vsel %vm947_vm13, 65537, %v11466_v0 }
  0x6c   : > { %v1425_v58 = vrot.slane %v1423_v46, 3  ;;  %v1428_v11 = vrot.slane %v1426_v51, 4  ;;  %v7223_v30 = vcombine.low %v977_v15, %v7978_v17  ;;  %v426_v3 = vand.u32 15, %v258_v9 }
  0x6d   : > { %v260_v21 = vadd.s32 192, %v7751_v34  ;;  %v8353_v7 = vsel %vm11474_vm15, %v7819_v26, 0  ;;  %v8358_v40 = vsel %vm11475_vm1, %v7819_v26, 0  ;;  %v7224_v59 = vcombine.low %v979_v16, %v7978_v17 }
  0x6e   : > { %1739 = vrot.lane.b32.xlu0 %v1705_v5, %s7662_s13  ;;  %v8328_v22 = vor.u32 %v1428_v11, %v1425_v58  ;;  %v8335_v5 = vld [vmem:[#allocation2 + $0x20] sm:$0xff]  ;;  %v8372_v62 = vor.u32 %v1110_v18, %v1107_v38  ;;  %v262_v6 = vadd.s32 208, %v7751_v34  ;;  %v1114_v46 = vshrl.u32 %v7223_v30, 16  ;;  %v8387_v58 = vld [vmem:[#allocation2 + $0x38] sm:$0xff] }
  0x6f   : > { %v8340_v27 = vsel %vm11475_vm1, %v8335_v5, 0  ;;  %v245_v15 = vadd.s32 72, %v7751_v34  ;;  %v8392_v11 = vsel %vm11472_vm6, %v8387_v58, 0  ;;  %v981_v9 = vsel %vm949_vm14, 65537, %v11466_v0 }
  0x70   : > { %v8347_v33 = vsel %vm1395_vm5, %v8167_v23, %v8328_v22  ;;  %v8365_v23 = vld [vmem:[#allocation2 + $0x30] sm:$0xff]  ;;  %vm8395_vm8 = vcmp.ne.s32.totalorder %v426_v3, 0  ;;  %v440_v18 = vand.u32 15, %v260_v21  ;;  %v1117_v16 = vshll.u32 %v7223_v30, 16 }
  0x71   : > { %11641 = vst [vmem:[#allocation20_spill] sm:$0xff] %v8347_v33  ;;  %vm11479_vm13 = vcmp.ne.s16.totalorder %v8347_v33, 0  ;;  %v8370_v49 = vsel %vm11474_vm15, %v8365_v23, 0  ;;  %v8383_v24 = vsel %vm11472_vm6, %v8365_v23, 0  ;;  %v1123_v1 = vshrl.u32 %v7224_v59, 16  ;;  %vm951_vm14 = vmpackc.low %vm8395_vm8, %vm8395_vm8 }
  0x72   : > { %v8377_v26 = vsel %vm11479_vm13, %v8335_v5, 0  ;;  %v1126_v52 = vshll.u32 %v7224_v59, 16  ;;  %v11644_v2 = vrot.slane %v8198_v42, 1  ;;  %v8407_v13 = vsel %vm1041_vm11, %v8278_v31, %v8372_v62 }
  0x73   : > { %v11473_v51 = vrot.slane %v8377_v26, 1  ;;  %11645 = vst [vmem:[#allocation21_spill] sm:$0xff] %v8407_v13  ;;  %v454_v45 = vand.u32 15, %v262_v6  ;;  %v1116_v43 = vrot.slane %v1114_v46, 4  ;;  %v7225_v21 = vcombine.low %v981_v9, %v7978_v17 }
  0x74   : > { %v335_v30 = vand.u32 15, %v245_v15  ;;  %v3310_v42 = vshrl.u32 %v8365_v23, 16  ;;  %vm8414_vm6 = vcmp.ne.s32.totalorder %v440_v18, 0  ;;  %v264_v31 = vadd.s32 224, %v7751_v34 }
  0x75   : > { %v1963_v44 = vsel %vm1760_vm12, %v11644_v2, %v11473_v51  ;;  %v1125_v6 = vrot.slane %v1123_v1, 4  ;;  %v1128_v46 = vrot.slane %v1126_v52, 5  ;;  %vm11491_vm1 = vcmp.ne.s16.totalorder %v8407_v13, 0  ;;  %vm953_vm13 = vmpackc.low %vm8414_vm6, %vm8414_vm6 }
  0x76   : > { %v2094_v0 = vshrl.u32 %v1963_v44, 16  ;;  %v2097_v3 = vshll.u32 %v1963_v44, 16  ;;  %v1119_v44 = vrot.slane %v1117_v16, 5  ;;  %vm693_vm15 = vcmp.ne.s32.totalorder %v335_v30, 15 }
  0x77   : > { %v11648_v38 = vmov 0   ;;  %vm8423_vm8 = vcmp.ne.s32.totalorder %v454_v45, 0  ;;  %vm1292_vm9 = vmpackc.low %vm693_vm15, %vm693_vm15  ;;  %v1132_v18 = vshrl.u32 %v7225_v21, 16  ;;  %v247_v16 = vadd.s32 88, %v7751_v34 }
  0x78   : > { %v2096_v59 = vrot.slane %v2094_v0, 3  ;;  %v2099_v2 = vrot.slane %v2097_v3, 4  ;;  %v983_v15 = vsel %vm951_vm14, 65537, %v11648_v38  ;;  %v3312_v0 = vor.u32 %v3310_v42, %v7839_v50  ;;  %vm955_vm15 = vmpackc.low %vm8423_vm8, %vm8423_vm8 }
  0x79   : > { %v1135_v3 = vshll.u32 %v7225_v21, 16  ;;  %v1324_v52 = vsel %vm1292_vm9, 65537, %v11648_v38  ;;  %v468_v1 = vand.u32 15, %v264_v31  ;;  %v1120_v21 = vor.u32 %v1119_v44, %v1116_v43 }
  0x7a   : > { %v8420_v9 = vor.u32 %v2099_v2, %v2096_v59  ;;  %v7235_v30 = vcombine.low %v7978_v17, %v1324_v52  ;;  %v3317_v50 = vsel %vm11553_vm4, %v3312_v0, %v7858_v63  ;;  %v349_v51 = vand.u32 15, %v247_v16 }
  0x7b   : > { %3417 = vrot.lane.b32.xlu1 %v3317_v50, %s7662_s13  ;;  %v1706_v42 = vshrl.u32 %v8088_v60, 16  ;;  %v985_v59 = vsel %vm953_vm13, 65537, %v11648_v38  ;;  %v7226_v31 = vcombine.low %v983_v15, %v7978_v17  ;;  %v249_v63 = vadd.s32 104, %v7751_v34 }
  0x7c   : > { %v8436_v45 = vsel %vm1395_vm5, %v8219_v41, %v8420_v9  ;;  %v1432_v2 = vshrl.u32 %v7235_v30, 16  ;;  %v1435_v54 = vshll.u32 %v7235_v30, 16  ;;  %v8445_v41 = vor.u32 %v1128_v46, %v1125_v6 }
  0x7d   : > { %vm695_vm9 = vcmp.ne.s32.totalorder %v349_v51, 15  ;;  %v1134_v43 = vrot.slane %v1132_v18, 4  ;;  %v1708_v0 = vor.u32 %v1706_v42, %v8235_v39  ;;  %v1137_v52 = vrot.slane %v1135_v3, 5 }
  0x7e   : > { %v1434_v44 = vrot.slane %v1432_v2, 3  ;;  %v1437_v60 = vrot.slane %v1435_v54, 4  ;;  %vm1294_vm6 = vmpackc.low %vm695_vm9, %vm695_vm9  ;;  %v7227_v16 = vcombine.low %v985_v59, %v7978_v17  ;;  %vm8454_vm13 = vcmp.ne.s32.totalorder %v468_v1, 0  ;;  %v7603_v54 = vld [vmem:[#allocation2 + $0x10] sm:$0xff] }
  0x7f   : > { %v987_v46 = vsel %vm955_vm15, 65537, %v11648_v38  ;;  %v482_v15 = vand.u32 15, %v266_v32  ;;  %v1326_v18 = vsel %vm1294_vm6, 65537, %v11648_v38  ;;  %1741 = vrot.lane.b32.xlu0 %v1708_v0, %s7662_s13  ;;  %v8466_v39 = vsel %vm1541_vm10, %v7603_v54, 0  ;;  %vm957_vm14 = vmpackc.low %vm8454_vm13, %vm8454_vm13 }
  0x80   : > { %v1141_v3 = vshrl.u32 %v7226_v31, 16  ;;  %v8468_v1 = vor.u32 %v1437_v60, %v1434_v44  ;;  %v363_v30 = vand.u32 15, %v249_v63  ;;  %v7236_v29 = vcombine.low %v7978_v17, %v1326_v18 }
  0x81   : > { %v1761_v32 = vrot.slane %v8251_v14, 1  ;;  %v1762_v50 = vrot.slane %v1557_v19, 1  ;;  %v11482_v51 = vrot.slane %v8466_v39, 1  ;;  %v8479_v42 = vsel %vm11491_vm1, %v8387_v58, 0 }
  0x82   : > { %v8483_v59 = vsel %vm1041_vm11, %v8372_v62, %v1120_v21  ;;  %v8487_v2 = vsel %vm1041_vm11, %v1120_v21, %v8445_v41  ;;  %v1144_v63 = vshll.u32 %v7226_v31, 16  ;;  %v1138_v44 = vor.u32 %v1137_v52, %v1134_v43 }
  0x83   : > { %11653 = vst [vmem:[#allocation22_spill] sm:$0xff] %v8483_v59  ;;  %11654 = vst [vmem:[#allocation23_spill] sm:$0xff] %v8487_v2  ;;  %v1150_v60 = vshrl.u32 %v7227_v16, 16  ;;  %v1153_v14 = vshll.u32 %v7227_v16, 16  ;;  %vm8489_vm8 = vcmp.ne.s32.totalorder %v482_v15, 0  ;;  %v1143_v6 = vrot.slane %v1141_v3, 4 }
  0x84   : > { %v7228_v19 = vcombine.low %v987_v46, %v7978_v17  ;;  %v989_v18 = vsel %vm957_vm14, 65537, %v11648_v38  ;;  %vm8495_vm15 = vcmp.ne.s32.totalorder %v363_v30, 15  ;;  %v8502_v21 = vsel %vm1395_vm5, %v8328_v22, %v8468_v1  ;;  %vm959_vm9 = vmpackc.low %vm8489_vm8, %vm8489_vm8 }
  0x85   : > { %v1441_v31 = vshrl.u32 %v7236_v29, 16  ;;  %v1763_v43 = vsel %vm1760_vm12, %v1761_v32, %v1762_v50  ;;  %v1765_v52 = vsel %vm1760_vm12, %v1762_v50, %v11482_v51  ;;  %v1444_v16 = vshll.u32 %v7236_v29, 16  ;;  %vm1296_vm6 = vmpackc.low %vm8495_vm15, %vm8495_vm15  ;;  %v8515_v32 = vld [vmem:[#allocation2 + $0x40] sm:$0xff] }
  0x86   : > { %v2653_v46 = vshrl.u32 %v1763_v43, 16  ;;  %v2656_v15 = vshll.u32 %v1763_v43, 16  ;;  %v2661_v54 = vshrl.u32 %v1765_v52, 16  ;;  %v1146_v3 = vrot.slane %v1144_v63, 5  ;;  %11659 = vst [vmem:[#allocation24_spill] sm:$0xff] %v8515_v32 }
  0x87   : > { %v1152_v30 = vrot.slane %v1150_v60, 4  ;;  %v7229_v22 = vcombine.low %v989_v18, %v7978_v17  ;;  %v3326_v50 = vshrl.u32 %v8515_v32, 16  ;;  %v1155_v51 = vrot.slane %v1153_v14, 5 }
  0x88   : > { %v1159_v36 = vshrl.u32 %v7228_v19, 16  ;;  %v2655_v25 = vrot.slane %v2653_v46, 3  ;;  %v2658_v4 = vrot.slane %v2656_v15, 4  ;;  %v1162_v29 = vshll.u32 %v7228_v19, 16  ;;  %v8527_v15 = vld [vmem:[#allocation2 + $0x28] sm:$0xff] }
  0x89   : > { %vm1543_vm13 = vcmp.ne.s16.totalorder %v8502_v21, 0  ;;  %v991_v63 = vsel %vm959_vm9, 65537, %v11648_v38  ;;  %v1443_v60 = vrot.slane %v1441_v31, 3  ;;  %v1446_v18 = vrot.slane %v1444_v16, 4  ;;  %11660 = vst [vmem:[#allocation25_spill] sm:$0xff] %v8527_v15 }
  0x8a   : > { %v1328_v62 = vsel %vm1296_vm6, 65537, %v11648_v38  ;;  %v2663_v43 = vrot.slane %v2661_v54, 3  ;;  %v2664_v55 = vshll.u32 %v1765_v52, 16  ;;  %v1147_v14 = vor.u32 %v1146_v3, %v1143_v6 }
  0x8b   : > { %v1168_v48 = vshrl.u32 %v7229_v22, 16  ;;  %v1171_v46 = vshll.u32 %v7229_v22, 16  ;;  %v3328_v19 = vor.u32 %v3326_v50, %v7872_v8  ;;  %v8532_v47 = vsel %vm1543_vm13, %v8527_v15, 0 }
  0x8c   : > { %v7230_v0 = vcombine.low %v991_v63, %v7978_v17  ;;  %v2659_v31 = vor.u32 %v2658_v4, %v2655_v25  ;;  %v2666_v16 = vrot.slane %v2664_v55, 4  ;;  %vm11540_vm14 = vcmp.ne.s16.totalorder %v8483_v59, 0  ;;  %v8601_v59 = vld [vmem:[#allocation2 + $0x50] sm:$0xff] }
  0x8d   : > { %v1156_v54 = vor.u32 %v1155_v51, %v1152_v30  ;;  %v7237_v6 = vcombine.low %v7978_v17, %v1328_v62  ;;  %v3333_v52 = vsel %vm11553_vm4, %v3328_v19, %v7897_v28  ;;  %v1161_v8 = vrot.slane %v1159_v36, 4  ;;  %11667 = vst [vmem:[#allocation31_spill] sm:$0xff] %v8601_v59 }
  0x8e   : > { %v1164_v3 = vrot.slane %v1162_v29, 5  ;;  %v8539_v22 = vor.u32 %v1446_v18, %v1443_v60  ;;  %v8541_v50 = vor.u32 %v2666_v16, %v2663_v43  ;;  %3421 = vrot.lane.b32.xlu1 %v3333_v52, %s7662_s13  ;;  %vm11527_vm8 = vcmp.ne.s16.totalorder %v8487_v2, 0 }
  0x8f   : > { %v8547_v55 = vsel %vm1041_vm11, %v8445_v41, %v1138_v44  ;;  %v8550_v4 = vsel %vm1041_vm11, %v1138_v44, %v1147_v14  ;;  %v11494_v25 = vrot.slane %v8532_v47, 1  ;;  %v1170_v28 = vrot.slane %v1168_v48, 4 }
  0x90   : > { %11661 = vst [vmem:[#allocation26_spill] sm:$0xff] %v8547_v55  ;;  %11662 = vst [vmem:[#allocation27_spill] sm:$0xff] %v8550_v4  ;;  %v1173_v36 = vrot.slane %v1171_v46, 5  ;;  %v1177_v51 = vshrl.u32 %v7230_v0, 16  ;;  %v2668_v30 = vsel %vm1395_vm5, %v2659_v31, %v8541_v50  ;;  %v8556_v29 = vsel %vm1041_vm11, %v1147_v14, %v1156_v54  ;;  %v8578_v46 = vld [vmem:[#allocation2 + $0x48] sm:$0xff] }
  0x91   : > { %11663 = vst [vmem:[#allocation28_spill] sm:$0xff] %v8556_v29  ;;  %v1180_v63 = vshll.u32 %v7230_v0, 16  ;;  %v1450_v60 = vshrl.u32 %v7237_v6, 16  ;;  %v1453_v18 = vshll.u32 %v7237_v6, 16  ;;  %7311 = vmatprep.mubr.msk.bf16.mxu1 %vm228_vm0, %v2668_v30  ;;  %v8564_v44 = vsel %vm11540_vm14, %v8515_v32, 0  ;;  %11665 = vst [vmem:[#allocation30_spill] sm:$0xff] %v8578_v46 }
  0x92   : > { %v8569_v48 = vsel %vm11491_vm1, %v8515_v32, 0  ;;  %v1165_v62 = vor.u32 %v1164_v3, %v1161_v8  ;;  %v8574_v43 = vsel %vm1395_vm5, %v8468_v1, %v8539_v22  ;;  %v8583_v19 = vsel %vm11527_vm8, %v8578_v46, 0 }
  0x93   : > { %11664 = vst [vmem:[#allocation29_spill] sm:$0xff] %v8574_v43  ;;  %v8588_v0 = vsel %vm11540_vm14, %v8578_v46, 0  ;;  %vm11515_vm15 = vcmp.ne.s16.totalorder %v8547_v55, 0  ;;  %v11666_v1 = vrot.slane %v8377_v26, 1  ;;  %vm11502_vm9 = vcmp.ne.s16.totalorder %v8550_v4, 0 }
  0x94   : > { %vm11516_vm6 = vcmp.ne.s16.totalorder %v8556_v29, 0  ;;  %v1174_v16 = vor.u32 %v1173_v36, %v1170_v28  ;;  %v1179_v6 = vrot.slane %v1177_v51, 4  ;;  %v1182_v52 = vrot.slane %v1180_v63, 5  ;;  %v8616_v63 = vld [vmem:[#allocation2 + $0x58] sm:$0xff]  ;;  %v7612_v29 = vld [vmem:[#allocation2 + $0x8] sm:$0xff] }
  0x95   : > { %v1965_v31 = vsel %vm1760_vm12, %v11666_v1, %v11494_v25  ;;  %vm11541_vm1 = vcmp.ne.s16.totalorder %v8574_v43, 0  ;;  %v1452_v8 = vrot.slane %v1450_v60, 3  ;;  %v1455_v3 = vrot.slane %v1453_v18, 4  ;;  %11669 = vst [vmem:[#allocation33_spill] sm:$0xff] %v8616_v63  ;;  %v8628_v18 = vld [vmem:[#allocation2 + $0x60] sm:$0xff] }
  0x96   : > { %v8606_v26 = vsel %vm11527_vm8, %v8601_v59, 0  ;;  %v8609_v1 = vsel %vm1041_vm11, %v1156_v54, %v1165_v62  ;;  %v2111_v25 = vshrl.u32 %v1965_v31, 16  ;;  %v2114_v28 = vshll.u32 %v1965_v31, 16  ;;  %11670 = vst [vmem:[#allocation34_spill] sm:$0xff] %v8628_v18 }
  0x97   : > { %11668 = vst [vmem:[#allocation32_spill] sm:$0xff] %v8609_v1  ;;  %v8614_v51 = vsel %vm11515_vm15, %v8601_v59, 0  ;;  %v8621_v60 = vsel %vm11502_vm9, %v8616_v63, 0  ;;  %v8626_v54 = vsel %vm11515_vm15, %v8616_v63, 0  ;;  %v8633_v31 = vsel %vm11502_vm9, %v8628_v18, 0  ;;  %v8664_v59 = vld [vmem:[#allocation2 + $0x68] sm:$0xff] }
  0x98   : > { %11671 = vst [vmem:[#allocation35_spill] sm:$0xff] %v8633_v31  ;;  %v8643_v55 = vsel %vm11516_vm6, %v8628_v18, 0  ;;  %v8648_v63 = vsel %vm11541_vm1, %v8365_v23, 0  ;;  %vm11524_vm9 = vcmp.ne.s16.totalorder %v8609_v1, 0  ;;  %v8652_v4 = vsel %vm1041_vm11, %v1165_v62, %v1174_v16  ;;  %v846_v23 = vld [vmem:[#allocation2] sm:$0xf8] }
  0x99   : > { %11672 = vst [vmem:[#allocation36_spill] sm:$0xff] %v8643_v55  ;;  %11673 = vst [vmem:[#allocation37_spill] sm:$0xff] %v8652_v4  ;;  %v8654_v31 = vor.u32 %v1182_v52, %v1179_v6  ;;  %v2113_v18 = vrot.slane %v2111_v25, 3  ;;  %v2116_v55 = vrot.slane %v2114_v28, 4  ;;  %v251_v62 = vadd.s32 120, %v7751_v34 }
  0x9a   : > { %v8559_v41 = vpop.permute.xlu1 %1715  ;;  %11675 = vst [vmem:[#allocation39_spill] sm:$0xff] %v8664_v59  ;;  %v8669_v6 = vsel %vm11524_vm9, %v8664_v59, 0  ;;  %vm11537_vm15 = vcmp.ne.s16.totalorder %v8652_v4, 0  ;;  %v8698_v1 = vsel %vm11558_vm2, %v846_v23, 0  ;;  %vm11688_vm8 = vcmp.ne.s16.totalorder %v8347_v33, 0 }
  0x9b   : > { %11674 = vst [vmem:[#allocation38_spill] sm:$0xff] %v8654_v31  ;;  %11676 = vst [vmem:[#allocation40_spill] sm:$0xff] %v8669_v6  ;;  %v8693_v15 = vor.u32 %v2116_v55, %v2113_v18  ;;  %v11683_v55 = vrot.slane %v8532_v47, 1  ;;  %v377_v61 = vand.u32 15, %v251_v62  ;;  %v7615_v62 = vld [vmem:[#allocation2 + $0x88] sm:$0xf]  ;;  %v1996_v4 = vsel %vm228_vm0, %v8261_v10, %v8559_v41 }
  0x9c   : > { %v8576_v14 = vpop.permute.xlu0 %1713 }
  0x9d   : > { %v1994_v2 = vsel %vm228_vm0, %v8333_v20, %v8576_v14  ;;  %v8656_v20 = vor.u32 %v1455_v3, %v1452_v8  ;;  %v8686_v3 = vsel %vm1041_vm11, %v1174_v16, %v8654_v31 }
  0x9e   : > { %v8599_v30 = vpop.permute.xlu1 %1717  ;;  %v2060_v35 = vshrl.u32 %v1994_v2, 16  ;;  %v2063_v32 = vshll.u32 %v1994_v2, 16  ;;  %v8677_v2 = vld [vmem:[#allocation2 + $0x70] sm:$0xff]  ;;  %11680 = vst [vmem:[#allocation44_spill] sm:$0xff] %v8686_v3  ;;  %vm11572_vm11 = vcmp.ne.s16.totalorder %v8686_v3, 0 }
  0x9f   : > { %11678 = vst [vmem:[#allocation42_spill] sm:$0xff] %v8677_v2  ;;  %v8682_v25 = vsel %vm11524_vm9, %v8677_v2, 0  ;;  %v8691_v28 = vsel %vm1395_vm5, %v8539_v22, %v8656_v20  ;;  %v11682_v22 = vrot.slane %v8648_v63, 1  ;;  %v8716_v23 = vsel %vm11537_vm15, %v8677_v2, 0 }
  0xa0   : > { %v1933_v36 = vpop.permute.xlu0 %1932  ;;  %11679 = vst [vmem:[#allocation43_spill] sm:$0xff] %v8682_v25  ;;  %11681 = vst [vmem:[#allocation45_spill] sm:$0xff] %v8691_v28  ;;  %v2062_v16 = vrot.slane %v2060_v35, 3  ;;  %vm11543_vm9 = vcmp.ne.s16.totalorder %v8691_v28, 0  ;;  %v8726_v47 = vsel %vm11572_vm11, %v7614_v53, 0 }
  0xa1   : > { %v1992_v13 = vsel %vm228_vm0, %v8310_v12, %v1933_v36  ;;  %v1967_v18 = vsel %vm1760_vm12, %v11683_v55, %v11682_v22  ;;  %11684 = vst [vmem:[#allocation46_spill] sm:$0xff] %v8716_v23  ;;  %11686 = vst [vmem:[#allocation48_spill] sm:$0xff] %v8726_v47  ;;  %v7616_v55 = vld [vmem:[#allocation2 + $0x18] sm:$0xff]  ;;  %v8757_v10 = vsel %vm11543_vm9, %v8387_v58, 0  ;;  %v2088_v58 = vshll.u32 %v1996_v4, 16 }
  0xa2   : > { %v2053_v12 = vshrl.u32 %v1992_v13, 16  ;;  %v2056_v36 = vshll.u32 %v1992_v13, 16  ;;  %v8658_v46 = vpop.permute.xlu1 %1721  ;;  %v8674_v13 = vsel %vm11516_vm6, %v8664_v59, 0  ;;  %vm11542_vm6 = vcmp.ne.s16.totalorder %v8654_v31, 0 }
  0xa3   : > { %11677 = vst [vmem:[#allocation41_spill] sm:$0xff] %v8674_v13  ;;  %v8730_v22 = vsel %vm11542_vm6, %v7615_v62, 0  ;;  %v2128_v53 = vshrl.u32 %v1967_v18, 16  ;;  %v1805_v62 = vsel %vm228_vm0, %v8294_v57, %v8559_v41  ;;  %v1802_v57 = vsel %vm228_vm0, %v8276_v37, %v8576_v14 }
  0xa4   : > { %v8660_v43 = vpop.permute.xlu0 %1719  ;;  %v2055_v52 = vrot.slane %v2053_v12, 3  ;;  %v2058_v8 = vrot.slane %v2056_v36, 4  ;;  %v8702_v12 = vsel %vm11555_vm3, %v7612_v29, 0  ;;  %v2065_v36 = vrot.slane %v2063_v32, 4  ;;  %v7613_v29 = vld [vmem:[#allocation2 + $0x78] sm:$0xff]  ;;  %11687 = vst [vmem:[#allocation49_spill] sm:$0xff] %v8730_v22 }
  0xa5   : > { %v8720_v35 = vsel %vm11537_vm15, %v7613_v29, 0  ;;  %v8734_v29 = vsel %vm11688_vm8, %v7616_v55, 0  ;;  %v7544_v55 = vld [vmem:[%s11449_s1 + $0xc0] sm:$0xff]   ;;  %vm8759_vm8 = vcmp.ne.s32.totalorder %v377_v61, 15  ;;  %v1808_v41 = vsel %vm228_vm0, %v8340_v27, %v8599_v30 }
  0xa6   : > { %v8706_v25 = vpop.permute.xlu1 %1725  ;;  %11685 = vst [vmem:[#allocation47_spill] sm:$0xff] %v8720_v35  ;;  %v2059_v32 = vor.u32 %v2058_v8, %v2055_v52  ;;  %v8742_v52 = vsel %vm1395_vm5, %v8420_v9, %v8693_v15  ;;  %v2131_v8 = vshll.u32 %v1967_v18, 16  ;;  %v8747_v31 = vor.u32 %v2065_v36, %v2062_v16  ;;  %vm1298_vm15 = vmpackc.low %vm8759_vm8, %vm8759_vm8 }
  0xa7   : > { %v8771_v36 = vadd.s32 136, %v7751_v34  ;;  %v2085_v18 = vshrl.u32 %v1996_v4, 16  ;;  %v1998_v61 = vsel %vm228_vm0, %v8299_v56, %v8599_v30  ;;  %v2686_v37 = vshrl.u32 %v1805_v62, 16  ;;  %v7548_v30 = vld [vmem:[%s11449_s1 + $0xc8] sm:$0xff]  }
  0xa8   : > { %v8704_v59 = vpop.permute.xlu0 %1723  ;;  %v2067_v3 = vsel %vm1395_vm5, %v2059_v32, %v8747_v31  ;;  %v2130_v14 = vrot.slane %v2128_v53, 3  ;;  %v2133_v27 = vrot.slane %v2131_v8, 4  ;;  %v2689_v4 = vshll.u32 %v1805_v62, 16 }
  0xa9   : > { %2509 = vmatmul.mubr.bf16.vlgmr.msra.gmra.mrb[0].mxu0 %v2067_v3  ;;  %v2669_v22 = vshrl.u32 %v1802_v57, 16  ;;  %v2672_v47 = vshll.u32 %v1802_v57, 16  ;;  %v2703_v35 = vshrl.u32 %v1808_v41, 16  ;;  %v2102_v3 = vshrl.u32 %v1998_v61, 16 }
  0xaa   : > { %v8778_v2 = vpop.permute.xlu1 %1729  ;;  %3993 = vmatpush1.bf16.msra.mxu0 %v7544_v55  ;;  %7284 = vmatprep.mubr.msk.bf16.mxu0 %vm228_vm0, %v8436_v45  ;;  %v2105_v32 = vshll.u32 %v1998_v61, 16  ;;  %v2706_v53 = vshll.u32 %v1808_v41, 16  ;;  %v11691_v8 = vrot.slane %v8734_v29, 1  ;;  %v11692_v62 = vrot.slane %v8466_v39, 1 }
  0xab   : > { %3994 = vmatprep.subr.bf16.mxu0 %v11648_v38  ;;  %v2087_v57 = vrot.slane %v2085_v18, 3  ;;  %v2090_v45 = vrot.slane %v2088_v58, 4  ;;  %v1330_v16 = vsel %vm1298_vm15, 65537, %v11648_v38  ;;  %v2688_v61 = vrot.slane %v2686_v37, 3 }
  0xac   : > { %v8752_v33 = vpop.permute.xlu0 %1727  ;;  %v8797_v55 = vsel %vm1760_vm12, %v11692_v62, %v11691_v8  ;;  %v2000_v23 = vsel %vm228_vm0, %v8358_v40, %v8660_v43  ;;  %v8809_v39 = vor.u32 %v2133_v27, %v2130_v14  ;;  %v11693_v8 = vrot.slane %v8757_v10, 1  ;;  %v7552_v40 = vld [vmem:[%s11449_s1 + $0xd0] sm:$0xff]  }
  0xad   : > { %v11694_v18 = vrot.slane %v8648_v63, 1  ;;  %v2691_v62 = vrot.slane %v2689_v4, 4  ;;  %v2671_v9 = vrot.slane %v2669_v22, 3  ;;  %v2674_v13 = vrot.slane %v2672_v47, 4 }
  0xae   : > { %v2705_v6 = vrot.slane %v2703_v35, 3  ;;  %v8818_v28 = vpop.permute.xlu1 %1733  ;;  %3995 = vmatpush1.bf16.msra.mxu0 %v7548_v30  ;;  %v2104_v14 = vrot.slane %v2102_v3, 3  ;;  %v2107_v27 = vrot.slane %v2105_v32, 4  ;;  %v2708_v41 = vrot.slane %v2706_v53, 4 }
  0xaf   : > { %v8816_v58 = vsel %vm1760_vm12, %v11694_v18, %v11693_v8  ;;  %v1811_v63 = vsel %vm228_vm0, %v8353_v7, %v8660_v43  ;;  %3996 = vmatprep.subr.bf16.mxu0 %v11648_v38  ;;  %v8829_v47 = vor.u32 %v2090_v45, %v2087_v57  ;;  %v2119_v35 = vshrl.u32 %v2000_v23, 16 }
  0xb0   : > { %v8786_v56 = vpop.permute.xlu0 %1731  ;;  %v2122_v22 = vshll.u32 %v2000_v23, 16  ;;  %v8832_v4 = vcombine.low %v7978_v17, %v1330_v16  ;;  %v8837_v30 = vsel %vm1395_vm5, %v8693_v15, %v8809_v39  ;;  %v8842_v43 = vor.u32 %v2691_v62, %v2688_v61  ;;  %v7555_v15 = vld [vmem:[%s11449_s1 + $0xd8] sm:$0xff]  }
  0xb1   : > { %v2720_v53 = vshrl.u32 %v1811_v63, 16  ;;  %v2723_v57 = vshll.u32 %v1811_v63, 16  ;;  %v2002_v23 = vsel %vm228_vm0, %v8370_v49, %v8658_v46  ;;  %v8850_v16 = vor.u32 %v2674_v13, %v2671_v9 }
  0xb2   : > { %3997 = vmatpush1.bf16.msra.mxu0 %v7552_v40  ;;  %v8852_v45 = vor.u32 %v2107_v27, %v2104_v14  ;;  %v8854_v8 = vor.u32 %v2708_v41, %v2705_v6  ;;  %v1814_v61 = vsel %vm228_vm0, %v8383_v24, %v8658_v46  ;;  %v2121_v18 = vrot.slane %v2119_v35, 3  ;;  %v8866_v9 = vpop.permute.xlu1 %1737 }
  0xb3   : > { %3998 = vmatprep.subr.bf16.mxu0 %v11648_v38  ;;  %v2124_v62 = vrot.slane %v2122_v22, 4  ;;  %v2004_v49 = vsel %vm228_vm0, %v8392_v11, %v8704_v59  ;;  %v2092_v13 = vsel %vm1395_vm5, %v8747_v31, %v8829_v47  ;;  %v2136_v41 = vshrl.u32 %v2002_v23, 16 }
  0xb4   : > { %v8820_v37 = vpop.permute.xlu0 %1735  ;;  %v2139_v40 = vshll.u32 %v2002_v23, 16  ;;  %v1817_v24 = vsel %vm228_vm0, %v8479_v42, %v8704_v59  ;;  %v1820_v46 = vsel %vm228_vm0, %v8564_v44, %v8706_v25  ;;  %2517 = vmatmul.mubr.bf16.gmra.mrb[4].mxu0 %v2092_v13  ;;  %v2722_v11 = vrot.slane %v2720_v53, 3  ;;  %v7556_v42 = vld [vmem:[%s11449_s1 + $0xe0] sm:$0xff]  }
  0xb5   : > { %v2725_v14 = vrot.slane %v2723_v57, 4  ;;  %v2737_v27 = vshrl.u32 %v1814_v61, 16  ;;  %v2006_v31 = vsel %vm228_vm0, %v8569_v48, %v8706_v25  ;;  %7285 = vmatprep.mubr.msk.bf16.mxu0 %vm228_vm0, %v8742_v52  ;;  %v2740_v59 = vshll.u32 %v1814_v61, 16 }
  0xb6   : > { %3999 = vmatpush1.bf16.msra.mxu0 %v7555_v15  ;;  %v2153_v63 = vshrl.u32 %v2004_v49, 16  ;;  %v2156_v35 = vshll.u32 %v2004_v49, 16  ;;  %v2008_v44 = vsel %vm228_vm0, %v8588_v0, %v8752_v33  ;;  %v2754_v22 = vshrl.u32 %v1817_v24, 16  ;;  %v8891_v32 = vpop.permute.xlu1 %1936 }
  0xb7   : > { %4000 = vmatprep.subr.bf16.mxu0 %v11648_v38  ;;  %v2757_v53 = vshll.u32 %v1817_v24, 16  ;;  %v2771_v48 = vshrl.u32 %v1820_v46, 16  ;;  %v1823_v25 = vsel %vm228_vm0, %v8583_v19, %v8752_v33  ;;  %v2138_v52 = vrot.slane %v2136_v41, 3  ;;  %v7557_v24 = vld [vmem:[%s11449_s1 + $0xe8] sm:$0xff]  }
  0xb8   : > { %v8868_v6 = vpop.permute.xlu0 %1934  ;;  %v2141_v57 = vrot.slane %v2139_v40, 4  ;;  %v2170_v23 = vshrl.u32 %v2006_v31, 16  ;;  %v2173_v15 = vshll.u32 %v2006_v31, 16  ;;  %v2739_v61 = vrot.slane %v2737_v27, 3 }
  0xb9   : > { %11695 = vst [vmem:[#allocation50_spill] sm:$0xff] %v8868_v6  ;;  %v2774_v13 = vshll.u32 %v1820_v46, 16  ;;  %v2187_v49 = vshrl.u32 %v2008_v44, 16  ;;  %v2190_v7 = vshll.u32 %v2008_v44, 16  ;;  %v2742_v3 = vrot.slane %v2740_v59, 4 }
  0xba   : > { %4001 = vmatpush1.bf16.msra.mxu0 %v7556_v42  ;;  %v2155_v6 = vrot.slane %v2153_v63, 3  ;;  %v2788_v33 = vshrl.u32 %v1823_v25, 16  ;;  %v2791_v19 = vshll.u32 %v1823_v25, 16  ;;  %v2158_v41 = vrot.slane %v2156_v35, 4 }
  0xbb   : > { %4002 = vmatprep.subr.bf16.mxu0 %v11648_v38  ;;  %v2756_v40 = vrot.slane %v2754_v22, 3  ;;  %v2759_v46 = vrot.slane %v2757_v53, 4  ;;  %v2773_v27 = vrot.slane %v2771_v48, 3  ;;  %v11697_v31 = vand.u32 15, %v8771_v36  ;;  %v7558_v48 = vld [vmem:[%s11449_s1 + $0xf0] sm:$0xff]  }
  0xbc   : > { %v8893_v0 = vpop.permute.xlu0 %1938  ;;  %v2172_v42 = vrot.slane %v2170_v23, 3  ;;  %v1826_v59 = vsel %vm228_vm0, %v8614_v51, %v8778_v2  ;;  %v2010_v63 = vsel %vm228_vm0, %v8606_v26, %v8778_v2  ;;  %v2776_v35 = vrot.slane %v2774_v13, 4 }
  0xbd   : > { %11696 = vst [vmem:[#allocation51_spill] sm:$0xff] %v8893_v0  ;;  %vm8901_vm15 = vcmp.ne.s32.totalorder %v11697_v31, 15  ;;  %v2175_v0 = vrot.slane %v2173_v15, 4  ;;  %v2189_v22 = vrot.slane %v2187_v49, 3  ;;  %v2192_v53 = vrot.slane %v2190_v7, 4 }
  0xbe   : > { %v2109_v36 = vsel %vm1395_vm5, %v8829_v47, %v8852_v45  ;;  %4003 = vmatpush1.bf16.msra.mxu0 %v7557_v24  ;;  %v8917_v25 = vor.u32 %v2124_v62, %v2121_v18  ;;  %v8919_v23 = vor.u32 %v2725_v14, %v2722_v11  ;;  %v2790_v51 = vrot.slane %v2788_v33, 3  ;;  %v1710_v47 = vpop.permute.xlu1 %1709  ;;  %vm1300_vm8 = vmpackc.low %vm8901_vm15, %vm8901_vm15 }
  0xbf   : > { %v2793_v15 = vrot.slane %v2791_v19, 4  ;;  %2525 = vmatmul.mubr.bf16.gmra.mrb[8].mxu0 %v2109_v36  ;;  %4004 = vmatprep.subr.bf16.mxu0 %v11648_v38  ;;  %v8922_v26 = vor.u32 %v2141_v57, %v2138_v52  ;;  %v2204_v2 = vshrl.u32 %v2010_v63, 16  ;;  %v2207_v7 = vshll.u32 %v2010_v63, 16  ;;  %v7560_v63 = vld [vmem:[%s11449_s1 + $0x100] sm:$0xff]  }
  0xc0   : > { %v2805_v13 = vshrl.u32 %v1826_v59, 16  ;;  %7286 = vmatprep.mubr.msk.bf16.mxu0 %vm228_vm0, %v8837_v30  ;;  %v1712_v49 = vpop.permute.xlu0 %1711  ;;  %v8926_v24 = vor.u32 %v2742_v3, %v2739_v61  ;;  %v8928_v18 = vor.u32 %v2158_v41, %v2155_v6  ;;  %v8930_v62 = vor.u32 %v2759_v46, %v2756_v40  ;;  %v7559_v30 = vld [vmem:[%s11449_s1 + $0xf8] sm:$0xff]  }
  0xc1   : > { %v2808_v11 = vshll.u32 %v1826_v59, 16  ;;  %v8932_v14 = vor.u32 %v2175_v0, %v2172_v42  ;;  %v8934_v33 = vor.u32 %v2776_v35, %v2773_v27  ;;  %v8936_v52 = vor.u32 %v2192_v53, %v2189_v22 }
  0xc2   : > { %v8941_v57 = vsel %vm228_vm0, %v8621_v60, %v8786_v56  ;;  %4005 = vmatpush1.bf16.msra.mxu0 %v7558_v48  ;;  %v8946_v3 = vor.u32 %v2793_v15, %v2790_v51  ;;  %v8951_v6 = vsel %vm228_vm0, %v8626_v54, %v8786_v56  ;;  %v1796_v61 = vsel %vm228_vm0, %v8698_v1, %v1710_v47 }
  0xc3   : > { %v1799_v0 = vsel %vm228_vm0, %v8702_v12, %v1712_v49  ;;  %4006 = vmatprep.subr.bf16.mxu0 %v11648_v38  ;;  %v2206_v60 = vrot.slane %v2204_v2, 3  ;;  %v2209_v19 = vrot.slane %v2207_v7, 4  ;;  %v8958_v41 = vrot.slane %v2805_v13, 3 }
  0xc4   : > { %v2637_v40 = vshrl.u32 %v1796_v61, 16  ;;  %v8960_v46 = vrot.slane %v2808_v11, 4  ;;  %v2640_v27 = vshll.u32 %v1796_v61, 16  ;;  %v2644_v31 = vshrl.u32 %v1799_v0, 16 }
  0xc5   : > { %v2647_v42 = vshll.u32 %v1799_v0, 16  ;;  %v2221_v54 = vshrl.u32 %v8951_v6, 16  ;;  %v2126_v1 = vsel %vm1395_vm5, %v8852_v45, %v8917_v25  ;;  %v11700_v12 = vshrl.u32 %v8816_v58, 16 }
  0xc6   : > { %v2639_v56 = vrot.slane %v2637_v40, 3  ;;  %4007 = vmatpush1.bf16.msra.mxu0 %v7559_v30  ;;  %v2642_v35 = vrot.slane %v2640_v27, 4  ;;  %v2646_v22 = vrot.slane %v2644_v31, 3  ;;  %v2148_v36 = vshll.u32 %v8816_v58, 16 }
  0xc7   : > { %v2147_v59 = vrot.slane %v11700_v12, 3  ;;  %v2649_v53 = vrot.slane %v2647_v42, 4  ;;  %2533 = vmatmul.mubr.bf16.gmra.mrb[12].mxu0 %v2126_v1  ;;  %4008 = vmatprep.subr.bf16.mxu0 %v11648_v38  ;;  %v2224_v45 = vshll.u32 %v8951_v6, 16  ;;  %v1459_v48 = vshrl.u32 %v8832_v4, 16  ;;  %v7561_v1 = vld [vmem:[%s11449_s1 + $0x108] sm:$0xff]  }
  0xc8   : > { %v1462_v51 = vshll.u32 %v8832_v4, 16  ;;  %v11701_v15 = vshrl.u32 %v8797_v55, 16  ;;  %v2643_v7 = vor.u32 %v2642_v35, %v2639_v56  ;;  %v2150_v47 = vrot.slane %v2148_v36, 4  ;;  %v11706_v36 = vld [vmem:[#allocation25_spill] sm:$0xff] }
  0xc9   : > { %v2650_v13 = vor.u32 %v2649_v53, %v2646_v22  ;;  %v11702_v58 = vshll.u32 %v8797_v55, 16  ;;  %v2822_v44 = vshrl.u32 %v8941_v57, 16  ;;  %v1461_v11 = vrot.slane %v1459_v48, 3  ;;  %v11704_v22 = vld [vmem:[#allocation31_spill] sm:$0xff]  ;;  %v11707_v48 = vld [vmem:[#allocation29_spill] sm:$0xff] }
  0xca   : > { %v2680_v2 = vrot.slane %v11701_v15, 3  ;;  %v1464_v30 = vrot.slane %v1462_v51, 4  ;;  %v1332_v61 = vsel %vm1300_vm8, 65537, %v11648_v38  ;;  %4009 = vmatpush1.bf16.msra.mxu0 %v7560_v63  ;;  %v2825_v0 = vshll.u32 %v8941_v57, 16  ;;  %v11708_v51 = vld [vmem:[#allocation24_spill] sm:$0xff] }
  0xcb   : > { %v2683_v49 = vrot.slane %v11702_v58, 4  ;;  %v8986_v40 = vor.u32 %v2150_v47, %v2147_v59  ;;  %v2651_v4 = vsel %vm1395_vm5, %v2643_v7, %v2650_v13  ;;  %4010 = vmatprep.subr.bf16.mxu0 %v11648_v38  ;;  %v8990_v31 = vor.u32 %v2209_v19, %v2206_v60 }
  0xcc   : > { %3093 = vmatmul.mubr.bf16.vlgmr.msra.gmra.mrb[0].mxu1 %v2651_v4  ;;  %v1465_v55 = vor.u32 %v1464_v30, %v1461_v11  ;;  %v7239_v42 = vcombine.low %v7978_v17, %v1332_v61  ;;  %v1560_v56 = vsel %vm1543_vm13, %v8335_v5, 0  ;;  %v2143_v60 = vsel %vm1395_vm5, %v8917_v25, %v8922_v26  ;;  %v7562_v61 = vld [vmem:[%s11449_s1 + $0x110] sm:$0xff]  }
  0xcd   : > { %v2684_v27 = vor.u32 %v2683_v49, %v2680_v2  ;;  %v2152_v12 = vsel %vm1395_vm5, %v8809_v39, %v8986_v40  ;;  %v1768_v59 = vrot.slane %v1560_v56, 1  ;;  %v3342_v39 = vshrl.u32 %v11704_v22, 16 }
  0xce   : > { %7287 = vmatprep.mubr.msk.bf16.mxu0 %vm228_vm0, %v2152_v12  ;;  %v9010_v5 = vsel %vm1395_vm5, %v8656_v20, %v1465_v55  ;;  %v1468_v63 = vshrl.u32 %v7239_v42, 16  ;;  %v1471_v35 = vshll.u32 %v7239_v42, 16  ;;  %v11705_v25 = vrot.slane %v8734_v29, 1  ;;  %4011 = vmatpush1.bf16.msra.mxu0 %v7561_v1  ;;  %v11709_v29 = vld [vmem:[#allocation3_spill] sm:$0xff] }
  0xcf   : > { %v2685_v19 = vsel %vm1395_vm5, %v8541_v50, %v2684_v27  ;;  %11703 = vst [vmem:[#allocation52_spill] sm:$0xff] %v9010_v5  ;;  %2541 = vmatmul.mubr.bf16.gmra.mrb[16].mxu0 %v2143_v60  ;;  %vm1546_vm15 = vcmp.ne.s16.totalorder %v9010_v5, 0  ;;  %v255_v53 = vadd.s32 152, %v7751_v34  ;;  %v9022_v20 = vsel %vm11541_vm1, %v11706_v36, 0  ;;  %4012 = vmatprep.subr.bf16.mxu0 %v11648_v38 }
  0xd0   : > { %7312 = vmatprep.mubr.msk.bf16.mxu1 %vm228_vm0, %v2685_v19  ;;  %v1769_v50 = vsel %vm1760_vm12, %v11705_v25, %v1768_v59  ;;  %v1898_v15 = vsel %vm1546_vm15, %v11708_v51, 0  ;;  %v1470_v2 = vrot.slane %v1468_v63, 3  ;;  %v1473_v7 = vrot.slane %v1471_v35, 4  ;;  %v11711_v63 = vld [vmem:[#allocation4_spill] sm:$0xff]  ;;  %v7563_v51 = vld [vmem:[%s11449_s1 + $0x118] sm:$0xff]  }
  0xd1   : > { %v2695_v47 = vshrl.u32 %v1769_v50, 16  ;;  %v1970_v58 = vrot.slane %v1898_v15, 1  ;;  %v2698_v49 = vshll.u32 %v1769_v50, 16  ;;  %v3344_v11 = vor.u32 %v3342_v39, %v11709_v29 }
  0xd2   : > { %v405_v30 = vand.u32 15, %v255_v53  ;;  %v2676_v4 = vsel %vm1395_vm5, %v2650_v13, %v8850_v16  ;;  %v9034_v42 = vor.u32 %v1473_v7, %v1470_v2  ;;  %v1770_v12 = vrot.slane %v9022_v20, 1  ;;  %4013 = vmatpush1.bf16.msra.mxu0 %v7562_v61  ;;  %v11713_v2 = vld [vmem:[#allocation30_spill] sm:$0xff] }
  0xd3   : > { %v2697_v56 = vrot.slane %v2695_v47, 3  ;;  %v11710_v1 = vrot.slane %v8757_v10, 1  ;;  %v2700_v19 = vrot.slane %v2698_v49, 4  ;;  %v3349_v35 = vsel %vm11553_vm4, %v3344_v11, %v11711_v63  ;;  %4014 = vmatprep.subr.bf16.mxu0 %v11648_v38 }
  0xd4   : > { %vm703_vm8 = vcmp.ne.s32.totalorder %v405_v30, 15  ;;  %3101 = vmatmul.mubr.bf16.gmra.mrb[4].mxu1 %v2676_v4  ;;  %v9044_v13 = vsel %vm1395_vm5, %v1465_v55, %v9034_v42  ;;  %3425 = vrot.lane.b32.xlu1 %v3349_v35, %s7662_s13  ;;  %v1771_v10 = vsel %vm1760_vm12, %v1768_v59, %v1770_v12  ;;  %v2223_v30 = vrot.slane %v2221_v54, 3 }
  0xd5   : > { %v1971_v60 = vsel %vm1760_vm12, %v11710_v1, %v1970_v58  ;;  %11712 = vst [vmem:[#allocation31_spill] sm:$0xff] %v9044_v13  ;;  %vm1302_vm14 = vmpackc.low %vm703_vm8, %vm703_vm8  ;;  %vm11544_vm1 = vcmp.ne.s16.totalorder %v9044_v13, 0  ;;  %v2701_v50 = vor.u32 %v2700_v19, %v2697_v56  ;;  %v2712_v36 = vshrl.u32 %v1771_v10, 16 }
  0xd6   : > { %v2162_v39 = vshrl.u32 %v1971_v60, 16  ;;  %v2165_v25 = vshll.u32 %v1971_v60, 16  ;;  %v1334_v53 = vsel %vm1302_vm14, 65537, %v11648_v38  ;;  %v9058_v7 = vsel %vm11544_vm1, %v11713_v2, 0  ;;  %4015 = vmatpush1.bf16.msra.mxu0 %v7563_v51 }
  0xd7   : > { %v7240_v59 = vcombine.low %v7978_v17, %v1334_v53  ;;  %v1972_v47 = vrot.slane %v9058_v7, 1  ;;  %v2702_v49 = vsel %vm1395_vm5, %v2684_v27, %v2701_v50  ;;  %v2714_v29 = vrot.slane %v2712_v36, 3  ;;  %5891 = vmatprep.subr.bf16.mxu0 %v11648_v38  ;;  %v11714_v53 = vld [vmem:[#allocation36_spill] sm:$0xff]  ;;  %v11720_v7 = vld [vmem:[#allocation34_spill] sm:$0xff] }
  0xd8   : > { %v2164_v55 = vrot.slane %v2162_v39, 3  ;;  %v2167_v15 = vrot.slane %v2165_v25, 4  ;;  %v2715_v11 = vshll.u32 %v1771_v10, 16  ;;  %7313 = vmatprep.mubr.msk.bf16.mxu1 %vm228_vm0, %v2702_v49  ;;  %v2160_v1 = vsel %vm1395_vm5, %v8922_v26, %v8928_v18 }
  0xd9   : > { %v1477_v4 = vshrl.u32 %v7240_v59, 16  ;;  %v1480_v56 = vshll.u32 %v7240_v59, 16  ;;  %v1973_v60 = vsel %vm1760_vm12, %v1970_v58, %v1972_v47  ;;  %v257_v27 = vadd.s32 168, %v7751_v34 }
  0xda   : > { %v2168_v61 = vor.u32 %v2167_v15, %v2164_v55  ;;  %v2717_v19 = vrot.slane %v2715_v11, 4  ;;  %v2179_v63 = vshrl.u32 %v1973_v60, 16  ;;  %v2182_v35 = vshll.u32 %v1973_v60, 16 }
  0xdb   : > { %v1479_v39 = vrot.slane %v1477_v4, 3  ;;  %v2693_v26 = vsel %vm1395_vm5, %v8850_v16, %v8842_v43  ;;  %v1482_v25 = vrot.slane %v1480_v56, 4  ;;  %v419_v10 = vand.u32 15, %v257_v27  ;;  %v9120_v56 = vld [vmem:[#allocation2 + $0x30] sm:$0xff] }
  0xdc   : > { %v2169_v54 = vsel %vm1395_vm5, %v8986_v40, %v2168_v61  ;;  %v9081_v58 = vor.u32 %v2717_v19, %v2714_v29  ;;  %v9086_v36 = vsel %vm228_vm0, %v11714_v53, %v8818_v28  ;;  %v11715_v40 = vld [vmem:[#allocation35_spill] sm:$0xff]  ;;  %v2181_v55 = vrot.slane %v2179_v63, 3  ;;  %3109 = vmatmul.mubr.bf16.gmra.mrb[8].mxu1 %v2693_v26  ;;  %v11718_v63 = vld [vmem:[#allocation40_spill] sm:$0xff] }
  0xdd   : > { %7288 = vmatprep.mubr.msk.bf16.mxu0 %vm228_vm0, %v2169_v54  ;;  %v2014_v51 = vsel %vm228_vm0, %v11715_v40, %v8818_v28  ;;  %v2184_v15 = vrot.slane %v2182_v35, 4  ;;  %v2226_v16 = vrot.slane %v2224_v45, 4  ;;  %v1483_v2 = vor.u32 %v1482_v25, %v1479_v39 }
  0xde   : > { %2549 = vmatmul.mubr.bf16.gmra.mrb[20].mxu0 %v2160_v1  ;;  %v2719_v59 = vsel %vm1395_vm5, %v2701_v50, %v9081_v58  ;;  %vm705_vm14 = vcmp.ne.s32.totalorder %v419_v10, 15  ;;  %v9097_v49 = vor.u32 %v8960_v46, %v8958_v41  ;;  %v2824_v29 = vrot.slane %v2822_v44, 3  ;;  %v11717_v1 = vld [vmem:[#allocation45_spill] sm:$0xff] }
  0xdf   : > { %v2827_v28 = vrot.slane %v2825_v0, 4  ;;  %v2185_v11 = vor.u32 %v2184_v15, %v2181_v55  ;;  %7314 = vmatprep.mubr.msk.bf16.mxu1 %vm228_vm0, %v2719_v59  ;;  %vm1304_vm8 = vmpackc.low %vm705_vm14, %vm705_vm14  ;;  %v2238_v6 = vshrl.u32 %v2014_v51, 16  ;;  %v2241_v45 = vshll.u32 %v2014_v51, 16  ;;  %v11719_v55 = vld [vmem:[#allocation41_spill] sm:$0xff] }
  0xe0   : > { %v9106_v50 = vsel %vm1395_vm5, %v9034_v42, %v1483_v2  ;;  %v1336_v4 = vsel %vm1304_vm8, 65537, %v11648_v38  ;;  %v2839_v41 = vshrl.u32 %v9086_v36, 16  ;;  %v9113_v44 = vor.u32 %v2226_v16, %v2223_v30 }
  0xe1   : > { %11716 = vst [vmem:[#allocation25_spill] sm:$0xff] %v9106_v50  ;;  %v2186_v46 = vsel %vm1395_vm5, %v2168_v61, %v2185_v11  ;;  %vm11545_vm6 = vcmp.ne.s16.totalorder %v9106_v50, 0  ;;  %v7241_v57 = vcombine.low %v7978_v17, %v1336_v4  ;;  %v2842_v0 = vshll.u32 %v9086_v36, 16 }
  0xe2   : > { %7289 = vmatprep.mubr.msk.bf16.mxu0 %vm228_vm0, %v2186_v46  ;;  %v1900_v42 = vsel %vm11545_vm6, %v11704_v22, 0  ;;  %v9125_v61 = vsel %vm11543_vm9, %v9120_v56, 0  ;;  %v9128_v54 = vor.u32 %v2827_v28, %v2824_v29  ;;  %v9133_v35 = vsel %vm228_vm0, %v11718_v63, %v8820_v37 }
  0xe3   : > { %v1974_v60 = vrot.slane %v1900_v42, 1  ;;  %v1486_v19 = vshrl.u32 %v7241_v57, 16  ;;  %v1489_v27 = vshll.u32 %v7241_v57, 16  ;;  %v1772_v30 = vrot.slane %v9125_v61, 1  ;;  %v11722_v57 = vld [vmem:[#allocation5_spill] sm:$0xff] }
  0xe4   : > { %v2177_v22 = vsel %vm1395_vm5, %v8928_v18, %v8932_v14  ;;  %v2710_v39 = vsel %vm1395_vm5, %v8842_v43, %v8854_v8  ;;  %v2016_v43 = vsel %vm228_vm0, %v11719_v55, %v8820_v37  ;;  %v3358_v16 = vshrl.u32 %v11720_v7, 16 }
  0xe5   : > { %v1975_v26 = vsel %vm1760_vm12, %v1972_v47, %v1974_v60  ;;  %3117 = vmatmul.mubr.bf16.gmra.mrb[12].mxu1 %v2710_v39  ;;  %v1488_v25 = vrot.slane %v1486_v19, 3  ;;  %v1491_v10 = vrot.slane %v1489_v27, 4  ;;  %v1773_v53 = vsel %vm1760_vm12, %v1770_v12, %v1772_v30 }
  0xe6   : > { %2557 = vmatmul.mubr.bf16.gmra.mrb[24].mxu0 %v2177_v22  ;;  %v2196_v36 = vshrl.u32 %v1975_v26, 16  ;;  %v2199_v40 = vshll.u32 %v1975_v26, 16  ;;  %v2729_v51 = vshrl.u32 %v1773_v53, 16  ;;  %v2732_v18 = vshll.u32 %v1773_v53, 16  ;;  %v11723_v22 = vld [vmem:[#allocation33_spill] sm:$0xff] }
  0xe7   : > { %v9150_v15 = vor.u32 %v1491_v10, %v1488_v25  ;;  %v259_v47 = vadd.s32 184, %v7751_v34  ;;  %v2240_v4 = vrot.slane %v2238_v6, 3  ;;  %v2243_v12 = vrot.slane %v2241_v45, 4  ;;  %v11724_v45 = vld [vmem:[#allocation6_spill] sm:$0xff]  ;;  %v9187_v10 = vld [vmem:[#allocation2 + $0x38] sm:$0xff] }
  0xe8   : > { %v2198_v59 = vrot.slane %v2196_v36, 3  ;;  %v2201_v29 = vrot.slane %v2199_v40, 4  ;;  %v2731_v28 = vrot.slane %v2729_v51, 3  ;;  %v2734_v20 = vrot.slane %v2732_v18, 4 }
  0xe9   : > { %v9156_v46 = vsel %vm1395_vm5, %v1483_v2, %v9150_v15  ;;  %v3360_v42 = vor.u32 %v3358_v16, %v11722_v57  ;;  %v433_v19 = vand.u32 15, %v259_v47  ;;  %v9162_v27 = vrot.slane %v2839_v41, 3  ;;  %v11725_v47 = vld [vmem:[#allocation43_spill] sm:$0xff] }
  0xea   : > { %11721 = vst [vmem:[#allocation29_spill] sm:$0xff] %v9156_v46  ;;  %v2202_v61 = vor.u32 %v2201_v29, %v2198_v59  ;;  %vm1549_vm14 = vcmp.ne.s16.totalorder %v9156_v46, 0  ;;  %v9160_v37 = vor.u32 %v2734_v20, %v2731_v28  ;;  %v9164_v63 = vrot.slane %v2842_v0, 4 }
  0xeb   : > { %v9169_v6 = vsel %vm1549_vm14, %v11723_v22, 0  ;;  %v3365_v2 = vsel %vm11553_vm4, %v3360_v42, %v11724_v45  ;;  %vm707_vm8 = vcmp.ne.s32.totalorder %v433_v19, 15  ;;  %v2255_v41 = vshrl.u32 %v2016_v43, 16  ;;  %v11726_v19 = vld [vmem:[#allocation46_spill] sm:$0xff] }
  0xec   : > { %v2203_v39 = vsel %vm1395_vm5, %v2185_v11, %v2202_v61  ;;  %v1976_v26 = vrot.slane %v9169_v6, 1  ;;  %v2736_v25 = vsel %vm1395_vm5, %v9081_v58, %v9160_v37  ;;  %3429 = vrot.lane.b32.xlu1 %v3365_v2, %s7662_s13  ;;  %v2194_v0 = vsel %vm1395_vm5, %v8932_v14, %v8936_v52  ;;  %vm1306_vm9 = vmpackc.low %vm707_vm8, %vm707_vm8 }
  0xed   : > { %7290 = vmatprep.mubr.msk.bf16.mxu0 %vm228_vm0, %v2203_v39  ;;  %7315 = vmatprep.mubr.msk.bf16.mxu1 %vm228_vm0, %v2736_v25  ;;  %v2727_v11 = vsel %vm1395_vm5, %v8854_v8, %v8919_v23  ;;  %v9192_v58 = vsel %vm1546_vm15, %v9187_v10, 0  ;;  %v2258_v53 = vshll.u32 %v2016_v43, 16  ;;  %v1338_v36 = vsel %vm1306_vm9, 65537, %v11648_v38 }
  0xee   : > { %2565 = vmatmul.mubr.bf16.gmra.mrb[28].mxu0 %v2194_v0  ;;  %v1977_v14 = vsel %vm1760_vm12, %v1974_v60, %v1976_v26  ;;  %3125 = vmatmul.mubr.bf16.gmra.mrb[16].mxu1 %v2727_v11  ;;  %v1774_v40 = vrot.slane %v9192_v58, 1  ;;  %v7242_v55 = vcombine.low %v7978_v17, %v1338_v36  ;;  %v9201_v16 = vor.u32 %v2243_v12, %v2240_v4 }
  0xef   : > { %v2213_v51 = vshrl.u32 %v1977_v14, 16  ;;  %v2216_v18 = vshll.u32 %v1977_v14, 16  ;;  %v2018_v59 = vsel %vm228_vm0, %v11725_v47, %v8866_v9  ;;  %v2257_v42 = vrot.slane %v2255_v41, 3 }
  0xf0   : > { %v1775_v60 = vsel %vm1760_vm12, %v1772_v30, %v1774_v40  ;;  %v1495_v20 = vshrl.u32 %v7242_v55, 16  ;;  %v1498_v57 = vshll.u32 %v7242_v55, 16  ;;  %v9211_v22 = vsel %vm228_vm0, %v11726_v19, %v8866_v9  ;;  %v9226_v55 = vld [vmem:[#allocation2 + $0x40] sm:$0xff] }
  0xf1   : > { %v2215_v29 = vrot.slane %v2213_v51, 3  ;;  %v2218_v28 = vrot.slane %v2216_v18, 4  ;;  %v2746_v4 = vshrl.u32 %v1775_v60, 16  ;;  %v2749_v12 = vshll.u32 %v1775_v60, 16  ;;  %v11728_v60 = vld [vmem:[#allocation47_spill] sm:$0xff] }
  0xf2   : > { %v2260_v45 = vrot.slane %v2258_v53, 4  ;;  %v1497_v39 = vrot.slane %v1495_v20, 3  ;;  %v1500_v25 = vrot.slane %v1498_v57, 4  ;;  %v2272_v0 = vshrl.u32 %v2018_v59, 16 }
  0xf3   : > { %v9213_v2 = vor.u32 %v2218_v28, %v2215_v29  ;;  %v2275_v11 = vshll.u32 %v2018_v59, 16  ;;  %v2748_v30 = vrot.slane %v2746_v4, 3  ;;  %v2751_v58 = vrot.slane %v2749_v12, 4  ;;  %v11727_v59 = vld [vmem:[#allocation50_spill] sm:$0xff] }
  0xf4   : > { %v9218_v36 = vor.u32 %v1500_v25, %v1497_v39  ;;  %v261_v9 = vadd.s32 200, %v7751_v34  ;;  %v2211_v53 = vsel %vm1395_vm5, %v8936_v52, %v8990_v31  ;;  %v9231_v47 = vsel %vm11544_vm1, %v9226_v55, 0 }
  0xf5   : > { %v2220_v41 = vsel %vm1395_vm5, %v2202_v61, %v9213_v2  ;;  %v2752_v18 = vor.u32 %v2751_v58, %v2748_v30  ;;  %v9233_v61 = vor.u32 %v2260_v45, %v2257_v42  ;;  %v2021_v29 = vsel %vm228_vm0, %v11728_v60, %v11727_v59  ;;  %v11731_v30 = vld [vmem:[#allocation51_spill] sm:$0xff]  ;;  %v11732_v58 = vld [vmem:[#allocation49_spill] sm:$0xff] }
  0xf6   : > { %7291 = vmatprep.mubr.msk.bf16.mxu0 %vm228_vm0, %v2220_v41  ;;  %v9241_v28 = vsel %vm1395_vm5, %v9150_v15, %v9218_v36  ;;  %v447_v52 = vand.u32 15, %v261_v9  ;;  %v2274_v20 = vrot.slane %v2272_v0, 3  ;;  %v2277_v57 = vrot.slane %v2275_v11, 4 }
  0xf7   : > { %2573 = vmatmul.mubr.bf16.gmra.mrb[32].mxu0 %v2211_v53  ;;  %11729 = vst [vmem:[#allocation24_spill] sm:$0xff] %v9241_v28  ;;  %vm11546_vm9 = vcmp.ne.s16.totalorder %v9241_v28, 0  ;;  %v2753_v19 = vsel %vm1395_vm5, %v9160_v37, %v2752_v18  ;;  %v2744_v15 = vsel %vm1395_vm5, %v8919_v23, %v8926_v24  ;;  %v1776_v4 = vrot.slane %v9231_v47, 1  ;;  %v11730_v37 = vld [vmem:[#allocation48_spill] sm:$0xff] }
  0xf8   : > { %v9249_v42 = vsel %vm11546_vm9, %v11720_v7, 0  ;;  %7316 = vmatprep.mubr.msk.bf16.mxu1 %vm228_vm0, %v2753_v19  ;;  %vm709_vm8 = vcmp.ne.s32.totalorder %v447_v52, 15  ;;  %v2289_v12 = vshrl.u32 %v2021_v29, 16  ;;  %v2292_v45 = vshll.u32 %v2021_v29, 16 }
  0xf9   : > { %v1978_v39 = vrot.slane %v9249_v42, 1  ;;  %3133 = vmatmul.mubr.bf16.gmra.mrb[20].mxu1 %v2744_v15  ;;  %vm1308_vm1 = vmpackc.low %vm709_vm8, %vm709_vm8  ;;  %v9260_v7 = vsel %vm1395_vm5, %v9113_v44, %v9201_v16  ;;  %v2024_v25 = vsel %vm228_vm0, %v11730_v37, %v8891_v32  ;;  %v1777_v0 = vsel %vm1760_vm12, %v1774_v40, %v1776_v4 }
  0xfa   : > { %v1340_v23 = vsel %vm1308_vm1, 65537, %v11648_v38  ;;  %v2761_v11 = vsel %vm1395_vm5, %v8926_v24, %v8930_v62  ;;  %v9273_v41 = vsel %vm228_vm0, %v11732_v58, %v11731_v30  ;;  %v2763_v53 = vshrl.u32 %v1777_v0, 16 }
  0xfb   : > { %v1979_v9 = vsel %vm1760_vm12, %v1976_v26, %v1978_v39  ;;  %v7243_v32 = vcombine.low %v7978_v17, %v1340_v23  ;;  %v9281_v47 = vor.u32 %v2277_v57, %v2274_v20  ;;  %v2766_v60 = vshll.u32 %v1777_v0, 16  ;;  %v11733_v26 = vld [vmem:[#allocation42_spill] sm:$0xff] }
  0xfc   : > { %v2230_v40 = vshrl.u32 %v1979_v9, 16  ;;  %v2233_v59 = vshll.u32 %v1979_v9, 16  ;;  %v2306_v24 = vshrl.u32 %v2024_v25, 16  ;;  %v2765_v19 = vrot.slane %v2763_v53, 3  ;;  %v9293_v53 = vld [vmem:[#allocation2 + $0x48] sm:$0xff] }
  0xfd   : > { %v1504_v29 = vshrl.u32 %v7243_v32, 16  ;;  %v1507_v52 = vshll.u32 %v7243_v32, 16  ;;  %v2309_v15 = vshll.u32 %v2024_v25, 16  ;;  %v2768_v58 = vrot.slane %v2766_v60, 4  ;;  %v11734_v25 = vld [vmem:[#allocation7_spill] sm:$0xff] }
  0xfe   : > { %v2232_v37 = vrot.slane %v2230_v40, 3  ;;  %v2235_v30 = vrot.slane %v2233_v59, 4  ;;  %v2291_v51 = vrot.slane %v2289_v12, 3  ;;  %v3374_v43 = vshrl.u32 %v11733_v26, 16 }
  0xff   : > { %v1506_v6 = vrot.slane %v1504_v29, 3  ;;  %v1509_v14 = vrot.slane %v1507_v52, 4  ;;  %v2294_v23 = vrot.slane %v2292_v45, 4  ;;  %v9286_v20 = vor.u32 %v2768_v58, %v2765_v19  ;;  %v11736_v29 = vld [vmem:[#allocation8_spill] sm:$0xff] }
 0x100   : > { %v9284_v8 = vor.u32 %v2235_v30, %v2232_v37  ;;  %v263_v57 = vadd.s32 216, %v7751_v34  ;;  %v2323_v0 = vshrl.u32 %v9273_v41, 16  ;;  %v3376_v32 = vor.u32 %v3374_v43, %v11734_v25  ;;  %v11737_v37 = vld [vmem:[#allocation39_spill] sm:$0xff]  ;;  %v9342_v25 = vpop.permute.xlu0 %3411 }
 0x101   : > { %v9290_v9 = vor.u32 %v1509_v14, %v1506_v6  ;;  %v1565_v12 = vsel %vm11545_vm6, %v9293_v53, 0  ;;  %v2770_v59 = vsel %vm1395_vm5, %v2752_v18, %v9286_v20  ;;  %v2228_v43 = vsel %vm1395_vm5, %v8990_v31, %v9113_v44 }
 0x102   : > { %v2237_v40 = vsel %vm1395_vm5, %v9213_v2, %v9284_v8  ;;  %v461_v60 = vand.u32 15, %v263_v57  ;;  %7317 = vmatprep.mubr.msk.bf16.mxu1 %vm228_vm0, %v2770_v59  ;;  %v3381_v2 = vsel %vm11553_vm4, %v3376_v32, %v11736_v29  ;;  %v1778_v52 = vrot.slane %v1565_v12, 1 }
 0x103   : > { %7292 = vmatprep.mubr.msk.bf16.mxu0 %vm228_vm0, %v2237_v40  ;;  %v9311_v14 = vsel %vm1395_vm5, %v9218_v36, %v9290_v9  ;;  %v2308_v19 = vrot.slane %v2306_v24, 3  ;;  %v2311_v18 = vrot.slane %v2309_v15, 4  ;;  %3141 = vmatmul.mubr.bf16.gmra.mrb[24].mxu1 %v2761_v11  ;;  %v9327_v36 = vsel %vm1395_vm5, %v9201_v16, %v9233_v61 }
 0x104   : > { %11735 = vst [vmem:[#allocation3_spill] sm:$0xff] %v9311_v14  ;;  %2581 = vmatmul.mubr.bf16.gmra.mrb[36].mxu0 %v2228_v43  ;;  %vm1551_vm1 = vcmp.ne.s16.totalorder %v9311_v14, 0  ;;  %vm711_vm8 = vcmp.ne.s32.totalorder %v461_v60, 15  ;;  %3433 = vrot.lane.b32.xlu1 %v3381_v2, %s7662_s13  ;;  %v1779_v44 = vsel %vm1760_vm12, %v1776_v4, %v1778_v52  ;;  %v2778_v11 = vsel %vm1395_vm5, %v8930_v62, %v8934_v33 }
 0x105   : > { %v9320_v31 = vsel %vm1551_vm1, %v11737_v37, 0  ;;  %vm1310_vm6 = vmpackc.low %vm711_vm8, %vm711_vm8  ;;  %v9332_v24 = vor.u32 %v2294_v23, %v2291_v51  ;;  %v9334_v15 = vrot.slane %v2323_v0, 3  ;;  %v2780_v4 = vshrl.u32 %v1779_v44, 16  ;;  %v9349_v51 = vld [vmem:[#allocation2 + $0x50] sm:$0xff]  ;;  %v9362_v37 = vld [vmem:[#allocation2 + $0x88] sm:$0xff] }
 0x106   : > { %v1980_v30 = vrot.slane %v9320_v31, 1  ;;  %v1342_v58 = vsel %vm1310_vm6, 65537, %v11648_v38  ;;  %v2783_v26 = vshll.u32 %v1779_v44, 16  ;;  %v265_v57 = vadd.s32 232, %v7751_v34  ;;  %11738 = vst [vmem:[#allocation4_spill] sm:$0xff] %v9362_v37 }
 0x107   : > { %v7244_v6 = vcombine.low %v7978_v17, %v1342_v58  ;;  %v9340_v16 = vor.u32 %v2311_v18, %v2308_v19  ;;  %v9354_v23 = vsel %vm1549_vm14, %v9349_v51, 0  ;;  %v9359_v0 = vsel %vm1395_vm5, %v9233_v61, %v9281_v47 }
 0x108   : > { %v1981_v62 = vsel %vm1760_vm12, %v1978_v39, %v1980_v30  ;;  %v2782_v60 = vrot.slane %v2780_v4, 3  ;;  %v2785_v42 = vrot.slane %v2783_v26, 4  ;;  %v475_v43 = vand.u32 15, %v265_v57 }
 0x109   : > { %v2247_v32 = vshrl.u32 %v1981_v62, 16  ;;  %v2250_v12 = vshll.u32 %v1981_v62, 16  ;;  %v1513_v40 = vshrl.u32 %v7244_v6, 16  ;;  %v1516_v59 = vshll.u32 %v7244_v6, 16  ;;  %v9370_v62 = vpop.permute.xlu0 %3415 }
 0x10a   : > { %v1780_v39 = vrot.slane %v9354_v23, 1  ;;  %v2786_v44 = vor.u32 %v2785_v42, %v2782_v60  ;;  %vm713_vm6 = vcmp.ne.s32.totalorder %v475_v43, 15  ;;  %v2795_v58 = vsel %vm1395_vm5, %v8934_v33, %v8946_v3  ;;  %v11740_v43 = vld [vmem:[#allocation9_spill] sm:$0xff] }
 0x10b   : > { %v2249_v29 = vrot.slane %v2247_v32, 3  ;;  %v2252_v2 = vrot.slane %v2250_v12, 4  ;;  %v1515_v19 = vrot.slane %v1513_v40, 3  ;;  %v1518_v18 = vrot.slane %v1516_v59, 4  ;;  %vm1312_vm8 = vmpackc.low %vm713_vm6, %vm713_vm6  ;;  %v9375_v12 = vld [vmem:[#allocation2 + $0x80] sm:$0xff] }
 0x10c   : > { %v1781_v61 = vsel %vm1760_vm12, %v1778_v52, %v1780_v39  ;;  %v2787_v23 = vsel %vm1395_vm5, %v9286_v20, %v2786_v44  ;;  %v1344_v32 = vsel %vm1312_vm8, 65537, %v11648_v38  ;;  %v3390_v52 = vshrl.u32 %v9375_v12, 16 }
 0x10d   : > { %v9368_v6 = vor.u32 %v2252_v2, %v2249_v29  ;;  %v1519_v4 = vor.u32 %v1518_v18, %v1515_v19  ;;  %v2797_v26 = vshrl.u32 %v1781_v61, 16  ;;  %v2800_v57 = vshll.u32 %v1781_v61, 16  ;;  %7318 = vmatprep.mubr.msk.bf16.mxu1 %vm228_vm0, %v2787_v23 }
 0x10e   : > { %v3394_v40 = vshll.u32 %v9362_v37, 16  ;;  %v7245_v20 = vcombine.low %v7978_v17, %v1344_v32  ;;  %3149 = vmatmul.mubr.bf16.gmra.mrb[28].mxu1 %v2778_v11  ;;  %v3392_v29 = vor.u32 %v3390_v52, %v11740_v43  ;;  %v267_v61 = vadd.s32 248, %v7751_v34  ;;  %v9409_v34 = vpop.permute.xlu0 %3419 }
 0x10f   : > { %v2254_v33 = vsel %vm1395_vm5, %v9284_v8, %v9368_v6  ;;  %v9384_v59 = vsel %vm1395_vm5, %v9290_v9, %v1519_v4  ;;  %v2799_v60 = vrot.slane %v2797_v26, 3  ;;  %v2802_v42 = vrot.slane %v2800_v57, 4  ;;  %v9392_v8 = vld [vmem:[#allocation2 + $0x70] sm:$0xff]  ;;  %v9401_v57 = vld [vmem:[#allocation2 + $0x58] sm:$0xff] }
 0x110   : > { %11739 = vst [vmem:[#allocation30_spill] sm:$0xff] %v9384_v59  ;;  %7293 = vmatprep.mubr.msk.bf16.mxu0 %vm228_vm0, %v2254_v33  ;;  %vm1552_vm6 = vcmp.ne.s16.totalorder %v9384_v59, 0  ;;  %v3396_v2 = vrot.slane %v3394_v40, 1  ;;  %v1522_v19 = vshrl.u32 %v7245_v20, 16  ;;  %v1525_v18 = vshll.u32 %v7245_v20, 16 }
 0x111   : > { %2589 = vmatmul.mubr.bf16.gmra.mrb[40].mxu0 %v9260_v7  ;;  %v1904_v9 = vsel %vm1552_vm6, %v9392_v8, 0  ;;  %v9398_v23 = vor.u32 %v2802_v42, %v2799_v60  ;;  %v1567_v7 = vsel %vm11546_vm9, %v9401_v57, 0  ;;  %v489_v40 = vand.u32 15, %v267_v61  ;;  %v9407_v20 = vld [vmem:[#allocation2 + $0x90] sm:$0xf] }
 0x112   : > { %v1982_v26 = vrot.slane %v1904_v9, 1  ;;  %v3397_v11 = vsel %vm11553_vm4, %v3392_v29, %v3396_v2  ;;  %v1524_v32 = vrot.slane %v1522_v19, 3  ;;  %v1527_v52 = vrot.slane %v1525_v18, 4 }
 0x113   : > { %3437 = vrot.lane.b32.xlu1 %v3397_v11, %s7662_s13  ;;  %v1782_v33 = vrot.slane %v1567_v7, 1  ;;  %v2804_v42 = vsel %vm1395_vm5, %v2786_v44, %v9398_v23  ;;  %v9419_v43 = vsel %vm1395_vm5, %v9281_v47, %v9332_v24  ;;  %v9424_v29 = vsel %vm1395_vm5, %v8946_v3, %v9097_v49  ;;  %v9430_v47 = vld [vmem:[#allocation2 + $0x60] sm:$0xff] }
 0x114   : > { %v1983_v60 = vsel %vm1760_vm12, %v1980_v30, %v1982_v26  ;;  %v1528_v18 = vor.u32 %v1527_v52, %v1524_v32  ;;  %7319 = vmatprep.mubr.msk.bf16.mxu1 %vm228_vm0, %v2804_v42  ;;  %vm715_vm8 = vcmp.ne.s32.totalorder %v489_v40, 15  ;;  %v3398_v30 = vshrl.u32 %v9362_v37, 16  ;;  %v9443_v42 = vld [vmem:[#allocation2 + $0x78] sm:$0xff] }
 0x115   : > { %v2264_v9 = vshrl.u32 %v1983_v60, 16  ;;  %v2267_v19 = vshll.u32 %v1983_v60, 16  ;;  %vm1314_vm9 = vmpackc.low %vm715_vm8, %vm715_vm8  ;;  %v1783_v31 = vsel %vm1760_vm12, %v1780_v39, %v1782_v33  ;;  %v3402_v44 = vshll.u32 %v9407_v20, 16 }
 0x116   : > { %v9435_v3 = vsel %vm1551_vm1, %v9430_v47, 0  ;;  %v9438_v7 = vsel %vm1395_vm5, %v1519_v4, %v1528_v18  ;;  %v1346_v32 = vsel %vm1314_vm9, 65537, %v11648_v38  ;;  %3157 = vmatmul.mubr.bf16.gmra.mrb[32].mxu1 %v2795_v58  ;;  %v2814_v52 = vshrl.u32 %v1783_v31, 16  ;;  %v9448_v4 = vpop.permute.xlu0 %3423 }
 0x117   : > { %v2266_v61 = vrot.slane %v2264_v9, 3  ;;  %v2269_v11 = vrot.slane %v2267_v19, 4  ;;  %11741 = vst [vmem:[#allocation36_spill] sm:$0xff] %v9438_v7  ;;  %vm1553_vm8 = vcmp.ne.s16.totalorder %v9438_v7, 0  ;;  %v7246_v39 = vcombine.low %v7978_v17, %v1346_v32 }
 0x118   : > { %v2817_v40 = vshll.u32 %v1783_v31, 16  ;;  %v1905_v9 = vsel %vm1553_vm8, %v9443_v42, 0  ;;  %v3400_v19 = vor.u32 %v3398_v30, %v3396_v2  ;;  %v3404_v45 = vrot.slane %v3402_v44, 1 }
 0x119   : > { %v2270_v60 = vor.u32 %v2269_v11, %v2266_v61  ;;  %v1984_v37 = vrot.slane %v1905_v9, 1  ;;  %v1531_v38 = vshrl.u32 %v7246_v39, 16  ;;  %v1534_v14 = vshll.u32 %v7246_v39, 16 }
 0x11a   : > { %v2816_v28 = vrot.slane %v2814_v52, 3  ;;  %v2819_v58 = vrot.slane %v2817_v40, 4  ;;  %v3405_v31 = vsel %vm11553_vm4, %v3400_v19, %v3404_v45  ;;  %v11554_v61 = vrot.slane %v9435_v3, 1 }
 0x11b   : > { %v2271_v17 = vsel %vm1395_vm5, %v9368_v6, %v2270_v60  ;;  %v1985_v11 = vsel %vm1760_vm12, %v1982_v26, %v1984_v37  ;;  %v1533_v2 = vrot.slane %v1531_v38, 3  ;;  %v1536_v30 = vrot.slane %v1534_v14, 4  ;;  %3439 = vrot.lane.b32.xlu1 %v3405_v31, %s7662_s13  ;;  %v1873_v38 = vld [vmem:[#allocation2 + $0x88] sm:$0x1f] }
 0x11c   : > { %7294 = vmatprep.mubr.msk.bf16.mxu0 %vm228_vm0, %v2271_v17  ;;  %v9460_v44 = vsel %vm1395_vm5, %v9332_v24, %v9340_v16  ;;  %v2281_v6 = vshrl.u32 %v1985_v11, 16  ;;  %v2284_v32 = vshll.u32 %v1985_v11, 16  ;;  %v2820_v39 = vor.u32 %v2819_v58, %v2816_v28  ;;  %v9475_v58 = vpop.permute.xlu0 %3427  ;;  %v9483_v11 = vld [vmem:[#allocation2 + $0x18] sm:$0xff] }
 0x11d   : > { %2597 = vmatmul.mubr.bf16.gmra.mrb[44].mxu0 %v9327_v36  ;;  %v1785_v52 = vsel %vm1760_vm12, %v1782_v33, %v11554_v61  ;;  %v9466_v40 = vor.u32 %v1536_v30, %v1533_v2  ;;  %v2829_v9 = vsel %vm1395_vm5, %v9097_v49, %v9128_v54  ;;  %v11743_v24 = vshll.u32 %v9273_v41, 16 }
 0x11e   : > { %v2831_v14 = vshrl.u32 %v1785_v52, 16  ;;  %v2834_v26 = vshll.u32 %v1785_v52, 16  ;;  %v2283_v36 = vrot.slane %v2281_v6, 3  ;;  %v2286_v17 = vrot.slane %v2284_v32, 4 }
 0x11f   : > { %11742 = vst [vmem:[#allocation35_spill] sm:$0xff] %v9466_v40  ;;  %v2328_v19 = vrot.slane %v11743_v24, 4  ;;  %v2821_v28 = vsel %vm1395_vm5, %v9398_v23, %v2820_v39  ;;  %v9479_v33 = vsel %vm1395_vm5, %v1528_v18, %v9466_v40  ;;  %vm1555_vm9 = vcmp.ne.s16.totalorder %v9466_v40, 0 }
 0x120   : > { %11744 = vst [vmem:[#allocation40_spill] sm:$0xff] %v9479_v33  ;;  %7320 = vmatprep.mubr.msk.bf16.mxu1 %vm228_vm0, %v2821_v28  ;;  %v2833_v31 = vrot.slane %v2831_v14, 3  ;;  %v2836_v49 = vrot.slane %v2834_v26, 4  ;;  %v3241_v2 = vsel %vm11555_vm3, %v9483_v11, 0  ;;  %v2287_v30 = vor.u32 %v2286_v17, %v2283_v36 }
 0x121   : > { %vm1554_vm4 = vcmp.ne.s16.totalorder %v9479_v33, 0  ;;  %3165 = vmatmul.mubr.bf16.gmra.mrb[36].mxu1 %v9424_v29  ;;  %v1907_v23 = vsel %vm1555_vm9, %v1873_v38, 0  ;;  %v11746_v18 = vshrl.u32 %v9133_v35, 16  ;;  %v11747_v26 = vshll.u32 %v9133_v35, 16 }
 0x122   : > { %v1906_v32 = vsel %vm1554_vm4, %v9375_v12, 0  ;;  %v1988_v52 = vrot.slane %v1907_v23, 1  ;;  %v9497_v14 = vor.u32 %v2836_v49, %v2833_v31  ;;  %v2288_v36 = vsel %vm1395_vm5, %v2270_v60, %v2287_v30 }
 0x123   : > { %v2858_v6 = vrot.slane %v11746_v18, 3  ;;  %v2861_v24 = vrot.slane %v11747_v26, 4  ;;  %v1986_v17 = vrot.slane %v1906_v32, 1  ;;  %v3406_v29 = vshrl.u32 %v9407_v20, 16  ;;  %7295 = vmatprep.mubr.msk.bf16.mxu0 %vm228_vm0, %v2288_v36 }
 0x124   : > { %v11748_v38 = vshrl.u32 %v9211_v22, 16  ;;  %v2329_v18 = vor.u32 %v2328_v19, %v9334_v15  ;;  %v9508_v61 = vsel %vm228_vm0, %v3241_v2, %v9342_v25  ;;  %v2838_v35 = vsel %vm1395_vm5, %v2820_v39, %v9497_v14  ;;  %v9519_v19 = vpop.permute.xlu0 %3431 }
 0x125   : > { %v11749_v31 = vshll.u32 %v9211_v22, 16  ;;  %2605 = vmatmul.mubr.bf16.gmra.mrb[48].mxu0 %v9359_v0  ;;  %v1987_v20 = vsel %vm1760_vm12, %v1984_v37, %v1986_v17  ;;  %v1989_v49 = vsel %vm1760_vm12, %v1986_v17, %v1988_v52  ;;  %7321 = vmatprep.mubr.msk.bf16.mxu1 %vm228_vm0, %v2838_v35  ;;  %v3408_v15 = vor.u32 %v3406_v29, %v3404_v45  ;;  %v7631_v29 = vld [vmem:[#allocation2 + $0x20] sm:$0xff] }
 0x126   : > { %v2875_v28 = vrot.slane %v11748_v38, 3  ;;  %v2298_v25 = vshrl.u32 %v1987_v20, 16  ;;  %v2301_v2 = vshll.u32 %v1987_v20, 16  ;;  %v2315_v23 = vshrl.u32 %v1989_v49, 16 }
 0x127   : > { %v2878_v60 = vrot.slane %v11749_v31, 4  ;;  %v2318_v32 = vshll.u32 %v1989_v49, 16  ;;  %v2845_v39 = vor.u32 %v9164_v63, %v9162_v27  ;;  %v9523_v22 = vor.u32 %v2861_v24, %v2858_v6  ;;  %3441 = vrot.lane.b32.xlu1 %v3408_v15, %s7662_s13  ;;  %v9530_v31 = vld [vmem:[#allocation2 + $0x68] sm:$0xff] }
 0x128   : > { %v2332_v0 = vshrl.u32 %v1988_v52, 16  ;;  %v2335_v37 = vshll.u32 %v1988_v52, 16  ;;  %v2300_v26 = vrot.slane %v2298_v25, 3  ;;  %v2303_v36 = vrot.slane %v2301_v2, 4  ;;  %v3221_v52 = vld [vmem:[#allocation2 + $0x10] sm:$0xf8]  ;;  %v9545_v2 = vpop.permute.xlu0 %3435 }
 0x129   : > { %v2317_v17 = vrot.slane %v2315_v23, 3  ;;  %v2320_v38 = vrot.slane %v2318_v32, 4  ;;  %v9526_v45 = vor.u32 %v2878_v60, %v2875_v28  ;;  %3173 = vmatmul.mubr.bf16.gmra.mrb[40].mxu1 %v2829_v9  ;;  %v1569_v27 = vsel %vm1552_vm6, %v9530_v31, 0  ;;  %v7629_v28 = vld [vmem:[#allocation2 + $0x28] sm:$0xff]  ;;  %v11750_v60 = vld [vmem:[#allocation14_spill] sm:$0xff]  ;;  %11752 = vst [vmem:[#allocation41_spill] sm:$0xff] %v9545_v2 }
 0x12a   : > { %v2304_v63 = vor.u32 %v2303_v36, %v2300_v26  ;;  %v1786_v24 = vrot.slane %v1569_v27, 1  ;;  %v9537_v20 = vsel %vm1395_vm5, %v9340_v16, %v2329_v18  ;;  %vm11751_vm3 = vcmp.ne.s16.totalorder %v11750_v60, 0  ;;  %v11756_v27 = vld [vmem:[#allocation10_spill] sm:$0xff] }
 0x12b   : > { %v2321_v6 = vor.u32 %v2320_v38, %v2317_v17  ;;  %v9541_v49 = vsel %vm11751_vm3, %v7629_v28, 0  ;;  %v2334_v9 = vrot.slane %v2332_v0, 3  ;;  %v2337_v15 = vrot.slane %v2335_v37, 4  ;;  %v7630_v38 = vld [vmem:[#allocation2 + $0x10] sm:$0xf0] }
 0x12c   : > { %v2846_v25 = vsel %vm1395_vm5, %v9128_v54, %v2845_v39  ;;  %v2305_v23 = vsel %vm1395_vm5, %v2287_v30, %v2304_v63  ;;  %v11753_v26 = vrot.slane %v9435_v3, 1  ;;  %v9555_v18 = vsel %vm1553_vm8, %v9392_v8, 0  ;;  %v1740_v7 = vpop.permute.xlu0 %1739 }
 0x12d   : > { %v2322_v32 = vsel %vm1395_vm5, %v2304_v63, %v2321_v6  ;;  %v1217_v37 = vsel %vm11572_vm11, %v9443_v42, 0  ;;  %7296 = vmatprep.mubr.msk.bf16.mxu0 %vm228_vm0, %v2305_v23  ;;  %v3240_v30 = vsel %vm11558_vm2, %v3221_v52, 0  ;;  %v1788_v3 = vrot.slane %v9555_v18, 1 }
 0x12e   : > { %v1787_v16 = vsel %vm1760_vm12, %v11753_v26, %v1786_v24  ;;  %2613 = vmatmul.mubr.bf16.gmra.mrb[52].mxu0 %v9419_v43  ;;  %vm11757_vm3 = vcmp.ne.s16.totalorder %v11756_v27, 0  ;;  %v3258_v35 = vsel %vm1540_vm7, %v9483_v11, 0  ;;  %v3259_v23 = vsel %vm1541_vm10, %v7631_v29, 0  ;;  %v3410_v27 = vpop.permute.xlu1 %3409 }
 0x12f   : > { %v2848_v36 = vshrl.u32 %v1787_v16, 16  ;;  %v2851_v17 = vshll.u32 %v1787_v16, 16  ;;  %v3257_v63 = vsel %vm11757_vm3, %v7630_v38, 0  ;;  %7297 = vmatprep.mubr.msk.bf16.mxu0 %vm228_vm0, %v2322_v32  ;;  %v3461_v43 = vrot.slane %v3258_v35, 1 }
 0x130   : > { %v3460_v41 = vrot.slane %v3257_v63, 1  ;;  %v2338_v54 = vor.u32 %v2337_v15, %v2334_v9  ;;  %v1789_v18 = vsel %vm1760_vm12, %v1786_v24, %v1788_v3  ;;  %v3463_v0 = vrot.slane %v3259_v23, 1 }
 0x131   : > { %v2850_v52 = vrot.slane %v2848_v36, 3  ;;  %v2853_v16 = vrot.slane %v2851_v17, 4  ;;  %v2863_v38 = vsel %vm1395_vm5, %v2845_v39, %v9523_v22  ;;  %v2865_v11 = vshrl.u32 %v1789_v18, 16 }
 0x132   : > { %v2868_v2 = vshll.u32 %v1789_v18, 16  ;;  %v3462_v60 = vsel %vm1760_vm12, %v3460_v41, %v3461_v43  ;;  %v3495_v32 = vsel %vm228_vm0, %v3240_v30, %v3410_v27  ;;  %v3464_v36 = vsel %vm1760_vm12, %v3461_v43, %v3463_v0 }
 0x133   : > { %v2854_v26 = vor.u32 %v2853_v16, %v2850_v52  ;;  %v3585_v17 = vshrl.u32 %v3462_v60, 16  ;;  %v3588_v35 = vshll.u32 %v3462_v60, 16  ;;  %v2867_v9 = vrot.slane %v2865_v11, 3 }
 0x134   : > { %v2870_v15 = vrot.slane %v2868_v2, 4  ;;  %v3593_v63 = vshrl.u32 %v3464_v36, 16  ;;  %v2339_v39 = vsel %vm1395_vm5, %v2321_v6, %v2338_v54  ;;  %v3596_v41 = vshll.u32 %v3464_v36, 16  ;;  %v11760_v6 = vld [vmem:[#allocation20_spill] sm:$0xff] }
 0x135   : > { %v2855_v24 = vsel %vm1395_vm5, %v9497_v14, %v2854_v26  ;;  %v3587_v23 = vrot.slane %v3585_v17, 3  ;;  %v3590_v52 = vrot.slane %v3588_v35, 4  ;;  %v1841_v16 = vsel %vm228_vm0, %v1217_v37, %v1740_v7 }
 0x136   : > { %7322 = vmatprep.mubr.msk.bf16.mxu1 %vm228_vm0, %v2855_v24  ;;  %v3569_v30 = vshrl.u32 %v3495_v32, 16  ;;  %v2871_v27 = vor.u32 %v2870_v15, %v2867_v9  ;;  %v3595_v43 = vrot.slane %v3593_v63, 3  ;;  %2621 = vmatmul.mubr.bf16.gmra.mrb[56].mxu0 %v9460_v44  ;;  %v3572_v60 = vshll.u32 %v3495_v32, 16 }
 0x137   : > { %3181 = vmatmul.mubr.bf16.gmra.mrb[44].mxu1 %v2846_v25  ;;  %v3598_v14 = vrot.slane %v3596_v41, 4  ;;  %v1571_v2 = vsel %vm1554_vm4, %v9443_v42, 0  ;;  %vm11761_vm3 = vcmp.ne.s16.totalorder %v11760_v6, 0  ;;  %v11762_v18 = vshrl.u32 %v9508_v61, 16  ;;  %7298 = vmatprep.mubr.msk.bf16.mxu0 %vm228_vm0, %v2339_v39 }
 0x138   : > { %v3260_v54 = vsel %vm11761_vm3, %v7629_v28, 0  ;;  %v11763_v7 = vshll.u32 %v9508_v61, 16  ;;  %v2872_v25 = vsel %vm1395_vm5, %v2854_v26, %v2871_v27  ;;  %v1790_v44 = vrot.slane %v1571_v2, 1 }
 0x139   : > { %v3578_v11 = vrot.slane %v11762_v18, 3  ;;  %7323 = vmatprep.mubr.msk.bf16.mxu1 %vm228_vm0, %v2872_v25  ;;  %v3591_v32 = vor.u32 %v3590_v52, %v3587_v23  ;;  %v3599_v36 = vor.u32 %v3598_v14, %v3595_v43  ;;  %v3465_v17 = vrot.slane %v3260_v54, 1  ;;  %v864_v23 = vld [vmem:[#allocation2 + $0x80] sm:$0x1f]  ;;  %v11764_v52 = vld [vmem:[#allocation13_spill] sm:$0xff]  ;;  %v3414_v43 = vpop.permute.xlu1 %3413 }
 0x13a   : > { %v3581_v37 = vrot.slane %v11763_v7, 4  ;;  %v2880_v28 = vsel %vm1395_vm5, %v9523_v22, %v9526_v45  ;;  %v2890_v35 = vshrl.u32 %v1841_v16, 16  ;;  %v3571_v24 = vrot.slane %v3569_v30, 3 }
 0x13b   : > { %v1791_v9 = vsel %vm1760_vm12, %v1788_v3, %v1790_v44  ;;  %v9604_v61 = vsel %vm1543_vm13, %v9120_v56, 0  ;;  %v3574_v26 = vrot.slane %v3572_v60, 4  ;;  %v3466_v39 = vsel %vm1760_vm12, %v3463_v0, %v3465_v17 }
 0x13c   : > { %v2882_v15 = vshrl.u32 %v1791_v9, 16  ;;  %v2885_v63 = vshll.u32 %v1791_v9, 16  ;;  %vm11765_vm3 = vcmp.ne.s16.totalorder %v11764_v52, 0  ;;  %v3610_v22 = vshrl.u32 %v3466_v39, 16 }
 0x13d   : > { %v3242_v41 = vsel %vm11765_vm3, %v7631_v29, 0  ;;  %v3613_v14 = vshll.u32 %v3466_v39, 16  ;;  %v3467_v30 = vrot.slane %v9604_v61, 1  ;;  %v2893_v3 = vshll.u32 %v1841_v16, 16 }
 0x13e   : > { %v3600_v2 = vsel %vm1395_vm5, %v3591_v32, %v3599_v36  ;;  %v2884_v54 = vrot.slane %v2882_v15, 3  ;;  %v2887_v18 = vrot.slane %v2885_v63, 4  ;;  %v3612_v60 = vrot.slane %v3610_v22, 3  ;;  %2629 = vmatmul.mubr.bf16.gmra.mrb[60].mxu0 %v9537_v20  ;;  %v11766_v15 = vld [vmem:[#allocation38_spill] sm:$0xff] }
 0x13f   : > { %3189 = vmatmul.mubr.bf16.gmra.mrb[48].mxu1 %v2863_v38  ;;  %v3615_v7 = vrot.slane %v3613_v14, 4  ;;  %v3468_v25 = vsel %vm1760_vm12, %v3465_v17, %v3467_v30  ;;  %v1572_v0 = vsel %vm1555_vm9, %v864_v23, 0  ;;  %v9614_v9 = vor.u32 %v3581_v37, %v3578_v11  ;;  %7363 = vmatprep.mubr.msk.bf16.mxu0 %vm228_vm0, %v3600_v2  ;;  %v7632_v38 = vld [vmem:[#allocation2 + $0x80] sm:$0xf]  ;;  %v1742_v17 = vpop.permute.xlu0 %1741 }
 0x140   : > { %v3575_v29 = vor.u32 %v3574_v26, %v3571_v24  ;;  %v3501_v39 = vsel %vm228_vm0, %v3242_v41, %v3414_v43  ;;  %v2888_v16 = vor.u32 %v2887_v18, %v2884_v54  ;;  %v3627_v32 = vshrl.u32 %v3468_v25, 16 }
 0x141   : > { %v3630_v61 = vshll.u32 %v3468_v25, 16  ;;  %vm11767_vm3 = vcmp.ne.s16.totalorder %v11766_v15, 0  ;;  %v1792_v22 = vrot.slane %v1572_v0, 1  ;;  %v3504_v11 = vsel %vm228_vm0, %v9541_v49, %v9370_v62 }
 0x142   : > { %v1218_v63 = vsel %vm11767_vm3, %v7632_v38, 0  ;;  %v2892_v37 = vrot.slane %v2890_v35, 3  ;;  %v2889_v24 = vsel %vm1395_vm5, %v2871_v27, %v2888_v16  ;;  %v3616_v26 = vor.u32 %v3615_v7, %v3612_v60 }
 0x143   : > { %v2895_v20 = vrot.slane %v2893_v3, 4  ;;  %v3601_v23 = vshrl.u32 %v3501_v39, 16  ;;  %v3604_v41 = vshll.u32 %v3501_v39, 16  ;;  %7324 = vmatprep.mubr.msk.bf16.mxu1 %vm228_vm0, %v2889_v24  ;;  %v1793_v43 = vsel %vm1760_vm12, %v1790_v44, %v1792_v22 }
 0x144   : > { %v3583_v14 = vsel %vm1395_vm5, %v3575_v29, %v9614_v9  ;;  %v1844_v2 = vsel %vm228_vm0, %v1218_v63, %v1742_v17  ;;  %v2899_v54 = vshrl.u32 %v1793_v43, 16  ;;  %v2902_v18 = vshll.u32 %v1793_v43, 16 }
 0x145   : > { %v3629_v25 = vrot.slane %v3627_v32, 3  ;;  %v3632_v62 = vrot.slane %v3630_v61, 4  ;;  %v2916_v49 = vshrl.u32 %v1792_v22, 16  ;;  %v2919_v35 = vshll.u32 %v1792_v22, 16 }
 0x146   : > { %v3617_v27 = vsel %vm1395_vm5, %v3599_v36, %v3616_v26  ;;  %v2901_v3 = vrot.slane %v2899_v54, 3  ;;  %v2904_v60 = vrot.slane %v2902_v18, 4  ;;  %vm11768_vm3 = vcmp.ne.s16.totalorder %v11707_v48, 0  ;;  %4025 = vmatmul.mubr.bf16.vlgmr.msra.gmra.mrb[64].mxu0 %v3583_v14 }
 0x147   : > { %v3262_v7 = vsel %vm11768_vm3, %v9187_v10, 0  ;;  %v3603_v44 = vrot.slane %v3601_v23, 3  ;;  %v3606_v0 = vrot.slane %v3604_v41, 4  ;;  %3197 = vmatmul.mubr.bf16.gmra.mrb[52].mxu1 %v2880_v28  ;;  %v2918_v29 = vrot.slane %v2916_v49, 3  ;;  %7364 = vmatprep.mubr.msk.bf16.mxu0 %vm228_vm0, %v3617_v27 }
 0x148   : > { %v2921_v39 = vrot.slane %v2919_v35, 4  ;;  %v2907_v38 = vshrl.u32 %v1844_v2, 16  ;;  %v2910_v63 = vshll.u32 %v1844_v2, 16  ;;  %v2905_v32 = vor.u32 %v2904_v60, %v2901_v3  ;;  %v11770_v35 = vld [vmem:[#allocation17_spill] sm:$0xff]  ;;  %v3418_v3 = vpop.permute.xlu1 %3417 }
 0x149   : > { %v3469_v61 = vrot.slane %v3262_v7, 1  ;;  %v3618_v17 = vshrl.u32 %v3504_v11, 16  ;;  %v3621_v22 = vshll.u32 %v3504_v11, 16  ;;  %vm11769_vm2 = vcmp.ne.s16.totalorder %v11717_v1, 0 }
 0x14a   : > { %v2922_v36 = vor.u32 %v2921_v39, %v2918_v29  ;;  %v3263_v24 = vsel %vm11769_vm2, %v9226_v55, 0  ;;  %v2896_v43 = vor.u32 %v2895_v20, %v2892_v37  ;;  %v3633_v23 = vor.u32 %v3632_v62, %v3629_v25 }
 0x14b   : > { %v2906_v28 = vsel %vm1395_vm5, %v2888_v16, %v2905_v32  ;;  %v3470_v41 = vsel %vm1760_vm12, %v3467_v30, %v3469_v61  ;;  %v3607_v14 = vor.u32 %v3606_v0, %v3603_v44  ;;  %v3471_v18 = vrot.slane %v3263_v24, 1 }
 0x14c   : > { %7325 = vmatprep.mubr.msk.bf16.mxu1 %vm228_vm0, %v2906_v28  ;;  %v3644_v2 = vshrl.u32 %v3470_v41, 16  ;;  %v3647_v54 = vshll.u32 %v3470_v41, 16  ;;  %v2909_v11 = vrot.slane %v2907_v38, 3  ;;  %v2912_v49 = vrot.slane %v2910_v63, 4 }
 0x14d   : > { %vm11771_vm3 = vcmp.ne.s16.totalorder %v11770_v35, 0  ;;  %v2923_v37 = vsel %vm1395_vm5, %v2905_v32, %v2922_v36  ;;  %v3634_v20 = vsel %vm1395_vm5, %v3616_v26, %v3633_v23  ;;  %v2897_v30 = vsel %vm1395_vm5, %v9526_v45, %v2896_v43 }
 0x14e   : > { %v3244_v27 = vsel %vm11771_vm3, %v9120_v56, 0  ;;  %v3646_v16 = vrot.slane %v3644_v2, 3  ;;  %v3649_v25 = vrot.slane %v3647_v54, 4  ;;  %v3620_v62 = vrot.slane %v3618_v17, 3  ;;  %v11772_v17 = vld [vmem:[#allocation18_spill] sm:$0xff] }
 0x14f   : > { %v3623_v60 = vrot.slane %v3621_v22, 4  ;;  %v3608_v7 = vsel %vm1395_vm5, %v9614_v9, %v3607_v14  ;;  %3205 = vmatmul.mubr.bf16.gmra.mrb[56].mxu1 %v2897_v30  ;;  %v3472_v44 = vsel %vm1760_vm12, %v3469_v61, %v3471_v18  ;;  %v3507_v56 = vsel %vm228_vm0, %v3244_v27, %v3418_v3  ;;  %v11775_v30 = vld [vmem:[#allocation19_spill] sm:$0xff] }
 0x150   : > { %4033 = vmatmul.mubr.bf16.gmra.mrb[68].mxu0 %v3608_v7  ;;  %v2913_v0 = vor.u32 %v2912_v49, %v2909_v11  ;;  %7326 = vmatprep.mubr.msk.bf16.mxu1 %vm228_vm0, %v2923_v37  ;;  %v3264_v45 = vsel %vm1546_vm15, %v9293_v53, 0  ;;  %v3650_v26 = vor.u32 %v3649_v25, %v3646_v16  ;;  %v3661_v29 = vshrl.u32 %v3472_v44, 16  ;;  %v3422_v16 = vpop.permute.xlu1 %3421 }
 0x151   : > { %7365 = vmatprep.mubr.msk.bf16.mxu0 %vm228_vm0, %v3634_v20  ;;  %v3664_v39 = vshll.u32 %v3472_v44, 16  ;;  %v3624_v38 = vor.u32 %v3623_v60, %v3620_v62  ;;  %v3635_v9 = vshrl.u32 %v3507_v56, 16  ;;  %v3638_v63 = vshll.u32 %v3507_v56, 16 }
 0x152   : > { %v3473_v32 = vrot.slane %v3264_v45, 1  ;;  %v2914_v61 = vsel %vm1395_vm5, %v2896_v43, %v2913_v0  ;;  %vm11773_vm2 = vcmp.ne.s16.totalorder %v11772_v17, 0  ;;  %v3651_v36 = vsel %vm1395_vm5, %v3633_v23, %v3650_v26 }
 0x153   : > { %v3245_v22 = vsel %vm11773_vm2, %v9187_v10, 0  ;;  %v3663_v24 = vrot.slane %v3661_v29, 3  ;;  %v3666_v28 = vrot.slane %v3664_v39, 4  ;;  %v3637_v41 = vrot.slane %v3635_v9, 3 }
 0x154   : > { %v3640_v2 = vrot.slane %v3638_v63, 4  ;;  %v3625_v54 = vsel %vm1395_vm5, %v3607_v14, %v3624_v38  ;;  %v3474_v11 = vsel %vm1760_vm12, %v3471_v18, %v3473_v32  ;;  %v3510_v49 = vsel %vm228_vm0, %v3245_v22, %v9409_v34 }
 0x155   : > { %vm11774_vm3 = vcmp.ne.s16.totalorder %v9044_v13, 0  ;;  %v3667_v10 = vor.u32 %v3666_v28, %v3663_v24  ;;  %v3678_v23 = vshrl.u32 %v3474_v11, 16  ;;  %v3681_v27 = vshll.u32 %v3474_v11, 16 }
 0x156   : > { %v3265_v43 = vsel %vm11774_vm3, %v9349_v51, 0  ;;  %v3652_v3 = vshrl.u32 %v3510_v49, 16  ;;  %v3655_v37 = vshll.u32 %v3510_v49, 16  ;;  %v3641_v20 = vor.u32 %v3640_v2, %v3637_v41 }
 0x157   : > { %3213 = vmatmul.mubr.bf16.gmra.mrb[60].mxu1 %v2914_v61  ;;  %v3475_v14 = vrot.slane %v3265_v43, 1  ;;  %vm11776_vm2 = vcmp.ne.s16.totalorder %v11775_v30, 0  ;;  %v3668_v34 = vsel %vm1395_vm5, %v3650_v26, %v3667_v10  ;;  %v3680_v25 = vrot.slane %v3678_v23, 3 }
 0x158   : > { %4041 = vmatmul.mubr.bf16.gmra.mrb[72].mxu0 %v3625_v54  ;;  %v3246_v18 = vsel %vm11776_vm2, %v9226_v55, 0  ;;  %v3683_v62 = vrot.slane %v3681_v27, 4  ;;  %v3654_v60 = vrot.slane %v3652_v3, 3  ;;  %v3657_v7 = vrot.slane %v3655_v37, 4 }
 0x159   : > { %7366 = vmatprep.mubr.msk.bf16.mxu0 %vm228_vm0, %v3651_v36  ;;  %v3642_v44 = vsel %vm1395_vm5, %v3624_v38, %v3641_v20  ;;  %v3476_v56 = vsel %vm1760_vm12, %v3473_v32, %v3475_v14  ;;  %v3513_v0 = vsel %vm228_vm0, %v3246_v18, %v3422_v16  ;;  %vm11777_vm3 = vcmp.ne.s16.totalorder %v9106_v50, 0  ;;  %v11778_v38 = vld [vmem:[#allocation21_spill] sm:$0xff]  ;;  %v3426_v18 = vpop.permute.xlu1 %3425 }
 0x15a   : > { %v3266_v45 = vsel %vm11777_vm3, %v9401_v57, 0  ;;  %v3684_v55 = vor.u32 %v3683_v62, %v3680_v25  ;;  %v3695_v29 = vshrl.u32 %v3476_v56, 16  ;;  %v3698_v26 = vshll.u32 %v3476_v56, 16  ;;  %v11782_v56 = vld [vmem:[#allocation24_spill] sm:$0xff] }
 0x15b   : > { %v3658_v39 = vor.u32 %v3657_v7, %v3654_v60  ;;  %v3669_v9 = vshrl.u32 %v3513_v0, 16  ;;  %v3672_v63 = vshll.u32 %v3513_v0, 16  ;;  %v3477_v61 = vrot.slane %v3266_v45, 1 }
 0x15c   : > { %vm11779_vm2 = vcmp.ne.s16.totalorder %v11778_v38, 0  ;;  %v3685_v22 = vsel %vm1395_vm5, %v3667_v10, %v3684_v55  ;;  %v3697_v36 = vrot.slane %v3695_v29, 3  ;;  %v3700_v24 = vrot.slane %v3698_v26, 4 }
 0x15d   : > { %v3247_v32 = vsel %vm11779_vm2, %v9293_v53, 0  ;;  %v3671_v28 = vrot.slane %v3669_v9, 3  ;;  %v3674_v41 = vrot.slane %v3672_v63, 4  ;;  %v3659_v2 = vsel %vm1395_vm5, %v3641_v20, %v3658_v39  ;;  %v11780_v20 = vld [vmem:[#allocation22_spill] sm:$0xff] }
 0x15e   : > { %v3478_v54 = vsel %vm1760_vm12, %v3475_v14, %v3477_v61  ;;  %v3516_v11 = vsel %vm228_vm0, %v3247_v32, %v9448_v4  ;;  %v3267_v49 = vsel %vm1549_vm14, %v9430_v47, 0  ;;  %v3701_v53 = vor.u32 %v3700_v24, %v3697_v36 }
 0x15f   : > { %v3712_v43 = vshrl.u32 %v3478_v54, 16  ;;  %v3715_v10 = vshll.u32 %v3478_v54, 16  ;;  %v3686_v23 = vshrl.u32 %v3516_v11, 16  ;;  %v3689_v27 = vshll.u32 %v3516_v11, 16  ;;  %v11804_v11 = vld [vmem:[#allocation10_spill] sm:$0xff] }
 0x160   : > { %4049 = vmatmul.mubr.bf16.gmra.mrb[76].mxu0 %v3642_v44  ;;  %v3675_v3 = vor.u32 %v3674_v41, %v3671_v28  ;;  %v3479_v37 = vrot.slane %v3267_v49, 1  ;;  %vm11781_vm3 = vcmp.ne.s16.totalorder %v11780_v20, 0  ;;  %v3702_v4 = vsel %vm1395_vm5, %v3684_v55, %v3701_v53 }
 0x161   : > { %7367 = vmatprep.mubr.msk.bf16.mxu0 %vm228_vm0, %v3668_v34  ;;  %v3248_v14 = vsel %vm11781_vm3, %v9349_v51, 0  ;;  %v3714_v16 = vrot.slane %v3712_v43, 3  ;;  %v3717_v34 = vrot.slane %v3715_v10, 4  ;;  %v3688_v25 = vrot.slane %v3686_v23, 3 }
 0x162   : > { %v3691_v62 = vrot.slane %v3689_v27, 4  ;;  %v3676_v60 = vsel %vm1395_vm5, %v3658_v39, %v3675_v3  ;;  %v3480_v7 = vsel %vm1760_vm12, %v3477_v61, %v3479_v37  ;;  %v3519_v44 = vsel %vm228_vm0, %v3248_v14, %v3426_v18  ;;  %v11784_v39 = vld [vmem:[#allocation23_spill] sm:$0xff]  ;;  %v3430_v18 = vpop.permute.xlu1 %3429 }
 0x163   : > { %vm11783_vm2 = vcmp.ne.s16.totalorder %v11782_v56, 0  ;;  %v3718_v51 = vor.u32 %v3717_v34, %v3714_v16  ;;  %v3729_v45 = vshrl.u32 %v3480_v7, 16  ;;  %v3732_v55 = vshll.u32 %v3480_v7, 16 }
 0x164   : > { %v3268_v0 = vsel %vm11783_vm2, %v9530_v31, 0  ;;  %v3692_v29 = vor.u32 %v3691_v62, %v3688_v25  ;;  %v3703_v26 = vshrl.u32 %v3519_v44, 16  ;;  %v3706_v9 = vshll.u32 %v3519_v44, 16 }
 0x165   : > { %v3481_v63 = vrot.slane %v3268_v0, 1  ;;  %vm11785_vm3 = vcmp.ne.s16.totalorder %v11784_v39, 0  ;;  %v3719_v32 = vsel %vm1395_vm5, %v3701_v53, %v3718_v51  ;;  %v3734_v36 = vrot.slane %v3732_v55, 4 }
 0x166   : > { %v3249_v61 = vsel %vm11785_vm3, %v9401_v57, 0  ;;  %v3705_v24 = vrot.slane %v3703_v26, 3  ;;  %v3708_v28 = vrot.slane %v3706_v9, 4  ;;  %v3693_v41 = vsel %vm1395_vm5, %v3675_v3, %v3692_v29  ;;  %v11787_v3 = vld [vmem:[#allocation26_spill] sm:$0xff] }
 0x167   : > { %v3522_v54 = vsel %vm228_vm0, %v3249_v61, %v9475_v58  ;;  %v3269_v49 = vsel %vm1551_vm1, %v9392_v8, 0  ;;  %vm11788_vm2 = vcmp.ne.s16.totalorder %v11787_v3, 0  ;;  %v9902_v3 = vld [vmem:[%s11450_s2] ss:$0 sm:$0xff] }
 0x168   : > { %4057 = vmatmul.mubr.bf16.gmra.mrb[80].mxu0 %v3659_v2  ;;  %v3482_v2 = vsel %vm1760_vm12, %v3479_v37, %v3481_v63  ;;  %v3720_v10 = vshrl.u32 %v3522_v54, 16  ;;  %v3723_v23 = vshll.u32 %v3522_v54, 16  ;;  %v3709_v27 = vor.u32 %v3708_v28, %v3705_v24 }
 0x169   : > { %7368 = vmatprep.mubr.msk.bf16.mxu0 %vm228_vm0, %v3685_v22  ;;  %v3731_v22 = vrot.slane %v3729_v45, 3  ;;  %v3746_v53 = vshrl.u32 %v3482_v2, 16  ;;  %v3749_v43 = vshll.u32 %v3482_v2, 16  ;;  %v3483_v14 = vrot.slane %v3269_v49, 1 }
 0x16a   : > { %v3250_v37 = vsel %vm11788_vm2, %v9430_v47, 0  ;;  %v3722_v25 = vrot.slane %v3720_v10, 3  ;;  %v3725_v62 = vrot.slane %v3723_v23, 4  ;;  %v3270_v47 = vsel %vm1552_vm6, %v9443_v42, 0 }
 0x16b   : > { %v3735_v57 = vor.u32 %v3734_v36, %v3731_v22  ;;  %v3751_v16 = vrot.slane %v3749_v43, 4  ;;  %v3484_v7 = vsel %vm1760_vm12, %v3481_v63, %v3483_v14  ;;  %v3525_v0 = vsel %vm228_vm0, %v3250_v37, %v3430_v18  ;;  %v11789_v22 = vld [vmem:[#allocation27_spill] sm:$0xff] }
 0x16c   : > { %v3763_v26 = vshrl.u32 %v3484_v7, 16  ;;  %v3766_v9 = vshll.u32 %v3484_v7, 16  ;;  %v3726_v61 = vor.u32 %v3725_v62, %v3722_v25  ;;  %v3485_v63 = vrot.slane %v3270_v47, 1 }
 0x16d   : > { %v3736_v58 = vsel %vm1395_vm5, %v3718_v51, %v3735_v57  ;;  %vm11790_vm3 = vcmp.ne.s16.totalorder %v11789_v22, 0  ;;  %v3271_v23 = vsel %vm1553_vm8, %v9375_v12, 0 }
 0x16e   : > { %v3251_v36 = vsel %vm11790_vm3, %v9530_v31, 0  ;;  %v3765_v28 = vrot.slane %v3763_v26, 3  ;;  %v3727_v49 = vsel %vm1395_vm5, %v3709_v27, %v3726_v61 }
 0x16f   : > { %v3528_v43 = vsel %vm228_vm0, %v3251_v36, %v9519_v19  ;;  %v11792_v19 = vld [vmem:[#allocation28_spill] sm:$0xff] }
 0x170   : > { %4065 = vmatmul.mubr.bf16.gmra.mrb[84].mxu0 %v3676_v60  ;;  %v3710_v60 = vsel %vm1395_vm5, %v3692_v29, %v3709_v27  ;;  %v3737_v29 = vshrl.u32 %v3525_v0, 16  ;;  %vm11793_vm2 = vcmp.ne.s16.totalorder %v11792_v19, 0  ;;  %v11794_v36 = vld [vmem:[#allocation4_spill] sm:$0xff] }
 0x171   : > { %7369 = vmatprep.mubr.msk.bf16.mxu0 %vm228_vm0, %v3702_v4  ;;  %v3748_v4 = vrot.slane %v3746_v53, 3  ;;  %v3486_v53 = vsel %vm1760_vm12, %v3483_v14, %v3485_v63  ;;  %v3487_v14 = vrot.slane %v3271_v23, 1  ;;  %v3252_v62 = vsel %vm11793_vm2, %v9392_v8, 0  ;;  %v3239_v23 = vld [vmem:[#allocation2 + $0x90] sm:$0x1f] }
 0x172   : > { %v3739_v2 = vrot.slane %v3737_v29, 3  ;;  %v3783_v37 = vshll.u32 %v3486_v53, 16 }
 0x173   : > { %v3752_v55 = vor.u32 %v3751_v16, %v3748_v4  ;;  %v3757_v4 = vshll.u32 %v3528_v43, 16  ;;  %v3488_v29 = vsel %vm1760_vm12, %v3485_v63, %v3487_v14 }
 0x174   : > { %v3785_v47 = vrot.slane %v3783_v37, 4 }
 0x175   : > { %v3753_v24 = vsel %vm1395_vm5, %v3735_v57, %v3752_v55  ;;  %v3780_v57 = vshrl.u32 %v3486_v53, 16  ;;  %v3759_v26 = vrot.slane %v3757_v4, 4 }
 0x178   : > { %4073 = vmatmul.mubr.bf16.gmra.mrb[88].mxu0 %v3693_v41  ;;  %v3768_v41 = vrot.slane %v3766_v9, 4 }
 0x179   : > { %7370 = vmatprep.mubr.msk.bf16.mxu0 %vm228_vm0, %v3719_v32  ;;  %v3740_v32 = vshll.u32 %v3525_v0, 16  ;;  %v3782_v0 = vrot.slane %v3780_v57, 3 }
 0x17a   : > { %v3769_v31 = vor.u32 %v3768_v41, %v3765_v28  ;;  %v3797_v28 = vshrl.u32 %v3488_v29, 16 }
 0x17b   : > { %v3742_v54 = vrot.slane %v3740_v32, 4  ;;  %v3786_v8 = vor.u32 %v3785_v47, %v3782_v0  ;;  %v11797_v0 = vld [vmem:[#allocation41_spill] sm:$0xff] }
 0x17c   : > { %v9720_v34 = vpop.f32.mrb[0].mxu0  ;;  %v3799_v37 = vrot.slane %v3797_v28, 3 }
 0x17d   : > { %v2512_v44 = vpop.f32.mrb[1].mxu0  ;;  %v3743_v27 = vor.u32 %v3742_v54, %v3739_v2  ;;  %v3787_v57 = vsel %vm1395_vm5, %v3769_v31, %v3786_v8 }
 0x17e   : > { %v9725_v45 = vpop.f32.mrb[2].mxu0  ;;  %v3770_v44 = vsel %vm1395_vm5, %v3752_v55, %v3769_v31  ;;  %v3800_v55 = vshll.u32 %v3488_v29, 16 }
 0x17f   : > { %v2515_v51 = vpop.f32.mrb[3].mxu0  ;;  %v3744_v9 = vsel %vm1395_vm5, %v3726_v61, %v3743_v27  ;;  %v11795_v61 = vld [vmem:[#allocation32_spill] sm:$0xff] }
 0x180   : > { %4081 = vmatmul.mubr.bf16.gmra.mrb[92].mxu0 %v3710_v60  ;;  %v3434_v60 = vpop.permute.xlu1 %3433  ;;  %vm11796_vm3 = vcmp.ne.s16.totalorder %v11795_v61, 0 }
 0x181   : > { %7371 = vmatprep.mubr.msk.bf16.mxu0 %vm228_vm0, %v3736_v58  ;;  %v3754_v58 = vshrl.u32 %v3528_v43, 16  ;;  %v3531_v32 = vsel %vm228_vm0, %v3252_v62, %v3434_v60  ;;  %v3253_v63 = vsel %vm11796_vm3, %v9443_v42, 0  ;;  %v3273_v42 = vsel %vm1555_vm9, %v3239_v23, 0 }
 0x182   : > { %v3771_v2 = vshrl.u32 %v3531_v32, 16  ;;  %v3774_v54 = vshll.u32 %v3531_v32, 16  ;;  %v3534_v47 = vsel %vm228_vm0, %v3253_v63, %v11797_v0  ;;  %vm11801_vm3 = vcmp.ne.s16.totalorder %v11766_v15, 0 }
 0x183   : > { %v3756_v51 = vrot.slane %v3754_v58, 3  ;;  %v3802_v58 = vrot.slane %v3800_v55, 4  ;;  %v3791_v29 = vshll.u32 %v3534_v47, 16 }
 0x184   : > { %v3776_v62 = vrot.slane %v3774_v54, 4 }
 0x185   : > { %v3760_v41 = vor.u32 %v3759_v26, %v3756_v51  ;;  %v3803_v31 = vor.u32 %v3802_v58, %v3799_v37  ;;  %v3438_v28 = vpop.permute.xlu1 %3437 }
 0x187   : > { %v9743_v18 = vpop.f32.mrb[4].mxu0  ;;  %v3761_v60 = vsel %vm1395_vm5, %v3743_v27, %v3760_v41 }
 0x188   : > { %4089 = vmatmul.mubr.bf16.gmra.mrb[96].mxu0 %v3727_v49  ;;  %v2520_v16 = vpop.f32.mrb[5].mxu0 }
 0x189   : > { %7372 = vmatprep.mubr.msk.bf16.mxu0 %vm228_vm0, %v3753_v24  ;;  %v9745_v25 = vpop.f32.mrb[6].mxu0  ;;  %v3272_v24 = vsel %vm1554_vm4, %v11794_v36, 0  ;;  %v3773_v16 = vrot.slane %v3771_v2, 3  ;;  %v3491_v36 = vrot.slane %v3273_v42, 1  ;;  %v3804_v2 = vsel %vm1395_vm5, %v3786_v8, %v3803_v31 }
 0x18a   : > { %v2523_v7 = vpop.f32.mrb[7].mxu0  ;;  %v3489_v49 = vrot.slane %v3272_v24, 1 }
 0x18b   : > { %v3777_v32 = vor.u32 %v3776_v62, %v3773_v16 }
 0x18c   : > { %v3492_v16 = vsel %vm1760_vm12, %v3489_v49, %v3491_v36 }
 0x18d   : > { %v3778_v37 = vsel %vm1395_vm5, %v3760_v41, %v3777_v32  ;;  %v3834_v8 = vshll.u32 %v3492_v16, 16 }
 0x190   : > { %4097 = vmatmul.mubr.bf16.gmra.mrb[100].mxu0 %v3744_v9  ;;  %v3788_v9 = vshrl.u32 %v3534_v47, 16 }
 0x191   : > { %7373 = vmatprep.mubr.msk.bf16.mxu0 %vm228_vm0, %v3770_v44  ;;  %v3490_v44 = vsel %vm1760_vm12, %v3487_v14, %v3489_v49  ;;  %v11798_v14 = vld [vmem:[#allocation37_spill] sm:$0xff] }
 0x192   : > { %v9758_v53 = vpop.f32.mrb[8].mxu0  ;;  %v3814_v51 = vshrl.u32 %v3490_v44, 16  ;;  %v3817_v26 = vshll.u32 %v3490_v44, 16  ;;  %vm11799_vm2 = vcmp.ne.s16.totalorder %v11798_v14, 0  ;;  %v3790_v23 = vrot.slane %v3788_v9, 3 }
 0x193   : > { %v2528_v43 = vpop.f32.mrb[9].mxu0  ;;  %v3254_v24 = vsel %vm11799_vm2, %v9375_v12, 0  ;;  %vm11803_vm2 = vcmask 523268  }
 0x194   : > { %v9764_v4 = vpop.f32.mrb[10].mxu0  ;;  %v3816_v54 = vrot.slane %v3814_v51, 3  ;;  %v3819_v63 = vrot.slane %v3817_v26, 4  ;;  %v3537_v62 = vsel %vm228_vm0, %v3254_v24, %v3438_v28 }
 0x195   : > { %v2531_v7 = vpop.f32.mrb[11].mxu0  ;;  %v3805_v42 = vshrl.u32 %v3537_v62, 16  ;;  %v3808_v51 = vshll.u32 %v3537_v62, 16 }
 0x196   : > { %v3831_v7 = vshrl.u32 %v3492_v16, 16 }
 0x198   : > { %4105 = vmatmul.mubr.bf16.gmra.mrb[104].mxu0 %v3761_v60  ;;  %v3820_v60 = vor.u32 %v3819_v63, %v3816_v54  ;;  %v3833_v54 = vrot.slane %v3831_v7, 3  ;;  %v3836_v63 = vrot.slane %v3834_v8, 4 }
 0x199   : > { %7374 = vmatprep.mubr.msk.bf16.mxu0 %vm228_vm0, %v3787_v57  ;;  %v3793_v57 = vrot.slane %v3791_v29, 4  ;;  %v7633_v29 = vld [vmem:[#allocation2 + $0x88] sm:$0xff] }
 0x19a   : > { %v9773_v27 = vpop.f32.mrb[12].mxu0  ;;  %v3255_v28 = vsel %vm11572_vm11, %v7633_v29, 0  ;;  %vm11809_vm11 = vcmp.ne.s16.totalorder %v11804_v11, 0 }
 0x19b   : > { %v2536_v55 = vpop.f32.mrb[13].mxu0  ;;  %v3794_v47 = vor.u32 %v3793_v57, %v3790_v23  ;;  %v3807_v57 = vrot.slane %v3805_v42, 3 }
 0x19c   : > { %v9779_v43 = vpop.f32.mrb[14].mxu0  ;;  %v3440_v55 = vpop.permute.xlu1 %3439 }
 0x19d   : > { %v2539_v58 = vpop.f32.mrb[15].mxu0 }
 0x19e   : > { %v3795_v58 = vsel %vm1395_vm5, %v3777_v32, %v3794_v47 }
 0x19f   : > { %v3094_v12 = vpop.f32.mrb[0].mxu1 }
 0x1a0   : > { %4113 = vmatmul.mubr.bf16.gmra.mrb[108].mxu0 %v3778_v37  ;;  %v9786_v44 = vadd.f32 %v3094_v12, %v9720_v34  ;;  %v3096_v0 = vpop.f32.mrb[1].mxu1  ;;  %v3821_v34 = vsel %vm1395_vm5, %v3803_v31, %v3820_v60  ;;  %v3810_v37 = vrot.slane %v3808_v51, 4  ;;  %v3837_v12 = vor.u32 %v3836_v63, %v3833_v54 }
 0x1a1   : > { %7375 = vmatprep.mubr.msk.bf16.mxu0 %vm228_vm0, %v3804_v2  ;;  %v3097_v41 = vpop.f32.mrb[2].mxu1  ;;  %v3848_v0 = vshrl.u32 %v3491_v36, 16 }
 0x1a2   : > { %v9788_v26 = vpop.f32.mrb[16].mxu0  ;;  %v9791_v49 = vadd.f32 %v3097_v41, %v9725_v45  ;;  %v3099_v9 = vpop.f32.mrb[3].mxu1  ;;  %v3540_v45 = vsel %vm228_vm0, %v3255_v28, %v3440_v55  ;;  %v3851_v41 = vshll.u32 %v3491_v36, 16  ;;  %v3811_v8 = vor.u32 %v3810_v37, %v3807_v57  ;;  %v7634_v28 = vld [vmem:[#allocation2 + $0x90] sm:$0xf] }
 0x1a3   : > { %v2544_v2 = vpop.f32.mrb[17].mxu0  ;;  %v3822_v9 = vshrl.u32 %v3540_v45, 16  ;;  %v3825_v42 = vshll.u32 %v3540_v45, 16  ;;  %v3256_v55 = vsel %vm11801_vm3, %v7634_v28, 0  ;;  %v3850_v36 = vrot.slane %v3848_v0, 3 }
 0x1a4   : > { %v9796_v23 = vpop.f32.mrb[18].mxu0  ;;  %v3442_v2 = vpop.permute.xlu1 %3441  ;;  %v3853_v54 = vrot.slane %v3851_v41, 4  ;;  %v3812_v57 = vsel %vm1395_vm5, %v3794_v47, %v3811_v8  ;;  %vm11805_vm3 = vcmp.ne.s16.totalorder %v11804_v11, 0 }
 0x1a5   : > { %v2547_v16 = vpop.f32.mrb[19].mxu0  ;;  %v3827_v63 = vrot.slane %v3825_v42, 4  ;;  %v3543_v37 = vsel %vm228_vm0, %v3256_v55, %v3442_v2 }
 0x1a6   : > { %v3854_v16 = vor.u32 %v3853_v54, %v3850_v36  ;;  %v3839_v0 = vshrl.u32 %v3543_v37, 16  ;;  %v3842_v41 = vshll.u32 %v3543_v37, 16 }
 0x1a7   : > { %v3102_v62 = vpop.f32.mrb[4].mxu1 }
 0x1a8   : > { %4121 = vmatmul.mubr.bf16.gmra.mrb[112].mxu0 %v3795_v58  ;;  %v9802_v31 = vadd.f32 %v3102_v62, %v9743_v18  ;;  %v3104_v7 = vpop.f32.mrb[5].mxu1  ;;  %v3824_v18 = vrot.slane %v3822_v9, 3  ;;  %v3855_v28 = vsel %vm1395_vm5, %v3837_v12, %v3854_v16  ;;  %v3841_v55 = vrot.slane %v3839_v0, 3 }
 0x1a9   : > { %7376 = vmatprep.mubr.msk.bf16.mxu0 %vm228_vm0, %v3821_v34  ;;  %v3105_v51 = vpop.f32.mrb[6].mxu1  ;;  %v3838_v34 = vsel %vm1395_vm5, %v3820_v60, %v3837_v12  ;;  %v3844_v2 = vrot.slane %v3842_v41, 4 }
 0x1aa   : > { %v9805_v32 = vadd.f32 %v3105_v51, %v9745_v25  ;;  %v3107_v29 = vpop.f32.mrb[7].mxu1  ;;  %v3828_v60 = vor.u32 %v3827_v63, %v3824_v18 }
 0x1af   : > { %v3110_v58 = vpop.f32.mrb[8].mxu1 }
 0x1b0   : > { %4129 = vmatmul.mubr.bf16.gmra.mrb[116].mxu0 %v3812_v57  ;;  %v9814_v62 = vadd.f32 %v3110_v58, %v9758_v53  ;;  %v3112_v7 = vpop.f32.mrb[9].mxu1  ;;  %v3845_v57 = vor.u32 %v3844_v2, %v3841_v55 }
 0x1b1   : > { %7377 = vmatprep.mubr.msk.bf16.mxu0 %vm228_vm0, %v3838_v34  ;;  %v2550_v25 = vpop.f32.mrb[20].mxu0  ;;  %v3113_v42 = vpop.f32.mrb[10].mxu1  ;;  %v3829_v34 = vsel %vm1395_vm5, %v3811_v8, %v3828_v60 }
 0x1b2   : > { %v2552_v45 = vpop.f32.mrb[21].mxu0  ;;  %v9817_v47 = vadd.f32 %v3113_v42, %v9764_v4  ;;  %v3115_v29 = vpop.f32.mrb[11].mxu1  ;;  %v3846_v8 = vsel %vm1395_vm5, %v3828_v60, %v3845_v57 }
 0x1b3   : > { %v2553_v9 = vpop.f32.mrb[22].mxu0 }
 0x1b4   : > { %v2555_v51 = vpop.f32.mrb[23].mxu0 }
 0x1b8   : > { %4137 = vmatmul.mubr.bf16.gmra.mrb[120].mxu0 %v3829_v34  ;;  %v3118_v36 = vpop.f32.mrb[12].mxu1  ;;  %v11802_v34 = vmov 0  }
 0x1b9   : > { %7378 = vmatprep.mubr.msk.bf16.mxu0 %vm228_vm0, %v3855_v28  ;;  %v2558_v53 = vpop.f32.mrb[24].mxu0  ;;  %v9823_v18 = vadd.f32 %v3118_v36, %v9773_v27  ;;  %v3120_v63 = vpop.f32.mrb[13].mxu1 }
 0x1ba   : > { %v2560_v54 = vpop.f32.mrb[25].mxu0  ;;  %v3121_v37 = vpop.f32.mrb[14].mxu1 }
 0x1bb   : > { %v2561_v4 = vpop.f32.mrb[26].mxu0  ;;  %v9826_v12 = vadd.f32 %v3121_v37, %v9779_v43  ;;  %v3123_v16 = vpop.f32.mrb[15].mxu1  ;;  %v7564_v43 = vld [vmem:[%s11451_s3 + $0x60] sm:$0xff]  }
 0x1bc   : > { %v2563_v58 = vpop.f32.mrb[27].mxu0  ;;  %5308 = vmatpush1.bf16.msra.mxu1 %v7564_v43  ;;  %v7565_v16 = vld [vmem:[%s11451_s3 + $0x68] sm:$0xff]  }
 0x1bd   : > { %5309 = vmatprep.subr.bf16.mxu1 %v11802_v34 }
 0x1c0   : > { %4145 = vmatmul.mubr.bf16.gmra.mrb[124].mxu0 %v3846_v8  ;;  %5310 = vmatpush1.bf16.msra.mxu1 %v7565_v16 }
 0x1c1   : > { %v2566_v45 = vpop.f32.mrb[28].mxu0  ;;  %v3126_v7 = vpop.f32.mrb[16].mxu1  ;;  %5311 = vmatprep.subr.bf16.mxu1 %v11802_v34 }
 0x1c2   : > { %v2568_v0 = vpop.f32.mrb[29].mxu0  ;;  %v9830_v41 = vadd.f32 %v3126_v7, %v9788_v26  ;;  %v3128_v27 = vpop.f32.mrb[17].mxu1 }
 0x1c3   : > { %v2569_v42 = vpop.f32.mrb[30].mxu0  ;;  %v3129_v51 = vpop.f32.mrb[18].mxu1 }
 0x1c4   : > { %v2571_v29 = vpop.f32.mrb[31].mxu0  ;;  %v9833_v28 = vadd.f32 %v3129_v51, %v9796_v23  ;;  %v3131_v55 = vpop.f32.mrb[19].mxu1 }
 0x1ca   : > { %v2574_v60 = vpop.f32.mrb[32].mxu0 }
 0x1cb   : > { %v2576_v2 = vpop.f32.mrb[33].mxu0 }
 0x1cc   : > { %v2577_v36 = vpop.f32.mrb[34].mxu0  ;;  %v3134_v54 = vpop.f32.mrb[20].mxu1  ;;  %v7566_v2 = vld [vmem:[%s11451_s3 + $0x70] sm:$0xff]  }
 0x1cd   : > { %v2579_v26 = vpop.f32.mrb[35].mxu0  ;;  %v9839_v63 = vadd.f32 %v3134_v54, %v2550_v25  ;;  %v3136_v57 = vpop.f32.mrb[21].mxu1  ;;  %5312 = vmatpush1.bf16.msra.mxu1 %v7566_v2 }
 0x1ce   : > { %v3137_v37 = vpop.f32.mrb[22].mxu1  ;;  %5313 = vmatprep.subr.bf16.mxu1 %v11802_v34 }
 0x1cf   : > { %v9841_v58 = vadd.f32 %v3137_v37, %v2553_v9  ;;  %v3139_v23 = vpop.f32.mrb[23].mxu1 }
 0x1d6   : > { %v3142_v7 = vpop.f32.mrb[24].mxu1 }
 0x1d7   : > { %v2582_v8 = vpop.f32.mrb[36].mxu0  ;;  %v9847_v27 = vadd.f32 %v3142_v7, %v2558_v53  ;;  %v3144_v51 = vpop.f32.mrb[25].mxu1 }
 0x1d8   : > { %v2584_v0 = vpop.f32.mrb[37].mxu0  ;;  %v3145_v29 = vpop.f32.mrb[26].mxu1  ;;  %v7567_v51 = vld [vmem:[%s11451_s3 + $0x78] sm:$0xff]  }
 0x1d9   : > { %v2585_v25 = vpop.f32.mrb[38].mxu0  ;;  %v9849_v43 = vadd.f32 %v3145_v29, %v2561_v4  ;;  %v3147_v9 = vpop.f32.mrb[27].mxu1  ;;  %5314 = vmatpush1.bf16.msra.mxu1 %v7567_v51 }
 0x1da   : > { %v2587_v55 = vpop.f32.mrb[39].mxu0  ;;  %5315 = vmatprep.subr.bf16.mxu1 %v11802_v34 }
 0x1e1   : > { %v3150_v26 = vpop.f32.mrb[28].mxu1 }
 0x1e2   : > { %v9855_v57 = vadd.f32 %v3150_v26, %v2566_v45  ;;  %v3152_v53 = vpop.f32.mrb[29].mxu1 }
 0x1e3   : > { %v3153_v23 = vpop.f32.mrb[30].mxu1 }
 0x1e4   : > { %v2590_v54 = vpop.f32.mrb[40].mxu0  ;;  %v9857_v7 = vadd.f32 %v3153_v23, %v2569_v42  ;;  %v3155_v4 = vpop.f32.mrb[31].mxu1  ;;  %v7568_v42 = vld [vmem:[%s11451_s3 + $0x80] sm:$0xff]  }
 0x1e5   : > { %v2592_v37 = vpop.f32.mrb[41].mxu0  ;;  %5316 = vmatpush1.bf16.msra.mxu1 %v7568_v42 }
 0x1e6   : > { %v2593_v16 = vpop.f32.mrb[42].mxu0  ;;  %5317 = vmatprep.subr.bf16.mxu1 %v11802_v34 }
 0x1e7   : > { %v2595_v0 = vpop.f32.mrb[43].mxu0 }
 0x1e9   : > { %v3158_v29 = vpop.f32.mrb[32].mxu1 }
 0x1ea   : > { %v9863_v55 = vadd.f32 %v3158_v29, %v2574_v60  ;;  %v3160_v45 = vpop.f32.mrb[33].mxu1 }
 0x1eb   : > { %v3161_v9 = vpop.f32.mrb[34].mxu1 }
 0x1ec   : > { %v9865_v2 = vadd.f32 %v3161_v9, %v2577_v36  ;;  %v3163_v26 = vpop.f32.mrb[35].mxu1 }
 0x1f0   : > { %v2598_v53 = vpop.f32.mrb[44].mxu0 }
 0x1f1   : > { %v2600_v37 = vpop.f32.mrb[45].mxu0 }
 0x1f2   : > { %v2601_v23 = vpop.f32.mrb[46].mxu0 }
 0x1f3   : > { %v2603_v4 = vpop.f32.mrb[47].mxu0 }
 0x1f4   : > { %v3166_v0 = vpop.f32.mrb[36].mxu1 }
 0x1f5   : > { %v9871_v51 = vadd.f32 %v3166_v0, %v2582_v8  ;;  %v3168_v60 = vpop.f32.mrb[37].mxu1  ;;  %v7569_v8 = vld [vmem:[%s11451_s3 + $0x88] sm:$0xff]  }
 0x1f6   : > { %v3169_v29 = vpop.f32.mrb[38].mxu1  ;;  %5318 = vmatpush1.bf16.msra.mxu1 %v7569_v8 }
 0x1f7   : > { %v9873_v45 = vadd.f32 %v3169_v29, %v2585_v25  ;;  %v3171_v36 = vpop.f32.mrb[39].mxu1  ;;  %5319 = vmatprep.subr.bf16.mxu1 %v11802_v34 }
 0x1f8   : > { %v2606_v9 = vpop.f32.mrb[48].mxu0 }
 0x1f9   : > { %v2608_v26 = vpop.f32.mrb[49].mxu0 }
 0x1fa   : > { %v2609_v15 = vpop.f32.mrb[50].mxu0 }
 0x1fb   : > { %v2611_v24 = vpop.f32.mrb[51].mxu0 }
 0x1fc   : > { %v3174_v14 = vpop.f32.mrb[40].mxu1 }
 0x1fd   : > { %v9875_v61 = vadd.f32 %v3174_v14, %v2590_v54  ;;  %v3176_v42 = vpop.f32.mrb[41].mxu1  ;;  %v7570_v14 = vld [vmem:[%s11451_s3 + $0x90] sm:$0xff]  }
 0x1fe   : > { %v3177_v37 = vpop.f32.mrb[42].mxu1  ;;  %5320 = vmatpush1.bf16.msra.mxu1 %v7570_v14 }
 0x1ff   : > { %v9877_v40 = vadd.f32 %v3177_v37, %v2593_v16  ;;  %v3179_v4 = vpop.f32.mrb[43].mxu1  ;;  %5321 = vmatprep.subr.bf16.mxu1 %v11802_v34 }
 0x201   : > { %v2614_v0 = vpop.f32.mrb[52].mxu0 }
 0x202   : > { %v2616_v25 = vpop.f32.mrb[53].mxu0 }
 0x203   : > { %v2617_v60 = vpop.f32.mrb[54].mxu0 }
 0x204   : > { %v2619_v29 = vpop.f32.mrb[55].mxu0 }
 0x205   : > { %v7571_v29 = vld [vmem:[%s11451_s3 + $0x98] sm:$0xff]  }
 0x206   : > { %5322 = vmatpush1.bf16.msra.mxu1 %v7571_v29 }
 0x207   : > { %5323 = vmatprep.subr.bf16.mxu1 %v11802_v34 }
 0x209   : > { %v2622_v54 = vpop.f32.mrb[56].mxu0 }
 0x20a   : > { %v3182_v24 = vpop.f32.mrb[44].mxu1  ;;  %v2624_v26 = vpop.f32.mrb[57].mxu0 }
 0x20b   : > { %v9886_v16 = vadd.f32 %v3182_v24, %v2598_v53  ;;  %v3184_v36 = vpop.f32.mrb[45].mxu1  ;;  %v2625_v37 = vpop.f32.mrb[58].mxu0 }
 0x20c   : > { %v3185_v42 = vpop.f32.mrb[46].mxu1  ;;  %v2627_v25 = vpop.f32.mrb[59].mxu0 }
 0x20d   : > { %v9889_v4 = vadd.f32 %v3185_v42, %v2601_v23  ;;  %v3187_v8 = vpop.f32.mrb[47].mxu1 }
 0x211   : > { %v2630_v22 = vpop.f32.mrb[60].mxu0 }
 0x212   : > { %v3190_v19 = vpop.f32.mrb[48].mxu1  ;;  %v2632_v14 = vpop.f32.mrb[61].mxu0 }
 0x213   : > { %v9894_v33 = vadd.f32 %v3190_v19, %v2606_v9  ;;  %v3192_v53 = vpop.f32.mrb[49].mxu1  ;;  %v2633_v36 = vpop.f32.mrb[62].mxu0 }
 0x214   : > { %v3193_v24 = vpop.f32.mrb[50].mxu1  ;;  %v2635_v42 = vpop.f32.mrb[63].mxu0 }
 0x215   : > { %v9897_v26 = vadd.f32 %v3193_v24, %v2609_v15  ;;  %v3195_v23 = vpop.f32.mrb[51].mxu1 }
 0x219   : > { %v4026_v25 = vpop.f32.mrb[64].mxu0 }
 0x21a   : > { %v3198_v8 = vpop.f32.mrb[52].mxu1  ;;  %v4153_v29 = vadd.f32 %v4026_v25, %v9786_v44  ;;  %v4028_v53 = vpop.f32.mrb[65].mxu0 }
 0x21b   : > { %v9904_v19 = vadd.f32 %v3198_v8, %v2614_v0  ;;  %v3200_v9 = vpop.f32.mrb[53].mxu1  ;;  %v4029_v10 = vpop.f32.mrb[66].mxu0  ;;  %v7572_v0 = vld [vmem:[%s11451_s3 + $0xa0] sm:$0xff]  }
 0x21c   : > { %v3201_v14 = vpop.f32.mrb[54].mxu1  ;;  %v4192_v24 = vadd.f32 %v9902_v3, %v4153_v29  ;;  %v4154_v23 = vadd.f32 %v4029_v10, %v9791_v49  ;;  %v4031_v42 = vpop.f32.mrb[67].mxu0  ;;  %5324 = vmatpush1.bf16.msra.mxu1 %v7572_v0  ;;  %v7573_v29 = vld [vmem:[%s11451_s3 + $0xa8] sm:$0xff]  }
 0x21d   : > { %v9907_v59 = vadd.f32 %v3201_v14, %v2617_v60  ;;  %v3203_v15 = vpop.f32.mrb[55].mxu1  ;;  %5325 = vmatprep.subr.bf16.mxu1 %v11802_v34 }
 0x21e   : > { %v4193_v39 = vadd.f32 %v9902_v3, %v4154_v23  ;;  %v4224_v8 = vmax.f32 %v4192_v24, 0.0 }
 0x220   : > { %v4225_v9 = vmax.f32 %v4193_v39, 0.0  ;;  %5326 = vmatpush1.bf16.msra.mxu1 %v7573_v29 }
 0x221   : > { %5327 = vmatprep.subr.bf16.mxu1 %v11802_v34 }
 0x222   : > { %v3206_v44 = vpop.f32.mrb[56].mxu1  ;;  %v4256_v10 = vpack.c.bf16 %v4225_v9, %v4224_v8 }
 0x223   : > { %v4034_v25 = vpop.f32.mrb[68].mxu0  ;;  %v9915_v53 = vadd.f32 %v3206_v44, %v2622_v54  ;;  %v3208_v60 = vpop.f32.mrb[57].mxu1 }
 0x224   : > { %v4155_v49 = vadd.f32 %v4034_v25, %v9802_v31  ;;  %v4036_v14 = vpop.f32.mrb[69].mxu0  ;;  %v3209_v15 = vpop.f32.mrb[58].mxu1  ;;  %v4288_v42 = vrot.slane %v4256_v10, 4  ;;  %v4370_v60 = vld [vmem:[#allocation2] sm:$0xf0]  ;;  %v7574_v31 = vld [vmem:[%s11451_s3 + $0xb0] sm:$0xff]  }
 0x225   : > { %v4037_v23 = vpop.f32.mrb[70].mxu0  ;;  %v9922_v24 = vadd.f32 %v3209_v15, %v2625_v37  ;;  %v3211_v39 = vpop.f32.mrb[59].mxu1  ;;  %v4409_v37 = vshll.u32 %v4370_v60, 16  ;;  %5328 = vmatpush1.bf16.msra.mxu1 %v7574_v31  ;;  %v4407_v20 = vshrl.u32 %v4370_v60, 16 }
 0x226   : > { %v4194_v54 = vadd.f32 %v9902_v3, %v4155_v49  ;;  %v4156_v0 = vadd.f32 %v4037_v23, %v9805_v32  ;;  %v4039_v44 = vpop.f32.mrb[71].mxu0  ;;  %4336 = vst.msk [vmem:[#allocation2 + $0x8] sm:$0xf0] %vm11803_vm2, %v4288_v42  ;;  %5329 = vmatprep.subr.bf16.mxu1 %v11802_v34  ;;  %vm11806_vm2 = vcmask 1043456  }
 0x227   : > { %v4411_v56 = vrot.slane %v4409_v37, 1 }
 0x228   : > { %v4195_v8 = vadd.f32 %v9902_v3, %v4156_v0  ;;  %v4226_v9 = vmax.f32 %v4194_v54, 0.0  ;;  %v4389_v54 = vsel %vm11805_vm3, %v4370_v60, 0  ;;  %vm11808_vm3 = vsmask.f32 7424 }
 0x229   : > { %v4412_v37 = vor.u32 %v4411_v56, %v4407_v20 }
 0x22a   : > { %v4227_v25 = vmax.f32 %v4195_v8, 0.0  ;;  %v3214_v10 = vpop.f32.mrb[60].mxu1 }
 0x22b   : > { %v4042_v49 = vpop.f32.mrb[72].mxu0  ;;  %v9932_v14 = vadd.f32 %v3214_v10, %v2630_v22  ;;  %v3216_v32 = vpop.f32.mrb[61].mxu1 }
 0x22c   : > { %v4257_v29 = vpack.c.bf16 %v4227_v25, %v4226_v9  ;;  %v4157_v15 = vadd.f32 %v4042_v49, %v9814_v62  ;;  %v4044_v23 = vpop.f32.mrb[73].mxu0  ;;  %v3217_v39 = vpop.f32.mrb[62].mxu1 }
 0x22d   : > { %v4045_v44 = vpop.f32.mrb[74].mxu0  ;;  %v9936_v0 = vadd.f32 %v3217_v39, %v2633_v36  ;;  %v3219_v8 = vpop.f32.mrb[63].mxu1  ;;  %v4703_v62 = vld [vmem:[#allocation2 + $0x8] sm:$0xf0]  ;;  %v4592_v36 = vrot.slane %v4389_v54, 1 }
 0x22e   : > { %v4289_v22 = vrot.slane %v4257_v29, 4  ;;  %v4196_v10 = vadd.f32 %v9902_v3, %v4157_v15  ;;  %v4158_v31 = vadd.f32 %v4045_v44, %v9817_v47  ;;  %v4047_v9 = vpop.f32.mrb[75].mxu0  ;;  %v4354_v25 = vld [vmem:[#allocation2 + $0x8] sm:$0xff]  ;;  %v4742_v23 = vshll.u32 %v4703_v62, 16 }
 0x22f   : > { %v4390_v60 = vsel %vm1540_vm7, %v4354_v25, 0  ;;  %v4414_v46 = vshll.u32 %v4354_v25, 16 }
 0x230   : > { %v4290_v49 = vsel %vm11806_vm2, %v4288_v42, %v4289_v22  ;;  %v4197_v32 = vadd.f32 %v9902_v3, %v4158_v31  ;;  %v4228_v29 = vmax.f32 %v4196_v10, 0.0  ;;  %v4593_v15 = vrot.slane %v4390_v60, 1  ;;  %v7575_v10 = vld [vmem:[%s11451_s3 + $0xb8] sm:$0xff]  }
 0x231   : > { %4337 = vst.msk [vmem:[#allocation2 + $0x10] sm:$0xff] %vm228_vm0, %v4290_v49  ;;  %v4416_v31 = vrot.slane %v4414_v46, 1  ;;  %v4744_v50 = vrot.slane %v4742_v23, 1  ;;  %5330 = vmatpush1.bf16.msra.mxu1 %v7575_v10 }
 0x232   : > { %v4229_v8 = vmax.f32 %v4197_v32, 0.0  ;;  %v4594_v42 = vsel %vm1760_vm12, %v4592_v36, %v4593_v15  ;;  %6823 = vmatprep.subr.bf16.mxu1 %v11802_v34 }
 0x233   : > { %v4050_v47 = vpop.f32.mrb[76].mxu0  ;;  %v9952_v56 = vsel %vm11808_vm3, %v4412_v37, %v4416_v31  ;;  %v5487_v32 = vshll.u32 %v4594_v42, 16 }
 0x234   : > { %v4258_v44 = vpack.c.bf16 %v4229_v8, %v4228_v29  ;;  %v4159_v9 = vadd.f32 %v4050_v47, %v9823_v18  ;;  %v4052_v38 = vpop.f32.mrb[77].mxu0  ;;  %v4740_v18 = vshrl.u32 %v4703_v62, 16  ;;  %v4418_v47 = vshrl.u32 %v4354_v25, 16 }
 0x235   : > { %v4053_v54 = vpop.f32.mrb[78].mxu0  ;;  %v5484_v38 = vshrl.u32 %v4594_v42, 16 }
 0x236   : > { %v4291_v49 = vrot.slane %v4258_v44, 4  ;;  %v4198_v30 = vadd.f32 %v9902_v3, %v4159_v9  ;;  %v4160_v13 = vadd.f32 %v4053_v54, %v9826_v12  ;;  %v4055_v20 = vpop.f32.mrb[79].mxu0  ;;  %v4722_v12 = vsel %vm11809_vm11, %v4703_v62, 0  ;;  %vm11811_vm11 = vmmov %vm11808_vm3 }
 0x237   : > { %v4745_v37 = vor.u32 %v4744_v50, %v4740_v18  ;;  %v5486_v54 = vrot.slane %v5484_v38, 3  ;;  %v5489_v50 = vrot.slane %v5487_v32, 4  ;;  %v4788_v25 = vrot.slane %v4722_v12, 1  ;;  %vm11812_vm3 = vmmov %vm11806_vm2 }
 0x238   : > { %v4292_v46 = vsel %vm11806_vm2, %v4289_v22, %v4291_v49  ;;  %v4199_v36 = vadd.f32 %v9902_v3, %v4160_v13  ;;  %v9959_v23 = vld [vmem:[#allocation2 + $0x10] sm:$0xff]  ;;  %v4230_v13 = vmax.f32 %v4198_v30, 0.0  ;;  %v4420_v1 = vor.u32 %v4418_v47, %v4416_v31  ;;  %vm11813_vm2 = vmmov %vm11811_vm11 }
 0x239   : > { %4338 = vst.msk [vmem:[#allocation2 + $0x18] sm:$0xff] %vm228_vm0, %v4292_v46  ;;  %v4422_v60 = vshll.u32 %v9959_v23, 16  ;;  %v9968_v8 = vsel %vm1541_vm10, %v9959_v23, 0  ;;  %v4723_v62 = vsel %vm1540_vm7, %v9959_v23, 0  ;;  %v5490_v12 = vor.u32 %v5489_v50, %v5486_v54 }
 0x23a   : > { %v4231_v22 = vmax.f32 %v4199_v36, 0.0  ;;  %v4595_v44 = vrot.slane %v9968_v8, 1  ;;  %v4789_v20 = vrot.slane %v4723_v62, 1 }
 0x23b   : > { %v4058_v9 = vpop.f32.mrb[80].mxu0  ;;  %v4424_v42 = vrot.slane %v4422_v60, 1 }
 0x23c   : > { %v4259_v10 = vpack.c.bf16 %v4231_v22, %v4230_v13  ;;  %v4161_v18 = vadd.f32 %v4058_v9, %v9830_v41  ;;  %v4060_v46 = vpop.f32.mrb[81].mxu0  ;;  %v4596_v30 = vsel %vm1760_vm12, %v4593_v15, %v4595_v44  ;;  %v4790_v41 = vsel %vm1760_vm12, %v4788_v25, %v4789_v20  ;;  %v7576_v15 = vld [vmem:[%s11451_s3] sm:$0xff]  }
 0x23d   : > { %v4061_v36 = vpop.f32.mrb[82].mxu0  ;;  %v4746_v17 = vsel %vm11811_vm11, %v4745_v37, %v4424_v42  ;;  %v5492_v5 = vshrl.u32 %v4596_v30, 16  ;;  %v5495_v35 = vshll.u32 %v4596_v30, 16  ;;  %v4426_v22 = vshrl.u32 %v9959_v23, 16  ;;  %5892 = vmatpush1.bf16.msra.mxu0 %v7576_v15  ;;  %vm11814_vm11 = vmmov %vm11813_vm2 }
 0x23e   : > { %v4293_v52 = vrot.slane %v4259_v10, 4  ;;  %v4200_v38 = vadd.f32 %v9902_v3, %v4161_v18  ;;  %v4162_v32 = vadd.f32 %v4061_v36, %v9833_v28  ;;  %v4063_v60 = vpop.f32.mrb[83].mxu0  ;;  %4763 = vrot.lane.b32.xlu1 %v4746_v17, %s7662_s13  ;;  %v4900_v28 = vshrl.u32 %v4790_v41, 16  ;;  %5893 = vmatprep.subr.bf16.mxu0 %v11802_v34 }
 0x23f   : > { %v5494_v13 = vrot.slane %v5492_v5, 3  ;;  %v5497_v37 = vrot.slane %v5495_v35, 4  ;;  %v9993_v17 = vsel %vm11813_vm2, %v4420_v1, %v4424_v42  ;;  %v4428_v46 = vor.u32 %v4426_v22, %v4424_v42 }
 0x240   : > { %v4294_v31 = vsel %vm11812_vm3, %v4291_v49, %v4293_v52  ;;  %v4201_v47 = vadd.f32 %v9902_v3, %v4162_v32  ;;  %v9990_v62 = vld [vmem:[#allocation2 + $0x18] sm:$0xff]  ;;  %v4903_v49 = vshll.u32 %v4790_v41, 16  ;;  %v4232_v54 = vmax.f32 %v4200_v38, 0.0 }
 0x241   : > { %4339 = vst.msk [vmem:[#allocation2 + $0x20] sm:$0xff] %vm228_vm0, %v4294_v31  ;;  %v9996_v9 = vor.u32 %v5497_v37, %v5494_v13  ;;  %v4430_v5 = vshll.u32 %v9990_v62, 16  ;;  %v4724_v35 = vsel %vm1541_vm10, %v9990_v62, 0  ;;  %v4902_v41 = vrot.slane %v4900_v28, 3 }
 0x242   : > { %v4233_v50 = vmax.f32 %v4201_v47, 0.0  ;;  %v4791_v10 = vrot.slane %v4724_v35, 1  ;;  %v4905_v13 = vrot.slane %v4903_v49, 4  ;;  %vm11815_vm2 = vcmp.ne.s16.totalorder %v11760_v6, 0 }
 0x243   : > { %v4066_v18 = vpop.f32.mrb[84].mxu0  ;;  %v5499_v1 = vsel %vm1395_vm5, %v5490_v12, %v9996_v9  ;;  %v10005_v25 = vrot.slane %v4430_v5, 1 }
 0x244   : > { %v4260_v30 = vpack.c.bf16 %v4233_v50, %v4232_v54  ;;  %v4163_v36 = vadd.f32 %v4066_v18, %v9839_v63  ;;  %v4068_v32 = vpop.f32.mrb[85].mxu0  ;;  %7444 = vmatprep.mubr.msk.bf16.mxu0 %vm228_vm0, %v5499_v1  ;;  %v4792_v60 = vsel %vm1760_vm12, %v4789_v20, %v4791_v10  ;;  %v4906_v49 = vor.u32 %v4905_v13, %v4902_v41 }
 0x245   : > { %v4069_v15 = vpop.f32.mrb[86].mxu0  ;;  %v4433_v38 = vsel %vm11814_vm11, %v4428_v46, %v10005_v25  ;;  %v4908_v37 = vshrl.u32 %v4792_v60, 16  ;;  %v4911_v31 = vshll.u32 %v4792_v60, 16  ;;  %v4434_v50 = vshrl.u32 %v9990_v62, 16 }
 0x246   : > { %v4295_v12 = vrot.slane %v4260_v30, 4  ;;  %v4202_v42 = vadd.f32 %v9902_v3, %v4163_v36  ;;  %v4164_v22 = vadd.f32 %v4069_v15, %v9841_v58  ;;  %v4071_v47 = vpop.f32.mrb[87].mxu0  ;;  %4545 = vrot.lane.b32.xlu0 %v4433_v38, %s7662_s13 }
 0x247   : > { %v4910_v63 = vrot.slane %v4908_v37, 3  ;;  %v4913_v5 = vrot.slane %v4911_v31, 4  ;;  %v4436_v36 = vor.u32 %v4434_v50, %v10005_v25 }
 0x248   : > { %v4296_v20 = vsel %vm11812_vm3, %v4293_v52, %v4295_v12  ;;  %v4203_v28 = vadd.f32 %v9902_v3, %v4164_v22  ;;  %v10017_v35 = vld [vmem:[#allocation2 + $0x20] sm:$0xff]  ;;  %v4234_v58 = vmax.f32 %v4202_v42, 0.0 }
 0x249   : > { %4340 = vst.msk [vmem:[#allocation2 + $0x28] sm:$0xff] %vm228_vm0, %v4296_v20  ;;  %v4914_v54 = vor.u32 %v4913_v5, %v4910_v63  ;;  %v4438_v18 = vshll.u32 %v10017_v35, 16  ;;  %v4725_v32 = vsel %vm11815_vm2, %v10017_v35, 0  ;;  %vm11816_vm2 = vmmov %vm11814_vm11 }
 0x24a   : > { %v4235_v1 = vmax.f32 %v4203_v28, 0.0  ;;  %v4793_v38 = vrot.slane %v4725_v32, 1 }
 0x24b   : > { %v4074_v46 = vpop.f32.mrb[88].mxu0  ;;  %v4915_v30 = vsel %vm1395_vm5, %v4906_v49, %v4914_v54  ;;  %v4440_v52 = vrot.slane %v4438_v18, 1 }
 0x24c   : > { %v4261_v60 = vpack.c.bf16 %v4235_v1, %v4234_v58  ;;  %v4165_v41 = vadd.f32 %v4074_v46, %v9847_v27  ;;  %v4076_v15 = vpop.f32.mrb[89].mxu0  ;;  %7416 = vmatprep.mubr.msk.bf16.mxu1 %vm228_vm0, %v4915_v30  ;;  %v4794_v63 = vsel %vm1760_vm12, %v4791_v10, %v4793_v38  ;;  %v7578_v27 = vld [vmem:[%s11451_s3 + $0x8] sm:$0xff]  }
 0x24d   : > { %v4077_v13 = vpop.f32.mrb[90].mxu0  ;;  %v10030_v37 = vsel %vm11814_vm11, %v4436_v36, %v4440_v52  ;;  %v4925_v5 = vshrl.u32 %v4794_v63, 16  ;;  %v4928_v20 = vshll.u32 %v4794_v63, 16  ;;  %5894 = vmatpush1.bf16.msra.mxu0 %v7578_v27  ;;  %vm11817_vm11 = vcmp.ne.s16.totalorder %v11760_v6, 0 }
 0x24e   : > { %v4297_v31 = vrot.slane %v4261_v60, 4  ;;  %v4204_v42 = vadd.f32 %v9902_v3, %v4165_v41  ;;  %v4166_v22 = vadd.f32 %v4077_v13, %v9849_v43  ;;  %v4079_v47 = vpop.f32.mrb[91].mxu0  ;;  %4547 = vrot.lane.b32.xlu0 %v10030_v37, %s7662_s13  ;;  %v4442_v43 = vshrl.u32 %v10017_v35, 16  ;;  %5895 = vmatprep.subr.bf16.mxu0 %v11802_v34 }
 0x24f   : > { %v4927_v10 = vrot.slane %v4925_v5, 3  ;;  %v4930_v46 = vrot.slane %v4928_v20, 4 }
 0x250   : > { %v4298_v28 = vsel %vm11812_vm3, %v4295_v12, %v4297_v31  ;;  %v4205_v49 = vadd.f32 %v9902_v3, %v4166_v22  ;;  %v10042_v50 = vld [vmem:[#allocation2 + $0x28] sm:$0xff]  ;;  %v4236_v58 = vmax.f32 %v4204_v42, 0.0  ;;  %v4444_v36 = vor.u32 %v4442_v43, %v4440_v52 }
 0x251   : > { %4341 = vst.msk [vmem:[#allocation2 + $0x30] sm:$0xff] %vm228_vm0, %v4298_v28  ;;  %v4446_v18 = vshll.u32 %v10042_v50, 16  ;;  %v10051_v12 = vsel %vm1543_vm13, %v10042_v50, 0  ;;  %v4931_v22 = vor.u32 %v4930_v46, %v4927_v10  ;;  %v7580_v28 = vld [vmem:[%s11451_s3 + $0x10] sm:$0xff]  }
 0x252   : > { %v4237_v1 = vmax.f32 %v4205_v49, 0.0  ;;  %v11576_v60 = vrot.slane %v10051_v12, 1  ;;  %5896 = vmatpush1.bf16.msra.mxu0 %v7580_v28 }
 0x253   : > { %v4082_v30 = vpop.f32.mrb[92].mxu0  ;;  %v4448_v32 = vrot.slane %v4446_v18, 1  ;;  %5897 = vmatprep.subr.bf16.mxu0 %v11802_v34 }
 0x254   : > { %v4262_v41 = vpack.c.bf16 %v4237_v1, %v4236_v58  ;;  %v4167_v15 = vadd.f32 %v4082_v30, %v9855_v57  ;;  %v4084_v13 = vpop.f32.mrb[93].mxu0  ;;  %v4796_v63 = vsel %vm1760_vm12, %v4793_v38, %v11576_v60  ;;  %v10066_v57 = vsel %vm1395_vm5, %v4914_v54, %v4931_v22 }
 0x255   : > { %v4085_v47 = vpop.f32.mrb[94].mxu0  ;;  %v10056_v42 = vsel %vm11816_vm2, %v4444_v36, %v4448_v32  ;;  %v4942_v49 = vshrl.u32 %v4796_v63, 16  ;;  %v4945_v43 = vshll.u32 %v4796_v63, 16  ;;  %v10074_v38 = vsel %vm11817_vm11, %v9990_v62, 0  ;;  %vm11818_vm11 = vmmov %vm11812_vm3 }
 0x256   : > { %v4299_v27 = vrot.slane %v4262_v41, 4  ;;  %v4206_v5 = vadd.f32 %v9902_v3, %v4167_v15  ;;  %v4168_v52 = vadd.f32 %v4085_v47, %v9857_v7  ;;  %v4087_v20 = vpop.f32.mrb[95].mxu0  ;;  %4549 = vrot.lane.b32.xlu1 %v10056_v42, %s7662_s13  ;;  %v4450_v54 = vshrl.u32 %v10042_v50, 16 }
 0x257   : > { %v4944_v1 = vrot.slane %v4942_v49, 3  ;;  %v4597_v46 = vrot.slane %v10074_v38, 1  ;;  %v4947_v41 = vrot.slane %v4945_v43, 4  ;;  %v10174_v38 = vsel %vm1541_vm10, %v10017_v35, 0 }
 0x258   : > { %v4300_v7 = vsel %vm11812_vm3, %v4297_v31, %v4299_v27  ;;  %v4207_v18 = vadd.f32 %v9902_v3, %v4168_v52  ;;  %v10078_v10 = vld [vmem:[#allocation2 + $0x30] sm:$0xff]  ;;  %v4238_v30 = vmax.f32 %v4206_v5, 0.0  ;;  %v4452_v15 = vor.u32 %v4450_v54, %v4448_v32  ;;  %v7582_v54 = vld [vmem:[%s11451_s3 + $0x18] sm:$0xff]   ;;  %vm11819_vm3 = vmmov %vm11816_vm2 }
 0x259   : > { %4342 = vst.msk [vmem:[#allocation2 + $0x38] sm:$0xff] %vm228_vm0, %v4300_v7  ;;  %v4454_v58 = vshll.u32 %v10078_v10, 16  ;;  %v10086_v20 = vor.u32 %v4947_v41, %v4944_v1  ;;  %v4598_v5 = vsel %vm1760_vm12, %v4595_v44, %v4597_v46  ;;  %5898 = vmatpush1.bf16.msra.mxu0 %v7582_v54  ;;  %v11578_v29 = vrot.slane %v10174_v38, 1 }
 0x25a   : > { %v4239_v36 = vmax.f32 %v4207_v18, 0.0  ;;  %5899 = vmatprep.subr.bf16.mxu0 %v11802_v34 }
 0x25b   : > { %v4090_v31 = vpop.f32.mrb[96].mxu0  ;;  %v4456_v13 = vrot.slane %v4454_v58, 1 }
 0x25c   : > { %v4263_v47 = vpack.c.bf16 %v4239_v36, %v4238_v30  ;;  %v4169_v63 = vadd.f32 %v4090_v31, %v9863_v55  ;;  %v4092_v52 = vpop.f32.mrb[97].mxu0  ;;  %v10102_v55 = vsel %vm1395_vm5, %v4931_v22, %v10086_v20 }
 0x25d   : > { %v4093_v28 = vpop.f32.mrb[98].mxu0  ;;  %v10089_v7 = vsel %vm11816_vm2, %v4452_v15, %v4456_v13  ;;  %v5512_v52 = vshll.u32 %v4598_v5, 16  ;;  %vm11820_vm2 = vmmov %vm11818_vm11 }
 0x25e   : > { %v4301_v49 = vrot.slane %v4263_v47, 4  ;;  %v4208_v32 = vadd.f32 %v9902_v3, %v4169_v63  ;;  %v4170_v43 = vadd.f32 %v4093_v28, %v9865_v2  ;;  %v4095_v18 = vpop.f32.mrb[99].mxu0  ;;  %4551 = vrot.lane.b32.xlu0 %v10089_v7, %s7662_s13  ;;  %v4458_v2 = vshrl.u32 %v10078_v10, 16 }
 0x25f   : > { %v5509_v63 = vshrl.u32 %v4598_v5, 16 }
 0x260   : > { %v4302_v8 = vsel %vm11818_vm11, %v4299_v27, %v4301_v49  ;;  %v4209_v44 = vadd.f32 %v9902_v3, %v4170_v43  ;;  %v10109_v58 = vld [vmem:[#allocation2 + $0x38] sm:$0xff]  ;;  %v4240_v22 = vmax.f32 %v4208_v32, 0.0  ;;  %v4460_v41 = vor.u32 %v4458_v2, %v4456_v13  ;;  %vm11821_vm11 = vmmov %vm11819_vm3 }
 0x261   : > { %4343 = vst.msk [vmem:[#allocation2 + $0x40] sm:$0xff] %vm228_vm0, %v4302_v8  ;;  %v4462_v1 = vshll.u32 %v10109_v58, 16  ;;  %v5511_v2 = vrot.slane %v5509_v63, 3 }
 0x262   : > { %v4241_v30 = vmax.f32 %v4209_v44, 0.0 }
 0x263   : > { %v4098_v36 = vpop.f32.mrb[100].mxu0  ;;  %v4464_v31 = vrot.slane %v4462_v1, 1  ;;  %v5514_v1 = vrot.slane %v5512_v52, 4 }
 0x264   : > { %v4264_v15 = vpack.c.bf16 %v4241_v30, %v4240_v22  ;;  %v4171_v27 = vadd.f32 %v4098_v36, %v9871_v51  ;;  %v4100_v47 = vpop.f32.mrb[101].mxu0  ;;  %v10126_v51 = vsel %vm1543_vm13, %v10017_v35, 0 }
 0x265   : > { %v4101_v28 = vpop.f32.mrb[102].mxu0  ;;  %v10117_v43 = vsel %vm11819_vm3, %v4460_v41, %v4464_v31  ;;  %v11577_v47 = vrot.slane %v10126_v51, 1  ;;  %vm11823_vm3 = vmmov %vm11820_vm2 }
 0x266   : > { %v4303_v18 = vrot.slane %v4264_v15, 4  ;;  %v4210_v54 = vadd.f32 %v9902_v3, %v4171_v27  ;;  %v4172_v8 = vadd.f32 %v4101_v28, %v9873_v45  ;;  %v4103_v32 = vpop.f32.mrb[103].mxu0  ;;  %4553 = vrot.lane.b32.xlu1 %v10117_v43, %s7662_s13  ;;  %v4466_v45 = vshrl.u32 %v10109_v58, 16  ;;  %vm11826_vm10 = vmmov %vm11823_vm3 }
 0x267   : > { %v10137_v32 = vor.u32 %v5514_v1, %v5511_v2 }
 0x268   : > { %v4304_v13 = vsel %vm11820_vm2, %v4301_v49, %v4303_v18  ;;  %v4211_v5 = vadd.f32 %v9902_v3, %v4172_v8  ;;  %v10130_v44 = vld [vmem:[#allocation2 + $0x40] sm:$0xff]  ;;  %v4242_v30 = vmax.f32 %v4210_v54, 0.0  ;;  %v4468_v15 = vor.u32 %v4466_v45, %v4464_v31  ;;  %v10149_v31 = vld [vmem:[#allocation2 + $0x10] sm:$0xf0] }
 0x269   : > { %4344 = vst.msk [vmem:[#allocation2 + $0x48] sm:$0xff] %vm228_vm0, %v4304_v13  ;;  %v4470_v22 = vshll.u32 %v10130_v44, 16  ;;  %v10154_v2 = vsel %vm1395_vm5, %v9996_v9, %v10137_v32  ;;  %v4474_v9 = vshrl.u32 %v10130_v44, 16  ;;  %vm11824_vm2 = vcmp.ne.s16.totalorder %v11804_v11, 0 }
 0x26a   : > { %v4243_v36 = vmax.f32 %v4211_v5, 0.0  ;;  %11822 = vst [vmem:[#allocation34_spill] sm:$0xff] %v10154_v2  ;;  %v6088_v39 = vsel %vm11824_vm2, %v10149_v31, 0 }
 0x26b   : > { %v4106_v41 = vpop.f32.mrb[104].mxu0  ;;  %v4472_v27 = vrot.slane %v4470_v22, 1 }
 0x26c   : > { %v4265_v49 = vpack.c.bf16 %v4243_v36, %v4242_v30  ;;  %v4173_v28 = vadd.f32 %v4106_v41, %v9875_v61  ;;  %v4108_v8 = vpop.f32.mrb[105].mxu0  ;;  %v7584_v61 = vld [vmem:[%s11451_s3 + $0x20] sm:$0xff]   ;;  %v6089_v30 = vsel %vm1540_vm7, %v9990_v62, 0  ;;  %vm11825_vm7 = vmmov %vm11821_vm11 }
 0x26d   : > { %v4109_v63 = vpop.f32.mrb[106].mxu0  ;;  %v10140_v52 = vsel %vm11821_vm11, %v4468_v15, %v4472_v27  ;;  %5900 = vmatpush1.bf16.msra.mxu0 %v7584_v61  ;;  %v4476_v15 = vor.u32 %v4474_v9, %v4472_v27  ;;  %vm11827_vm11 = vmmov %vm11825_vm7 }
 0x26e   : > { %v4305_v13 = vrot.slane %v4265_v49, 4  ;;  %v4212_v60 = vadd.f32 %v9902_v3, %v4173_v28  ;;  %v4174_v54 = vadd.f32 %v4109_v63, %v9877_v40  ;;  %v4111_v5 = vpop.f32.mrb[107].mxu0  ;;  %4555 = vrot.lane.b32.xlu0 %v10140_v52, %s7662_s13  ;;  %v4600_v40 = vsel %vm1760_vm12, %v4597_v46, %v11577_v47  ;;  %5901 = vmatprep.subr.bf16.mxu0 %v11802_v34  ;;  %vm11829_vm2 = vmmov %vm11825_vm7 }
 0x26f   : > { %v6292_v28 = vrot.slane %v6089_v30, 1 }
 0x270   : > { %v4306_v1 = vsel %vm11823_vm3, %v4303_v18, %v4305_v13  ;;  %v4213_v45 = vadd.f32 %v9902_v3, %v4174_v54  ;;  %v10163_v22 = vld [vmem:[#allocation2 + $0x48] sm:$0xff]  ;;  %v4244_v46 = vmax.f32 %v4212_v60, 0.0  ;;  %v6291_v60 = vrot.slane %v6088_v39, 1 }
 0x271   : > { %4345 = vst.msk [vmem:[#allocation2 + $0x50] sm:$0xff] %vm228_vm0, %v4306_v1  ;;  %v4478_v36 = vshll.u32 %v10163_v22, 16 }
 0x272   : > { %v4245_v18 = vmax.f32 %v4213_v45, 0.0  ;;  %v10193_v27 = vsel %vm1760_vm12, %v6291_v60, %v6292_v28 }
 0x273   : > { %v4114_v41 = vpop.f32.mrb[108].mxu0  ;;  %v4480_v49 = vrot.slane %v4478_v36, 1 }
 0x274   : > { %v4266_v8 = vpack.c.bf16 %v4245_v18, %v4244_v46  ;;  %v4175_v63 = vadd.f32 %v4114_v41, %v9886_v16  ;;  %v4116_v54 = vpop.f32.mrb[109].mxu0  ;;  %v7586_v16 = vld [vmem:[%s11451_s3 + $0x28] sm:$0xff]   ;;  %v5526_v46 = vshrl.u32 %v4600_v40, 16 }
 0x275   : > { %v4117_v5 = vpop.f32.mrb[110].mxu0  ;;  %v10183_v61 = vsel %vm11825_vm7, %v4476_v15, %v4480_v49  ;;  %5902 = vmatpush1.bf16.msra.mxu0 %v7586_v16  ;;  %vm11830_vm7 = vmmov %vm11823_vm3 }
 0x276   : > { %v4307_v1 = vrot.slane %v4266_v8, 4  ;;  %v4214_v45 = vadd.f32 %v9902_v3, %v4175_v63  ;;  %v4176_v11 = vadd.f32 %v4117_v5, %v9889_v4  ;;  %v4119_v47 = vpop.f32.mrb[111].mxu0  ;;  %4557 = vrot.lane.b32.xlu1 %v10183_v61, %s7662_s13  ;;  %v10202_v4 = vsel %vm1760_vm12, %v6292_v28, %v11578_v29  ;;  %5903 = vmatprep.subr.bf16.mxu0 %v11802_v34 }
 0x277   : > { %v4482_v47 = vshrl.u32 %v10163_v22, 16  ;;  %v5528_v28 = vrot.slane %v5526_v46, 3 }
 0x278   : > { %v4308_v30 = vsel %vm11826_vm10, %v4305_v13, %v4307_v1  ;;  %v4215_v9 = vadd.f32 %v9902_v3, %v4176_v11  ;;  %v10197_v36 = vld [vmem:[#allocation2 + $0x50] sm:$0xff]  ;;  %v5529_v13 = vshll.u32 %v4600_v40, 16  ;;  %v4246_v39 = vmax.f32 %v4214_v45, 0.0  ;;  %vm11831_vm10 = vmmov %vm11829_vm2 }
 0x279   : > { %4346 = vst.msk [vmem:[#allocation2 + $0x58] sm:$0xff] %vm228_vm0, %v4308_v30  ;;  %v4486_v18 = vshll.u32 %v10197_v36, 16  ;;  %v4484_v8 = vor.u32 %v4482_v47, %v4480_v49 }
 0x27a   : > { %v4247_v41 = vmax.f32 %v4215_v9, 0.0  ;;  %v5531_v30 = vrot.slane %v5529_v13, 4 }
 0x27b   : > { %v4122_v15 = vpop.f32.mrb[112].mxu0  ;;  %v4488_v63 = vrot.slane %v4486_v18, 1 }
 0x27c   : > { %v4267_v54 = vpack.c.bf16 %v4247_v41, %v4246_v39  ;;  %v4177_v5 = vadd.f32 %v4122_v15, %v9894_v33  ;;  %v4124_v60 = vpop.f32.mrb[113].mxu0  ;;  %v7588_v33 = vld [vmem:[%s11451_s3 + $0x30] sm:$0xff]   ;;  %v10223_v47 = vor.u32 %v5531_v30, %v5528_v28 }
 0x27d   : > { %v4125_v11 = vpop.f32.mrb[114].mxu0  ;;  %v10210_v16 = vsel %vm11827_vm11, %v4484_v8, %v4488_v63  ;;  %5904 = vmatpush1.bf16.msra.mxu0 %v7588_v33  ;;  %vm11832_vm11 = vmmov %vm11823_vm3 }
 0x27e   : > { %v4309_v29 = vrot.slane %v4267_v54, 4  ;;  %v4216_v2 = vadd.f32 %v9902_v3, %v4177_v5  ;;  %v4178_v40 = vadd.f32 %v4125_v11, %v9897_v26  ;;  %v4127_v45 = vpop.f32.mrb[115].mxu0  ;;  %4559 = vrot.lane.b32.xlu0 %v10210_v16, %s7662_s13  ;;  %v4490_v26 = vshrl.u32 %v10197_v36, 16  ;;  %5905 = vmatprep.subr.bf16.mxu0 %v11802_v34 }
 0x27f   : > { %v10233_v60 = vsel %vm1395_vm5, %v10137_v32, %v10223_v47 }
 0x280   : > { %v4310_v49 = vsel %vm11823_vm3, %v4307_v1, %v4309_v29  ;;  %v4217_v9 = vadd.f32 %v9902_v3, %v4178_v40  ;;  %v10221_v46 = vld [vmem:[#allocation2 + $0x58] sm:$0xff]  ;;  %v4248_v13 = vmax.f32 %v4216_v2, 0.0  ;;  %v4492_v15 = vor.u32 %v4490_v26, %v4488_v63  ;;  %11828 = vst [vmem:[#allocation5_spill] sm:$0xff] %v10233_v60  ;;  %vm11833_vm3 = vmmov %vm11829_vm2 }
 0x281   : > { %4347 = vst.msk [vmem:[#allocation2 + $0x60] sm:$0xff] %vm228_vm0, %v4310_v49  ;;  %v4494_v18 = vshll.u32 %v10221_v46, 16  ;;  %v4498_v32 = vshrl.u32 %v10221_v46, 16 }
 0x282   : > { %v4249_v39 = vmax.f32 %v4217_v9, 0.0 }
 0x283   : > { %v4130_v41 = vpop.f32.mrb[116].mxu0  ;;  %v4496_v1 = vrot.slane %v4494_v18, 1 }
 0x284   : > { %v4268_v8 = vpack.c.bf16 %v4249_v39, %v4248_v13  ;;  %v4179_v54 = vadd.f32 %v4130_v41, %v9904_v19  ;;  %v4132_v5 = vpop.f32.mrb[117].mxu0 }
 0x285   : > { %v4133_v28 = vpop.f32.mrb[118].mxu0  ;;  %v10236_v11 = vsel %vm11829_vm2, %v4492_v15, %v4496_v1  ;;  %vm11834_vm2 = vmmov %vm11830_vm7 }
 0x286   : > { %v4311_v30 = vrot.slane %v4268_v8, 4  ;;  %v4218_v2 = vadd.f32 %v9902_v3, %v4179_v54  ;;  %v4180_v40 = vadd.f32 %v4133_v28, %v9907_v59  ;;  %v4135_v63 = vpop.f32.mrb[119].mxu0  ;;  %4561 = vrot.lane.b32.xlu1 %v10236_v11, %s7662_s13  ;;  %v4500_v59 = vor.u32 %v4498_v32, %v4496_v1 }
 0x287   : > { %v6427_v8 = vshll.u32 %v10202_v4, 16  ;;  %v6416_v28 = vshrl.u32 %v10193_v27, 16 }
 0x288   : > { %v4312_v19 = vsel %vm11830_vm7, %v4309_v29, %v4311_v30  ;;  %v4219_v45 = vadd.f32 %v9902_v3, %v4180_v40  ;;  %v10244_v33 = vld [vmem:[#allocation2 + $0x60] sm:$0xff]  ;;  %v4250_v9 = vmax.f32 %v4218_v2, 0.0  ;;  %v6424_v29 = vshrl.u32 %v10202_v4, 16 }
 0x289   : > { %4348 = vst.msk [vmem:[#allocation2 + $0x68] sm:$0xff] %vm228_vm0, %v4312_v19  ;;  %v4502_v49 = vshll.u32 %v10244_v33, 16  ;;  %v6419_v2 = vshll.u32 %v10193_v27, 16  ;;  %vm11835_vm7 = vcmp.ne.s16.totalorder %v11707_v48, 0 }
 0x28a   : > { %v4251_v26 = vmax.f32 %v4219_v45, 0.0  ;;  %v6426_v27 = vrot.slane %v6424_v29, 3 }
 0x28b   : > { %v4138_v18 = vpop.f32.mrb[120].mxu0  ;;  %v4504_v13 = vrot.slane %v4502_v49, 1  ;;  %v6429_v49 = vrot.slane %v6427_v8, 4 }
 0x28c   : > { %v4269_v39 = vpack.c.bf16 %v4251_v26, %v4250_v9  ;;  %v4181_v41 = vadd.f32 %v4138_v18, %v9915_v53  ;;  %v4140_v15 = vpop.f32.mrb[121].mxu0  ;;  %v7590_v53 = vld [vmem:[%s11451_s3 + $0x38] sm:$0xff]   ;;  %v6418_v26 = vrot.slane %v6416_v28, 3  ;;  %v6421_v18 = vrot.slane %v6419_v2, 4 }
 0x28d   : > { %v4141_v54 = vpop.f32.mrb[122].mxu0  ;;  %v10253_v5 = vsel %vm11831_vm10, %v4500_v59, %v4504_v13  ;;  %5906 = vmatpush1.bf16.msra.mxu0 %v7590_v53  ;;  %v10273_v8 = vor.u32 %v6429_v49, %v6426_v27  ;;  %vm11836_vm10 = vmmov %vm11833_vm3 }
 0x28e   : > { %v4313_v40 = vrot.slane %v4269_v39, 4  ;;  %v4220_v1 = vadd.f32 %v9902_v3, %v4181_v41  ;;  %v4182_v63 = vadd.f32 %v4141_v54, %v9922_v24  ;;  %v4143_v19 = vpop.f32.mrb[123].mxu0  ;;  %4563 = vrot.lane.b32.xlu0 %v10253_v5, %s7662_s13  ;;  %v4506_v24 = vshrl.u32 %v10244_v33, 16  ;;  %5907 = vmatprep.subr.bf16.mxu0 %v11802_v34 }
 0x290   : > { %v4314_v4 = vsel %vm11832_vm11, %v4311_v30, %v4313_v40  ;;  %v4221_v45 = vadd.f32 %v9902_v3, %v4182_v63  ;;  %v10266_v32 = vld [vmem:[#allocation2 + $0x68] sm:$0xff]  ;;  %v4252_v59 = vmax.f32 %v4220_v1, 0.0  ;;  %v4508_v41 = vor.u32 %v4506_v24, %v4504_v13 }
 0x291   : > { %4349 = vst.msk [vmem:[#allocation2 + $0x70] sm:$0xff] %vm228_vm0, %v4314_v4  ;;  %v4510_v9 = vshll.u32 %v10266_v32, 16  ;;  %v6422_v4 = vor.u32 %v6421_v18, %v6418_v26  ;;  %v10300_v18 = vsel %vm11835_vm7, %v10042_v50, 0  ;;  %vm11837_vm11 = vcmp.ne.s16.totalorder %v11760_v6, 0  ;;  %vm11841_vm7 = vmmov %vm11836_vm10 }
 0x292   : > { %v4253_v39 = vmax.f32 %v4221_v45, 0.0 }
 0x293   : > { %v4146_v30 = vpop.f32.mrb[124].mxu0  ;;  %v4512_v15 = vrot.slane %v4510_v9, 1  ;;  %v10287_v13 = vsel %vm1395_vm5, %v6422_v4, %v10273_v8 }
 0x294   : > { %v4270_v54 = vpack.c.bf16 %v4253_v39, %v4252_v59  ;;  %v4183_v63 = vadd.f32 %v4146_v30, %v9932_v14  ;;  %v4148_v29 = vpop.f32.mrb[125].mxu0  ;;  %v7592_v14 = vld [vmem:[%s11451_s3 + $0x40] sm:$0xff]   ;;  %v11580_v30 = vrot.slane %v10300_v18, 1 }
 0x295   : > { %v4149_v19 = vpop.f32.mrb[126].mxu0  ;;  %v10276_v53 = vsel %vm11833_vm3, %v4508_v41, %v4512_v15  ;;  %5908 = vmatpush1.bf16.msra.mxu0 %v7592_v14  ;;  %vm11838_vm3 = vmmov %vm11834_vm2 }
 0x296   : > { %v4315_v60 = vrot.slane %v4270_v54, 4  ;;  %v4222_v28 = vadd.f32 %v9902_v3, %v4183_v63  ;;  %v4184_v2 = vadd.f32 %v4149_v19, %v9936_v0  ;;  %v4151_v1 = vpop.f32.mrb[127].mxu0  ;;  %4565 = vrot.lane.b32.xlu1 %v10276_v53, %s7662_s13  ;;  %v4514_v0 = vshrl.u32 %v10266_v32, 16  ;;  %5909 = vmatprep.subr.bf16.mxu0 %v11802_v34 }
 0x297   : > { %v10311_v54 = vsel %vm11837_vm11, %v10042_v50, 0  ;;  %vm11845_vm11 = vmmov %vm11841_vm7 }
 0x298   : > { %v4316_v45 = vsel %vm11834_vm2, %v4313_v40, %v4315_v60  ;;  %v4223_v27 = vadd.f32 %v9902_v3, %v4184_v2  ;;  %v10291_v49 = vld [vmem:[#allocation2 + $0x70] sm:$0xff]  ;;  %v4254_v9 = vmax.f32 %v4222_v28, 0.0  ;;  %v4516_v40 = vor.u32 %v4514_v0, %v4512_v15  ;;  %v7594_v15 = vld [vmem:[%s11451_s3 + $0x48] sm:$0xff]  }
 0x299   : > { %4350 = vst.msk [vmem:[#allocation2 + $0x78] sm:$0xff] %vm228_vm0, %v4316_v45  ;;  %v4518_v24 = vshll.u32 %v10291_v49, 16  ;;  %vm11839_vm2 = vcmask 519168   ;;  %5910 = vmatpush1.bf16.msra.mxu0 %v7594_v15  ;;  %v4522_v19 = vshrl.u32 %v10291_v49, 16  ;;  %v11579_v6 = vrot.slane %v10311_v54, 1 }
 0x29a   : > { %v4255_v26 = vmax.f32 %v4223_v27, 0.0  ;;  %5911 = vmatprep.subr.bf16.mxu0 %v11802_v34  ;;  %v11840_v28 = vrot.slane %v10126_v51, 1  ;;  %v11842_v0 = vrot.slane %v10174_v38, 1 }
 0x29b   : > { %v4520_v3 = vrot.slane %v4518_v24, 1 }
 0x29c   : > { %v4271_v59 = vpack.c.bf16 %v4255_v26, %v4254_v9  ;;  %v6297_v24 = vsel %vm1760_vm12, %v11842_v0, %v11579_v6 }
 0x29d   : > { %v10303_v39 = vsel %vm11836_vm10, %v4516_v40, %v4520_v3  ;;  %v4524_v2 = vor.u32 %v4522_v19, %v4520_v3  ;;  %v6441_v3 = vshrl.u32 %v6297_v24, 16  ;;  %vm11843_vm10 = vmmov %vm11841_vm7 }
 0x29e   : > { %v4317_v41 = vrot.slane %v4271_v59, 4  ;;  %4567 = vrot.lane.b32.xlu0 %v10303_v39, %s7662_s13 }
 0x2a0   : > { %v4318_v63 = vsel %vm11838_vm3, %v4315_v60, %v4317_v41  ;;  %4352 = vst.msk [vmem:[#allocation2 + $0x88] sm:$0xf] %vm11839_vm2, %v4317_v41  ;;  %v10318_v29 = vld [vmem:[#allocation2 + $0x78] sm:$0xff]  ;;  %v4602_v60 = vsel %vm1760_vm12, %v11840_v28, %v11580_v30  ;;  %vm11851_vm2 = vcmp.ne.s16.totalorder %v11707_v48, 0 }
 0x2a1   : > { %4351 = vst.msk [vmem:[#allocation2 + $0x80] sm:$0xff] %vm228_vm0, %v4318_v63  ;;  %v4526_v4 = vshll.u32 %v10318_v29, 16  ;;  %v5543_v14 = vshrl.u32 %v4602_v60, 16  ;;  %v5546_v27 = vshll.u32 %v4602_v60, 16  ;;  %v4530_v59 = vshrl.u32 %v10318_v29, 16 }
 0x2a2   : > { %v6444_v63 = vshll.u32 %v6297_v24, 16  ;;  %v6108_v60 = vshll.u32 %v10149_v31, 16 }
 0x2a3   : > { %v4528_v1 = vrot.slane %v4526_v4, 1  ;;  %v5545_v40 = vrot.slane %v5543_v14, 3  ;;  %v5548_v15 = vrot.slane %v5546_v27, 4  ;;  %v7596_v27 = vld [vmem:[%s11451_s3 + $0x50] sm:$0xff]  }
 0x2a4   : > { %v6446_v30 = vrot.slane %v6444_v63, 4  ;;  %5912 = vmatpush1.bf16.msra.mxu0 %v7596_v27  ;;  %v11848_v63 = vld [vmem:[#allocation15_spill] sm:$0xff]  ;;  %v4727_v27 = vsel %vm11851_vm2, %v10078_v10, 0 }
 0x2a5   : > { %v10331_v45 = vsel %vm11841_vm7, %v4524_v2, %v4528_v1  ;;  %v10347_v38 = vor.u32 %v4530_v59, %v4528_v1  ;;  %v6443_v2 = vrot.slane %v6441_v3, 3  ;;  %v10357_v6 = vor.u32 %v5548_v15, %v5545_v40  ;;  %5913 = vmatprep.subr.bf16.mxu0 %v11802_v34 }
 0x2a6   : > { %4569 = vrot.lane.b32.xlu1 %v10331_v45, %s7662_s13  ;;  %v6110_v40 = vrot.slane %v6108_v60, 1  ;;  %vm11849_vm3 = vcmp.ne.s16.totalorder %v11848_v63, 0  ;;  %v6106_v60 = vshrl.u32 %v10149_v31, 16 }
 0x2a7   : > { %v10340_v9 = vld [vmem:[#allocation2 + $0x88] sm:$0xf]  ;;  %11844 = vst [vmem:[#allocation33_spill] sm:$0xff] %v10357_v6  ;;  %v10374_v15 = vor.u32 %v6446_v30, %v6443_v2 }
 0x2a8   : > { %v10342_v51 = vld [vmem:[#allocation2 + $0x80] sm:$0xff]  ;;  %v4756_v26 = vshll.u32 %v10340_v9, 16  ;;  %v4760_v1 = vshrl.u32 %v10340_v9, 16  ;;  %v6111_v30 = vor.u32 %v6110_v40, %v6106_v60  ;;  %v4797_v40 = vrot.slane %v4727_v27, 1 }
 0x2a9   : > { %v4748_v41 = vshll.u32 %v10342_v51, 16  ;;  %v4752_v4 = vshrl.u32 %v10342_v51, 16  ;;  %11847 = vst [vmem:[#allocation43_spill] sm:$0xff] %v10374_v15 }
 0x2aa   : > { %v4758_v28 = vrot.slane %v4756_v26, 1  ;;  %v4700_v26 = vld [vmem:[#allocation2 + $0x8] sm:$0xf8]  ;;  %v6116_v31 = vsel %vm11841_vm7, %v6111_v30, %v10005_v25 }
 0x2ab   : > { %v4750_v19 = vrot.slane %v4748_v41, 1  ;;  %v10372_v41 = vsel %vm1395_vm5, %v10223_v47, %v10357_v6  ;;  %v10387_v47 = vsel %vm1395_vm5, %v10273_v8, %v10374_v15  ;;  %v11852_v8 = vld [vmem:[#allocation16_spill] sm:$0xff] }
 0x2ac   : > { %v4762_v59 = vor.u32 %v4760_v1, %v4758_v28  ;;  %11846 = vst [vmem:[#allocation6_spill] sm:$0xff] %v10372_v41  ;;  %11850 = vst [vmem:[#allocation46_spill] sm:$0xff] %v10387_v47  ;;  %v11867_v41 = vld [vmem:[#allocation18_spill] sm:$0xff] }
 0x2ad   : > { %v10353_v0 = vsel %vm11843_vm10, %v10347_v38, %v4750_v19  ;;  %v10355_v14 = vor.u32 %v4752_v4, %v4750_v19  ;;  %v4705_v19 = vsel %vm11849_vm3, %v4700_v26, 0  ;;  %v7598_v4 = vld [vmem:[%s11451_s3 + $0x58] sm:$0xff]   ;;  %vm11853_vm10 = vcmp.ne.s16.totalorder %v11852_v8, 0  ;;  %v11854_v26 = vld [vmem:[#allocation13_spill] sm:$0xff] }
 0x2ae   : > { %4765 = vrot.lane.b32.xlu0 %v10353_v0, %s7662_s13  ;;  %5914 = vmatpush1.bf16.msra.mxu0 %v7598_v4 }
 0x2af   : > { %v4759_v24 = vsel %vm11845_vm11, %v10355_v14, %v4758_v28  ;;  %vm11855_vm11 = vcmp.ne.s16.totalorder %v11854_v26, 0 }
 0x2b0   : > { %4767 = vrot.lane.b32.xlu1 %v4759_v24, %s7662_s13  ;;  %v4764_v3 = vpop.permute.xlu1 %4763  ;;  %vm11861_vm7 = vmmov %vm11855_vm11 }
 0x2b1   : > { %v4823_v28 = vsel %vm228_vm0, %v4705_v19, %v4764_v3  ;;  %v4374_v3 = vsel %vm11855_vm11, %v9959_v23, 0 }
 0x2b2   : > { %4769 = vrot.lane.b32.xlu0 %v4762_v59, %s7662_s13  ;;  %v4884_v2 = vshrl.u32 %v4823_v28, 16  ;;  %v4887_v1 = vshll.u32 %v4823_v28, 16 }
 0x2b4   : > { %4541 = vrot.lane.b32.xlu1 %v9952_v56, %s7662_s13  ;;  %v4706_v56 = vsel %vm11853_vm10, %v9959_v23, 0  ;;  %v4886_v19 = vrot.slane %v4884_v2, 3  ;;  %v4889_v4 = vrot.slane %v4887_v1, 4  ;;  %v11858_v2 = vrot.slane %v10051_v12, 1 }
 0x2b5   : > { %v4707_v12 = vsel %vm11861_vm7, %v9990_v62, 0 }
 0x2b6   : > { %4543 = vrot.lane.b32.xlu0 %v9993_v17, %s7662_s13  ;;  %v4798_v1 = vsel %vm1760_vm12, %v11858_v2, %v4797_v40  ;;  %v4890_v27 = vor.u32 %v4889_v4, %v4886_v19 }
 0x2b7   : > { %v4959_v19 = vshrl.u32 %v4798_v1, 16  ;;  %v4962_v4 = vshll.u32 %v4798_v1, 16 }
 0x2b8   : > { %6240 = vrot.lane.b32.xlu1 %v6116_v31, %s7662_s13  ;;  %v4546_v24 = vpop.permute.xlu0 %4545  ;;  %v11856_v31 = vld [vmem:[#allocation45_spill] sm:$0xff] }
 0x2b9   : > { %v4633_v17 = vsel %vm228_vm0, %v4374_v3, %v4546_v24  ;;  %v4825_v59 = vsel %vm228_vm0, %v4706_v56, %v4546_v24  ;;  %vm11857_vm3 = vcmp.ne.s16.totalorder %v11856_v31, 0 }
 0x2ba   : > { %v4891_v28 = vshrl.u32 %v4825_v59, 16  ;;  %v4894_v25 = vshll.u32 %v4825_v59, 16  ;;  %6242 = vrot.lane.b32.xlu0 %v10030_v37, %s7662_s13  ;;  %v10414_v23 = vsel %vm11857_vm3, %v10109_v58, 0  ;;  %v5500_v3 = vshrl.u32 %v4633_v17, 16  ;;  %v7577_v37 = vld [vmem:[%s11451_s3 + $0xc0] sm:$0xff]  }
 0x2bb   : > { %v5503_v56 = vshll.u32 %v4633_v17, 16  ;;  %vm11868_vm3 = vcmp.ne.s16.totalorder %v11867_v41, 0 }
 0x2bc   : > { %v4893_v60 = vrot.slane %v4891_v28, 3  ;;  %v4896_v30 = vrot.slane %v4894_v25, 4  ;;  %6244 = vrot.lane.b32.xlu1 %v10056_v42, %s7662_s13  ;;  %v11859_v42 = vld [vmem:[#allocation14_spill] sm:$0xff]  ;;  %v5502_v25 = vrot.slane %v5500_v3, 3  ;;  %v11862_v3 = vrot.slane %v10414_v23, 1 }
 0x2bd   : > { %vm11860_vm2 = vcmp.ne.s16.totalorder %v11859_v42, 0 }
 0x2be   : > { %v4897_v24 = vor.u32 %v4896_v30, %v4893_v60  ;;  %6246 = vrot.lane.b32.xlu0 %v10089_v7, %s7662_s13  ;;  %v4375_v59 = vsel %vm11860_vm2, %v9990_v62, 0  ;;  %v5505_v60 = vrot.slane %v5503_v56, 4  ;;  %v7579_v62 = vld [vmem:[%s11451_s3 + $0xc8] sm:$0xff]   ;;  %v4800_v56 = vsel %vm1760_vm12, %v4797_v40, %v11862_v3  ;;  %vm11865_vm11 = vmmov %vm11860_vm2  ;;  %v7583_v3 = vld [vmem:[%s11451_s3 + $0xd8] sm:$0xff]  }
 0x2bf   : > { %v4979_v40 = vshll.u32 %v4800_v56, 16 }
 0x2c0   : > { %6248 = vrot.lane.b32.xlu1 %v10117_v43, %s7662_s13  ;;  %v4548_v17 = vpop.permute.xlu0 %4547  ;;  %v4898_v7 = vsel %vm1395_vm5, %v4890_v27, %v4897_v24 }
 0x2c1   : > { %v4636_v30 = vsel %vm228_vm0, %v4375_v59, %v4548_v17  ;;  %v4827_v2 = vsel %vm228_vm0, %v4707_v12, %v4548_v17  ;;  %5340 = vmatmul.mubr.bf16.vlgmr.msra.gmra.mrb[64].mxu1 %v4898_v7  ;;  %v4964_v12 = vrot.slane %v4962_v4, 4  ;;  %v10449_v17 = vor.u32 %v5505_v60, %v5502_v25  ;;  %v10468_v25 = vld [vmem:[#allocation2 + $0x88] sm:$0xff] }
 0x2c2   : > { %v4916_v28 = vshrl.u32 %v4827_v2, 16  ;;  %v4919_v15 = vshll.u32 %v4827_v2, 16  ;;  %v5517_v6 = vshrl.u32 %v4636_v30, 16  ;;  %v5520_v43 = vshll.u32 %v4636_v30, 16  ;;  %6824 = vmatpush1.bf16.msra.mxu1 %v7577_v37  ;;  %7417 = vmatprep.mubr.msk.bf16.mxu1 %vm228_vm0, %v10066_v57  ;;  %v10454_v2 = vld [vmem:[#allocation2 + $0x90] sm:$0xf] }
 0x2c3   : > { %6250 = vrot.lane.b32.xlu0 %v10140_v52, %s7662_s13  ;;  %6825 = vmatprep.subr.bf16.mxu1 %v11802_v34  ;;  %v4961_v57 = vrot.slane %v4959_v19, 3  ;;  %v7581_v52 = vld [vmem:[%s11451_s3 + $0xd0] sm:$0xff]   ;;  %v10473_v60 = vsel %vm1546_vm15, %v10130_v44, 0 }
 0x2c4   : > { %v4918_v1 = vrot.slane %v4916_v28, 3  ;;  %v4921_v27 = vrot.slane %v4919_v15, 4  ;;  %v5519_v59 = vrot.slane %v5517_v6, 3  ;;  %v5522_v37 = vrot.slane %v5520_v43, 4  ;;  %6252 = vrot.lane.b32.xlu1 %v10183_v61, %s7662_s13  ;;  %v11863_v6 = vld [vmem:[#allocation17_spill] sm:$0xff] }
 0x2c5   : > { %vm11864_vm10 = vcmp.ne.s16.totalorder %v11863_v6, 0  ;;  %v4976_v15 = vshrl.u32 %v4800_v56, 16  ;;  %v4708_v28 = vsel %vm11865_vm11, %v10017_v35, 0 }
 0x2c6   : > { %v4922_v7 = vor.u32 %v4921_v27, %v4918_v1  ;;  %v5523_v30 = vor.u32 %v5522_v37, %v5519_v59  ;;  %6826 = vmatpush1.bf16.msra.mxu1 %v7579_v62  ;;  %v4376_v61 = vsel %vm11864_vm10, %v10017_v35, 0  ;;  %v10481_v35 = vor.u32 %v4964_v12, %v4961_v57  ;;  %v10489_v37 = vld [vmem:[#allocation2 + $0x80] sm:$0xf]  ;;  %vm11869_vm2 = vmmov %vm11864_vm10 }
 0x2c7   : > { %6254 = vrot.lane.b32.xlu0 %v10210_v16, %s7662_s13  ;;  %6827 = vmatprep.subr.bf16.mxu1 %v11802_v34  ;;  %v6225_v57 = vshll.u32 %v10468_v25, 16  ;;  %v4978_v12 = vrot.slane %v4976_v15, 3  ;;  %v4377_v15 = vsel %vm11868_vm3, %v10042_v50, 0  ;;  %vm11873_vm10 = vsmask.f32 7424 }
 0x2c8   : > { %6256 = vrot.lane.b32.xlu1 %v10236_v11, %s7662_s13  ;;  %v4550_v19 = vpop.permute.xlu1 %4549  ;;  %v4923_v4 = vsel %vm1395_vm5, %v4897_v24, %v4922_v7  ;;  %v10477_v43 = vsel %vm1395_vm5, %v10449_v17, %v5523_v30  ;;  %v6233_v24 = vshll.u32 %v10454_v2, 16 }
 0x2c9   : > { %v4639_v11 = vsel %vm228_vm0, %v4376_v61, %v4550_v19  ;;  %v4829_v62 = vsel %vm228_vm0, %v4708_v28, %v4550_v19  ;;  %5348 = vmatmul.mubr.bf16.gmra.mrb[68].mxu1 %v4923_v4  ;;  %v4981_v61 = vrot.slane %v4979_v40, 4  ;;  %v4801_v28 = vrot.slane %v10473_v60, 1 }
 0x2ca   : > { %v4933_v56 = vshrl.u32 %v4829_v62, 16  ;;  %v4936_v1 = vshll.u32 %v4829_v62, 16  ;;  %v5534_v27 = vshrl.u32 %v4639_v11, 16  ;;  %v5537_v59 = vshll.u32 %v4639_v11, 16  ;;  %7418 = vmatprep.mubr.msk.bf16.mxu1 %vm228_vm0, %v10102_v55  ;;  %6828 = vmatpush1.bf16.msra.mxu1 %v7581_v52 }
 0x2cb   : > { %6258 = vrot.lane.b32.xlu0 %v10253_v5, %s7662_s13  ;;  %6829 = vmatprep.subr.bf16.mxu1 %v11802_v34  ;;  %v4534_v55 = vshll.u32 %v10489_v37, 16  ;;  %v6235_v52 = vrot.slane %v6233_v24, 1  ;;  %v4709_v40 = vsel %vm11869_vm2, %v10042_v50, 0  ;;  %v6227_v24 = vrot.slane %v6225_v57, 1  ;;  %vm11876_vm2 = vmmov %vm11873_vm10 }
 0x2cc   : > { %v4935_v19 = vrot.slane %v4933_v56, 3  ;;  %v4938_v4 = vrot.slane %v4936_v1, 4  ;;  %v5536_v11 = vrot.slane %v5534_v27, 3  ;;  %v5539_v62 = vrot.slane %v5537_v59, 4  ;;  %6260 = vrot.lane.b32.xlu1 %v10276_v53, %s7662_s13  ;;  %v7585_v56 = vld [vmem:[%s11451_s3 + $0xe0] sm:$0xff]  }
 0x2cd   : > { %v4966_v53 = vsel %vm1395_vm5, %v10086_v20, %v10481_v35  ;;  %v10513_v1 = vor.u32 %v4981_v61, %v4978_v12  ;;  %v6237_v27 = vshrl.u32 %v10454_v2, 16  ;;  %v11871_v20 = vld [vmem:[#allocation31_spill] sm:$0xff]  ;;  %v6229_v61 = vshrl.u32 %v10468_v25, 16 }
 0x2ce   : > { %v4939_v47 = vor.u32 %v4938_v4, %v4935_v19  ;;  %v5540_v5 = vor.u32 %v5539_v62, %v5536_v11  ;;  %6830 = vmatpush1.bf16.msra.mxu1 %v7583_v3  ;;  %vm11872_vm7 = vcmp.ne.s16.totalorder %v11871_v20, 0  ;;  %v6228_v62 = vsel %vm11873_vm10, %v10355_v14, %v6227_v24 }
 0x2cf   : > { %6262 = vrot.lane.b32.xlu0 %v10303_v39, %s7662_s13  ;;  %6831 = vmatprep.subr.bf16.mxu1 %v11802_v34  ;;  %v11870_v39 = vrot.slane %v10414_v23, 1  ;;  %v10528_v57 = vsel %vm11872_vm7, %v10163_v22, 0  ;;  %vm11877_vm7 = vmmov %vm11876_vm2 }
 0x2d0   : > { %6264 = vrot.lane.b32.xlu1 %v10331_v45, %s7662_s13  ;;  %v4552_v50 = vpop.permute.xlu0 %4551  ;;  %v4940_v3 = vsel %vm1395_vm5, %v4922_v7, %v4939_v47  ;;  %v10531_v2 = vsel %vm1395_vm5, %v5523_v30, %v5540_v5  ;;  %v4536_v7 = vrot.slane %v4534_v55, 1  ;;  %v7587_v30 = vld [vmem:[%s11451_s3 + $0xe8] sm:$0xff]   ;;  %v6231_v55 = vor.u32 %v6229_v61, %v6227_v24 }
 0x2d1   : > { %v4802_v59 = vsel %vm1760_vm12, %v11870_v39, %v4801_v28  ;;  %v4642_v12 = vsel %vm228_vm0, %v4377_v15, %v4552_v50  ;;  %v4831_v45 = vsel %vm228_vm0, %v4709_v40, %v4552_v50  ;;  %5356 = vmatmul.mubr.bf16.gmra.mrb[72].mxu1 %v4940_v3  ;;  %v4803_v14 = vrot.slane %v10528_v57, 1 }
 0x2d2   : > { %v4950_v19 = vshrl.u32 %v4831_v45, 16  ;;  %v4953_v23 = vshll.u32 %v4831_v45, 16  ;;  %v5551_v4 = vshrl.u32 %v4642_v12, 16  ;;  %v5554_v11 = vshll.u32 %v4642_v12, 16  ;;  %7419 = vmatprep.mubr.msk.bf16.mxu1 %vm228_vm0, %v4966_v53  ;;  %6832 = vmatpush1.bf16.msra.mxu1 %v7585_v56  ;;  %v11874_v56 = vld [vmem:[#allocation19_spill] sm:$0xff] }
 0x2d3   : > { %6266 = vrot.lane.b32.xlu0 %v10353_v0, %s7662_s13  ;;  %v4993_v15 = vshrl.u32 %v4802_v59, 16  ;;  %v4996_v40 = vshll.u32 %v4802_v59, 16  ;;  %6833 = vmatprep.subr.bf16.mxu1 %v11802_v34  ;;  %vm11875_vm11 = vcmp.ne.s16.totalorder %v11874_v56, 0  ;;  %v4710_v0 = vsel %vm11868_vm3, %v10078_v10, 0 }
 0x2d4   : > { %v4952_v50 = vrot.slane %v4950_v19, 3  ;;  %v4955_v3 = vrot.slane %v4953_v23, 4  ;;  %v5553_v39 = vrot.slane %v5551_v4, 3  ;;  %v5556_v53 = vrot.slane %v5554_v11, 4  ;;  %6268 = vrot.lane.b32.xlu1 %v6228_v62, %s7662_s13  ;;  %v7589_v19 = vld [vmem:[%s11451_s3 + $0xf0] sm:$0xff]  }
 0x2d5   : > { %v4378_v12 = vsel %vm11875_vm11, %v10078_v10, 0  ;;  %v4537_v45 = vsel %vm11876_vm2, %v10347_v38, %v4536_v7  ;;  %v6239_v61 = vor.u32 %v6237_v27, %v6235_v52  ;;  %v6236_v23 = vsel %vm11877_vm7, %v6231_v55, %v6235_v52 }
 0x2d6   : > { %v4956_v24 = vor.u32 %v4955_v3, %v4952_v50  ;;  %v5557_v59 = vor.u32 %v5556_v53, %v5553_v39  ;;  %6834 = vmatpush1.bf16.msra.mxu1 %v7587_v30  ;;  %v4538_v4 = vshrl.u32 %v10489_v37, 16  ;;  %v4995_v10 = vrot.slane %v4993_v15, 3  ;;  %v11878_v30 = vld [vmem:[#allocation25_spill] sm:$0xff] }
 0x2d7   : > { %4571 = vrot.lane.b32.xlu0 %v4537_v45, %s7662_s13  ;;  %v4998_v11 = vrot.slane %v4996_v40, 4  ;;  %6835 = vmatprep.subr.bf16.mxu1 %v11802_v34  ;;  %v4983_v27 = vsel %vm1395_vm5, %v10481_v35, %v10513_v1  ;;  %vm11879_vm10 = vcmp.ne.s16.totalorder %v11878_v30, 0  ;;  %vm11882_vm3 = vcmp.ne.s16.totalorder %v11874_v56, 0 }
 0x2d8   : > { %6270 = vrot.lane.b32.xlu1 %v6236_v23, %s7662_s13  ;;  %v4554_v57 = vpop.permute.xlu1 %4553  ;;  %v4957_v38 = vsel %vm1395_vm5, %v4939_v47, %v4956_v24  ;;  %v10570_v62 = vsel %vm11879_vm10, %v10197_v36, 0  ;;  %v10573_v37 = vsel %vm1395_vm5, %v5540_v5, %v5557_v59  ;;  %v4540_v15 = vor.u32 %v4538_v4, %v4536_v7  ;;  %v7591_v5 = vld [vmem:[%s11451_s3 + $0xf8] sm:$0xff]   ;;  %v7593_v4 = vld [vmem:[%s11451_s3 + $0x100] sm:$0xff]  }
 0x2d9   : > { %v4645_v52 = vsel %vm228_vm0, %v4378_v12, %v4554_v57  ;;  %v4833_v55 = vsel %vm228_vm0, %v4710_v0, %v4554_v57  ;;  %5364 = vmatmul.mubr.bf16.gmra.mrb[76].mxu1 %v4957_v38  ;;  %v4804_v47 = vsel %vm1760_vm12, %v4801_v28, %v4803_v14  ;;  %v4999_v39 = vor.u32 %v4998_v11, %v4995_v10  ;;  %v11880_v10 = vld [vmem:[#allocation21_spill] sm:$0xff] }
 0x2da   : > { %v4967_v40 = vshrl.u32 %v4833_v55, 16  ;;  %v4970_v35 = vshll.u32 %v4833_v55, 16  ;;  %v5568_v50 = vshrl.u32 %v4645_v52, 16  ;;  %v5571_v3 = vshll.u32 %v4645_v52, 16  ;;  %7420 = vmatprep.mubr.msk.bf16.mxu1 %vm228_vm0, %v4983_v27  ;;  %6836 = vmatpush1.bf16.msra.mxu1 %v7589_v19 }
 0x2db   : > { %4573 = vrot.lane.b32.xlu0 %v4540_v15, %s7662_s13  ;;  %v4805_v7 = vrot.slane %v10570_v62, 1  ;;  %6837 = vmatprep.subr.bf16.mxu1 %v11802_v34  ;;  %v5010_v0 = vshrl.u32 %v4804_v47, 16  ;;  %v5013_v45 = vshll.u32 %v4804_v47, 16  ;;  %vm11881_vm11 = vcmp.ne.s16.totalorder %v11880_v10, 0 }
 0x2dc   : > { %v4969_v60 = vrot.slane %v4967_v40, 3  ;;  %v4972_v28 = vrot.slane %v4970_v35, 4  ;;  %v5570_v53 = vrot.slane %v5568_v50, 3  ;;  %v5573_v12 = vrot.slane %v5571_v3, 4  ;;  %6272 = vrot.lane.b32.xlu1 %v6239_v61, %s7662_s13  ;;  %vm11888_vm10 = vmmov %vm11881_vm11 }
 0x2dd   : > { %v4379_v11 = vsel %vm11881_vm11, %v10109_v58, 0  ;;  %v4711_v57 = vsel %vm11882_vm3, %v10109_v58, 0  ;;  %v5000_v61 = vsel %vm1395_vm5, %v10513_v1, %v4999_v39  ;;  %v4806_v62 = vsel %vm1760_vm12, %v4803_v14, %v4805_v7  ;;  %v7595_v14 = vld [vmem:[%s11451_s3 + $0x108] sm:$0xff]  }
 0x2de   : > { %v4973_v19 = vor.u32 %v4972_v28, %v4969_v60  ;;  %v5574_v23 = vor.u32 %v5573_v12, %v5570_v53  ;;  %6838 = vmatpush1.bf16.msra.mxu1 %v7591_v5  ;;  %v4732_v55 = vsel %vm1549_vm14, %v10221_v46, 0  ;;  %v5012_v1 = vrot.slane %v5010_v0, 3 }
 0x2df   : > { %6839 = vmatprep.subr.bf16.mxu1 %v11802_v34  ;;  %v5015_v40 = vrot.slane %v5013_v45, 4  ;;  %v5030_v5 = vshll.u32 %v4806_v62, 16  ;;  %v4807_v60 = vrot.slane %v4732_v55, 1 }
 0x2e0   : > { %v4556_v38 = vpop.permute.xlu0 %4555  ;;  %v4974_v27 = vsel %vm1395_vm5, %v4956_v24, %v4973_v19  ;;  %v10606_v15 = vsel %vm1395_vm5, %v5557_v59, %v5574_v23  ;;  %v5027_v59 = vshrl.u32 %v4806_v62, 16 }
 0x2e1   : > { %v4648_v47 = vsel %vm228_vm0, %v4379_v11, %v4556_v38  ;;  %v4835_v58 = vsel %vm228_vm0, %v4711_v57, %v4556_v38  ;;  %5372 = vmatmul.mubr.bf16.gmra.mrb[80].mxu1 %v4974_v27  ;;  %v5016_v45 = vor.u32 %v5015_v40, %v5012_v1  ;;  %v11884_v38 = vld [vmem:[#allocation24_spill] sm:$0xff]  ;;  %v11886_v27 = vld [vmem:[#allocation22_spill] sm:$0xff] }
 0x2e2   : > { %v4984_v35 = vshrl.u32 %v4835_v58, 16  ;;  %v4987_v50 = vshll.u32 %v4835_v58, 16  ;;  %v5585_v3 = vshrl.u32 %v4648_v47, 16  ;;  %v5588_v24 = vshll.u32 %v4648_v47, 16  ;;  %7421 = vmatprep.mubr.msk.bf16.mxu1 %vm228_vm0, %v5000_v61  ;;  %6840 = vmatpush1.bf16.msra.mxu1 %v7593_v4  ;;  %v7597_v61 = vld [vmem:[%s11451_s3 + $0x110] sm:$0xff]  }
 0x2e3   : > { %6841 = vmatprep.subr.bf16.mxu1 %v11802_v34  ;;  %vm11885_vm2 = vcmp.ne.s16.totalorder %v11884_v38, 0  ;;  %vm11887_vm7 = vcmp.ne.s16.totalorder %v11886_v27, 0  ;;  %v5029_v55 = vrot.slane %v5027_v59, 3  ;;  %v5032_v47 = vrot.slane %v5030_v5, 4 }
 0x2e4   : > { %v4986_v28 = vrot.slane %v4984_v35, 3  ;;  %v4989_v53 = vrot.slane %v4987_v50, 4  ;;  %v5587_v12 = vrot.slane %v5585_v3, 3  ;;  %v5590_v0 = vrot.slane %v5588_v24, 4  ;;  %vm11893_vm3 = vmmov %vm11887_vm7 }
 0x2e5   : > { %v4733_v4 = vsel %vm11885_vm2, %v10244_v33, 0  ;;  %v4380_v62 = vsel %vm11887_vm7, %v10130_v44, 0  ;;  %v4712_v58 = vsel %vm11888_vm10, %v10130_v44, 0  ;;  %v4808_v35 = vsel %vm1760_vm12, %v4805_v7, %v4807_v60  ;;  %v7599_v7 = vld [vmem:[%s11451_s3 + $0x118] sm:$0xff]  }
 0x2e6   : > { %v4990_v11 = vor.u32 %v4989_v53, %v4986_v28  ;;  %v5591_v57 = vor.u32 %v5590_v0, %v5587_v12  ;;  %6842 = vmatpush1.bf16.msra.mxu1 %v7595_v14  ;;  %v5017_v14 = vsel %vm1395_vm5, %v4999_v39, %v5016_v45  ;;  %v4809_v59 = vrot.slane %v4733_v4, 1 }
 0x2e7   : > { %6843 = vmatprep.subr.bf16.mxu1 %v11802_v34  ;;  %v5047_v12 = vshll.u32 %v4808_v35, 16 }
 0x2e8   : > { %v4558_v1 = vpop.permute.xlu1 %4557  ;;  %v4991_v40 = vsel %vm1395_vm5, %v4973_v19, %v4990_v11  ;;  %v10631_v50 = vsel %vm1395_vm5, %v5574_v23, %v5591_v57  ;;  %v5033_v19 = vor.u32 %v5032_v47, %v5029_v55  ;;  %v5044_v23 = vshrl.u32 %v4808_v35, 16  ;;  %v11891_v55 = vld [vmem:[#allocation23_spill] sm:$0xff] }
 0x2e9   : > { %11889 = vst [vmem:[#allocation50_spill] sm:$0xff] %v10631_v50  ;;  %v4651_v3 = vsel %vm228_vm0, %v4380_v62, %v4558_v1  ;;  %v4837_v24 = vsel %vm228_vm0, %v4712_v58, %v4558_v1  ;;  %5380 = vmatmul.mubr.bf16.gmra.mrb[84].mxu1 %v4991_v40  ;;  %v10643_v62 = vsel %vm1551_vm1, %v10266_v32, 0  ;;  %vm11892_vm11 = vcmp.ne.s16.totalorder %v11891_v55, 0 }
 0x2ea   : > { %v5001_v5 = vshrl.u32 %v4837_v24, 16  ;;  %v5004_v28 = vshll.u32 %v4837_v24, 16  ;;  %v5602_v53 = vshrl.u32 %v4651_v3, 16  ;;  %v5605_v44 = vshll.u32 %v4651_v3, 16  ;;  %7422 = vmatprep.mubr.msk.bf16.mxu1 %vm228_vm0, %v5017_v14  ;;  %6844 = vmatpush1.bf16.msra.mxu1 %v7597_v61  ;;  %vm11899_vm7 = vmmov %vm11892_vm11 }
 0x2eb   : > { %6845 = vmatprep.subr.bf16.mxu1 %v11802_v34  ;;  %v4810_v3 = vsel %vm1760_vm12, %v4807_v60, %v4809_v59  ;;  %v4381_v47 = vsel %vm11892_vm11, %v10163_v22, 0  ;;  %v5046_v35 = vrot.slane %v5044_v23, 3  ;;  %v5049_v24 = vrot.slane %v5047_v12, 4 }
 0x2ec   : > { %v5003_v39 = vrot.slane %v5001_v5, 3  ;;  %v5006_v4 = vrot.slane %v5004_v28, 4  ;;  %v5604_v58 = vrot.slane %v5602_v53, 3  ;;  %v5607_v1 = vrot.slane %v5605_v44, 4 }
 0x2ed   : > { %v4811_v14 = vrot.slane %v10643_v62, 1  ;;  %v4713_v34 = vsel %vm11893_vm3, %v10163_v22, 0  ;;  %v5034_v53 = vsel %vm1395_vm5, %v5016_v45, %v5033_v19  ;;  %v5061_v23 = vshrl.u32 %v4810_v3, 16 }
 0x2ee   : > { %v5007_v40 = vor.u32 %v5006_v4, %v5003_v39  ;;  %v5608_v61 = vor.u32 %v5607_v1, %v5604_v58  ;;  %6846 = vmatpush1.bf16.msra.mxu1 %v7599_v7  ;;  %v5064_v12 = vshll.u32 %v4810_v3, 16  ;;  %v5050_v22 = vor.u32 %v5049_v24, %v5046_v35 }
 0x2f0   : > { %v4560_v5 = vpop.permute.xlu0 %4559  ;;  %v5008_v28 = vsel %vm1395_vm5, %v4990_v11, %v5007_v40  ;;  %v10657_v60 = vsel %vm1395_vm5, %v5591_v57, %v5608_v61  ;;  %v4812_v11 = vsel %vm1760_vm12, %v4809_v59, %v4811_v14  ;;  %v10666_v57 = vsel %vm1552_vm6, %v10291_v49, 0  ;;  %v11897_v59 = vld [vmem:[#allocation26_spill] sm:$0xff] }
 0x2f1   : > { %11894 = vst [vmem:[#allocation47_spill] sm:$0xff] %v10657_v60  ;;  %v4654_v44 = vsel %vm228_vm0, %v4381_v47, %v4560_v5  ;;  %v4839_v7 = vsel %vm228_vm0, %v4713_v34, %v4560_v5  ;;  %5388 = vmatmul.mubr.bf16.gmra.mrb[88].mxu1 %v5008_v28  ;;  %v5063_v28 = vrot.slane %v5061_v23, 3  ;;  %v5066_v3 = vrot.slane %v5064_v12, 4  ;;  %v11957_v52 = vld [vmem:[#allocation50_spill] sm:$0xff] }
 0x2f2   : > { %v5018_v62 = vshrl.u32 %v4839_v7, 16  ;;  %v5021_v39 = vshll.u32 %v4839_v7, 16  ;;  %v5619_v4 = vshrl.u32 %v4654_v44, 16  ;;  %v5622_v58 = vshll.u32 %v4654_v44, 16  ;;  %7423 = vmatprep.mubr.msk.bf16.mxu1 %vm228_vm0, %v5034_v53 }
 0x2f3   : > { %v10671_v44 = vsel %vm1553_vm8, %v10342_v51, 0  ;;  %vm11898_vm2 = vcmp.ne.s16.totalorder %v11897_v59, 0  ;;  %v10683_v12 = vsel %vm1552_vm6, %v10318_v29, 0  ;;  %v5067_v23 = vor.u32 %v5066_v3, %v5063_v28  ;;  %v11971_v28 = vld [vmem:[#allocation27_spill] sm:$0xff] }
 0x2f4   : > { %v5020_v1 = vrot.slane %v5018_v62, 3  ;;  %v5023_v47 = vrot.slane %v5021_v39, 4  ;;  %v5621_v34 = vrot.slane %v5619_v4, 3  ;;  %v5624_v5 = vrot.slane %v5622_v58, 4  ;;  %11900 = vst [vmem:[#allocation48_spill] sm:$0xff] %v10683_v12  ;;  %vm11906_vm11 = vmmov %vm11898_vm2 }
 0x2f5   : > { %v4382_v24 = vsel %vm11898_vm2, %v10197_v36, 0  ;;  %v4714_v62 = vsel %vm11899_vm7, %v10197_v36, 0  ;;  %v5078_v39 = vshrl.u32 %v4812_v11, 16  ;;  %v5081_v4 = vshll.u32 %v4812_v11, 16 }
 0x2f6   : > { %v5024_v53 = vor.u32 %v5023_v47, %v5020_v1  ;;  %v5625_v35 = vor.u32 %v5624_v5, %v5621_v34  ;;  %v5051_v47 = vsel %vm1395_vm5, %v5033_v19, %v5050_v22  ;;  %v6318_v5 = vrot.slane %v10671_v44, 1 }
 0x2f7   : > { %v5080_v19 = vrot.slane %v5078_v39, 3  ;;  %v5083_v0 = vrot.slane %v5081_v4, 4  ;;  %v10701_v3 = vsel %vm1554_vm4, %v10468_v25, 0  ;;  %v4715_v39 = vsel %vm11906_vm11, %v10221_v46, 0 }
 0x2f8   : > { %v4562_v58 = vpop.permute.xlu1 %4561  ;;  %v5025_v1 = vsel %vm1395_vm5, %v5007_v40, %v5024_v53  ;;  %v10688_v34 = vsel %vm1395_vm5, %v5608_v61, %v5625_v35  ;;  %v11586_v40 = vrot.slane %v10683_v12, 1  ;;  %v11902_v61 = vrot.slane %v10666_v57, 1 }
 0x2f9   : > { %11901 = vst [vmem:[#allocation51_spill] sm:$0xff] %v10688_v34  ;;  %v4657_v36 = vsel %vm228_vm0, %v4382_v24, %v4562_v58  ;;  %v4841_v11 = vsel %vm228_vm0, %v4714_v62, %v4562_v58  ;;  %5396 = vmatmul.mubr.bf16.gmra.mrb[92].mxu1 %v5025_v1  ;;  %v11904_v58 = vld [vmem:[#allocation27_spill] sm:$0xff]  ;;  %v5068_v25 = vsel %vm1395_vm5, %v5050_v22, %v5067_v23 }
 0x2fa   : > { %v5035_v55 = vshrl.u32 %v4841_v11, 16  ;;  %v5038_v45 = vshll.u32 %v4841_v11, 16  ;;  %v5636_v60 = vshrl.u32 %v4657_v36, 16  ;;  %v5639_v27 = vshll.u32 %v4657_v36, 16  ;;  %7424 = vmatprep.mubr.msk.bf16.mxu1 %vm228_vm0, %v5051_v47 }
 0x2fb   : > { %v4814_v44 = vsel %vm1760_vm12, %v4811_v14, %v11902_v61  ;;  %vm11905_vm10 = vcmp.ne.s16.totalorder %v11904_v58, 0  ;;  %v6320_v11 = vrot.slane %v10701_v3, 1 }
 0x2fc   : > { %v5037_v34 = vrot.slane %v5035_v55, 3  ;;  %v5040_v24 = vrot.slane %v5038_v45, 4  ;;  %v5638_v50 = vrot.slane %v5636_v60, 3  ;;  %v5641_v62 = vrot.slane %v5639_v27, 4  ;;  %v11907_v55 = vld [vmem:[#allocation28_spill] sm:$0xff]  ;;  %vm11910_vm2 = vmmov %vm11905_vm10 }
 0x2fd   : > { %v4383_v1 = vsel %vm11905_vm10, %v10221_v46, 0  ;;  %vm11908_vm3 = vcmp.ne.s16.totalorder %v11907_v55, 0  ;;  %v6319_v27 = vsel %vm1760_vm12, %v11586_v40, %v6318_v5  ;;  %v10716_v60 = vor.u32 %v5083_v0, %v5080_v19 }
 0x2fe   : > { %v5041_v4 = vor.u32 %v5040_v24, %v5037_v34  ;;  %v5642_v47 = vor.u32 %v5641_v62, %v5638_v50  ;;  %v4384_v14 = vsel %vm11908_vm3, %v10244_v33, 0  ;;  %v5095_v45 = vshrl.u32 %v4814_v44, 16  ;;  %vm11917_vm10 = vmmov %vm11908_vm3 }
 0x2ff   : > { %v5098_v36 = vshll.u32 %v4814_v44, 16  ;;  %v10723_v50 = vsel %vm1553_vm8, %v10318_v29, 0  ;;  %v6628_v22 = vshrl.u32 %v6319_v27, 16  ;;  %v6631_v19 = vshll.u32 %v6319_v27, 16 }
 0x300   : > { %v4564_v61 = vpop.permute.xlu0 %4563  ;;  %v5042_v46 = vsel %vm1395_vm5, %v5024_v53, %v5041_v4  ;;  %v10726_v34 = vsel %vm1395_vm5, %v5625_v35, %v5642_v47  ;;  %v4716_v53 = vsel %vm11910_vm2, %v10244_v33, 0  ;;  %v5097_v12 = vrot.slane %v5095_v45, 3 }
 0x301   : > { %11909 = vst [vmem:[#allocation49_spill] sm:$0xff] %v10726_v34  ;;  %v4660_v24 = vsel %vm228_vm0, %v4383_v1, %v4564_v61  ;;  %v4843_v0 = vsel %vm228_vm0, %v4715_v39, %v4564_v61  ;;  %5404 = vmatmul.mubr.bf16.gmra.mrb[96].mxu1 %v5042_v46  ;;  %v5100_v35 = vrot.slane %v5098_v36, 4  ;;  %v4815_v34 = vrot.slane %v10723_v50, 1  ;;  %v6070_v46 = vld [vmem:[#allocation2 + $0x90] sm:$0x1f] }
 0x302   : > { %v5052_v44 = vshrl.u32 %v4843_v0, 16  ;;  %v5055_v62 = vshll.u32 %v4843_v0, 16  ;;  %v5653_v3 = vshrl.u32 %v4660_v24, 16  ;;  %v5656_v40 = vshll.u32 %v4660_v24, 16  ;;  %7425 = vmatprep.mubr.msk.bf16.mxu1 %vm228_vm0, %v5068_v25 }
 0x303   : > { %v5085_v27 = vsel %vm1395_vm5, %v5067_v23, %v10716_v60  ;;  %v6630_v0 = vrot.slane %v6628_v22, 3  ;;  %v6633_v24 = vrot.slane %v6631_v19, 4  ;;  %v6321_v25 = vsel %vm1760_vm12, %v6318_v5, %v6320_v11 }
 0x304   : > { %v5054_v1 = vrot.slane %v5052_v44, 3  ;;  %v5057_v59 = vrot.slane %v5055_v62, 4  ;;  %v5655_v39 = vrot.slane %v5653_v3, 3  ;;  %v5658_v61 = vrot.slane %v5656_v40, 4 }
 0x305   : > { %v6645_v58 = vshrl.u32 %v6321_v25, 16  ;;  %v6648_v33 = vshll.u32 %v6321_v25, 16  ;;  %v10741_v45 = vsel %vm1554_vm4, %v10342_v51, 0  ;;  %v10743_v36 = vor.u32 %v5100_v35, %v5097_v12 }
 0x306   : > { %v5058_v7 = vor.u32 %v5057_v59, %v5054_v1  ;;  %v5659_v10 = vor.u32 %v5658_v61, %v5655_v39  ;;  %v11911_v40 = vrot.slane %v10666_v57, 1  ;;  %v6104_v22 = vsel %vm1555_vm9, %v6070_v46, 0 }
 0x307   : > { %v6647_v44 = vrot.slane %v6645_v58, 3  ;;  %v6650_v62 = vrot.slane %v6648_v33, 4  ;;  %v10756_v35 = vor.u32 %v6633_v24, %v6630_v0  ;;  %v10758_v57 = vrot.slane %v6104_v22, 1 }
 0x308   : > { %v4816_v50 = vsel %vm1760_vm12, %v11911_v40, %v4815_v34  ;;  %v4566_v19 = vpop.permute.xlu1 %4565  ;;  %v5059_v59 = vsel %vm1395_vm5, %v5041_v4, %v5058_v7  ;;  %v10752_v5 = vsel %vm1395_vm5, %v5642_v47, %v5659_v10  ;;  %v4817_v0 = vrot.slane %v10741_v45, 1 }
 0x309   : > { %v4663_v3 = vsel %vm228_vm0, %v4384_v14, %v4566_v19  ;;  %v4845_v12 = vsel %vm228_vm0, %v4716_v53, %v4566_v19  ;;  %5412 = vmatmul.mubr.bf16.gmra.mrb[100].mxu1 %v5059_v59  ;;  %11913 = vst [vmem:[#allocation42_spill] sm:$0xff] %v10758_v57  ;;  %v5112_v4 = vshrl.u32 %v4816_v50, 16  ;;  %v5115_v47 = vshll.u32 %v4816_v50, 16  ;;  %v11915_v50 = vld [vmem:[#allocation32_spill] sm:$0xff] }
 0x30a   : > { %v5069_v1 = vshrl.u32 %v4845_v12, 16  ;;  %v5072_v39 = vshll.u32 %v4845_v12, 16  ;;  %v5670_v61 = vshrl.u32 %v4663_v3, 16  ;;  %v5673_v46 = vshll.u32 %v4663_v3, 16  ;;  %7426 = vmatprep.mubr.msk.bf16.mxu1 %vm228_vm0, %v5085_v27 }
 0x30b   : > { %v6651_v25 = vor.u32 %v6650_v62, %v6647_v44  ;;  %v6323_v58 = vsel %vm1760_vm12, %v6320_v11, %v10758_v57  ;;  %vm11916_vm7 = vcmp.ne.s16.totalorder %v11915_v50, 0  ;;  %v5114_v62 = vrot.slane %v5112_v4, 3 }
 0x30c   : > { %v5071_v14 = vrot.slane %v5069_v1, 3  ;;  %v5074_v33 = vrot.slane %v5072_v39, 4  ;;  %v5672_v53 = vrot.slane %v5670_v61, 3  ;;  %v5675_v40 = vrot.slane %v5673_v46, 4  ;;  %v4704_v46 = vld [vmem:[#allocation2 + $0x88] sm:$0x1f]  ;;  %vm11922_vm3 = vmmov %vm11916_vm7 }
 0x30d   : > { %v10766_v24 = vsel %vm1395_vm5, %v10756_v35, %v6651_v25  ;;  %v6662_v22 = vshrl.u32 %v6323_v58, 16  ;;  %v6665_v19 = vshll.u32 %v6323_v58, 16  ;;  %v4385_v44 = vsel %vm11916_vm7, %v10266_v32, 0 }
 0x30e   : > { %11914 = vst [vmem:[#allocation7_spill] sm:$0xff] %v10766_v24  ;;  %v5075_v59 = vor.u32 %v5074_v33, %v5071_v14  ;;  %v5676_v27 = vor.u32 %v5675_v40, %v5672_v53  ;;  %v5117_v11 = vrot.slane %v5115_v47, 4  ;;  %v4717_v45 = vsel %vm11917_vm10, %v10266_v32, 0 }
 0x30f   : > { %v6664_v3 = vrot.slane %v6662_v22, 3  ;;  %v6667_v12 = vrot.slane %v6665_v19, 4  ;;  %v5102_v61 = vsel %vm1395_vm5, %v10716_v60, %v10743_v36  ;;  %v4818_v14 = vsel %vm1760_vm12, %v4815_v34, %v4817_v0 }
 0x310   : > { %v4568_v1 = vpop.permute.xlu0 %4567  ;;  %v5076_v39 = vsel %vm1395_vm5, %v5058_v7, %v5075_v59  ;;  %v10779_v58 = vsel %vm1395_vm5, %v5659_v10, %v5676_v27  ;;  %v5118_v60 = vor.u32 %v5117_v11, %v5114_v62  ;;  %v4738_v10 = vsel %vm1555_vm9, %v4704_v46, 0 }
 0x311   : > { %v4666_v4 = vsel %vm228_vm0, %v4385_v44, %v4568_v1  ;;  %v4847_v47 = vsel %vm228_vm0, %v4717_v45, %v4568_v1  ;;  %5420 = vmatmul.mubr.bf16.gmra.mrb[104].mxu1 %v5076_v39  ;;  %v10784_v33 = vor.u32 %v6667_v12, %v6664_v3  ;;  %v5129_v3 = vshrl.u32 %v4818_v14, 16 }
 0x312   : > { %v5086_v32 = vshrl.u32 %v4847_v47, 16  ;;  %v5089_v53 = vshll.u32 %v4847_v47, 16  ;;  %v5687_v7 = vshrl.u32 %v4666_v4, 16  ;;  %v5690_v40 = vshll.u32 %v4666_v4, 16  ;;  %7427 = vmatprep.mubr.msk.bf16.mxu1 %vm228_vm0, %v5102_v61  ;;  %v11920_v4 = vld [vmem:[#allocation37_spill] sm:$0xff] }
 0x313   : > { %11918 = vst [vmem:[#allocation8_spill] sm:$0xff] %v10784_v33  ;;  %v10791_v22 = vsel %vm1395_vm5, %v6651_v25, %v10784_v33  ;;  %v5132_v12 = vshll.u32 %v4818_v14, 16  ;;  %vm11921_vm11 = vcmp.ne.s16.totalorder %v11920_v4, 0  ;;  %v10796_v62 = vrot.slane %v4738_v10, 1 }
 0x314   : > { %11919 = vst [vmem:[#allocation39_spill] sm:$0xff] %v10791_v22  ;;  %v5088_v19 = vrot.slane %v5086_v32, 3  ;;  %v5091_v44 = vrot.slane %v5089_v53, 4  ;;  %v5689_v45 = vrot.slane %v5687_v7, 3  ;;  %v5692_v34 = vrot.slane %v5690_v40, 4  ;;  %vm11924_vm2 = vmmov %vm11921_vm11 }
 0x315   : > { %v4386_v61 = vsel %vm11921_vm11, %v10291_v49, 0  ;;  %v4718_v11 = vsel %vm11922_vm3, %v10291_v49, 0  ;;  %v5119_v47 = vsel %vm1395_vm5, %v10743_v36, %v5118_v60  ;;  %v5131_v7 = vrot.slane %v5129_v3, 3 }
 0x316   : > { %v5092_v1 = vor.u32 %v5091_v44, %v5088_v19  ;;  %v5693_v39 = vor.u32 %v5692_v34, %v5689_v45  ;;  %v5134_v40 = vrot.slane %v5132_v12, 4  ;;  %v4719_v12 = vsel %vm11924_vm2, %v10318_v29, 0 }
 0x317   : > { %vm11929_vm11 = vcmp.ne.s16.totalorder %v11848_v63, 0  ;;  %vm11930_vm3 = vcmp.ne.s16.totalorder %v11852_v8, 0  ;;  %v7639_v63 = vld [vmem:[#allocation2 + $0x38] sm:$0xff] }
 0x318   : > { %v4570_v25 = vpop.permute.xlu1 %4569  ;;  %v5093_v46 = vsel %vm1395_vm5, %v5075_v59, %v5092_v1  ;;  %v10805_v14 = vsel %vm1395_vm5, %v5676_v27, %v5693_v39  ;;  %v4820_v59 = vsel %vm1760_vm12, %v4817_v0, %v10796_v62  ;;  %v5135_v33 = vor.u32 %v5134_v40, %v5131_v7  ;;  %vm11931_vm2 = vmmov %vm11930_vm3 }
 0x319   : > { %v4669_v32 = vsel %vm228_vm0, %v4386_v61, %v4570_v25  ;;  %v4849_v53 = vsel %vm228_vm0, %v4718_v11, %v4570_v25  ;;  %5428 = vmatmul.mubr.bf16.gmra.mrb[108].mxu1 %v5093_v46  ;;  %v5146_v11 = vshrl.u32 %v4820_v59, 16  ;;  %v5149_v3 = vshll.u32 %v4820_v59, 16 }
 0x31a   : > { %v5103_v10 = vshrl.u32 %v4849_v53, 16  ;;  %v5106_v19 = vshll.u32 %v4849_v53, 16  ;;  %v5704_v44 = vshrl.u32 %v4669_v32, 16  ;;  %v5707_v49 = vshll.u32 %v4669_v32, 16  ;;  %7428 = vmatprep.mubr.msk.bf16.mxu1 %vm228_vm0, %v5119_v47  ;;  %v4353_v47 = vld [vmem:[#allocation2] sm:$0xf8] }
 0x31b   : > { %v11925_v53 = vld [vmem:[#allocation44_spill] sm:$0xff]  ;;  %v5136_v40 = vsel %vm1395_vm5, %v5118_v60, %v5135_v33 }
 0x31c   : > { %v5105_v36 = vrot.slane %v5103_v10, 3  ;;  %v5108_v45 = vrot.slane %v5106_v19, 4  ;;  %v5706_v27 = vrot.slane %v5704_v44, 3  ;;  %v5709_v34 = vrot.slane %v5707_v49, 4 }
 0x31d   : > { %vm11926_vm7 = vcmp.ne.s16.totalorder %v11925_v53, 0  ;;  %v5151_v44 = vrot.slane %v5149_v3, 4 }
 0x31e   : > { %v5109_v61 = vor.u32 %v5108_v45, %v5105_v36  ;;  %v10812_v22 = vor.u32 %v5709_v34, %v5706_v27  ;;  %v4720_v7 = vsel %vm11926_vm7, %v10342_v51, 0  ;;  %v4372_v36 = vsel %vm11929_vm11, %v4353_v47, 0 }
 0x31f   : > { %vm11932_vm7 = vcmp.ne.s16.totalorder %v11854_v26, 0 }
 0x320   : > { %11923 = vst [vmem:[#allocation9_spill] sm:$0xff] %v10812_v22  ;;  %v4766_v25 = vpop.permute.xlu0 %4765  ;;  %v5110_v46 = vsel %vm1395_vm5, %v5092_v1, %v5109_v61  ;;  %v10820_v0 = vsel %vm1395_vm5, %v5693_v39, %v10812_v22  ;;  %v5148_v1 = vrot.slane %v5146_v11, 3  ;;  %v11927_v39 = vld [vmem:[#allocation38_spill] sm:$0xff]  ;;  %v7636_v22 = vld [vmem:[#allocation2 + $0x18] sm:$0xff] }
 0x321   : > { %v4852_v32 = vsel %vm228_vm0, %v4719_v12, %v4766_v25  ;;  %5436 = vmatmul.mubr.bf16.gmra.mrb[112].mxu1 %v5110_v46  ;;  %vm11928_vm10 = vcmp.ne.s16.totalorder %v11927_v39, 0  ;;  %v5163_v25 = vshrl.u32 %v10796_v62, 16 }
 0x322   : > { %v5120_v10 = vshrl.u32 %v4852_v32, 16  ;;  %v5123_v19 = vshll.u32 %v4852_v32, 16  ;;  %v4768_v29 = vpop.permute.xlu1 %4767  ;;  %7429 = vmatprep.mubr.msk.bf16.mxu1 %vm228_vm0, %v5136_v40  ;;  %v4721_v59 = vsel %vm11928_vm10, %v10340_v9, 0  ;;  %v5152_v32 = vor.u32 %v5151_v44, %v5148_v1 }
 0x323   : > { %v4855_v49 = vsel %vm228_vm0, %v4720_v7, %v4768_v29  ;;  %v5166_v7 = vshll.u32 %v10796_v62, 16  ;;  %v5165_v44 = vrot.slane %v5163_v25, 3  ;;  %vm11933_vm10 = vcmp.ne.s16.totalorder %v11856_v31, 0  ;;  %v11942_v31 = vld [vmem:[#allocation6_spill] sm:$0xff] }
 0x324   : > { %v5122_v45 = vrot.slane %v5120_v10, 3  ;;  %v5125_v51 = vrot.slane %v5123_v19, 4  ;;  %v5137_v27 = vshrl.u32 %v4855_v49, 16  ;;  %v5140_v60 = vshll.u32 %v4855_v49, 16  ;;  %v4770_v34 = vpop.permute.xlu0 %4769  ;;  %v7635_v49 = vld [vmem:[#allocation2 + $0x8] sm:$0xff] }
 0x325   : > { %v4858_v12 = vsel %vm228_vm0, %v4721_v59, %v4770_v34  ;;  %v4373_v59 = vsel %vm11930_vm3, %v7635_v49, 0  ;;  %vm11939_vm3 = vcmp.ne.s16.totalorder %v11871_v20, 0 }
 0x326   : > { %v5126_v11 = vor.u32 %v5125_v51, %v5122_v45  ;;  %v5154_v3 = vshrl.u32 %v4858_v12, 16  ;;  %v4542_v46 = vpop.permute.xlu1 %4541  ;;  %v5139_v40 = vrot.slane %v5137_v27, 3  ;;  %v5142_v9 = vrot.slane %v5140_v60, 4 }
 0x327   : > { %v5157_v29 = vshll.u32 %v4858_v12, 16  ;;  %v4627_v47 = vsel %vm228_vm0, %v4372_v36, %v4542_v46  ;;  %v5153_v36 = vsel %vm1395_vm5, %v5135_v33, %v5152_v32  ;;  %v5168_v60 = vrot.slane %v5166_v7, 4 }
 0x328   : > { %v5156_v10 = vrot.slane %v5154_v3, 3  ;;  %v5468_v19 = vshrl.u32 %v4627_v47, 16  ;;  %v5471_v57 = vshll.u32 %v4627_v47, 16  ;;  %v4544_v34 = vpop.permute.xlu0 %4543  ;;  %v5127_v1 = vsel %vm1395_vm5, %v5109_v61, %v5126_v11 }
 0x329   : > { %v5159_v24 = vrot.slane %v5157_v29, 4  ;;  %v4630_v45 = vsel %vm228_vm0, %v4373_v59, %v4544_v34  ;;  %5444 = vmatmul.mubr.bf16.gmra.mrb[116].mxu1 %v5127_v1  ;;  %v5143_v12 = vor.u32 %v5142_v9, %v5139_v40  ;;  %v6072_v61 = vsel %vm11931_vm2, %v7636_v22, 0  ;;  %v7637_v40 = vld [vmem:[#allocation2 + $0x20] sm:$0xff]  ;;  %v10851_v1 = vld [vmem:[#allocation2 + $0x30] sm:$0xff]  ;;  %vm11940_vm2 = vmmov %vm11933_vm10 }
 0x32a   : > { %v5475_v62 = vshrl.u32 %v4630_v45, 16  ;;  %v5478_v51 = vshll.u32 %v4630_v45, 16  ;;  %v6241_v27 = vpop.permute.xlu1 %6240  ;;  %v5470_v46 = vrot.slane %v5468_v19, 3  ;;  %v5473_v47 = vrot.slane %v5471_v57, 4  ;;  %7430 = vmatprep.mubr.msk.bf16.mxu1 %vm228_vm0, %v5153_v36  ;;  %v6052_v22 = vld [vmem:[#allocation2 + $0x10] sm:$0xf8] }
 0x32b   : > { %v5160_v3 = vor.u32 %v5159_v24, %v5156_v10  ;;  %v6073_v57 = vsel %vm11932_vm7, %v7637_v40, 0  ;;  %v5169_v19 = vor.u32 %v5168_v60, %v5165_v44  ;;  %v10856_v8 = vsel %vm11933_vm10, %v10851_v1, 0 }
 0x32c   : > { %v5477_v49 = vrot.slane %v5475_v62, 3  ;;  %v5480_v29 = vrot.slane %v5478_v51, 4  ;;  %v6243_v25 = vpop.permute.xlu0 %6242  ;;  %v5474_v9 = vor.u32 %v5473_v47, %v5470_v46  ;;  %v5144_v26 = vsel %vm1395_vm5, %v5126_v11, %v5143_v12 }
 0x32d   : > { %v6329_v59 = vsel %vm228_vm0, %v6072_v61, %v6243_v25  ;;  %v5161_v34 = vsel %vm1395_vm5, %v5143_v12, %v5160_v3  ;;  %v6092_v44 = vsel %vm1543_vm13, %v10851_v1, 0  ;;  %v5170_v61 = vsel %vm1395_vm5, %v5152_v32, %v5169_v19  ;;  %v11934_v12 = vld [vmem:[#allocation34_spill] sm:$0xff] }
 0x32e   : > { %v5481_v45 = vor.u32 %v5480_v29, %v5477_v49  ;;  %v6407_v33 = vshrl.u32 %v6329_v59, 16  ;;  %v6410_v7 = vshll.u32 %v6329_v59, 16  ;;  %v6245_v24 = vpop.permute.xlu1 %6244  ;;  %v6071_v11 = vsel %vm11929_vm11, %v6052_v22, 0 }
 0x32f   : > { %v6332_v10 = vsel %vm228_vm0, %v6073_v57, %v6245_v24  ;;  %v6326_v21 = vsel %vm228_vm0, %v6071_v11, %v6241_v27  ;;  %vm11935_vm13 = vcmp.ne.s16.totalorder %v11707_v48, 0  ;;  %v11936_v24 = vrot.slane %v10300_v18, 1 }
 0x330   : > { %v6409_v62 = vrot.slane %v6407_v33, 3  ;;  %v6412_v51 = vrot.slane %v6410_v7, 4  ;;  %v6432_v36 = vshrl.u32 %v6332_v10, 16  ;;  %v6435_v3 = vshll.u32 %v6332_v10, 16 }
 0x331   : > { %v5482_v49 = vsel %vm1395_vm5, %v5474_v9, %v5481_v45  ;;  %v5507_v46 = vsel %vm1395_vm5, %v5481_v45, %v10449_v17  ;;  %5452 = vmatmul.mubr.bf16.gmra.mrb[120].mxu1 %v5144_v26  ;;  %v4603_v17 = vrot.slane %v10856_v8, 1  ;;  %v6298_v45 = vrot.slane %v6092_v44, 1 }
 0x332   : > { %v6434_v60 = vrot.slane %v6432_v36, 3  ;;  %v6437_v47 = vrot.slane %v6435_v3, 4  ;;  %5924 = vmatmul.mubr.bf16.vlgmr.msra.gmra.mrb[128].mxu0 %v5482_v49  ;;  %v10865_v29 = vpop.permute.xlu1 %6248  ;;  %7431 = vmatprep.mubr.msk.bf16.mxu1 %vm228_vm0, %v5170_v61  ;;  %v6413_v25 = vor.u32 %v6412_v51, %v6409_v62  ;;  %v10885_v7 = vsel %vm11935_vm13, %v7639_v63, 0  ;;  %v11938_v51 = vld [vmem:[#allocation5_spill] sm:$0xff] }
 0x333   : > { %7445 = vmatprep.mubr.msk.bf16.mxu0 %vm228_vm0, %v11934_v12  ;;  %v6400_v40 = vshrl.u32 %v6326_v21, 16  ;;  %v6403_v57 = vshll.u32 %v6326_v21, 16  ;;  %v4604_v27 = vsel %vm1760_vm12, %v11936_v24, %v4603_v17  ;;  %v11937_v9 = vrot.slane %v10311_v54, 1 }
 0x334   : > { %v10875_v59 = vor.u32 %v6437_v47, %v6434_v60  ;;  %v6300_v19 = vrot.slane %v10885_v7, 1  ;;  %v5560_v22 = vshrl.u32 %v4604_v27, 16  ;;  %v5563_v18 = vshll.u32 %v4604_v27, 16 }
 0x335   : > { %v6299_v10 = vsel %vm1760_vm12, %v11937_v9, %v6298_v45  ;;  %v6402_v48 = vrot.slane %v6400_v40, 3  ;;  %v6405_v62 = vrot.slane %v6403_v57, 4  ;;  %v4396_v54 = vsel %vm1546_vm15, %v7639_v63, 0  ;;  %v7641_v40 = vld [vmem:[#allocation2 + $0x28] sm:$0xff] }
 0x336   : > { %v10877_v33 = vpop.permute.xlu1 %6252  ;;  %v10881_v32 = vsel %vm1395_vm5, %v6413_v25, %v10875_v59  ;;  %v6458_v36 = vshrl.u32 %v6299_v10, 16  ;;  %v6461_v3 = vshll.u32 %v6299_v10, 16  ;;  %v5562_v44 = vrot.slane %v5560_v22, 3 }
 0x337   : > { %v6406_v49 = vor.u32 %v6405_v62, %v6402_v48  ;;  %v5565_v60 = vrot.slane %v5563_v18, 4  ;;  %v6301_v47 = vsel %vm1760_vm12, %v6298_v45, %v6300_v19  ;;  %vm11941_vm7 = vcmp.ne.s16.totalorder %v11859_v42, 0  ;;  %v11943_v48 = vld [vmem:[#allocation46_spill] sm:$0xff] }
 0x338   : > { %v6460_v61 = vrot.slane %v6458_v36, 3  ;;  %v6463_v11 = vrot.slane %v6461_v3, 4  ;;  %v6074_v57 = vsel %vm11941_vm7, %v7641_v40, 0  ;;  %v6475_v10 = vshrl.u32 %v6301_v47, 16 }
 0x339   : > { %5460 = vmatmul.mubr.bf16.gmra.mrb[124].mxu1 %v5161_v34  ;;  %v4605_v34 = vrot.slane %v4396_v54, 1  ;;  %v6414_v45 = vsel %vm1395_vm5, %v6406_v49, %v6413_v25  ;;  %v6478_v22 = vshll.u32 %v6301_v47, 16  ;;  %v10931_v42 = vor.u32 %v5565_v60, %v5562_v44  ;;  %v10942_v49 = vld [vmem:[#allocation2 + $0x48] sm:$0xff]  ;;  %v7643_v44 = vld [vmem:[#allocation2 + $0x80] sm:$0xff] }
 0x33a   : > { %5932 = vmatmul.mubr.bf16.gmra.mrb[132].mxu0 %v5507_v46  ;;  %v10894_v8 = vpop.permute.xlu1 %6256  ;;  %7496 = vmatprep.mubr.msk.bf16.mxu1 %vm228_vm0, %v10287_v13  ;;  %v6247_v46 = vpop.permute.xlu0 %6246  ;;  %v10907_v13 = vld [vmem:[#allocation2 + $0x40] sm:$0xff]  ;;  %vm11944_vm10 = vcmp.ne.s16.totalorder %v11863_v6, 0  ;;  %vm11945_vm11 = vcmp.ne.s16.totalorder %v11867_v41, 0  ;;  %vm11946_vm13 = vcmp.ne.s16.totalorder %v11920_v4, 0  ;;  %v6477_v41 = vrot.slane %v6475_v10, 3  ;;  %v7644_v47 = vld [vmem:[#allocation2 + $0x88] sm:$0xff] }
 0x33b   : > { %7446 = vmatprep.mubr.msk.bf16.mxu0 %vm228_vm0, %v11938_v51  ;;  %v10912_v12 = vsel %vm11939_vm3, %v10907_v13, 0  ;;  %v10917_v21 = vsel %vm11940_vm2, %v10907_v13, 0  ;;  %v6335_v24 = vsel %vm228_vm0, %v6074_v57, %v6247_v46  ;;  %v4606_v9 = vsel %vm1760_vm12, %v4603_v17, %v4605_v34 }
 0x33c   : > { %v4607_v25 = vrot.slane %v10912_v12, 1  ;;  %v6302_v62 = vrot.slane %v10917_v21, 1  ;;  %v10940_v17 = vsel %vm11945_vm11, %v7639_v63, 0  ;;  %v6464_v51 = vor.u32 %v6463_v11, %v6460_v61  ;;  %v11948_v11 = vld [vmem:[#allocation33_spill] sm:$0xff] }
 0x33d   : > { %v6449_v18 = vshrl.u32 %v6335_v24, 16  ;;  %v6452_v54 = vshll.u32 %v6335_v24, 16  ;;  %v5577_v36 = vshrl.u32 %v4606_v9, 16  ;;  %v5580_v3 = vshll.u32 %v4606_v9, 16 }
 0x33e   : > { %v10902_v26 = vpop.permute.xlu1 %6260  ;;  %v10947_v46 = vsel %vm1546_vm15, %v10942_v49, 0  ;;  %v6085_v6 = vsel %vm11946_vm13, %v7643_v44, 0  ;;  %v6480_v63 = vrot.slane %v6478_v22, 4  ;;  %vm11947_vm3 = vcmp.ne.s16.totalorder %v11925_v53, 0 }
 0x33f   : > { %v6086_v61 = vsel %vm11947_vm3, %v7644_v47, 0  ;;  %v5567_v40 = vsel %vm1395_vm5, %v11948_v11, %v10931_v42  ;;  %v4608_v16 = vsel %vm1760_vm12, %v4605_v34, %v4607_v25  ;;  %v6303_v9 = vsel %vm1760_vm12, %v6300_v19, %v6302_v62 }
 0x340   : > { %v6451_v10 = vrot.slane %v6449_v18, 3  ;;  %v6454_v22 = vrot.slane %v6452_v54, 4  ;;  %vm11950_vm15 = vcmp.ne.s16.totalorder %v11878_v30, 0  ;;  %v5597_v18 = vshll.u32 %v4608_v16, 16 }
 0x341   : > { %6856 = vmatmul.mubr.bf16.vlgmr.msra.gmra.mrb[128].mxu1 %v6414_v45  ;;  %v11949_v45 = vld [vmem:[#allocation43_spill] sm:$0xff]  ;;  %v10974_v7 = vsel %vm11950_vm15, %v10942_v49, 0  ;;  %v6304_v47 = vrot.slane %v10947_v46, 1  ;;  %vm11951_vm2 = vcmp.ne.s16.totalorder %v11871_v20, 0  ;;  %vm11952_vm7 = vcmp.ne.s16.totalorder %v11874_v56, 0  ;;  %vm11954_vm11 = vmmov %vm11950_vm15 }
 0x342   : > { %5940 = vmatmul.mubr.bf16.gmra.mrb[136].mxu0 %v10477_v43  ;;  %v10924_v27 = vpop.permute.xlu1 %6264  ;;  %7497 = vmatprep.mubr.msk.bf16.mxu1 %vm228_vm0, %v11943_v48  ;;  %v6075_v43 = vsel %vm11944_vm10, %v10851_v1, 0  ;;  %v6465_v24 = vsel %vm1395_vm5, %v11949_v45, %v6464_v51  ;;  %v5582_v48 = vrot.slane %v5580_v3, 4  ;;  %v6455_v3 = vor.u32 %v6454_v22, %v6451_v10 }
 0x343   : > { %7447 = vmatprep.mubr.msk.bf16.mxu0 %vm228_vm0, %v11942_v31  ;;  %v5579_v31 = vrot.slane %v5577_v36, 3  ;;  %v6338_v44 = vsel %vm228_vm0, %v6075_v43, %v10865_v29  ;;  %v6492_v29 = vshrl.u32 %v6303_v9, 16  ;;  %v6495_v43 = vshll.u32 %v6303_v9, 16 }
 0x344   : > { %v5599_v9 = vrot.slane %v5597_v18, 4  ;;  %vm11953_vm10 = vcmp.ne.s16.totalorder %v11884_v38, 0 }
 0x345   : > { %v5583_v45 = vor.u32 %v5582_v48, %v5579_v31  ;;  %v6494_v46 = vrot.slane %v6492_v29, 3  ;;  %v6456_v48 = vsel %vm1395_vm5, %v10875_v59, %v6455_v3 }
 0x346   : > { %v6269_v1 = vpop.permute.xlu1 %6268 }
 0x347   : > { %v6368_v60 = vsel %vm228_vm0, %v6085_v6, %v6269_v1  ;;  %v6481_v6 = vor.u32 %v6480_v63, %v6477_v41  ;;  %v5594_v1 = vshrl.u32 %v4608_v16, 16  ;;  %v6466_v41 = vshrl.u32 %v6338_v44, 16 }
 0x348   : > { %v6636_v57 = vshrl.u32 %v6368_v60, 16  ;;  %v6639_v4 = vshll.u32 %v6368_v60, 16  ;;  %v6469_v63 = vshll.u32 %v6338_v44, 16  ;;  %v4609_v60 = vrot.slane %v10974_v7, 1 }
 0x349   : > { %6864 = vmatmul.mubr.bf16.gmra.mrb[132].mxu1 %v10881_v32  ;;  %v6497_v44 = vrot.slane %v6495_v43, 4 }
 0x34a   : > { %5948 = vmatmul.mubr.bf16.gmra.mrb[140].mxu0 %v10531_v2  ;;  %v6271_v34 = vpop.permute.xlu1 %6270  ;;  %7498 = vmatprep.mubr.msk.bf16.mxu1 %vm228_vm0, %v6465_v24  ;;  %v6638_v2 = vrot.slane %v6636_v57, 3  ;;  %v6641_v54 = vrot.slane %v6639_v4, 4  ;;  %v6251_v57 = vpop.permute.xlu0 %6250  ;;  %v6482_v4 = vsel %vm1395_vm5, %v6464_v51, %v6481_v6  ;;  %v5596_v24 = vrot.slane %v5594_v1, 3 }
 0x34b   : > { %v6371_v19 = vsel %vm228_vm0, %v6086_v61, %v6271_v34  ;;  %7448 = vmatprep.mubr.msk.bf16.mxu0 %vm228_vm0, %v5567_v40  ;;  %v10981_v40 = vld [vmem:[#allocation2 + $0x50] sm:$0xff]  ;;  %v6468_v34 = vrot.slane %v6466_v41, 3  ;;  %v6471_v31 = vrot.slane %v6469_v63, 4  ;;  %v4610_v20 = vsel %vm1760_vm12, %v4607_v25, %v4609_v60 }
 0x34c   : > { %v6653_v32 = vshrl.u32 %v6371_v19, 16  ;;  %v6656_v36 = vshll.u32 %v6371_v19, 16  ;;  %v10986_v16 = vsel %vm11951_vm2, %v10981_v40, 0  ;;  %v10989_v10 = vor.u32 %v6641_v54, %v6638_v2 }
 0x34d   : > { %v6341_v51 = vsel %vm228_vm0, %v10940_v17, %v6251_v57  ;;  %v5584_v1 = vsel %vm1395_vm5, %v10931_v42, %v5583_v45  ;;  %v4399_v7 = vsel %vm1549_vm14, %v10981_v40, 0  ;;  %v5600_v12 = vor.u32 %v5599_v9, %v5596_v24 }
 0x34e   : > { %v6655_v11 = vrot.slane %v6653_v32, 3  ;;  %v6658_v61 = vrot.slane %v6656_v36, 4  ;;  %v6306_v42 = vrot.slane %v10986_v16, 1  ;;  %v6498_v25 = vor.u32 %v6497_v44, %v6494_v46 }
 0x34f   : > { %v5611_v17 = vshrl.u32 %v4610_v20, 16  ;;  %v5614_v19 = vshll.u32 %v4610_v20, 16  ;;  %v6472_v18 = vor.u32 %v6471_v31, %v6468_v34  ;;  %v6483_v29 = vshrl.u32 %v6341_v51, 16 }
 0x350   : > { %v10991_v22 = vor.u32 %v6658_v61, %v6655_v11  ;;  %v6486_v43 = vshll.u32 %v6341_v51, 16  ;;  %v4611_v2 = vrot.slane %v4399_v7, 1  ;;  %v6077_v36 = vsel %vm11952_vm7, %v10907_v13, 0  ;;  %v11038_v51 = vld [vmem:[#allocation2 + $0x60] sm:$0xff] }
 0x351   : > { %6872 = vmatmul.mubr.bf16.gmra.mrb[136].mxu1 %v6456_v48  ;;  %v5601_v41 = vsel %vm1395_vm5, %v5583_v45, %v5600_v12  ;;  %v6499_v21 = vsel %vm1395_vm5, %v6481_v6, %v6498_v25  ;;  %v5616_v63 = vrot.slane %v5614_v19, 4  ;;  %v6307_v11 = vsel %vm1760_vm12, %v6304_v47, %v6306_v42  ;;  %v11028_v45 = vld [vmem:[#allocation2 + $0x58] sm:$0xff] }
 0x352   : > { %5956 = vmatmul.mubr.bf16.gmra.mrb[144].mxu0 %v10573_v37  ;;  %v11009_v59 = vsel %vm1395_vm5, %v10989_v10, %v10991_v22  ;;  %7499 = vmatprep.mubr.msk.bf16.mxu1 %vm228_vm0, %v6482_v4  ;;  %v6305_v37 = vsel %vm1760_vm12, %v6302_v62, %v6304_v47  ;;  %v5613_v62 = vrot.slane %v5611_v17, 3  ;;  %v6485_v61 = vrot.slane %v6483_v29, 3 }
 0x353   : > { %7449 = vmatprep.mubr.msk.bf16.mxu0 %vm228_vm0, %v5584_v1  ;;  %v6509_v54 = vshrl.u32 %v6305_v37, 16  ;;  %v6512_v32 = vshll.u32 %v6305_v37, 16  ;;  %v6488_v16 = vrot.slane %v6486_v43, 4  ;;  %v6473_v57 = vsel %vm1395_vm5, %v6455_v3, %v6472_v18  ;;  %v11955_v1 = vld [vmem:[#allocation21_spill] sm:$0xff]  ;;  %v6255_v37 = vpop.permute.xlu0 %6254 }
 0x354   : > { %v4612_v4 = vsel %vm1760_vm12, %v4609_v60, %v4611_v2  ;;  %v6344_v24 = vsel %vm228_vm0, %v6077_v36, %v10877_v33  ;;  %v4400_v6 = vsel %vm11953_vm10, %v11028_v45, 0  ;;  %v6097_v3 = vsel %vm11954_vm11, %v11028_v45, 0 }
 0x355   : > { %v6511_v56 = vrot.slane %v6509_v54, 3  ;;  %v6514_v13 = vrot.slane %v6512_v32, 4  ;;  %v5628_v33 = vshrl.u32 %v4612_v4, 16  ;;  %v5631_v60 = vshll.u32 %v4612_v4, 16 }
 0x356   : > { %v6529_v47 = vshll.u32 %v6307_v11, 16  ;;  %v6489_v9 = vor.u32 %v6488_v16, %v6485_v61  ;;  %v6500_v46 = vshrl.u32 %v6344_v24, 16  ;;  %v6503_v44 = vshll.u32 %v6344_v24, 16 }
 0x357   : > { %v4613_v34 = vrot.slane %v4400_v6, 1  ;;  %v5617_v31 = vor.u32 %v5616_v63, %v5613_v62  ;;  %v6515_v48 = vor.u32 %v6514_v13, %v6511_v56  ;;  %v6308_v20 = vrot.slane %v6097_v3, 1  ;;  %v11064_v3 = vld [vmem:[#allocation2 + $0x68] sm:$0xff] }
 0x358   : > { %v11043_v30 = vsel %vm1549_vm14, %v11038_v51, 0  ;;  %vm11956_vm13 = vcmp.ne.s16.totalorder %v11955_v1, 0  ;;  %v5630_v17 = vrot.slane %v5628_v33, 3  ;;  %v5633_v19 = vrot.slane %v5631_v60, 4  ;;  %vm11959_vm14 = vmmov %vm11953_vm10 }
 0x359   : > { %6880 = vmatmul.mubr.bf16.gmra.mrb[140].mxu1 %v6473_v57  ;;  %v6078_v7 = vsel %vm11956_vm13, %v10942_v49, 0  ;;  %v6531_v43 = vrot.slane %v6529_v47, 4  ;;  %v6502_v54 = vrot.slane %v6500_v46, 3  ;;  %v6505_v32 = vrot.slane %v6503_v44, 4 }
 0x35a   : > { %5964 = vmatmul.mubr.bf16.gmra.mrb[148].mxu0 %v10606_v15  ;;  %7500 = vmatprep.mubr.msk.bf16.mxu1 %vm228_vm0, %v6499_v21  ;;  %v6526_v15 = vshrl.u32 %v6307_v11, 16  ;;  %v6490_v36 = vsel %vm1395_vm5, %v6472_v18, %v6489_v9  ;;  %v6347_v21 = vsel %vm228_vm0, %v6078_v7, %v6255_v37  ;;  %v5618_v62 = vsel %vm1395_vm5, %v5600_v12, %v5617_v31 }
 0x35b   : > { %7450 = vmatprep.mubr.msk.bf16.mxu0 %vm228_vm0, %v5601_v41  ;;  %v4614_v41 = vsel %vm1760_vm12, %v4611_v2, %v4613_v34  ;;  %v6516_v49 = vsel %vm1395_vm5, %v6498_v25, %v6515_v48  ;;  %v11057_v11 = vsel %vm1551_vm1, %v11038_v51, 0  ;;  %v6309_v18 = vsel %vm1760_vm12, %v6306_v42, %v6308_v20  ;;  %v11960_v42 = vld [vmem:[#allocation22_spill] sm:$0xff] }
 0x35c   : > { %v6528_v29 = vrot.slane %v6526_v15, 3  ;;  %v6310_v2 = vrot.slane %v11043_v30, 1  ;;  %v5634_v61 = vor.u32 %v5633_v19, %v5630_v17  ;;  %v5645_v57 = vshrl.u32 %v4614_v41, 16  ;;  %v11962_v17 = vld [vmem:[#allocation47_spill] sm:$0xff] }
 0x35d   : > { %v6506_v4 = vor.u32 %v6505_v32, %v6502_v54  ;;  %v6517_v12 = vshrl.u32 %v6347_v21, 16  ;;  %v6520_v24 = vshll.u32 %v6347_v21, 16  ;;  %v4615_v25 = vrot.slane %v11057_v11, 1 }
 0x35e   : > { %v6532_v16 = vor.u32 %v6531_v43, %v6528_v29  ;;  %v5648_v56 = vshll.u32 %v4614_v41, 16  ;;  %v6543_v13 = vshrl.u32 %v6309_v18, 16  ;;  %v6546_v6 = vshll.u32 %v6309_v18, 16 }
 0x35f   : > { %v11069_v33 = vsel %vm11959_vm14, %v11064_v3, 0  ;;  %vm11961_vm3 = vcmp.ne.s16.totalorder %v11960_v42, 0  ;;  %v5635_v15 = vsel %vm1395_vm5, %v5617_v31, %v5634_v61  ;;  %v5647_v46 = vrot.slane %v5645_v57, 3 }
 0x360   : > { %v6079_v60 = vsel %vm11961_vm3, %v10981_v40, 0  ;;  %v6533_v47 = vsel %vm1395_vm5, %v6515_v48, %v6532_v16  ;;  %v6311_v44 = vsel %vm1760_vm12, %v6308_v20, %v6310_v2  ;;  %v6519_v30 = vrot.slane %v6517_v12, 3 }
 0x361   : > { %6888 = vmatmul.mubr.bf16.gmra.mrb[144].mxu1 %v6490_v36  ;;  %v6522_v1 = vrot.slane %v6520_v24, 4  ;;  %v6507_v7 = vsel %vm1395_vm5, %v6489_v9, %v6506_v4  ;;  %v4616_v37 = vsel %vm1760_vm12, %v4613_v34, %v4615_v25  ;;  %v6350_v38 = vsel %vm228_vm0, %v6079_v60, %v10894_v8  ;;  %v11966_v60 = vld [vmem:[#allocation51_spill] sm:$0xff] }
 0x362   : > { %5972 = vmatmul.mubr.bf16.gmra.mrb[152].mxu0 %v11957_v52  ;;  %7501 = vmatprep.mubr.msk.bf16.mxu1 %vm228_vm0, %v6516_v49  ;;  %v5650_v40 = vrot.slane %v5648_v56, 4  ;;  %v6545_v19 = vrot.slane %v6543_v13, 3  ;;  %v6548_v31 = vrot.slane %v6546_v6, 4  ;;  %v6560_v48 = vshrl.u32 %v6311_v44, 16  ;;  %v11964_v52 = vld [vmem:[#allocation23_spill] sm:$0xff]  ;;  %v6259_v49 = vpop.permute.xlu0 %6258 }
 0x363   : > { %7451 = vmatprep.mubr.msk.bf16.mxu0 %vm228_vm0, %v5618_v62  ;;  %v5662_v20 = vshrl.u32 %v4616_v37, 16  ;;  %v5665_v29 = vshll.u32 %v4616_v37, 16  ;;  %v6563_v43 = vshll.u32 %v6311_v44, 16  ;;  %v4402_v34 = vsel %vm1552_vm6, %v11064_v3, 0 }
 0x364   : > { %v6312_v8 = vrot.slane %v11069_v33, 1  ;;  %v6523_v54 = vor.u32 %v6522_v1, %v6519_v30  ;;  %v6534_v32 = vshrl.u32 %v6350_v38, 16  ;;  %v6537_v36 = vshll.u32 %v6350_v38, 16 }
 0x365   : > { %v5651_v41 = vor.u32 %v5650_v40, %v5647_v46  ;;  %v6549_v21 = vor.u32 %v6548_v31, %v6545_v19  ;;  %vm11965_vm15 = vcmp.ne.s16.totalorder %v11964_v52, 0  ;;  %v4617_v11 = vrot.slane %v4402_v34, 1  ;;  %v11968_v31 = vld [vmem:[#allocation26_spill] sm:$0xff] }
 0x366   : > { %v6080_v62 = vsel %vm11965_vm15, %v11028_v45, 0  ;;  %v5664_v18 = vrot.slane %v5662_v20, 3  ;;  %v5667_v57 = vrot.slane %v5665_v29, 4  ;;  %v6562_v12 = vrot.slane %v6560_v48, 3 }
 0x367   : > { %v6565_v24 = vrot.slane %v6563_v43, 4  ;;  %v6536_v56 = vrot.slane %v6534_v32, 3  ;;  %v6539_v13 = vrot.slane %v6537_v36, 4  ;;  %v6524_v6 = vsel %vm1395_vm5, %v6506_v4, %v6523_v54 }
 0x368   : > { %v6313_v33 = vsel %vm1760_vm12, %v6310_v2, %v6312_v8  ;;  %v6353_v42 = vsel %vm228_vm0, %v6080_v62, %v6259_v49  ;;  %v6550_v45 = vsel %vm1395_vm5, %v6532_v16, %v6549_v21  ;;  %v4618_v2 = vsel %vm1760_vm12, %v4615_v25, %v4617_v11  ;;  %v11970_v62 = vld [vmem:[#allocation49_spill] sm:$0xff] }
 0x369   : > { %6896 = vmatmul.mubr.bf16.gmra.mrb[148].mxu1 %v6507_v7  ;;  %v6566_v30 = vor.u32 %v6565_v24, %v6562_v12  ;;  %v6577_v16 = vshrl.u32 %v6313_v33, 16  ;;  %v6580_v1 = vshll.u32 %v6313_v33, 16  ;;  %v6540_v7 = vor.u32 %v6539_v13, %v6536_v56 }
 0x36a   : > { %5980 = vmatmul.mubr.bf16.gmra.mrb[156].mxu0 %v11962_v17  ;;  %7502 = vmatprep.mubr.msk.bf16.mxu1 %vm228_vm0, %v6533_v47  ;;  %v11097_v47 = vld [vmem:[#allocation2 + $0x70] sm:$0xff]  ;;  %v6551_v37 = vshrl.u32 %v6353_v42, 16  ;;  %v6554_v38 = vshll.u32 %v6353_v42, 16  ;;  %v5679_v40 = vshrl.u32 %v4618_v2, 16  ;;  %v5682_v19 = vshll.u32 %v4618_v2, 16  ;;  %v6263_v42 = vpop.permute.xlu0 %6262 }
 0x36b   : > { %7452 = vmatprep.mubr.msk.bf16.mxu0 %vm228_vm0, %v5635_v15  ;;  %v5652_v15 = vsel %vm1395_vm5, %v5634_v61, %v5651_v41  ;;  %v4403_v44 = vsel %vm1553_vm8, %v11097_v47, 0  ;;  %v11105_v4 = vsel %vm1551_vm1, %v11097_v47, 0  ;;  %v5668_v61 = vor.u32 %v5667_v57, %v5664_v18  ;;  %v11121_v18 = vld [vmem:[#allocation2 + $0x78] sm:$0xff] }
 0x36c   : > { %v4619_v17 = vrot.slane %v4403_v44, 1  ;;  %v6314_v63 = vrot.slane %v11105_v4, 1  ;;  %vm11969_vm1 = vcmp.ne.s16.totalorder %v11968_v31, 0  ;;  %v6567_v25 = vsel %vm1395_vm5, %v6549_v21, %v6566_v30 }
 0x36d   : > { %v6081_v48 = vsel %vm11969_vm1, %v11038_v51, 0  ;;  %v5669_v20 = vsel %vm1395_vm5, %v5651_v41, %v5668_v61  ;;  %v6579_v29 = vrot.slane %v6577_v16, 3  ;;  %v6582_v43 = vrot.slane %v6580_v1, 4  ;;  %v4371_v16 = vld [vmem:[#allocation2 + $0x80] sm:$0x1f] }
 0x36e   : > { %v6553_v9 = vrot.slane %v6551_v37, 3  ;;  %v6556_v34 = vrot.slane %v6554_v38, 4  ;;  %v6541_v32 = vsel %vm1395_vm5, %v6523_v54, %v6540_v7  ;;  %v4620_v36 = vsel %vm1760_vm12, %v4617_v11, %v4619_v17 }
 0x36f   : > { %v6356_v52 = vsel %vm228_vm0, %v6081_v48, %v10902_v26  ;;  %v5681_v49 = vrot.slane %v5679_v40, 3  ;;  %v5684_v51 = vrot.slane %v5682_v19, 4  ;;  %v4404_v41 = vsel %vm1554_vm4, %v11121_v18, 0 }
 0x370   : > { %v6315_v54 = vsel %vm1760_vm12, %v6312_v8, %v6314_v63  ;;  %v6583_v21 = vor.u32 %v6582_v43, %v6579_v29  ;;  %v5696_v11 = vshrl.u32 %v4620_v36, 16  ;;  %v5699_v26 = vshll.u32 %v4620_v36, 16 }
 0x371   : > { %6904 = vmatmul.mubr.bf16.gmra.mrb[152].mxu1 %v6524_v6  ;;  %v6557_v57 = vor.u32 %v6556_v34, %v6553_v9  ;;  %v6568_v12 = vshrl.u32 %v6356_v52, 16  ;;  %v6571_v24 = vshll.u32 %v6356_v52, 16  ;;  %v4621_v56 = vrot.slane %v4404_v41, 1 }
 0x372   : > { %5988 = vmatmul.mubr.bf16.gmra.mrb[160].mxu0 %v11966_v60  ;;  %7503 = vmatprep.mubr.msk.bf16.mxu1 %vm228_vm0, %v6550_v45  ;;  %v5685_v13 = vor.u32 %v5684_v51, %v5681_v49  ;;  %v6594_v6 = vshrl.u32 %v6315_v54, 16  ;;  %v6597_v33 = vshll.u32 %v6315_v54, 16  ;;  %vm11972_vm4 = vcmp.ne.s16.totalorder %v11971_v28, 0 }
 0x373   : > { %7453 = vmatprep.mubr.msk.bf16.mxu0 %vm228_vm0, %v5652_v15  ;;  %v6082_v60 = vsel %vm11972_vm4, %v11064_v3, 0  ;;  %v6584_v15 = vsel %vm1395_vm5, %v6566_v30, %v6583_v21  ;;  %v5698_v45 = vrot.slane %v5696_v11, 3  ;;  %v5701_v46 = vrot.slane %v5699_v26, 4  ;;  %v11973_v30 = vld [vmem:[#allocation48_spill] sm:$0xff] }
 0x374   : > { %v6570_v8 = vrot.slane %v6568_v12, 3  ;;  %v6573_v44 = vrot.slane %v6571_v24, 4  ;;  %v6558_v4 = vsel %vm1395_vm5, %v6540_v7, %v6557_v57  ;;  %v4622_v2 = vsel %vm1760_vm12, %v4619_v17, %v4621_v56 }
 0x375   : > { %v6359_v1 = vsel %vm228_vm0, %v6082_v60, %v6263_v42  ;;  %v5686_v37 = vsel %vm1395_vm5, %v5668_v61, %v5685_v13  ;;  %v6596_v38 = vrot.slane %v6594_v6, 3  ;;  %v6599_v3 = vrot.slane %v6597_v33, 4 }
 0x376   : > { %v11974_v40 = vrot.slane %v11973_v30, 1  ;;  %v5713_v19 = vshrl.u32 %v4622_v2, 16  ;;  %v5716_v17 = vshll.u32 %v4622_v2, 16  ;;  %v4405_v31 = vsel %vm1555_vm9, %v4371_v16, 0 }
 0x377   : > { %v6574_v48 = vor.u32 %v6573_v44, %v6570_v8  ;;  %v6600_v61 = vor.u32 %v6599_v3, %v6596_v38  ;;  %v11145_v9 = vrot.slane %v4405_v31, 1  ;;  %vm11975_vm6 = vcmp.ne.s16.totalorder %v11907_v55, 0 }
 0x378   : > { %v6317_v7 = vsel %vm1760_vm12, %v6314_v63, %v11974_v40  ;;  %v6083_v34 = vsel %vm11975_vm6, %v11097_v47, 0  ;;  %v5718_v63 = vrot.slane %v5716_v17, 4  ;;  %vm11976_vm8 = vcmp.ne.s16.totalorder %v11915_v50, 0 }
 0x379   : > { %6912 = vmatmul.mubr.bf16.gmra.mrb[156].mxu1 %v6541_v32  ;;  %v6611_v29 = vshrl.u32 %v6317_v7, 16  ;;  %v6614_v43 = vshll.u32 %v6317_v7, 16  ;;  %v5715_v32 = vrot.slane %v5713_v19, 3  ;;  %v6575_v23 = vsel %vm1395_vm5, %v6557_v57, %v6574_v48  ;;  %v7651_v7 = vld [vmem:[#allocation2 + $0x80] sm:$0xf] }
 0x37a   : > { %5996 = vmatmul.mubr.bf16.gmra.mrb[164].mxu0 %v11970_v62  ;;  %7504 = vmatprep.mubr.msk.bf16.mxu1 %vm228_vm0, %v6567_v25  ;;  %v5702_v25 = vor.u32 %v5701_v46, %v5698_v45  ;;  %v6267_v62 = vpop.permute.xlu0 %6266  ;;  %v6362_v51 = vsel %vm228_vm0, %v6083_v34, %v10924_v27  ;;  %v6601_v41 = vsel %vm1395_vm5, %v6583_v21, %v6600_v61  ;;  %v6084_v21 = vsel %vm11976_vm8, %v11121_v18, 0 }
 0x37b   : > { %7454 = vmatprep.mubr.msk.bf16.mxu0 %vm228_vm0, %v5669_v20  ;;  %v6588_v20 = vshll.u32 %v6359_v1, 16  ;;  %v6613_v54 = vrot.slane %v6611_v29, 3  ;;  %v6616_v55 = vrot.slane %v6614_v43, 4  ;;  %v4624_v47 = vsel %vm1760_vm12, %v4621_v56, %v11145_v9 }
 0x37c   : > { %v5703_v49 = vsel %vm1395_vm5, %v5685_v13, %v5702_v25  ;;  %v5719_v11 = vor.u32 %v5718_v63, %v5715_v32  ;;  %v6602_v57 = vshrl.u32 %v6362_v51, 16  ;;  %v6605_v12 = vshll.u32 %v6362_v51, 16 }
 0x37d   : > { %v6590_v52 = vrot.slane %v6588_v20, 4  ;;  %v6617_v24 = vor.u32 %v6616_v55, %v6613_v54  ;;  %v5730_v27 = vshrl.u32 %v4624_v47, 16  ;;  %v5733_v13 = vshll.u32 %v4624_v47, 16  ;;  %v11980_v47 = vld [vmem:[#allocation7_spill] sm:$0xff] }
 0x37e   : > { %vm11977_vm9 = vcmp.ne.s16.totalorder %v11925_v53, 0  ;;  %v5720_v33 = vsel %vm1395_vm5, %v5702_v25, %v5719_v11  ;;  %v6604_v42 = vrot.slane %v6602_v57, 3  ;;  %v6607_v56 = vrot.slane %v6605_v12, 4 }
 0x37f   : > { %v4387_v6 = vsel %vm11977_vm9, %v11121_v18, 0  ;;  %v6365_v28 = vsel %vm228_vm0, %v6084_v21, %v6267_v62  ;;  %v6618_v50 = vsel %vm1395_vm5, %v6600_v61, %v6617_v24  ;;  %v5732_v45 = vrot.slane %v5730_v27, 3 }
 0x380   : > { %v5735_v46 = vrot.slane %v5733_v13, 4  ;;  %v6619_v53 = vshrl.u32 %v6365_v28, 16  ;;  %v5747_v8 = vshrl.u32 %v11145_v9, 16  ;;  %v6608_v44 = vor.u32 %v6607_v56, %v6604_v42 }
 0x381   : > { %6920 = vmatmul.mubr.bf16.gmra.mrb[160].mxu1 %v6558_v4  ;;  %v6622_v4 = vshll.u32 %v6365_v28, 16  ;;  %v5750_v38 = vshll.u32 %v11145_v9, 16  ;;  %vm11978_vm12 = vcmp.ne.s16.totalorder %v11927_v39, 0  ;;  %v6635_v29 = vsel %vm1395_vm5, %v6617_v24, %v10756_v35  ;;  %v11981_v24 = vld [vmem:[#allocation42_spill] sm:$0xff] }
 0x382   : > { %6004 = vmatmul.mubr.bf16.gmra.mrb[168].mxu0 %v10752_v5  ;;  %7505 = vmatprep.mubr.msk.bf16.mxu1 %vm228_vm0, %v6584_v15  ;;  %v6585_v5 = vshrl.u32 %v6359_v1, 16  ;;  %v6621_v40 = vrot.slane %v6619_v53, 3  ;;  %v4388_v19 = vsel %vm11978_vm12, %v7651_v7, 0  ;;  %v5749_v17 = vrot.slane %v5747_v8, 3  ;;  %vm11982_vm2 = vmmov %vm11978_vm12 }
 0x383   : > { %7455 = vmatprep.mubr.msk.bf16.mxu0 %vm228_vm0, %v5686_v37  ;;  %v5736_v37 = vor.u32 %v5735_v46, %v5732_v45  ;;  %v6624_v31 = vrot.slane %v6622_v4, 4  ;;  %v5752_v43 = vrot.slane %v5750_v38, 4  ;;  %v6679_v27 = vshrl.u32 %v11981_v24, 16 }
 0x384   : > { %v6587_v36 = vrot.slane %v6585_v5, 3  ;;  %v6682_v13 = vshll.u32 %v11981_v24, 16 }
 0x385   : > { %v5737_v61 = vsel %vm1395_vm5, %v5719_v11, %v5736_v37  ;;  %v6625_v34 = vor.u32 %v6624_v31, %v6621_v40 }
 0x386   : > { %v6591_v26 = vor.u32 %v6590_v52, %v6587_v36 }
 0x387   : > { %v6626_v54 = vsel %vm1395_vm5, %v6608_v44, %v6625_v34  ;;  %v6643_v56 = vsel %vm1395_vm5, %v6625_v34, %v10989_v10 }
 0x388   : > { %v6592_v60 = vsel %vm1395_vm5, %v6574_v48, %v6591_v26  ;;  %v6609_v20 = vsel %vm1395_vm5, %v6591_v26, %v6608_v44 }
 0x389   : > { %6928 = vmatmul.mubr.bf16.gmra.mrb[164].mxu1 %v6575_v23 }
 0x38a   : > { %6012 = vmatmul.mubr.bf16.gmra.mrb[172].mxu0 %v10779_v58  ;;  %7506 = vmatprep.mubr.msk.bf16.mxu1 %vm228_vm0, %v6601_v41  ;;  %v4572_v58 = vpop.permute.xlu0 %4571  ;;  %v11979_v41 = vld [vmem:[#allocation9_spill] sm:$0xff] }
 0x38b   : > { %7456 = vmatprep.mubr.msk.bf16.mxu0 %vm228_vm0, %v5703_v49  ;;  %v4672_v15 = vsel %vm228_vm0, %v4387_v6, %v4572_v58  ;;  %v7652_v58 = vld [vmem:[#allocation2 + $0x90] sm:$0xf]  ;;  %v6273_v6 = vpop.permute.xlu1 %6272 }
 0x38c   : > { %v5721_v2 = vshrl.u32 %v4672_v15, 16  ;;  %v5724_v16 = vshll.u32 %v4672_v15, 16  ;;  %v6087_v21 = vsel %vm11982_vm2, %v7652_v58, 0  ;;  %v6684_v15 = vrot.slane %v6682_v13, 4 }
 0x38d   : > { %v6374_v28 = vsel %vm228_vm0, %v6087_v21, %v6273_v6 }
 0x38e   : > { %v4574_v3 = vpop.permute.xlu0 %4573  ;;  %v5723_v48 = vrot.slane %v5721_v2, 3  ;;  %v5726_v5 = vrot.slane %v5724_v16, 4  ;;  %v6670_v39 = vshrl.u32 %v6374_v28, 16  ;;  %v6673_v46 = vshll.u32 %v6374_v28, 16  ;;  %v11984_v16 = vld [vmem:[#allocation8_spill] sm:$0xff] }
 0x38f   : > { %v4675_v25 = vsel %vm228_vm0, %v4388_v19, %v4574_v3 }
 0x390   : > { %v5727_v32 = vor.u32 %v5726_v5, %v5723_v48  ;;  %v5738_v63 = vshrl.u32 %v4675_v25, 16  ;;  %v5741_v36 = vshll.u32 %v4675_v25, 16  ;;  %v6672_v2 = vrot.slane %v6670_v39, 3 }
 0x391   : > { %6936 = vmatmul.mubr.bf16.gmra.mrb[168].mxu1 %v6592_v60  ;;  %v6681_v60 = vrot.slane %v6679_v27, 3  ;;  %v6675_v10 = vrot.slane %v6673_v46, 4 }
 0x392   : > { %6020 = vmatmul.mubr.bf16.gmra.mrb[176].mxu0 %v10805_v14  ;;  %7507 = vmatprep.mubr.msk.bf16.mxu1 %vm228_vm0, %v6618_v50  ;;  %v5740_v49 = vrot.slane %v5738_v63, 3  ;;  %v5743_v51 = vrot.slane %v5741_v36, 4  ;;  %v5728_v35 = vsel %vm1395_vm5, %v11979_v41, %v5727_v32  ;;  %v11983_v50 = vld [vmem:[#allocation39_spill] sm:$0xff] }
 0x393   : > { %7457 = vmatprep.mubr.msk.bf16.mxu0 %vm228_vm0, %v5720_v33  ;;  %v6685_v44 = vor.u32 %v6684_v15, %v6681_v60  ;;  %v6676_v38 = vor.u32 %v6675_v10, %v6672_v2 }
 0x394   : > { %v11174_v18 = vpop.f32.mrb[64].mxu1  ;;  %v5744_v26 = vor.u32 %v5743_v51, %v5740_v49 }
 0x395   : > { %v5343_v1 = vpop.f32.mrb[65].mxu1  ;;  %v6677_v7 = vsel %vm1395_vm5, %v10991_v22, %v6676_v38 }
 0x396   : > { %v11177_v14 = vpop.f32.mrb[66].mxu1  ;;  %v5745_v42 = vsel %vm1395_vm5, %v5727_v32, %v5744_v26  ;;  %v6686_v1 = vsel %vm1395_vm5, %v11984_v16, %v6685_v44 }
 0x397   : > { %v5346_v30 = vpop.f32.mrb[67].mxu1 }
 0x399   : > { %6944 = vmatmul.mubr.bf16.gmra.mrb[172].mxu1 %v6609_v20 }
 0x39a   : > { %6028 = vmatmul.mubr.bf16.gmra.mrb[180].mxu0 %v10820_v0  ;;  %7508 = vmatprep.mubr.msk.bf16.mxu1 %vm228_vm0, %v6635_v29  ;;  %v5753_v0 = vor.u32 %v5752_v43, %v5749_v17 }
 0x39b   : > { %7458 = vmatprep.mubr.msk.bf16.mxu0 %vm228_vm0, %v5737_v61 }
 0x39c   : > { %v11190_v9 = vpop.f32.mrb[68].mxu1  ;;  %v5754_v55 = vsel %vm1395_vm5, %v5736_v37, %v5753_v0 }
 0x39d   : > { %v5351_v52 = vpop.f32.mrb[69].mxu1 }
 0x39e   : > { %v11192_v62 = vpop.f32.mrb[70].mxu1 }
 0x39f   : > { %v5354_v23 = vpop.f32.mrb[71].mxu1 }
 0x3a1   : > { %6952 = vmatmul.mubr.bf16.gmra.mrb[176].mxu1 %v6626_v54 }
 0x3a2   : > { %6036 = vmatmul.mubr.bf16.gmra.mrb[184].mxu0 %v5728_v35  ;;  %7509 = vmatprep.mubr.msk.bf16.mxu1 %vm228_vm0, %v11980_v47 }
 0x3a3   : > { %7459 = vmatprep.mubr.msk.bf16.mxu0 %vm228_vm0, %v5754_v55 }
 0x3a4   : > { %v11201_v11 = vpop.f32.mrb[72].mxu1 }
 0x3a5   : > { %v5359_v57 = vpop.f32.mrb[73].mxu1 }
 0x3a6   : > { %v11203_v12 = vpop.f32.mrb[74].mxu1 }
 0x3a7   : > { %v5362_v33 = vpop.f32.mrb[75].mxu1 }
 0x3a9   : > { %6960 = vmatmul.mubr.bf16.gmra.mrb[180].mxu1 %v6643_v56 }
 0x3aa   : > { %6044 = vmatmul.mubr.bf16.gmra.mrb[188].mxu0 %v5745_v42  ;;  %7510 = vmatprep.mubr.msk.bf16.mxu1 %vm228_vm0, %v11983_v50 }
 0x3ac   : > { %v11215_v45 = vpop.f32.mrb[76].mxu1 }
 0x3ad   : > { %v5367_v53 = vpop.f32.mrb[77].mxu1 }
 0x3ae   : > { %v11217_v8 = vpop.f32.mrb[78].mxu1 }
 0x3af   : > { %v5370_v4 = vpop.f32.mrb[79].mxu1 }
 0x3b1   : > { %6968 = vmatmul.mubr.bf16.gmra.mrb[184].mxu1 %v11009_v59 }
 0x3b2   : > { %7511 = vmatprep.mubr.msk.bf16.mxu1 %vm228_vm0, %v6686_v1 }
 0x3b4   : > { %v11223_v37 = vpop.f32.mrb[80].mxu1 }
 0x3b5   : > { %v5375_v3 = vpop.f32.mrb[81].mxu1 }
 0x3b6   : > { %v11225_v30 = vpop.f32.mrb[82].mxu1 }
 0x3b7   : > { %v5378_v40 = vpop.f32.mrb[83].mxu1 }
 0x3b9   : > { %6976 = vmatmul.mubr.bf16.gmra.mrb[188].mxu1 %v6677_v7 }
 0x3bc   : > { %v11229_v19 = vpop.f32.mrb[84].mxu1 }
 0x3bd   : > { %v5383_v17 = vpop.f32.mrb[85].mxu1 }
 0x3be   : > { %v11231_v59 = vpop.f32.mrb[86].mxu1 }
 0x3bf   : > { %v5386_v31 = vpop.f32.mrb[87].mxu1 }
 0x3c4   : > { %v11233_v48 = vpop.f32.mrb[88].mxu1 }
 0x3c5   : > { %v5391_v5 = vpop.f32.mrb[89].mxu1 }
 0x3c6   : > { %v11235_v20 = vpop.f32.mrb[90].mxu1  ;;  %v11280_v5 = vld [vmem:[%s11452_s4] ss:$0 sm:$0xff] }
 0x3c7   : > { %v5394_v25 = vpop.f32.mrb[91].mxu1 }
 0x3cc   : > { %v11237_v61 = vpop.f32.mrb[92].mxu1 }
 0x3cd   : > { %v5399_v29 = vpop.f32.mrb[93].mxu1 }
 0x3ce   : > { %v11239_v43 = vpop.f32.mrb[94].mxu1 }
 0x3cf   : > { %v5402_v34 = vpop.f32.mrb[95].mxu1 }
 0x3d4   : > { %v11241_v22 = vpop.f32.mrb[96].mxu1 }
 0x3d5   : > { %v5407_v32 = vpop.f32.mrb[97].mxu1 }
 0x3d6   : > { %v11243_v63 = vpop.f32.mrb[98].mxu1  ;;  %v7055_v32 = vld [vmem:[%s7726_s27] sm:$0xff] }
 0x3d7   : > { %v5410_v36 = vpop.f32.mrb[99].mxu1 }
 0x3dc   : > { %v11245_v52 = vpop.f32.mrb[100].mxu1 }
 0x3dd   : > { %v5415_v0 = vpop.f32.mrb[101].mxu1 }
 0x3de   : > { %v11247_v23 = vpop.f32.mrb[102].mxu1 }
 0x3df   : > { %v5418_v49 = vpop.f32.mrb[103].mxu1 }
 0x3e4   : > { %v11249_v51 = vpop.f32.mrb[104].mxu1 }
 0x3e5   : > { %v5423_v41 = vpop.f32.mrb[105].mxu1 }
 0x3e6   : > { %v11251_v35 = vpop.f32.mrb[106].mxu1 }
 0x3e7   : > { %v5426_v54 = vpop.f32.mrb[107].mxu1 }
 0x3ec   : > { %v11253_v55 = vpop.f32.mrb[108].mxu1 }
 0x3ed   : > { %v5431_v47 = vpop.f32.mrb[109].mxu1 }
 0x3ee   : > { %v11255_v26 = vpop.f32.mrb[110].mxu1 }
 0x3ef   : > { %v5434_v57 = vpop.f32.mrb[111].mxu1 }
 0x3f4   : > { %v11257_v24 = vpop.f32.mrb[112].mxu1 }
 0x3f5   : > { %v5439_v27 = vpop.f32.mrb[113].mxu1 }
 0x3f6   : > { %v11259_v13 = vpop.f32.mrb[114].mxu1 }
 0x3f7   : > { %v5442_v58 = vpop.f32.mrb[115].mxu1 }
 0x3fc   : > { %v11261_v21 = vpop.f32.mrb[116].mxu1 }
 0x3fd   : > { %v5447_v6 = vpop.f32.mrb[117].mxu1 }
 0x3fe   : > { %v11263_v33 = vpop.f32.mrb[118].mxu1 }
 0x3ff   : > { %v5450_v42 = vpop.f32.mrb[119].mxu1 }
 0x404   : > { %v11265_v56 = vpop.f32.mrb[120].mxu1 }
 0x405   : > { %v5925_v28 = vpop.f32.mrb[128].mxu0  ;;  %v5455_v15 = vpop.f32.mrb[121].mxu1 }
 0x406   : > { %v5926_v60 = vadd.f32 %v5925_v28, %v11174_v18  ;;  %v5927_v50 = vpop.f32.mrb[129].mxu0  ;;  %v11268_v39 = vpop.f32.mrb[122].mxu1 }
 0x407   : > { %v5928_v46 = vpop.f32.mrb[130].mxu0  ;;  %v5458_v44 = vpop.f32.mrb[123].mxu1  ;;  %v7057_v50 = vld [vmem:[%s7726_s27 + $0x10] sm:$0xff] }
 0x408   : > { %v5929_v53 = vadd.f32 %v5928_v46, %v11177_v14  ;;  %v5930_v4 = vpop.f32.mrb[131].mxu0 }
 0x40c   : > { %v11271_v2 = vpop.f32.mrb[124].mxu1 }
 0x40d   : > { %v5933_v10 = vpop.f32.mrb[132].mxu0  ;;  %v5463_v1 = vpop.f32.mrb[125].mxu1 }
 0x40e   : > { %v5934_v16 = vadd.f32 %v5933_v10, %v11190_v9  ;;  %v5935_v38 = vpop.f32.mrb[133].mxu0  ;;  %v11274_v3 = vpop.f32.mrb[126].mxu1 }
 0x40f   : > { %v5936_v18 = vpop.f32.mrb[134].mxu0  ;;  %v5466_v7 = vpop.f32.mrb[127].mxu1 }
 0x410   : > { %v5937_v40 = vadd.f32 %v5936_v18, %v11192_v62  ;;  %v5938_v17 = vpop.f32.mrb[135].mxu0  ;;  %v7058_v18 = vld [vmem:[%s7726_s27 + $0x18] sm:$0xff] }
 0x414   : > { %v6857_v14 = vpop.f32.mrb[128].mxu1 }
 0x415   : > { %v5941_v31 = vpop.f32.mrb[136].mxu0  ;;  %v6984_v25 = vadd.f32 %v6857_v14, %v5926_v60  ;;  %v6859_v34 = vpop.f32.mrb[129].mxu1 }
 0x416   : > { %v5942_v9 = vadd.f32 %v5941_v31, %v11201_v11  ;;  %v5943_v29 = vpop.f32.mrb[137].mxu0  ;;  %v6860_v0 = vpop.f32.mrb[130].mxu1  ;;  %v7056_v11 = vld [vmem:[%s7726_s27 + $0x8] sm:$0xff] }
 0x417   : > { %v5944_v36 = vpop.f32.mrb[138].mxu0  ;;  %v7023_v62 = vadd.f32 %v11280_v5, %v6984_v25  ;;  %v6985_v41 = vadd.f32 %v6860_v0, %v5929_v53  ;;  %v6862_v47 = vpop.f32.mrb[131].mxu1  ;;  %v7059_v29 = vld [vmem:[%s7726_s27 + $0x20] sm:$0xff] }
 0x418   : > { %v5945_v49 = vadd.f32 %v5944_v36, %v11203_v12  ;;  %v5946_v54 = vpop.f32.mrb[139].mxu0  ;;  %v7060_v47 = vld [vmem:[%s7726_s27 + $0x28] sm:$0xff] }
 0x419   : > { %v7087_v57 = vadd.f32 %v7055_v32, %v7023_v62  ;;  %v7024_v27 = vadd.f32 %v11280_v5, %v6985_v41 }
 0x41b   : > { %7119 = vst.msk [vmem:[%s11291_s8] sm:$0xff] %vm228_vm0, %v7087_v57  ;;  %v7088_v58 = vadd.f32 %v7056_v11, %v7024_v27 }
 0x41c   : > { %v6865_v6 = vpop.f32.mrb[132].mxu1 }
 0x41d   : > { %v5949_v12 = vpop.f32.mrb[140].mxu0  ;;  %7120 = vst.msk [vmem:[%s11291_s8 + $0x8] sm:$0xff] %vm228_vm0, %v7088_v58  ;;  %v6986_v28 = vadd.f32 %v6865_v6, %v5934_v16  ;;  %v6867_v15 = vpop.f32.mrb[133].mxu1  ;;  %v7061_v6 = vld [vmem:[%s7726_s27 + $0x30] sm:$0xff] }
 0x41e   : > { %v5950_v42 = vadd.f32 %v5949_v12, %v11215_v45  ;;  %v5951_v60 = vpop.f32.mrb[141].mxu0  ;;  %v6868_v53 = vpop.f32.mrb[134].mxu1 }
 0x41f   : > { %v5952_v46 = vpop.f32.mrb[142].mxu0  ;;  %v7025_v44 = vadd.f32 %v11280_v5, %v6986_v28  ;;  %v6987_v10 = vadd.f32 %v6868_v53, %v5937_v40  ;;  %v6870_v38 = vpop.f32.mrb[135].mxu1 }
 0x420   : > { %v5953_v4 = vadd.f32 %v5952_v46, %v11217_v8  ;;  %v5954_v1 = vpop.f32.mrb[143].mxu0 }
 0x421   : > { %v7089_v7 = vadd.f32 %v7057_v50, %v7025_v44  ;;  %v7026_v17 = vadd.f32 %v11280_v5, %v6987_v10  ;;  %v7062_v10 = vld [vmem:[%s7726_s27 + $0x38] sm:$0xff] }
 0x423   : > { %7121 = vst.msk [vmem:[%s11291_s8 + $0x10] sm:$0xff] %vm228_vm0, %v7089_v7  ;;  %v7090_v45 = vadd.f32 %v7058_v18, %v7026_v17 }
 0x424   : > { %v6873_v31 = vpop.f32.mrb[136].mxu1 }
 0x425   : > { %v5957_v16 = vpop.f32.mrb[144].mxu0  ;;  %7122 = vst.msk [vmem:[%s11291_s8 + $0x18] sm:$0xff] %vm228_vm0, %v7090_v45  ;;  %v6988_v8 = vadd.f32 %v6873_v31, %v5942_v9  ;;  %v6875_v40 = vpop.f32.mrb[137].mxu1  ;;  %v7063_v45 = vld [vmem:[%s7726_s27 + $0x40] sm:$0xff] }
 0x426   : > { %v5958_v14 = vadd.f32 %v5957_v16, %v11223_v37  ;;  %v5959_v25 = vpop.f32.mrb[145].mxu0  ;;  %v6876_v32 = vpop.f32.mrb[138].mxu1 }
 0x427   : > { %v5960_v34 = vpop.f32.mrb[146].mxu0  ;;  %v7027_v36 = vadd.f32 %v11280_v5, %v6988_v8  ;;  %v6989_v62 = vadd.f32 %v6876_v32, %v5945_v49  ;;  %v6878_v54 = vpop.f32.mrb[139].mxu1  ;;  %v7064_v32 = vld [vmem:[%s7726_s27 + $0x48] sm:$0xff] }
 0x428   : > { %v5961_v0 = vadd.f32 %v5960_v34, %v11225_v30  ;;  %v5962_v41 = vpop.f32.mrb[147].mxu0 }
 0x429   : > { %v7091_v11 = vadd.f32 %v7059_v29, %v7027_v36  ;;  %v7028_v57 = vadd.f32 %v11280_v5, %v6989_v62 }
 0x42b   : > { %7123 = vst.msk [vmem:[%s11291_s8 + $0x20] sm:$0xff] %vm228_vm0, %v7091_v11  ;;  %v7092_v37 = vadd.f32 %v7060_v47, %v7028_v57  ;;  %v7065_v11 = vld [vmem:[%s7726_s27 + $0x50] sm:$0xff] }
 0x42c   : > { %v6881_v27 = vpop.f32.mrb[140].mxu1 }
 0x42d   : > { %v5965_v9 = vpop.f32.mrb[148].mxu0  ;;  %7124 = vst.msk [vmem:[%s11291_s8 + $0x28] sm:$0xff] %vm228_vm0, %v7092_v37  ;;  %v6990_v30 = vadd.f32 %v6881_v27, %v5950_v42  ;;  %v6883_v49 = vpop.f32.mrb[141].mxu1 }
 0x42e   : > { %v5966_v58 = vadd.f32 %v5965_v9, %v11229_v19  ;;  %v5967_v12 = vpop.f32.mrb[149].mxu0  ;;  %v6884_v60 = vpop.f32.mrb[142].mxu1 }
 0x42f   : > { %v5968_v28 = vpop.f32.mrb[150].mxu0  ;;  %v7029_v15 = vadd.f32 %v11280_v5, %v6990_v30  ;;  %v6991_v46 = vadd.f32 %v6884_v60, %v5953_v4  ;;  %v6886_v44 = vpop.f32.mrb[143].mxu1 }
 0x430   : > { %v5969_v50 = vadd.f32 %v5968_v28, %v11231_v59  ;;  %v5970_v53 = vpop.f32.mrb[151].mxu0  ;;  %v7067_v44 = vld [vmem:[%s7726_s27 + $0x60] sm:$0xff] }
 0x431   : > { %v7093_v1 = vadd.f32 %v7061_v6, %v7029_v15  ;;  %v7030_v38 = vadd.f32 %v11280_v5, %v6991_v46  ;;  %v7066_v6 = vld [vmem:[%s7726_s27 + $0x58] sm:$0xff] }
 0x433   : > { %7125 = vst.msk [vmem:[%s11291_s8 + $0x30] sm:$0xff] %vm228_vm0, %v7093_v1  ;;  %v7094_v19 = vadd.f32 %v7062_v10, %v7030_v38 }
 0x434   : > { %v6889_v18 = vpop.f32.mrb[144].mxu1 }
 0x435   : > { %v5973_v42 = vpop.f32.mrb[152].mxu0  ;;  %7126 = vst.msk [vmem:[%s11291_s8 + $0x38] sm:$0xff] %vm228_vm0, %v7094_v19  ;;  %v6992_v59 = vadd.f32 %v6889_v18, %v5958_v14  ;;  %v6891_v4 = vpop.f32.mrb[145].mxu1 }
 0x436   : > { %v5974_v7 = vadd.f32 %v5973_v42, %v11233_v48  ;;  %v5975_v17 = vpop.f32.mrb[153].mxu0  ;;  %v6892_v31 = vpop.f32.mrb[146].mxu1 }
 0x437   : > { %v5976_v16 = vpop.f32.mrb[154].mxu0  ;;  %v7031_v8 = vadd.f32 %v11280_v5, %v6992_v59  ;;  %v6993_v40 = vadd.f32 %v6892_v31, %v5961_v0  ;;  %v6894_v34 = vpop.f32.mrb[147].mxu1  ;;  %v7068_v17 = vld [vmem:[%s7726_s27 + $0x68] sm:$0xff] }
 0x438   : > { %v5977_v25 = vadd.f32 %v5976_v16, %v11235_v20  ;;  %v5978_v29 = vpop.f32.mrb[155].mxu0 }
 0x439   : > { %v7095_v36 = vadd.f32 %v7063_v45, %v7031_v8  ;;  %v7032_v62 = vadd.f32 %v11280_v5, %v6993_v40  ;;  %v7069_v40 = vld [vmem:[%s7726_s27 + $0x70] sm:$0xff] }
 0x43b   : > { %7127 = vst.msk [vmem:[%s11291_s8 + $0x40] sm:$0xff] %vm228_vm0, %v7095_v36  ;;  %v7096_v48 = vadd.f32 %v7064_v32, %v7032_v62 }
 0x43c   : > { %v6897_v41 = vpop.f32.mrb[148].mxu1 }
 0x43d   : > { %v5981_v14 = vpop.f32.mrb[156].mxu0  ;;  %7128 = vst.msk [vmem:[%s11291_s8 + $0x48] sm:$0xff] %vm228_vm0, %v7096_v48  ;;  %v6994_v20 = vadd.f32 %v6897_v41, %v5966_v58  ;;  %v6899_v0 = vpop.f32.mrb[149].mxu1  ;;  %v7070_v41 = vld [vmem:[%s7726_s27 + $0x78] sm:$0xff] }
 0x43e   : > { %v5982_v54 = vadd.f32 %v5981_v14, %v11237_v61  ;;  %v5983_v47 = vpop.f32.mrb[157].mxu0  ;;  %v6900_v37 = vpop.f32.mrb[150].mxu1 }
 0x43f   : > { %v5984_v57 = vpop.f32.mrb[158].mxu0  ;;  %v7033_v9 = vadd.f32 %v11280_v5, %v6994_v20  ;;  %v6995_v30 = vadd.f32 %v6900_v37, %v5969_v50  ;;  %v6902_v49 = vpop.f32.mrb[151].mxu1 }
 0x440   : > { %v5985_v27 = vadd.f32 %v5984_v57, %v11239_v43  ;;  %v5986_v12 = vpop.f32.mrb[159].mxu0 }
 0x441   : > { %v7097_v28 = vadd.f32 %v7065_v11, %v7033_v9  ;;  %v7034_v60 = vadd.f32 %v11280_v5, %v6995_v30  ;;  %v7071_v9 = vld [vmem:[%s7726_s27 + $0x80] sm:$0xff] }
 0x443   : > { %7129 = vst.msk [vmem:[%s11291_s8 + $0x50] sm:$0xff] %vm228_vm0, %v7097_v28  ;;  %v7098_v61 = vadd.f32 %v7066_v6, %v7034_v60 }
 0x444   : > { %v6905_v15 = vpop.f32.mrb[152].mxu1 }
 0x445   : > { %v5989_v58 = vpop.f32.mrb[160].mxu0  ;;  %7130 = vst.msk [vmem:[%s11291_s8 + $0x58] sm:$0xff] %vm228_vm0, %v7098_v61  ;;  %v6996_v43 = vadd.f32 %v6905_v15, %v5974_v7  ;;  %v6907_v50 = vpop.f32.mrb[153].mxu1  ;;  %v7072_v61 = vld [vmem:[%s7726_s27 + $0x88] sm:$0xff] }
 0x446   : > { %v5990_v46 = vadd.f32 %v5989_v58, %v11241_v22  ;;  %v5991_v53 = vpop.f32.mrb[161].mxu0  ;;  %v6908_v1 = vpop.f32.mrb[154].mxu1 }
 0x447   : > { %v5992_v10 = vpop.f32.mrb[162].mxu0  ;;  %v7035_v38 = vadd.f32 %v11280_v5, %v6996_v43  ;;  %v6997_v42 = vadd.f32 %v6908_v1, %v5977_v25  ;;  %v6910_v59 = vpop.f32.mrb[155].mxu1 }
 0x448   : > { %v5993_v19 = vadd.f32 %v5992_v10, %v11243_v63  ;;  %v5994_v18 = vpop.f32.mrb[163].mxu0  ;;  %v7073_v10 = vld [vmem:[%s7726_s27 + $0x90] sm:$0xff] }
 0x449   : > { %v7099_v4 = vadd.f32 %v7067_v44, %v7035_v38  ;;  %v7036_v45 = vadd.f32 %v11280_v5, %v6997_v42 }
 0x44b   : > { %7131 = vst.msk [vmem:[%s11291_s8 + $0x60] sm:$0xff] %vm228_vm0, %v7099_v4  ;;  %v7100_v22 = vadd.f32 %v7068_v17, %v7036_v45  ;;  %v7074_v4 = vld [vmem:[%s7726_s27 + $0x98] sm:$0xff] }
 0x44c   : > { %v6913_v16 = vpop.f32.mrb[156].mxu1 }
 0x44d   : > { %v5997_v7 = vpop.f32.mrb[164].mxu0  ;;  %7132 = vst.msk [vmem:[%s11291_s8 + $0x68] sm:$0xff] %vm228_vm0, %v7100_v22  ;;  %v6998_v63 = vadd.f32 %v6913_v16, %v5982_v54  ;;  %v6915_v25 = vpop.f32.mrb[157].mxu1 }
 0x44e   : > { %v5998_v31 = vadd.f32 %v5997_v7, %v11245_v52  ;;  %v5999_v8 = vpop.f32.mrb[165].mxu0  ;;  %v6916_v34 = vpop.f32.mrb[158].mxu1  ;;  %v7075_v25 = vld [vmem:[%s7726_s27 + $0xa0] sm:$0xff] }
 0x44f   : > { %v6000_v29 = vpop.f32.mrb[166].mxu0  ;;  %v7037_v32 = vadd.f32 %v11280_v5, %v6998_v63  ;;  %v6999_v62 = vadd.f32 %v6916_v34, %v5985_v27  ;;  %v6918_v14 = vpop.f32.mrb[159].mxu1 }
 0x450   : > { %v6001_v36 = vadd.f32 %v6000_v29, %v11247_v23  ;;  %v6002_v48 = vpop.f32.mrb[167].mxu0  ;;  %v7076_v14 = vld [vmem:[%s7726_s27 + $0xa8] sm:$0xff] }
 0x451   : > { %v7101_v20 = vadd.f32 %v7069_v40, %v7037_v32  ;;  %v7038_v47 = vadd.f32 %v11280_v5, %v6999_v62 }
 0x453   : > { %7133 = vst.msk [vmem:[%s11291_s8 + $0x70] sm:$0xff] %vm228_vm0, %v7101_v20  ;;  %v7102_v52 = vadd.f32 %v7070_v41, %v7038_v47 }
 0x454   : > { %v6921_v0 = vpop.f32.mrb[160].mxu1 }
 0x455   : > { %v6005_v54 = vpop.f32.mrb[168].mxu0  ;;  %7134 = vst.msk [vmem:[%s11291_s8 + $0x78] sm:$0xff] %vm228_vm0, %v7102_v52  ;;  %v7000_v23 = vadd.f32 %v6921_v0, %v5990_v46  ;;  %v6923_v37 = vpop.f32.mrb[161].mxu1 }
 0x456   : > { %v6006_v11 = vadd.f32 %v6005_v54, %v11249_v51  ;;  %v6007_v57 = vpop.f32.mrb[169].mxu0  ;;  %v6924_v30 = vpop.f32.mrb[162].mxu1 }
 0x457   : > { %v6008_v27 = vpop.f32.mrb[170].mxu0  ;;  %v7039_v12 = vadd.f32 %v11280_v5, %v7000_v23  ;;  %v7001_v6 = vadd.f32 %v6924_v30, %v5993_v19  ;;  %v6926_v60 = vpop.f32.mrb[163].mxu1  ;;  %v7077_v23 = vld [vmem:[%s7726_s27 + $0xb0] sm:$0xff] }
 0x458   : > { %v6009_v49 = vadd.f32 %v6008_v27, %v11251_v35  ;;  %v6010_v28 = vpop.f32.mrb[171].mxu0 }
 0x459   : > { %v7103_v58 = vadd.f32 %v7071_v9, %v7039_v12  ;;  %v7040_v15 = vadd.f32 %v11280_v5, %v7001_v6  ;;  %v7078_v6 = vld [vmem:[%s7726_s27 + $0xb8] sm:$0xff] }
 0x45b   : > { %7135 = vst.msk [vmem:[%s11291_s8 + $0x80] sm:$0xff] %vm228_vm0, %v7103_v58  ;;  %v7104_v51 = vadd.f32 %v7072_v61, %v7040_v15 }
 0x45c   : > { %v6929_v43 = vpop.f32.mrb[164].mxu1 }
 0x45d   : > { %v6013_v46 = vpop.f32.mrb[172].mxu0  ;;  %7136 = vst.msk [vmem:[%s11291_s8 + $0x88] sm:$0xff] %vm228_vm0, %v7104_v51  ;;  %v7002_v35 = vadd.f32 %v6929_v43, %v5998_v31  ;;  %v6931_v44 = vpop.f32.mrb[165].mxu1  ;;  %v7079_v43 = vld [vmem:[%s7726_s27 + $0xc0] sm:$0xff] }
 0x45e   : > { %v6014_v53 = vadd.f32 %v6013_v46, %v11253_v55  ;;  %v6015_v50 = vpop.f32.mrb[173].mxu0  ;;  %v6932_v38 = vpop.f32.mrb[166].mxu1 }
 0x45f   : > { %v6016_v1 = vpop.f32.mrb[174].mxu0  ;;  %v7041_v19 = vadd.f32 %v11280_v5, %v7002_v35  ;;  %v7003_v18 = vadd.f32 %v6932_v38, %v6001_v36  ;;  %v6934_v17 = vpop.f32.mrb[167].mxu1 }
 0x460   : > { %v6017_v42 = vadd.f32 %v6016_v1, %v11255_v26  ;;  %v6018_v59 = vpop.f32.mrb[175].mxu0 }
 0x461   : > { %v7105_v45 = vadd.f32 %v7073_v10, %v7041_v19  ;;  %v7042_v22 = vadd.f32 %v11280_v5, %v7003_v18  ;;  %v7080_v19 = vld [vmem:[%s7726_s27 + $0xc8] sm:$0xff] }
 0x463   : > { %7137 = vst.msk [vmem:[%s11291_s8 + $0x90] sm:$0xff] %vm228_vm0, %v7105_v45  ;;  %v7106_v55 = vadd.f32 %v7074_v4, %v7042_v22 }
 0x464   : > { %v6937_v16 = vpop.f32.mrb[168].mxu1 }
 0x465   : > { %v6021_v7 = vpop.f32.mrb[176].mxu0  ;;  %7138 = vst.msk [vmem:[%s11291_s8 + $0x98] sm:$0xff] %vm228_vm0, %v7106_v55  ;;  %v7004_v26 = vadd.f32 %v6937_v16, %v6006_v11  ;;  %v6939_v8 = vpop.f32.mrb[169].mxu1  ;;  %v7081_v55 = vld [vmem:[%s7726_s27 + $0xd0] sm:$0xff] }
 0x466   : > { %v6022_v31 = vadd.f32 %v6021_v7, %v11257_v24  ;;  %v6023_v63 = vpop.f32.mrb[177].mxu0  ;;  %v6940_v29 = vpop.f32.mrb[170].mxu1 }
 0x467   : > { %v6024_v40 = vpop.f32.mrb[178].mxu0  ;;  %v7043_v34 = vadd.f32 %v11280_v5, %v7004_v26  ;;  %v7005_v36 = vadd.f32 %v6940_v29, %v6009_v49  ;;  %v6942_v48 = vpop.f32.mrb[171].mxu1 }
 0x468   : > { %v6025_v32 = vadd.f32 %v6024_v40, %v11259_v13  ;;  %v6026_v62 = vpop.f32.mrb[179].mxu0  ;;  %v7082_v40 = vld [vmem:[%s7726_s27 + $0xd8] sm:$0xff] }
 0x469   : > { %v7107_v41 = vadd.f32 %v7075_v25, %v7043_v34  ;;  %v7044_v20 = vadd.f32 %v11280_v5, %v7005_v36 }
 0x46b   : > { %7139 = vst.msk [vmem:[%s11291_s8 + $0xa0] sm:$0xff] %vm228_vm0, %v7107_v41  ;;  %v7108_v24 = vadd.f32 %v7076_v14, %v7044_v20 }
 0x46c   : > { %v6945_v52 = vpop.f32.mrb[172].mxu1 }
 0x46d   : > { %v6029_v47 = vpop.f32.mrb[180].mxu0  ;;  %7140 = vst.msk [vmem:[%s11291_s8 + $0xa8] sm:$0xff] %vm228_vm0, %v7108_v24  ;;  %v7006_v13 = vadd.f32 %v6945_v52, %v6014_v53  ;;  %v6947_v11 = vpop.f32.mrb[173].mxu1  ;;  %v7084_v24 = vld [vmem:[%s7726_s27 + $0xe8] sm:$0xff] }
 0x46e   : > { %v6030_v54 = vadd.f32 %v6029_v47, %v11261_v21  ;;  %v6031_v0 = vpop.f32.mrb[181].mxu0  ;;  %v6948_v37 = vpop.f32.mrb[174].mxu1 }
 0x46f   : > { %v6032_v57 = vpop.f32.mrb[182].mxu0  ;;  %v7045_v9 = vadd.f32 %v11280_v5, %v7006_v13  ;;  %v7007_v30 = vadd.f32 %v6948_v37, %v6017_v42  ;;  %v6950_v49 = vpop.f32.mrb[175].mxu1 }
 0x470   : > { %v6033_v27 = vadd.f32 %v6032_v57, %v11263_v33  ;;  %v6034_v12 = vpop.f32.mrb[183].mxu0 }
 0x471   : > { %v7109_v28 = vadd.f32 %v7077_v23, %v7045_v9  ;;  %v7046_v60 = vadd.f32 %v11280_v5, %v7007_v30  ;;  %v7085_v23 = vld [vmem:[%s7726_s27 + $0xf0] sm:$0xff]  ;;  %v7086_v30 = vld [vmem:[%s7726_s27 + $0xf8] sm:$0xff] }
 0x473   : > { %7141 = vst.msk [vmem:[%s11291_s8 + $0xb0] sm:$0xff] %vm228_vm0, %v7109_v28  ;;  %v7110_v21 = vadd.f32 %v7078_v6, %v7046_v60 }
 0x474   : > { %v6953_v58 = vpop.f32.mrb[176].mxu1 }
 0x475   : > { %v6037_v61 = vpop.f32.mrb[184].mxu0  ;;  %7142 = vst.msk [vmem:[%s11291_s8 + $0xb8] sm:$0xff] %vm228_vm0, %v7110_v21  ;;  %v7008_v33 = vadd.f32 %v6953_v58, %v6022_v31  ;;  %v6955_v46 = vpop.f32.mrb[177].mxu1 }
 0x476   : > { %v6038_v15 = vadd.f32 %v6037_v61, %v11265_v56  ;;  %v6039_v51 = vpop.f32.mrb[185].mxu0  ;;  %v6956_v35 = vpop.f32.mrb[178].mxu1 }
 0x477   : > { %v6040_v53 = vpop.f32.mrb[186].mxu0  ;;  %v7047_v50 = vadd.f32 %v11280_v5, %v7008_v33  ;;  %v7009_v10 = vadd.f32 %v6956_v35, %v6025_v32  ;;  %v6958_v38 = vpop.f32.mrb[179].mxu1 }
 0x478   : > { %v6041_v44 = vadd.f32 %v6040_v53, %v11268_v39  ;;  %v6042_v1 = vpop.f32.mrb[187].mxu0 }
 0x479   : > { %v7111_v42 = vadd.f32 %v7079_v43, %v7047_v50  ;;  %v7048_v18 = vadd.f32 %v11280_v5, %v7009_v10 }
 0x47b   : > { %7143 = vst.msk [vmem:[%s11291_s8 + $0xc0] sm:$0xff] %vm228_vm0, %v7111_v42  ;;  %v7112_v56 = vadd.f32 %v7080_v19, %v7048_v18 }
 0x47c   : > { %v6961_v17 = vpop.f32.mrb[180].mxu1 }
 0x47d   : > { %v6045_v59 = vpop.f32.mrb[188].mxu0  ;;  %7144 = vst.msk [vmem:[%s11291_s8 + $0xc8] sm:$0xff] %vm228_vm0, %v7112_v56  ;;  %v7010_v39 = vadd.f32 %v6961_v17, %v6030_v54  ;;  %v6963_v22 = vpop.f32.mrb[181].mxu1 }
 0x47e   : > { %v6046_v4 = vadd.f32 %v6045_v59, %v11271_v2  ;;  %v6047_v45 = vpop.f32.mrb[189].mxu0  ;;  %v6964_v16 = vpop.f32.mrb[182].mxu1 }
 0x47f   : > { %v6048_v7 = vpop.f32.mrb[190].mxu0  ;;  %v7049_v31 = vadd.f32 %v11280_v5, %v7010_v39  ;;  %v7011_v63 = vadd.f32 %v6964_v16, %v6033_v27  ;;  %v6966_v25 = vpop.f32.mrb[183].mxu1 }
 0x480   : > { %v6049_v26 = vadd.f32 %v6048_v7, %v11274_v3  ;;  %v6050_v8 = vpop.f32.mrb[191].mxu0  ;;  %v7083_v3 = vld [vmem:[%s7726_s27 + $0xe0] sm:$0xff] }
 0x481   : > { %v7113_v29 = vadd.f32 %v7081_v55, %v7049_v31  ;;  %v7050_v2 = vadd.f32 %v11280_v5, %v7011_v63 }
 0x483   : > { %7145 = vst.msk [vmem:[%s11291_s8 + $0xd0] sm:$0xff] %vm228_vm0, %v7113_v29  ;;  %v7114_v34 = vadd.f32 %v7082_v40, %v7050_v2 }
 0x484   : > { %v6969_v32 = vpop.f32.mrb[184].mxu1 }
 0x485   : > { %7146 = vst.msk [vmem:[%s11291_s8 + $0xd8] sm:$0xff] %vm228_vm0, %v7114_v34  ;;  %v7012_v36 = vadd.f32 %v6969_v32, %v6038_v15  ;;  %v6971_v62 = vpop.f32.mrb[185].mxu1 }
 0x486   : > { %v6972_v48 = vpop.f32.mrb[186].mxu1 }
 0x487   : > { %v7051_v14 = vadd.f32 %v11280_v5, %v7012_v36  ;;  %v7013_v41 = vadd.f32 %v6972_v48, %v6041_v44  ;;  %v6974_v20 = vpop.f32.mrb[187].mxu1 }
 0x489   : > { %v7115_v47 = vadd.f32 %v7083_v3, %v7051_v14  ;;  %v7052_v52 = vadd.f32 %v11280_v5, %v7013_v41 }
 0x48b   : > { %7147 = vst.msk [vmem:[%s11291_s8 + $0xe0] sm:$0xff] %vm228_vm0, %v7115_v47  ;;  %v7116_v54 = vadd.f32 %v7084_v24, %v7052_v52 }
 0x48c   : > { %v6977_v13 = vpop.f32.mrb[188].mxu1 }
 0x48d   : > { %7148 = vst.msk [vmem:[%s11291_s8 + $0xe8] sm:$0xff] %vm228_vm0, %v7116_v54  ;;  %v7014_v0 = vadd.f32 %v6977_v13, %v6046_v4  ;;  %v6979_v11 = vpop.f32.mrb[189].mxu1 }
 0x48e   : > { %v6980_v57 = vpop.f32.mrb[190].mxu1 }
 0x48f   : > { %v7053_v37 = vadd.f32 %v11280_v5, %v7014_v0  ;;  %v7015_v9 = vadd.f32 %v6980_v57, %v6049_v26  ;;  %v6982_v27 = vpop.f32.mrb[191].mxu1 }
 0x491   : > { %v7117_v12 = vadd.f32 %v7085_v23, %v7053_v37  ;;  %v7054_v49 = vadd.f32 %v11280_v5, %v7015_v9 }
 0x493   : > { %7149 = vst.msk [vmem:[%s11291_s8 + $0xf0] sm:$0xff] %vm228_vm0, %v7117_v12  ;;  %v7118_v6 = vadd.f32 %v7086_v30, %v7054_v49 }
 0x495   : > { %7150 = vst.msk [vmem:[%s11291_s8 + $0xf8] sm:$0xff] %vm228_vm0, %v7118_v6 }
 0x496 PF: > { %s15_s18 = sadd.s32 1, %s7659_s18  }
 0x497   : > { %p12_p4 = scmp.ge.s32.totalorder %s15_s18, 4  }
 0x499   :  { %14 = sbr.rel (!%p12_p4) target bundleno = 1 (0x1), region = 74 }

</bundles_post_ra>
